<compile_context>
chip_gen: v7x
topology: tpu7x:2x2x1
jax: 0.10.0
libtpu: 0.0.40
codegen_flags: <defaults>
</compile_context>

<pallas_src>
import math
import functools

import jax
import jax.numpy as jnp
from jax.experimental import pallas as pl
from jax.experimental.pallas import tpu as pltpu


# ----------------------------------------------------------------------------
# In-kernel math helpers (traced inside Pallas kernels)
# ----------------------------------------------------------------------------
def _layernorm(x, w, b, eps=1e-5):
    mu = jnp.mean(x, axis=-1, keepdims=True)
    var = jnp.mean((x - mu) ** 2, axis=-1, keepdims=True)
    return (x - mu) * jax.lax.rsqrt(var + eps) * w + b


def _mha_batched(q_in, kv_in, wq, wk, wv, bq, bk, bv, wo, bo):
    """PyTorch nn.MultiheadAttention (no mask, eval), all heads batched.

    q_in: (Tq, D) f32, kv_in: (Tk, D) f32
    wq/wk/wv: (H, D, dh) bf16, bq/bk/bv: (H, 1, dh) f32
    wo: (H, dh, D) bf16, bo: (1, D) f32
    """
    h, d, dh = wq.shape
    tq = q_in.shape[0]
    tk = kv_in.shape[0]
    scale = 1.0 / math.sqrt(dh)

    qb = jnp.broadcast_to(q_in.astype(jnp.bfloat16)[None], (h, tq, d))
    kb = jnp.broadcast_to(kv_in.astype(jnp.bfloat16)[None], (h, tk, d))

    q = jnp.einsum('htd,hdc->htc', qb, wq, preferred_element_type=jnp.float32) + bq
    k = jnp.einsum('htd,hdc->htc', kb, wk, preferred_element_type=jnp.float32) + bk
    v = jnp.einsum('htd,hdc->htc', kb, wv, preferred_element_type=jnp.float32) + bv

    s = jnp.einsum('hqc,hkc->hqk', (q * scale).astype(jnp.bfloat16),
                   k.astype(jnp.bfloat16), preferred_element_type=jnp.float32)
    s = s - jnp.max(s, axis=-1, keepdims=True)
    e = jnp.exp(s)
    p = e * pl.reciprocal(jnp.sum(e, axis=-1, keepdims=True), approx=True)

    ctx = jnp.einsum('hqk,hkc->hqc', p.astype(jnp.bfloat16),
                     v.astype(jnp.bfloat16), preferred_element_type=jnp.float32)
    # Output projection done per head and summed (== concat(heads) @ Wo.T).
    proj = jnp.einsum('htc,hcd->htd', ctx.astype(jnp.bfloat16), wo,
                      preferred_element_type=jnp.float32)
    return jnp.sum(proj, axis=0) + bo                       # (Tq, D)


def _ffn(x, w1, b1, w2, b2):
    h = jnp.maximum(jnp.dot(x.astype(jnp.bfloat16), w1,
                            preferred_element_type=jnp.float32) + b1, 0.0)
    return jnp.dot(h.astype(jnp.bfloat16), w2,
                   preferred_element_type=jnp.float32) + b2


# ----------------------------------------------------------------------------
# Fused image feature projection: (B*T, frame_dim) -> 512 -> latent
# ----------------------------------------------------------------------------
def _image_proj_kernel(x_ref, wr_ref, br_ref, wp_ref, bp_ref, o_ref, acc_ref):
    @pl.when(pl.program_id(1) == 0)
    def _():
        acc_ref[...] = jnp.zeros_like(acc_ref)

    acc_ref[...] += jnp.dot(x_ref[...].astype(jnp.bfloat16), wr_ref[...],
                            preferred_element_type=jnp.float32)

    @pl.when(pl.program_id(1) == pl.num_programs(1) - 1)
    def _():
        hid = acc_ref[...] + br_ref[...]
        o_ref[...] = jnp.dot(hid.astype(jnp.bfloat16), wp_ref[...],
                             preferred_element_type=jnp.float32) + bp_ref[...]


def _pick_m_tile(m, pref=256):
    if m <= pref:
        return m
    return pref if m % 8 == 0 else m


def _pick_k_tile(k, pref=512):
    if k <= pref:
        return k
    for cand in range(pref, 0, -128):          # multiples of 128 that divide k exactly
        if k % cand == 0:
            return cand
    return k


def pallas_image_projection(x, w_res_t, b_res, w_proj_t, b_proj):
    m, k = x.shape
    feat = w_res_t.shape[1]
    d = w_proj_t.shape[1]
    tm = _pick_m_tile(m)
    tk = _pick_k_tile(k)
    grid = (pl.cdiv(m, tm), k // tk)
    return pl.pallas_call(
        _image_proj_kernel,
        out_shape=jax.ShapeDtypeStruct((m, d), jnp.float32),
        grid=grid,
        in_specs=[pl.BlockSpec((tm, tk), lambda i, j: (i, j)),
                  pl.BlockSpec((tk, feat), lambda i, j: (j, 0)),
                  pl.BlockSpec((1, feat), lambda i, j: (0, 0)),
                  pl.BlockSpec((feat, d), lambda i, j: (0, 0)),
                  pl.BlockSpec((1, d), lambda i, j: (0, 0))],
        out_specs=pl.BlockSpec((tm, d), lambda i, j: (i, 0)),
        scratch_shapes=[pltpu.VMEM((tm, feat), jnp.float32)],
        compiler_params=pltpu.CompilerParams(
            dimension_semantics=("parallel", "arbitrary")),
    )(x, w_res_t, b_res, w_proj_t, b_proj)


# ----------------------------------------------------------------------------
# Fused encoder stack: posenc + relu + nlayers post-norm layers + final LayerNorm
# ----------------------------------------------------------------------------
_ENC_W = ('wq', 'wk', 'wv', 'bq', 'bk', 'bv', 'wo', 'bo',
          'w1', 'b1', 'w2', 'b2', 'nw', 'nb')


def _encoder_stack_kernel(feats_ref, pe_ref, *refs, nlayers):
    o_ref = refs[-1]
    p = dict(zip(_ENC_W, refs[:-1]))
    x = jnp.maximum(feats_ref[0] + pe_ref[...], 0.0)          # posenc + relu (src only)
    for l in range(nlayers):
        a = _mha_batched(x, x, p['wq'][l], p['wk'][l], p['wv'][l],
                         p['bq'][l], p['bk'][l], p['bv'][l],
                         p['wo'][l], p['bo'][l])
        x = _layernorm(x + a, p['nw'][2 * l], p['nb'][2 * l])
        h = _ffn(x, p['w1'][l], p['b1'][l], p['w2'][l], p['b2'][l])
        x = _layernorm(x + h, p['nw'][2 * l + 1], p['nb'][2 * l + 1])
    x = _layernorm(x, p['nw'][2 * nlayers], p['nb'][2 * nlayers])   # encoder final norm
    o_ref[0] = x


def pallas_encoder_stack(feats, pe, enc_w):
    bsz, t, d = feats.shape
    nlayers = enc_w['w1'].shape[0]
    arrays = [enc_w[n] for n in _ENC_W]
    w_specs = [pl.BlockSpec(a.shape, lambda b, nd=a.ndim: (0,) * nd) for a in arrays]
    return pl.pallas_call(
        functools.partial(_encoder_stack_kernel, nlayers=nlayers),
        out_shape=jax.ShapeDtypeStruct((bsz, t, d), jnp.float32),
        grid=(bsz,),
        in_specs=[pl.BlockSpec((1, t, d), lambda b: (b, 0, 0)),
                  pl.BlockSpec((t, d), lambda b: (0, 0))] + w_specs,
        out_specs=pl.BlockSpec((1, t, d), lambda b: (b, 0, 0)),
        compiler_params=pltpu.CompilerParams(dimension_semantics=("parallel",)),
    )(feats, pe, *arrays)


# ----------------------------------------------------------------------------
# Fused decoder stack: nlayers (self-attn + cross-attn + FFN) + final LayerNorm
# ----------------------------------------------------------------------------
_DEC_W = ('swq', 'swk', 'swv', 'sbq', 'sbk', 'sbv', 'swo', 'sbo',
          'cwq', 'cwk', 'cwv', 'cbq', 'cbk', 'cbv', 'cwo', 'cbo',
          'w1', 'b1', 'w2', 'b2', 'nw', 'nb')


def _decoder_stack_kernel(tok_ref, mem_ref, *refs, nlayers):
    o_ref = refs[-1]
    p = dict(zip(_DEC_W, refs[:-1]))
    x = tok_ref[...]                                          # (W, D) decoding tokens
    m = mem_ref[0]                                            # (T, D) encoder memory
    for l in range(nlayers):
        a = _mha_batched(x, x, p['swq'][l], p['swk'][l], p['swv'][l],
                         p['sbq'][l], p['sbk'][l], p['sbv'][l],
                         p['swo'][l], p['sbo'][l])
        x = _layernorm(x + a, p['nw'][3 * l], p['nb'][3 * l])
        a = _mha_batched(x, m, p['cwq'][l], p['cwk'][l], p['cwv'][l],
                         p['cbq'][l], p['cbk'][l], p['cbv'][l],
                         p['cwo'][l], p['cbo'][l])
        x = _layernorm(x + a, p['nw'][3 * l + 1], p['nb'][3 * l + 1])
        h = _ffn(x, p['w1'][l], p['b1'][l], p['w2'][l], p['b2'][l])
        x = _layernorm(x + h, p['nw'][3 * l + 2], p['nb'][3 * l + 2])
    x = _layernorm(x, p['nw'][3 * nlayers], p['nb'][3 * nlayers])   # decoder final norm
    o_ref[0] = x


def pallas_decoder_stack(tokens, mem, dec_w):
    bsz, t, d = mem.shape
    w = tokens.shape[0]
    nlayers = dec_w['w1'].shape[0]
    arrays = [dec_w[n] for n in _DEC_W]
    w_specs = [pl.BlockSpec(a.shape, lambda b, nd=a.ndim: (0,) * nd) for a in arrays]
    return pl.pallas_call(
        functools.partial(_decoder_stack_kernel, nlayers=nlayers),
        out_shape=jax.ShapeDtypeStruct((bsz, w, d), jnp.float32),
        grid=(bsz,),
        in_specs=[pl.BlockSpec((w, d), lambda b: (0, 0)),
                  pl.BlockSpec((1, t, d), lambda b: (b, 0, 0))] + w_specs,
        out_specs=pl.BlockSpec((1, w, d), lambda b: (b, 0, 0)),
        compiler_params=pltpu.CompilerParams(dimension_semantics=("parallel",)),
    )(tokens, mem, *arrays)


# ----------------------------------------------------------------------------
# Head: relu(joined) @ Wh.T + bh
# ----------------------------------------------------------------------------
def _head_kernel(x_ref, w_ref, b_ref, o_ref):
    x = jnp.maximum(x_ref[...], 0.0)
    o_ref[...] = jnp.dot(x.astype(jnp.bfloat16), w_ref[...],
                         preferred_element_type=jnp.float32) + b_ref[...]


def pallas_head(x, w_t, b):
    m, k = x.shape
    n = w_t.shape[1]
    return pl.pallas_call(
        _head_kernel,
        out_shape=jax.ShapeDtypeStruct((m, n), jnp.float32),
        grid=(1,),
        in_specs=[pl.BlockSpec((m, k), lambda i: (0, 0)),
                  pl.BlockSpec((k, n), lambda i: (0, 0)),
                  pl.BlockSpec((1, n), lambda i: (0, 0))],
        out_specs=pl.BlockSpec((m, n), lambda i: (0, 0)),
    )(x, w_t, b)


# ----------------------------------------------------------------------------
# Parameter init (synthetic, deterministic) — generated in PyTorch layout, then
# converted to the pre-transposed / head-split / bf16 layouts the kernels use.
# ----------------------------------------------------------------------------
def _dense(key, out_dim, in_dim, scale=0.05):
    kw, kb = jax.random.split(key)
    w = scale * jax.random.normal(kw, (out_dim, in_dim), jnp.float32)
    b = scale * jax.random.normal(kb, (out_dim,), jnp.float32)
    return w, b


def _split_heads_in(w, b, nheads):
    # w: (D_out, D_in) torch Linear layout -> (H, D_in, dh); b -> (H, 1, dh)
    d_out, d_in = w.shape
    dh = d_out // nheads
    w_h = w.T.reshape(d_in, nheads, dh).transpose(1, 0, 2)
    return w_h, b.reshape(nheads, 1, dh)


def _split_heads_out(w, b, nheads):
    # attention out_proj: w (D_out, D_in=H*dh) -> (H, dh, D_out); b -> (1, D_out)
    d_out, d_in = w.shape
    dh = d_in // nheads
    return w.T.reshape(nheads, dh, d_out), b.reshape(1, d_out)


def _attn_params(key, d, nheads):
    k1, k2 = jax.random.split(key)
    in_w, in_b = _dense(k1, 3 * d, d)           # torch in_proj_weight / in_proj_bias
    out_w, out_b = _dense(k2, d, d)             # torch out_proj
    wq, bq = _split_heads_in(in_w[:d], in_b[:d], nheads)
    wk, bk = _split_heads_in(in_w[d:2 * d], in_b[d:2 * d], nheads)
    wv, bv = _split_heads_in(in_w[2 * d:], in_b[2 * d:], nheads)
    wo, bo = _split_heads_out(out_w, out_b, nheads)
    return (wq, wk, wv, bq, bk, bv, wo, bo)


def _ffn_params(key, d, dff):
    k1, k2 = jax.random.split(key)
    w1, b1 = _dense(k1, dff, d)
    w2, b2 = _dense(k2, d, dff)
    return (w1.T, b1.reshape(1, dff), w2.T, b2.reshape(1, d))


def _init_encoder(key, d, dff, nheads, nlayers):
    names = ('wq', 'wk', 'wv', 'bq', 'bk', 'bv', 'wo', 'bo', 'w1', 'b1', 'w2', 'b2')
    bf16 = ('wq', 'wk', 'wv', 'wo', 'w1', 'w2')
    per = []
    for k in jax.random.split(key, nlayers):
        ka, kf = jax.random.split(k)
        per.append(_attn_params(ka, d, nheads) + _ffn_params(kf, d, dff))
    out = {}
    for i, n in enumerate(names):
        s = jnp.stack([p[i] for p in per], axis=0)
        out[n] = s.astype(jnp.bfloat16) if n in bf16 else s
    out['nw'] = jnp.ones((2 * nlayers + 1, 1, d), jnp.float32)
    out['nb'] = jnp.zeros((2 * nlayers + 1, 1, d), jnp.float32)
    return out


def _init_decoder(key, d, dff, nheads, nlayers):
    names = ('swq', 'swk', 'swv', 'sbq', 'sbk', 'sbv', 'swo', 'sbo',
             'cwq', 'cwk', 'cwv', 'cbq', 'cbk', 'cbv', 'cwo', 'cbo',
             'w1', 'b1', 'w2', 'b2')
    bf16 = ('swq', 'swk', 'swv', 'swo', 'cwq', 'cwk', 'cwv', 'cwo', 'w1', 'w2')
    per = []
    for k in jax.random.split(key, nlayers):
        ks, kc, kf = jax.random.split(k, 3)
        per.append(_attn_params(ks, d, nheads) + _attn_params(kc, d, nheads)
                   + _ffn_params(kf, d, dff))
    out = {}
    for i, n in enumerate(names):
        s = jnp.stack([p[i] for p in per], axis=0)
        out[n] = s.astype(jnp.bfloat16) if n in bf16 else s
    out['nw'] = jnp.ones((3 * nlayers + 1, 1, d), jnp.float32)
    out['nb'] = jnp.zeros((3 * nlayers + 1, 1, d), jnp.float32)
    return out


def init_params(key, *, frame_dim, state_dim, action_dim, latent, waypoints,
                nheads=8, nlayers=2, frame_stack=1):
    ks = jax.random.split(key, 6)
    # TODO(synk): ResnetFeatures internals are not in the reference module; a
    # deterministic per-frame linear projection to 512 features stands in.
    res_w, res_b = _dense(ks[0], 512, frame_dim)
    proj_w, proj_b = _dense(ks[1], latent, 512)                # Linear(512, latent)
    tokens = 0.05 * jax.random.normal(ks[2], (waypoints, latent), jnp.float32)
    head_w, head_b = _dense(ks[5], action_dim, latent + state_dim * frame_stack)
    return dict(
        res_w_t=res_w.T.astype(jnp.bfloat16), res_b=res_b.reshape(1, -1),
        proj_w_t=proj_w.T.astype(jnp.bfloat16), proj_b=proj_b.reshape(1, -1),
        tokens=tokens,
        enc=_init_encoder(ks[3], latent, latent, nheads, nlayers),
        dec=_init_decoder(ks[4], latent, latent, nheads, nlayers),
        head_w_t=head_w.T.astype(jnp.bfloat16), head_b=head_b.reshape(1, -1),
    )


# ----------------------------------------------------------------------------
# Forward pass (glue in JAX, heavy lifting in 3-4 Pallas kernels)
# ----------------------------------------------------------------------------
def sinusoidal_pe(t, d):
    pos = jnp.arange(t, dtype=jnp.float32)[:, None]
    div = jnp.exp(jnp.arange(0, d, 2, dtype=jnp.float32) * (-math.log(10000.0) / d))
    pe = jnp.zeros((t, d), jnp.float32)
    pe = pe.at[:, 0::2].set(jnp.sin(pos * div))
    pe = pe.at[:, 1::2].set(jnp.cos(pos * div))
    return pe


def full_transformer_forward(params, state, context, ims, *,
                             trajectory=False, no_state=False):
    # context: (B, Tc, C, H, W), ims: (B, Ti, C, H, W) -> cat along time axis 1
    inps = jnp.concatenate([context, ims], axis=1)
    bsz, t = inps.shape[0], inps.shape[1]
    d = params['tokens'].shape[1]

    # Fused per-frame feature projection (ResnetFeatures stand-in + Linear(512, latent)).
    flat = inps.reshape(bsz * t, -1)
    feats = pallas_image_projection(flat, params['res_w_t'], params['res_b'],
                                    params['proj_w_t'], params['proj_b'])
    feats = feats.reshape(bsz, t, d)

    # Fused: posenc + relu + 2 encoder layers + encoder LayerNorm.
    mem = pallas_encoder_stack(feats, sinusoidal_pe(t, d), params['enc'])

    # Fused: 2 decoder layers + decoder LayerNorm; decoding tokens shared across batch.
    out = pallas_decoder_stack(params['tokens'], mem, params['dec'])      # (B, W, D)

    if trajectory:
        w = out.shape[1]
        state_ext = jnp.broadcast_to(state[:, None, :], (bsz, w, state.shape[-1]))
        joined = jnp.concatenate([out, state_ext], axis=-1).reshape(bsz * w, -1)
        res = pallas_head(joined, params['head_w_t'], params['head_b'])
        return res.reshape(bsz, w, -1)

    x = out[:, -1, :]                                                     # res[..., -1, :]
    joined = x if no_state else jnp.concatenate([x, state], axis=-1)
    return pallas_head(joined, params['head_w_t'], params['head_b'])


# ----------------------------------------------------------------------------
if __name__ == "__main__":
    B = 2
    STATE_DIM = 4
    ACTION_DIM = 7
    C, H, W_IMG = 3, 16, 16
    T_CTX, T_OBS = 3, 2
    LATENT = 32          # latent_size != 512 -> Linear(512, latent) present
    WAYPOINTS = 4
    NHEADS = 8
    NLAYERS = 2

    key = jax.random.PRNGKey(0)
    kp, ks, kc, ki = jax.random.split(key, 4)
    params = init_params(kp, frame_dim=C * H * W_IMG, state_dim=STATE_DIM,
                         action_dim=ACTION_DIM, latent=LATENT,
                         waypoints=WAYPOINTS, nheads=NHEADS, nlayers=NLAYERS)

    state = jax.random.normal(ks, (B, STATE_DIM), jnp.float32)
    context = jax.random.normal(kc, (B, T_CTX, C, H, W_IMG), jnp.float32)
    ims = jax.random.normal(ki, (B, T_OBS, C, H, W_IMG), jnp.float32)

    fwd = jax.jit(full_transformer_forward)
    out = fwd(params, state, context, ims)
    out = jax.block_until_ready(out)
    assert out.shape == (B, ACTION_DIM), out.shape
    assert bool(jnp.all(jnp.isfinite(out)))
    print("KERNEL_OK")
</pallas_src>

<mosaic_0001>
module attributes {stable_mosaic.version = 11 : i64} {
  func.func @_image_proj_kernel(%arg0: i32, %arg1: i32, %arg2: memref<10x384xf32, #tpu.memory_space<vmem>>, %arg3: memref<384x512xbf16, #tpu.memory_space<vmem>>, %arg4: memref<1x512xf32, #tpu.memory_space<vmem>>, %arg5: memref<512x32xbf16, #tpu.memory_space<vmem>>, %arg6: memref<1x32xf32, #tpu.memory_space<vmem>>, %arg7: memref<10x32xf32, #tpu.memory_space<vmem>>, %arg8: memref<10x512xf32, #tpu.memory_space<vmem>>) attributes {dimension_semantics = [#tpu.dimension_semantics<parallel>, #tpu.dimension_semantics<arbitrary>], iteration_bounds = array<i64: 1, 2>, scalar_prefetch = 0 : i64, scratch_operands = 1 : i64, tpu.core_type = #tpu.core_type<tc>, window_params = [{transform_indices = @transform_0, window_bounds = array<i64: 10, 384>}, {transform_indices = @transform_1, window_bounds = array<i64: 384, 512>}, {pipeline_mode = #tpu.pipeline_mode<synchronous>, transform_indices = @transform_2, window_bounds = array<i64: 1, 512>}, {pipeline_mode = #tpu.pipeline_mode<synchronous>, transform_indices = @transform_3, window_bounds = array<i64: 512, 32>}, {pipeline_mode = #tpu.pipeline_mode<synchronous>, transform_indices = @transform_4, window_bounds = array<i64: 1, 32>}, {transform_indices = @transform_5, window_bounds = array<i64: 10, 32>}]} {
    %c0_i32 = arith.constant 0 : i32
    %0 = arith.cmpi eq, %arg1, %c0_i32 : i32
    %1 = arith.extui %0 : i1 to i32
    %c0_i32_0 = arith.constant 0 : i32
    %2 = arith.cmpi ne, %1, %c0_i32_0 : i32
    scf.if %2 {
      %cst_9 = arith.constant 0.000000e+00 : f32
      %13 = vector.broadcast %cst_9 : f32 to vector<10x512xf32>
      %c0_10 = arith.constant 0 : index
      %c0_11 = arith.constant 0 : index
      %14 = vector.load %arg8[%c0_10, %c0_11] : memref<10x512xf32, #tpu.memory_space<vmem>>, vector<10x512xf32>
      tpu.vector_store %arg8[%c0_10, %c0_11], %13 {strides = array<i32>} : memref<10x512xf32, #tpu.memory_space<vmem>>, vector<10x512xf32>,
    } else {
    }
    %c0 = arith.constant 0 : index
    %c0_1 = arith.constant 0 : index
    %3 = vector.load %arg8[%c0, %c0_1] : memref<10x512xf32, #tpu.memory_space<vmem>>, vector<10x512xf32>
    %c0_2 = arith.constant 0 : index
    %c0_3 = arith.constant 0 : index
    %4 = vector.load %arg2[%c0_2, %c0_3] : memref<10x384xf32, #tpu.memory_space<vmem>>, vector<10x384xf32>
    %5 = arith.truncf %4 : vector<10x384xf32> to vector<10x384xbf16>
    %c0_4 = arith.constant 0 : index
    %c0_5 = arith.constant 0 : index
    %6 = vector.load %arg3[%c0_4, %c0_5] : memref<384x512xbf16, #tpu.memory_space<vmem>>, vector<384x512xbf16>
    %cst = arith.constant dense<0.000000e+00> : vector<10x512xf32>
    %7 = tpu.matmul %5, %6, %cst {dimension_numbers = #tpu.dot_dimension_numbers<[1], [0], [0], [1], [0, 0, 1, 1], [], []>} : vector<10x384xbf16>, vector<384x512xbf16>, vector<10x512xf32> -> vector<10x512xf32>
    %8 = arith.addf %3, %7 : vector<10x512xf32>
    %c0_6 = arith.constant 0 : index
    %c0_7 = arith.constant 0 : index
    %9 = vector.load %arg8[%c0_6, %c0_7] : memref<10x512xf32, #tpu.memory_space<vmem>>, vector<10x512xf32>
    tpu.vector_store %arg8[%c0_6, %c0_7], %8 {strides = array<i32>} : memref<10x512xf32, #tpu.memory_space<vmem>>, vector<10x512xf32>,
    %c1_i32 = arith.constant 1 : i32
    %10 = arith.cmpi eq, %arg1, %c1_i32 : i32
    %11 = arith.extui %10 : i1 to i32
    %c0_i32_8 = arith.constant 0 : i32
    %12 = arith.cmpi ne, %11, %c0_i32_8 : i32
    scf.if %12 {
      %c0_9 = arith.constant 0 : index
      %c0_10 = arith.constant 0 : index
      %13 = vector.load %arg8[%c0_9, %c0_10] : memref<10x512xf32, #tpu.memory_space<vmem>>, vector<10x512xf32>
      %c0_11 = arith.constant 0 : index
      %c0_12 = arith.constant 0 : index
      %14 = vector.load %arg4[%c0_11, %c0_12] : memref<1x512xf32, #tpu.memory_space<vmem>>, vector<1x512xf32>
      %15 = vector.broadcast %14 : vector<1x512xf32> to vector<10x512xf32>
      %16 = arith.addf %13, %15 : vector<10x512xf32>
      %17 = arith.truncf %16 : vector<10x512xf32> to vector<10x512xbf16>
      %c0_13 = arith.constant 0 : index
      %c0_14 = arith.constant 0 : index
      %18 = vector.load %arg5[%c0_13, %c0_14] : memref<512x32xbf16, #tpu.memory_space<vmem>>, vector<512x32xbf16>
      %cst_15 = arith.constant dense<0.000000e+00> : vector<10x32xf32>
      %19 = tpu.matmul %17, %18, %cst_15 {dimension_numbers = #tpu.dot_dimension_numbers<[1], [0], [0], [1], [0, 0, 1, 1], [], []>} : vector<10x512xbf16>, vector<512x32xbf16>, vector<10x32xf32> -> vector<10x32xf32>
      %c0_16 = arith.constant 0 : index
      %c0_17 = arith.constant 0 : index
      %20 = vector.load %arg6[%c0_16, %c0_17] : memref<1x32xf32, #tpu.memory_space<vmem>>, vector<1x32xf32>
      %21 = vector.broadcast %20 : vector<1x32xf32> to vector<10x32xf32>
      %22 = arith.addf %19, %21 : vector<10x32xf32>
      %c0_18 = arith.constant 0 : index
      %c0_19 = arith.constant 0 : index
      %23 = vector.load %arg7[%c0_18, %c0_19] : memref<10x32xf32, #tpu.memory_space<vmem>>, vector<10x32xf32>
      tpu.vector_store %arg7[%c0_18, %c0_19], %22 {strides = array<i32>} : memref<10x32xf32, #tpu.memory_space<vmem>>, vector<10x32xf32>,
    } else {
    }
    return
  }
  func.func @transform_0(%arg0: i32, %arg1: i32) -> (i32, i32) {
    %c0_i32 = arith.constant 0 : i32
    return %arg0, %arg1 : i32, i32
  }
  func.func @transform_1(%arg0: i32, %arg1: i32) -> (i32, i32) {
    %c0_i32 = arith.constant 0 : i32
    %c0_i32_0 = arith.constant 0 : i32
    return %arg1, %c0_i32 : i32, i32
  }
  func.func @transform_2(%arg0: i32, %arg1: i32) -> (i32, i32) {
    %c0_i32 = arith.constant 0 : i32
    %c0_i32_0 = arith.constant 0 : i32
    %c0_i32_1 = arith.constant 0 : i32
    return %c0_i32, %c0_i32_0 : i32, i32
  }
  func.func @transform_3(%arg0: i32, %arg1: i32) -> (i32, i32) {
    %c0_i32 = arith.constant 0 : i32
    %c0_i32_0 = arith.constant 0 : i32
    %c0_i32_1 = arith.constant 0 : i32
    return %c0_i32, %c0_i32_0 : i32, i32
  }
  func.func @transform_4(%arg0: i32, %arg1: i32) -> (i32, i32) {
    %c0_i32 = arith.constant 0 : i32
    %c0_i32_0 = arith.constant 0 : i32
    %c0_i32_1 = arith.constant 0 : i32
    return %c0_i32, %c0_i32_0 : i32, i32
  }
  func.func @transform_5(%arg0: i32, %arg1: i32) -> (i32, i32) {
    %c0_i32 = arith.constant 0 : i32
    %c0_i32_0 = arith.constant 0 : i32
    return %arg0, %c0_i32 : i32, i32
  }
}

module attributes {stable_mosaic.version = 11 : i64} {
  func.func @_encoder_stack_kernel(%arg0: i32, %arg1: memref<1x5x32xf32, #tpu.memory_space<vmem>>, %arg2: memref<5x32xf32, #tpu.memory_space<vmem>>, %arg3: memref<2x8x32x4xbf16, #tpu.memory_space<vmem>>, %arg4: memref<2x8x32x4xbf16, #tpu.memory_space<vmem>>, %arg5: memref<2x8x32x4xbf16, #tpu.memory_space<vmem>>, %arg6: memref<2x8x1x4xf32, #tpu.memory_space<vmem>>, %arg7: memref<2x8x1x4xf32, #tpu.memory_space<vmem>>, %arg8: memref<2x8x1x4xf32, #tpu.memory_space<vmem>>, %arg9: memref<2x8x4x32xbf16, #tpu.memory_space<vmem>>, %arg10: memref<2x1x32xf32, #tpu.memory_space<vmem>>, %arg11: memref<2x32x32xbf16, #tpu.memory_space<vmem>>, %arg12: memref<2x1x32xf32, #tpu.memory_space<vmem>>, %arg13: memref<2x32x32xbf16, #tpu.memory_space<vmem>>, %arg14: memref<2x1x32xf32, #tpu.memory_space<vmem>>, %arg15: memref<5x1x32xf32, #tpu.memory_space<vmem>>, %arg16: memref<5x1x32xf32, #tpu.memory_space<vmem>>, %arg17: memref<1x5x32xf32, #tpu.memory_space<vmem>>) attributes {dimension_semantics = [#tpu.dimension_semantics<parallel>], iteration_bounds = array<i64: 2>, scalar_prefetch = 0 : i64, scratch_operands = 0 : i64, tpu.core_type = #tpu.core_type<tc>, window_params = [{transform_indices = @transform_0, window_bounds = array<i64: 1, 5, 32>}, {pipeline_mode = #tpu.pipeline_mode<synchronous>, transform_indices = @transform_1, window_bounds = array<i64: 5, 32>}, {pipeline_mode = #tpu.pipeline_mode<synchronous>, transform_indices = @transform_2, window_bounds = array<i64: 2, 8, 32, 4>}, {pipeline_mode = #tpu.pipeline_mode<synchronous>, transform_indices = @transform_3, window_bounds = array<i64: 2, 8, 32, 4>}, {pipeline_mode = #tpu.pipeline_mode<synchronous>, transform_indices = @transform_4, window_bounds = array<i64: 2, 8, 32, 4>}, {pipeline_mode = #tpu.pipeline_mode<synchronous>, transform_indices = @transform_5, window_bounds = array<i64: 2, 8, 1, 4>}, {pipeline_mode = #tpu.pipeline_mode<synchronous>, transform_indices = @transform_6, window_bounds = array<i64: 2, 8, 1, 4>}, {pipeline_mode = #tpu.pipeline_mode<synchronous>, transform_indices = @transform_7, window_bounds = array<i64: 2, 8, 1, 4>}, {pipeline_mode = #tpu.pipeline_mode<synchronous>, transform_indices = @transform_8, window_bounds = array<i64: 2, 8, 4, 32>}, {pipeline_mode = #tpu.pipeline_mode<synchronous>, transform_indices = @transform_9, window_bounds = array<i64: 2, 1, 32>}, {pipeline_mode = #tpu.pipeline_mode<synchronous>, transform_indices = @transform_10, window_bounds = array<i64: 2, 32, 32>}, {pipeline_mode = #tpu.pipeline_mode<synchronous>, transform_indices = @transform_11, window_bounds = array<i64: 2, 1, 32>}, {pipeline_mode = #tpu.pipeline_mode<synchronous>, transform_indices = @transform_12, window_bounds = array<i64: 2, 32, 32>}, {pipeline_mode = #tpu.pipeline_mode<synchronous>, transform_indices = @transform_13, window_bounds = array<i64: 2, 1, 32>}, {pipeline_mode = #tpu.pipeline_mode<synchronous>, transform_indices = @transform_14, window_bounds = array<i64: 5, 1, 32>}, {pipeline_mode = #tpu.pipeline_mode<synchronous>, transform_indices = @transform_15, window_bounds = array<i64: 5, 1, 32>}, {transform_indices = @transform_16, window_bounds = array<i64: 1, 5, 32>}]} {
    %c0 = arith.constant 0 : index
    %c0_0 = arith.constant 0 : index
    %c0_1 = arith.constant 0 : index
    %0 = vector.load %arg1[%c0, %c0_0, %c0_1] : memref<1x5x32xf32, #tpu.memory_space<vmem>>, vector<1x5x32xf32>
    %1 = vector.shape_cast %0 : vector<1x5x32xf32> to vector<5x32xf32>
    %c0_2 = arith.constant 0 : index
    %c0_3 = arith.constant 0 : index
    %2 = vector.load %arg2[%c0_2, %c0_3] : memref<5x32xf32, #tpu.memory_space<vmem>>, vector<5x32xf32>
    %3 = arith.addf %1, %2 : vector<5x32xf32>
    %cst = arith.constant 0.000000e+00 : f32
    %4 = vector.broadcast %cst : f32 to vector<5x32xf32>
    %5 = arith.maximumf %3, %4 : vector<5x32xf32>
    %c0_4 = arith.constant 0 : index
    %c0_5 = arith.constant 0 : index
    %c0_6 = arith.constant 0 : index
    %c0_7 = arith.constant 0 : index
    %6 = vector.load %arg3[%c0_4, %c0_5, %c0_6, %c0_7] : memref<2x8x32x4xbf16, #tpu.memory_space<vmem>>, vector<1x8x32x4xbf16>
    %7 = vector.shape_cast %6 : vector<1x8x32x4xbf16> to vector<8x32x4xbf16>
    %c0_8 = arith.constant 0 : index
    %c0_9 = arith.constant 0 : index
    %c0_10 = arith.constant 0 : index
    %c0_11 = arith.constant 0 : index
    %8 = vector.load %arg4[%c0_8, %c0_9, %c0_10, %c0_11] : memref<2x8x32x4xbf16, #tpu.memory_space<vmem>>, vector<1x8x32x4xbf16>
    %9 = vector.shape_cast %8 : vector<1x8x32x4xbf16> to vector<8x32x4xbf16>
    %c0_12 = arith.constant 0 : index
    %c0_13 = arith.constant 0 : index
    %c0_14 = arith.constant 0 : index
    %c0_15 = arith.constant 0 : index
    %10 = vector.load %arg5[%c0_12, %c0_13, %c0_14, %c0_15] : memref<2x8x32x4xbf16, #tpu.memory_space<vmem>>, vector<1x8x32x4xbf16>
    %11 = vector.shape_cast %10 : vector<1x8x32x4xbf16> to vector<8x32x4xbf16>
    %c0_16 = arith.constant 0 : index
    %c0_17 = arith.constant 0 : index
    %c0_18 = arith.constant 0 : index
    %c0_19 = arith.constant 0 : index
    %12 = vector.load %arg6[%c0_16, %c0_17, %c0_18, %c0_19] : memref<2x8x1x4xf32, #tpu.memory_space<vmem>>, vector<1x8x1x4xf32>
    %13 = vector.shape_cast %12 : vector<1x8x1x4xf32> to vector<8x1x4xf32>
    %c0_20 = arith.constant 0 : index
    %c0_21 = arith.constant 0 : index
    %c0_22 = arith.constant 0 : index
    %c0_23 = arith.constant 0 : index
    %14 = vector.load %arg7[%c0_20, %c0_21, %c0_22, %c0_23] : memref<2x8x1x4xf32, #tpu.memory_space<vmem>>, vector<1x8x1x4xf32>
    %15 = vector.shape_cast %14 : vector<1x8x1x4xf32> to vector<8x1x4xf32>
    %c0_24 = arith.constant 0 : index
    %c0_25 = arith.constant 0 : index
    %c0_26 = arith.constant 0 : index
    %c0_27 = arith.constant 0 : index
    %16 = vector.load %arg8[%c0_24, %c0_25, %c0_26, %c0_27] : memref<2x8x1x4xf32, #tpu.memory_space<vmem>>, vector<1x8x1x4xf32>
    %17 = vector.shape_cast %16 : vector<1x8x1x4xf32> to vector<8x1x4xf32>
    %c0_28 = arith.constant 0 : index
    %c0_29 = arith.constant 0 : index
    %c0_30 = arith.constant 0 : index
    %c0_31 = arith.constant 0 : index
    %18 = vector.load %arg9[%c0_28, %c0_29, %c0_30, %c0_31] : memref<2x8x4x32xbf16, #tpu.memory_space<vmem>>, vector<1x8x4x32xbf16>
    %19 = vector.shape_cast %18 : vector<1x8x4x32xbf16> to vector<8x4x32xbf16>
    %c0_32 = arith.constant 0 : index
    %c0_33 = arith.constant 0 : index
    %c0_34 = arith.constant 0 : index
    %20 = vector.load %arg10[%c0_32, %c0_33, %c0_34] : memref<2x1x32xf32, #tpu.memory_space<vmem>>, vector<1x1x32xf32>
    %21 = vector.shape_cast %20 : vector<1x1x32xf32> to vector<1x32xf32>
    %22 = arith.truncf %5 : vector<5x32xf32> to vector<5x32xbf16>
    %23 = vector.shape_cast %22 : vector<5x32xbf16> to vector<1x5x32xbf16>
    %24 = vector.shape_cast %23 : vector<1x5x32xbf16> to vector<1x5x32xbf16>
    %25 = vector.broadcast %24 : vector<1x5x32xbf16> to vector<8x5x32xbf16>
    %26 = arith.truncf %5 : vector<5x32xf32> to vector<5x32xbf16>
    %27 = vector.shape_cast %26 : vector<5x32xbf16> to vector<1x5x32xbf16>
    %28 = vector.shape_cast %27 : vector<1x5x32xbf16> to vector<1x5x32xbf16>
    %29 = vector.broadcast %28 : vector<1x5x32xbf16> to vector<8x5x32xbf16>
    "tpu.trace_start"() <{level = 10 : i32, message = "htd,hdc->htc"}> : () -> ()
    %cst_35 = arith.constant dense<0.000000e+00> : vector<8x5x4xf32>
    %30 = tpu.matmul %25, %7, %cst_35 {dimension_numbers = #tpu.dot_dimension_numbers<[2], [1], [1], [2], [0, 0, 0, 1, 1, 2], [0], [0]>} : vector<8x5x32xbf16>, vector<8x32x4xbf16>, vector<8x5x4xf32> -> vector<8x5x4xf32>
    "tpu.trace_stop"() : () -> ()
    %31 = vector.broadcast %13 : vector<8x1x4xf32> to vector<8x5x4xf32>
    %32 = arith.addf %30, %31 : vector<8x5x4xf32>
    "tpu.trace_start"() <{level = 10 : i32, message = "htd,hdc->htc"}> : () -> ()
    %cst_36 = arith.constant dense<0.000000e+00> : vector<8x5x4xf32>
    %33 = tpu.matmul %29, %9, %cst_36 {dimension_numbers = #tpu.dot_dimension_numbers<[2], [1], [1], [2], [0, 0, 0, 1, 1, 2], [0], [0]>} : vector<8x5x32xbf16>, vector<8x32x4xbf16>, vector<8x5x4xf32> -> vector<8x5x4xf32>
    "tpu.trace_stop"() : () -> ()
    %34 = vector.broadcast %15 : vector<8x1x4xf32> to vector<8x5x4xf32>
    %35 = arith.addf %33, %34 : vector<8x5x4xf32>
    "tpu.trace_start"() <{level = 10 : i32, message = "htd,hdc->htc"}> : () -> ()
    %cst_37 = arith.constant dense<0.000000e+00> : vector<8x5x4xf32>
    %36 = tpu.matmul %29, %11, %cst_37 {dimension_numbers = #tpu.dot_dimension_numbers<[2], [1], [1], [2], [0, 0, 0, 1, 1, 2], [0], [0]>} : vector<8x5x32xbf16>, vector<8x32x4xbf16>, vector<8x5x4xf32> -> vector<8x5x4xf32>
    "tpu.trace_stop"() : () -> ()
    %37 = vector.broadcast %17 : vector<8x1x4xf32> to vector<8x5x4xf32>
    %38 = arith.addf %36, %37 : vector<8x5x4xf32>
    %cst_38 = arith.constant 5.000000e-01 : f32
    %39 = vector.broadcast %cst_38 : f32 to vector<8x5x4xf32>
    %40 = arith.mulf %32, %39 : vector<8x5x4xf32>
    %41 = arith.truncf %40 : vector<8x5x4xf32> to vector<8x5x4xbf16>
    %42 = arith.truncf %35 : vector<8x5x4xf32> to vector<8x5x4xbf16>
    "tpu.trace_start"() <{level = 10 : i32, message = "hqc,hkc->hqk"}> : () -> ()
    %cst_39 = arith.constant dense<0.000000e+00> : vector<8x5x5xf32>
    %43 = tpu.matmul %41, %42, %cst_39 {dimension_numbers = #tpu.dot_dimension_numbers<[2], [2], [1], [1], [0, 0, 0, 1, 1, 1], [0], [0]>} : vector<8x5x4xbf16>, vector<8x5x4xbf16>, vector<8x5x5xf32> -> vector<8x5x5xf32>
    "tpu.trace_stop"() : () -> ()
    %cst_40 = arith.constant dense<0xFF800000> : vector<8x5xf32>
    %44 = vector.multi_reduction <maximumf>, %43, %cst_40 [2] : vector<8x5x5xf32> to vector<8x5xf32>
    %45 = vector.shape_cast %44 : vector<8x5xf32> to vector<8x5x1xf32>
    %46 = vector.broadcast %45 : vector<8x5x1xf32> to vector<8x5x5xf32>
    %47 = arith.subf %43, %46 : vector<8x5x5xf32>
    %48 = math.exp %47 : vector<8x5x5xf32>
    %cst_41 = arith.constant dense<0.000000e+00> : vector<8x5xf32>
    %49 = vector.multi_reduction <add>, %48, %cst_41 [2] : vector<8x5x5xf32> to vector<8x5xf32>
    %50 = vector.shape_cast %49 : vector<8x5xf32> to vector<8x5x1xf32>
    %51 = tpu.reciprocal %50 {approx = true} : vector<8x5x1xf32> -> vector<8x5x1xf32>
    %52 = vector.broadcast %51 : vector<8x5x1xf32> to vector<8x5x5xf32>
    %53 = arith.mulf %48, %52 : vector<8x5x5xf32>
    %54 = arith.truncf %53 : vector<8x5x5xf32> to vector<8x5x5xbf16>
    %55 = arith.truncf %38 : vector<8x5x4xf32> to vector<8x5x4xbf16>
    "tpu.trace_start"() <{level = 10 : i32, message = "hqk,hkc->hqc"}> : () -> ()
    %cst_42 = arith.constant dense<0.000000e+00> : vector<8x5x4xf32>
    %56 = tpu.matmul %54, %55, %cst_42 {dimension_numbers = #tpu.dot_dimension_numbers<[2], [1], [1], [2], [0, 0, 0, 1, 1, 2], [0], [0]>} : vector<8x5x5xbf16>, vector<8x5x4xbf16>, vector<8x5x4xf32> -> vector<8x5x4xf32>
    "tpu.trace_stop"() : () -> ()
    %57 = arith.truncf %56 : vector<8x5x4xf32> to vector<8x5x4xbf16>
    "tpu.trace_start"() <{level = 10 : i32, message = "htc,hcd->htd"}> : () -> ()
    %cst_43 = arith.constant dense<0.000000e+00> : vector<8x5x32xf32>
    %58 = tpu.matmul %57, %19, %cst_43 {dimension_numbers = #tpu.dot_dimension_numbers<[2], [1], [1], [2], [0, 0, 0, 1, 1, 2], [0], [0]>} : vector<8x5x4xbf16>, vector<8x4x32xbf16>, vector<8x5x32xf32> -> vector<8x5x32xf32>
    "tpu.trace_stop"() : () -> ()
    %cst_44 = arith.constant dense<0.000000e+00> : vector<5x32xf32>
    %59 = vector.multi_reduction <add>, %58, %cst_44 [0] : vector<8x5x32xf32> to vector<5x32xf32>
    %60 = vector.broadcast %21 : vector<1x32xf32> to vector<5x32xf32>
    %61 = arith.addf %59, %60 : vector<5x32xf32>
    %62 = arith.addf %5, %61 : vector<5x32xf32>
    %c0_45 = arith.constant 0 : index
    %c0_46 = arith.constant 0 : index
    %c0_47 = arith.constant 0 : index
    %63 = vector.load %arg15[%c0_45, %c0_46, %c0_47] : memref<5x1x32xf32, #tpu.memory_space<vmem>>, vector<1x1x32xf32>
    %64 = vector.shape_cast %63 : vector<1x1x32xf32> to vector<1x32xf32>
    %c0_48 = arith.constant 0 : index
    %c0_49 = arith.constant 0 : index
    %c0_50 = arith.constant 0 : index
    %65 = vector.load %arg16[%c0_48, %c0_49, %c0_50] : memref<5x1x32xf32, #tpu.memory_space<vmem>>, vector<1x1x32xf32>
    %66 = vector.shape_cast %65 : vector<1x1x32xf32> to vector<1x32xf32>
    %cst_51 = arith.constant dense<0.000000e+00> : vector<5xf32>
    %67 = vector.multi_reduction <add>, %62, %cst_51 [1] : vector<5x32xf32> to vector<5xf32>
    %68 = vector.shape_cast %67 : vector<5xf32> to vector<5x1xf32>
    %cst_52 = arith.constant 3.200000e+01 : f32
    %69 = vector.broadcast %cst_52 : f32 to vector<5x1xf32>
    %70 = arith.divf %68, %69 : vector<5x1xf32>
    %71 = vector.broadcast %70 : vector<5x1xf32> to vector<5x32xf32>
    %72 = arith.subf %62, %71 : vector<5x32xf32>
    %73 = arith.mulf %72, %72 : vector<5x32xf32>
    %cst_53 = arith.constant dense<0.000000e+00> : vector<5xf32>
    %74 = vector.multi_reduction <add>, %73, %cst_53 [1] : vector<5x32xf32> to vector<5xf32>
    %75 = vector.shape_cast %74 : vector<5xf32> to vector<5x1xf32>
    %cst_54 = arith.constant 3.200000e+01 : f32
    %76 = vector.broadcast %cst_54 : f32 to vector<5x1xf32>
    %77 = arith.divf %75, %76 : vector<5x1xf32>
    %78 = vector.broadcast %70 : vector<5x1xf32> to vector<5x32xf32>
    %79 = arith.subf %62, %78 : vector<5x32xf32>
    %cst_55 = arith.constant 9.99999974E-6 : f32
    %80 = vector.broadcast %cst_55 : f32 to vector<5x1xf32>
    %81 = arith.addf %77, %80 : vector<5x1xf32>
    %82 = math.rsqrt %81 : vector<5x1xf32>
    %83 = vector.broadcast %82 : vector<5x1xf32> to vector<5x32xf32>
    %84 = arith.mulf %79, %83 : vector<5x32xf32>
    %85 = vector.broadcast %64 : vector<1x32xf32> to vector<5x32xf32>
    %86 = arith.mulf %84, %85 : vector<5x32xf32>
    %87 = vector.broadcast %66 : vector<1x32xf32> to vector<5x32xf32>
    %88 = arith.addf %86, %87 : vector<5x32xf32>
    %c0_56 = arith.constant 0 : index
    %c0_57 = arith.constant 0 : index
    %c0_58 = arith.constant 0 : index
    %89 = vector.load %arg11[%c0_56, %c0_57, %c0_58] : memref<2x32x32xbf16, #tpu.memory_space<vmem>>, vector<1x32x32xbf16>
    %90 = vector.shape_cast %89 : vector<1x32x32xbf16> to vector<32x32xbf16>
    %c0_59 = arith.constant 0 : index
    %c0_60 = arith.constant 0 : index
    %c0_61 = arith.constant 0 : index
    %91 = vector.load %arg12[%c0_59, %c0_60, %c0_61] : memref<2x1x32xf32, #tpu.memory_space<vmem>>, vector<1x1x32xf32>
    %92 = vector.shape_cast %91 : vector<1x1x32xf32> to vector<1x32xf32>
    %c0_62 = arith.constant 0 : index
    %c0_63 = arith.constant 0 : index
    %c0_64 = arith.constant 0 : index
    %93 = vector.load %arg13[%c0_62, %c0_63, %c0_64] : memref<2x32x32xbf16, #tpu.memory_space<vmem>>, vector<1x32x32xbf16>
    %94 = vector.shape_cast %93 : vector<1x32x32xbf16> to vector<32x32xbf16>
    %c0_65 = arith.constant 0 : index
    %c0_66 = arith.constant 0 : index
    %c0_67 = arith.constant 0 : index
    %95 = vector.load %arg14[%c0_65, %c0_66, %c0_67] : memref<2x1x32xf32, #tpu.memory_space<vmem>>, vector<1x1x32xf32>
    %96 = vector.shape_cast %95 : vector<1x1x32xf32> to vector<1x32xf32>
    %97 = arith.truncf %88 : vector<5x32xf32> to vector<5x32xbf16>
    %cst_68 = arith.constant dense<0.000000e+00> : vector<5x32xf32>
    %98 = tpu.matmul %97, %90, %cst_68 {dimension_numbers = #tpu.dot_dimension_numbers<[1], [0], [0], [1], [0, 0, 1, 1], [], []>} : vector<5x32xbf16>, vector<32x32xbf16>, vector<5x32xf32> -> vector<5x32xf32>
    %99 = vector.broadcast %92 : vector<1x32xf32> to vector<5x32xf32>
    %100 = arith.addf %98, %99 : vector<5x32xf32>
    %cst_69 = arith.constant 0.000000e+00 : f32
    %101 = vector.broadcast %cst_69 : f32 to vector<5x32xf32>
    %102 = arith.maximumf %100, %101 : vector<5x32xf32>
    %103 = arith.truncf %102 : vector<5x32xf32> to vector<5x32xbf16>
    %cst_70 = arith.constant dense<0.000000e+00> : vector<5x32xf32>
    %104 = tpu.matmul %103, %94, %cst_70 {dimension_numbers = #tpu.dot_dimension_numbers<[1], [0], [0], [1], [0, 0, 1, 1], [], []>} : vector<5x32xbf16>, vector<32x32xbf16>, vector<5x32xf32> -> vector<5x32xf32>
    %105 = vector.broadcast %96 : vector<1x32xf32> to vector<5x32xf32>
    %106 = arith.addf %104, %105 : vector<5x32xf32>
    %107 = arith.addf %88, %106 : vector<5x32xf32>
    %c1 = arith.constant 1 : index
    %c0_71 = arith.constant 0 : index
    %c0_72 = arith.constant 0 : index
    %108 = vector.load %arg15[%c1, %c0_71, %c0_72] : memref<5x1x32xf32, #tpu.memory_space<vmem>>, vector<1x1x32xf32>
    %109 = vector.shape_cast %108 : vector<1x1x32xf32> to vector<1x32xf32>
    %c1_73 = arith.constant 1 : index
    %c0_74 = arith.constant 0 : index
    %c0_75 = arith.constant 0 : index
    %110 = vector.load %arg16[%c1_73, %c0_74, %c0_75] : memref<5x1x32xf32, #tpu.memory_space<vmem>>, vector<1x1x32xf32>
    %111 = vector.shape_cast %110 : vector<1x1x32xf32> to vector<1x32xf32>
    %cst_76 = arith.constant dense<0.000000e+00> : vector<5xf32>
    %112 = vector.multi_reduction <add>, %107, %cst_76 [1] : vector<5x32xf32> to vector<5xf32>
    %113 = vector.shape_cast %112 : vector<5xf32> to vector<5x1xf32>
    %cst_77 = arith.constant 3.200000e+01 : f32
    %114 = vector.broadcast %cst_77 : f32 to vector<5x1xf32>
    %115 = arith.divf %113, %114 : vector<5x1xf32>
    %116 = vector.broadcast %115 : vector<5x1xf32> to vector<5x32xf32>
    %117 = arith.subf %107, %116 : vector<5x32xf32>
    %118 = arith.mulf %117, %117 : vector<5x32xf32>
    %cst_78 = arith.constant dense<0.000000e+00> : vector<5xf32>
    %119 = vector.multi_reduction <add>, %118, %cst_78 [1] : vector<5x32xf32> to vector<5xf32>
    %120 = vector.shape_cast %119 : vector<5xf32> to vector<5x1xf32>
    %cst_79 = arith.constant 3.200000e+01 : f32
    %121 = vector.broadcast %cst_79 : f32 to vector<5x1xf32>
    %122 = arith.divf %120, %121 : vector<5x1xf32>
    %123 = vector.broadcast %115 : vector<5x1xf32> to vector<5x32xf32>
    %124 = arith.subf %107, %123 : vector<5x32xf32>
    %cst_80 = arith.constant 9.99999974E-6 : f32
    %125 = vector.broadcast %cst_80 : f32 to vector<5x1xf32>
    %126 = arith.addf %122, %125 : vector<5x1xf32>
    %127 = math.rsqrt %126 : vector<5x1xf32>
    %128 = vector.broadcast %127 : vector<5x1xf32> to vector<5x32xf32>
    %129 = arith.mulf %124, %128 : vector<5x32xf32>
    %130 = vector.broadcast %109 : vector<1x32xf32> to vector<5x32xf32>
    %131 = arith.mulf %129, %130 : vector<5x32xf32>
    %132 = vector.broadcast %111 : vector<1x32xf32> to vector<5x32xf32>
    %133 = arith.addf %131, %132 : vector<5x32xf32>
    %c1_81 = arith.constant 1 : index
    %c0_82 = arith.constant 0 : index
    %c0_83 = arith.constant 0 : index
    %c0_84 = arith.constant 0 : index
    %134 = vector.load %arg3[%c1_81, %c0_82, %c0_83, %c0_84] : memref<2x8x32x4xbf16, #tpu.memory_space<vmem>>, vector<1x8x32x4xbf16>
    %135 = vector.shape_cast %134 : vector<1x8x32x4xbf16> to vector<8x32x4xbf16>
    %c1_85 = arith.constant 1 : index
    %c0_86 = arith.constant 0 : index
    %c0_87 = arith.constant 0 : index
    %c0_88 = arith.constant 0 : index
    %136 = vector.load %arg4[%c1_85, %c0_86, %c0_87, %c0_88] : memref<2x8x32x4xbf16, #tpu.memory_space<vmem>>, vector<1x8x32x4xbf16>
    %137 = vector.shape_cast %136 : vector<1x8x32x4xbf16> to vector<8x32x4xbf16>
    %c1_89 = arith.constant 1 : index
    %c0_90 = arith.constant 0 : index
    %c0_91 = arith.constant 0 : index
    %c0_92 = arith.constant 0 : index
    %138 = vector.load %arg5[%c1_89, %c0_90, %c0_91, %c0_92] : memref<2x8x32x4xbf16, #tpu.memory_space<vmem>>, vector<1x8x32x4xbf16>
    %139 = vector.shape_cast %138 : vector<1x8x32x4xbf16> to vector<8x32x4xbf16>
    %c1_93 = arith.constant 1 : index
    %c0_94 = arith.constant 0 : index
    %c0_95 = arith.constant 0 : index
    %c0_96 = arith.constant 0 : index
    %140 = vector.load %arg6[%c1_93, %c0_94, %c0_95, %c0_96] : memref<2x8x1x4xf32, #tpu.memory_space<vmem>>, vector<1x8x1x4xf32>
    %141 = vector.shape_cast %140 : vector<1x8x1x4xf32> to vector<8x1x4xf32>
    %c1_97 = arith.constant 1 : index
    %c0_98 = arith.constant 0 : index
    %c0_99 = arith.constant 0 : index
    %c0_100 = arith.constant 0 : index
    %142 = vector.load %arg7[%c1_97, %c0_98, %c0_99, %c0_100] : memref<2x8x1x4xf32, #tpu.memory_space<vmem>>, vector<1x8x1x4xf32>
    %143 = vector.shape_cast %142 : vector<1x8x1x4xf32> to vector<8x1x4xf32>
    %c1_101 = arith.constant 1 : index
    %c0_102 = arith.constant 0 : index
    %c0_103 = arith.constant 0 : index
    %c0_104 = arith.constant 0 : index
    %144 = vector.load %arg8[%c1_101, %c0_102, %c0_103, %c0_104] : memref<2x8x1x4xf32, #tpu.memory_space<vmem>>, vector<1x8x1x4xf32>
    %145 = vector.shape_cast %144 : vector<1x8x1x4xf32> to vector<8x1x4xf32>
    %c1_105 = arith.constant 1 : index
    %c0_106 = arith.constant 0 : index
    %c0_107 = arith.constant 0 : index
    %c0_108 = arith.constant 0 : index
    %146 = vector.load %arg9[%c1_105, %c0_106, %c0_107, %c0_108] : memref<2x8x4x32xbf16, #tpu.memory_space<vmem>>, vector<1x8x4x32xbf16>
    %147 = vector.shape_cast %146 : vector<1x8x4x32xbf16> to vector<8x4x32xbf16>
    %c1_109 = arith.constant 1 : index
    %c0_110 = arith.constant 0 : index
    %c0_111 = arith.constant 0 : index
    %148 = vector.load %arg10[%c1_109, %c0_110, %c0_111] : memref<2x1x32xf32, #tpu.memory_space<vmem>>, vector<1x1x32xf32>
    %149 = vector.shape_cast %148 : vector<1x1x32xf32> to vector<1x32xf32>
    %150 = arith.truncf %133 : vector<5x32xf32> to vector<5x32xbf16>
    %151 = vector.shape_cast %150 : vector<5x32xbf16> to vector<1x5x32xbf16>
    %152 = vector.shape_cast %151 : vector<1x5x32xbf16> to vector<1x5x32xbf16>
    %153 = vector.broadcast %152 : vector<1x5x32xbf16> to vector<8x5x32xbf16>
    %154 = arith.truncf %133 : vector<5x32xf32> to vector<5x32xbf16>
    %155 = vector.shape_cast %154 : vector<5x32xbf16> to vector<1x5x32xbf16>
    %156 = vector.shape_cast %155 : vector<1x5x32xbf16> to vector<1x5x32xbf16>
    %157 = vector.broadcast %156 : vector<1x5x32xbf16> to vector<8x5x32xbf16>
    "tpu.trace_start"() <{level = 10 : i32, message = "htd,hdc->htc"}> : () -> ()
    %cst_112 = arith.constant dense<0.000000e+00> : vector<8x5x4xf32>
    %158 = tpu.matmul %153, %135, %cst_112 {dimension_numbers = #tpu.dot_dimension_numbers<[2], [1], [1], [2], [0, 0, 0, 1, 1, 2], [0], [0]>} : vector<8x5x32xbf16>, vector<8x32x4xbf16>, vector<8x5x4xf32> -> vector<8x5x4xf32>
    "tpu.trace_stop"() : () -> ()
    %159 = vector.broadcast %141 : vector<8x1x4xf32> to vector<8x5x4xf32>
    %160 = arith.addf %158, %159 : vector<8x5x4xf32>
    "tpu.trace_start"() <{level = 10 : i32, message = "htd,hdc->htc"}> : () -> ()
    %cst_113 = arith.constant dense<0.000000e+00> : vector<8x5x4xf32>
    %161 = tpu.matmul %157, %137, %cst_113 {dimension_numbers = #tpu.dot_dimension_numbers<[2], [1], [1], [2], [0, 0, 0, 1, 1, 2], [0], [0]>} : vector<8x5x32xbf16>, vector<8x32x4xbf16>, vector<8x5x4xf32> -> vector<8x5x4xf32>
    "tpu.trace_stop"() : () -> ()
    %162 = vector.broadcast %143 : vector<8x1x4xf32> to vector<8x5x4xf32>
    %163 = arith.addf %161, %162 : vector<8x5x4xf32>
    "tpu.trace_start"() <{level = 10 : i32, message = "htd,hdc->htc"}> : () -> ()
    %cst_114 = arith.constant dense<0.000000e+00> : vector<8x5x4xf32>
    %164 = tpu.matmul %157, %139, %cst_114 {dimension_numbers = #tpu.dot_dimension_numbers<[2], [1], [1], [2], [0, 0, 0, 1, 1, 2], [0], [0]>} : vector<8x5x32xbf16>, vector<8x32x4xbf16>, vector<8x5x4xf32> -> vector<8x5x4xf32>
    "tpu.trace_stop"() : () -> ()
    %165 = vector.broadcast %145 : vector<8x1x4xf32> to vector<8x5x4xf32>
    %166 = arith.addf %164, %165 : vector<8x5x4xf32>
    %cst_115 = arith.constant 5.000000e-01 : f32
    %167 = vector.broadcast %cst_115 : f32 to vector<8x5x4xf32>
    %168 = arith.mulf %160, %167 : vector<8x5x4xf32>
    %169 = arith.truncf %168 : vector<8x5x4xf32> to vector<8x5x4xbf16>
    %170 = arith.truncf %163 : vector<8x5x4xf32> to vector<8x5x4xbf16>
    "tpu.trace_start"() <{level = 10 : i32, message = "hqc,hkc->hqk"}> : () -> ()
    %cst_116 = arith.constant dense<0.000000e+00> : vector<8x5x5xf32>
    %171 = tpu.matmul %169, %170, %cst_116 {dimension_numbers = #tpu.dot_dimension_numbers<[2], [2], [1], [1], [0, 0, 0, 1, 1, 1], [0], [0]>} : vector<8x5x4xbf16>, vector<8x5x4xbf16>, vector<8x5x5xf32> -> vector<8x5x5xf32>
    "tpu.trace_stop"() : () -> ()
    %cst_117 = arith.constant dense<0xFF800000> : vector<8x5xf32>
    %172 = vector.multi_reduction <maximumf>, %171, %cst_117 [2] : vector<8x5x5xf32> to vector<8x5xf32>
    %173 = vector.shape_cast %172 : vector<8x5xf32> to vector<8x5x1xf32>
    %174 = vector.broadcast %173 : vector<8x5x1xf32> to vector<8x5x5xf32>
    %175 = arith.subf %171, %174 : vector<8x5x5xf32>
    %176 = math.exp %175 : vector<8x5x5xf32>
    %cst_118 = arith.constant dense<0.000000e+00> : vector<8x5xf32>
    %177 = vector.multi_reduction <add>, %176, %cst_118 [2] : vector<8x5x5xf32> to vector<8x5xf32>
    %178 = vector.shape_cast %177 : vector<8x5xf32> to vector<8x5x1xf32>
    %179 = tpu.reciprocal %178 {approx = true} : vector<8x5x1xf32> -> vector<8x5x1xf32>
    %180 = vector.broadcast %179 : vector<8x5x1xf32> to vector<8x5x5xf32>
    %181 = arith.mulf %176, %180 : vector<8x5x5xf32>
    %182 = arith.truncf %181 : vector<8x5x5xf32> to vector<8x5x5xbf16>
    %183 = arith.truncf %166 : vector<8x5x4xf32> to vector<8x5x4xbf16>
    "tpu.trace_start"() <{level = 10 : i32, message = "hqk,hkc->hqc"}> : () -> ()
    %cst_119 = arith.constant dense<0.000000e+00> : vector<8x5x4xf32>
    %184 = tpu.matmul %182, %183, %cst_119 {dimension_numbers = #tpu.dot_dimension_numbers<[2], [1], [1], [2], [0, 0, 0, 1, 1, 2], [0], [0]>} : vector<8x5x5xbf16>, vector<8x5x4xbf16>, vector<8x5x4xf32> -> vector<8x5x4xf32>
    "tpu.trace_stop"() : () -> ()
    %185 = arith.truncf %184 : vector<8x5x4xf32> to vector<8x5x4xbf16>
    "tpu.trace_start"() <{level = 10 : i32, message = "htc,hcd->htd"}> : () -> ()
    %cst_120 = arith.constant dense<0.000000e+00> : vector<8x5x32xf32>
    %186 = tpu.matmul %185, %147, %cst_120 {dimension_numbers = #tpu.dot_dimension_numbers<[2], [1], [1], [2], [0, 0, 0, 1, 1, 2], [0], [0]>} : vector<8x5x4xbf16>, vector<8x4x32xbf16>, vector<8x5x32xf32> -> vector<8x5x32xf32>
    "tpu.trace_stop"() : () -> ()
    %cst_121 = arith.constant dense<0.000000e+00> : vector<5x32xf32>
    %187 = vector.multi_reduction <add>, %186, %cst_121 [0] : vector<8x5x32xf32> to vector<5x32xf32>
    %188 = vector.broadcast %149 : vector<1x32xf32> to vector<5x32xf32>
    %189 = arith.addf %187, %188 : vector<5x32xf32>
    %190 = arith.addf %133, %189 : vector<5x32xf32>
    %c2 = arith.constant 2 : index
    %c0_122 = arith.constant 0 : index
    %c0_123 = arith.constant 0 : index
    %191 = vector.load %arg15[%c2, %c0_122, %c0_123] : memref<5x1x32xf32, #tpu.memory_space<vmem>>, vector<1x1x32xf32>
    %192 = vector.shape_cast %191 : vector<1x1x32xf32> to vector<1x32xf32>
    %c2_124 = arith.constant 2 : index
    %c0_125 = arith.constant 0 : index
    %c0_126 = arith.constant 0 : index
    %193 = vector.load %arg16[%c2_124, %c0_125, %c0_126] : memref<5x1x32xf32, #tpu.memory_space<vmem>>, vector<1x1x32xf32>
    %194 = vector.shape_cast %193 : vector<1x1x32xf32> to vector<1x32xf32>
    %cst_127 = arith.constant dense<0.000000e+00> : vector<5xf32>
    %195 = vector.multi_reduction <add>, %190, %cst_127 [1] : vector<5x32xf32> to vector<5xf32>
    %196 = vector.shape_cast %195 : vector<5xf32> to vector<5x1xf32>
    %cst_128 = arith.constant 3.200000e+01 : f32
    %197 = vector.broadcast %cst_128 : f32 to vector<5x1xf32>
    %198 = arith.divf %196, %197 : vector<5x1xf32>
    %199 = vector.broadcast %198 : vector<5x1xf32> to vector<5x32xf32>
    %200 = arith.subf %190, %199 : vector<5x32xf32>
    %201 = arith.mulf %200, %200 : vector<5x32xf32>
    %cst_129 = arith.constant dense<0.000000e+00> : vector<5xf32>
    %202 = vector.multi_reduction <add>, %201, %cst_129 [1] : vector<5x32xf32> to vector<5xf32>
    %203 = vector.shape_cast %202 : vector<5xf32> to vector<5x1xf32>
    %cst_130 = arith.constant 3.200000e+01 : f32
    %204 = vector.broadcast %cst_130 : f32 to vector<5x1xf32>
    %205 = arith.divf %203, %204 : vector<5x1xf32>
    %206 = vector.broadcast %198 : vector<5x1xf32> to vector<5x32xf32>
    %207 = arith.subf %190, %206 : vector<5x32xf32>
    %cst_131 = arith.constant 9.99999974E-6 : f32
    %208 = vector.broadcast %cst_131 : f32 to vector<5x1xf32>
    %209 = arith.addf %205, %208 : vector<5x1xf32>
    %210 = math.rsqrt %209 : vector<5x1xf32>
    %211 = vector.broadcast %210 : vector<5x1xf32> to vector<5x32xf32>
    %212 = arith.mulf %207, %211 : vector<5x32xf32>
    %213 = vector.broadcast %192 : vector<1x32xf32> to vector<5x32xf32>
    %214 = arith.mulf %212, %213 : vector<5x32xf32>
    %215 = vector.broadcast %194 : vector<1x32xf32> to vector<5x32xf32>
    %216 = arith.addf %214, %215 : vector<5x32xf32>
    %c1_132 = arith.constant 1 : index
    %c0_133 = arith.constant 0 : index
    %c0_134 = arith.constant 0 : index
    %217 = vector.load %arg11[%c1_132, %c0_133, %c0_134] : memref<2x32x32xbf16, #tpu.memory_space<vmem>>, vector<1x32x32xbf16>
    %218 = vector.shape_cast %217 : vector<1x32x32xbf16> to vector<32x32xbf16>
    %c1_135 = arith.constant 1 : index
    %c0_136 = arith.constant 0 : index
    %c0_137 = arith.constant 0 : index
    %219 = vector.load %arg12[%c1_135, %c0_136, %c0_137] : memref<2x1x32xf32, #tpu.memory_space<vmem>>, vector<1x1x32xf32>
    %220 = vector.shape_cast %219 : vector<1x1x32xf32> to vector<1x32xf32>
    %c1_138 = arith.constant 1 : index
    %c0_139 = arith.constant 0 : index
    %c0_140 = arith.constant 0 : index
    %221 = vector.load %arg13[%c1_138, %c0_139, %c0_140] : memref<2x32x32xbf16, #tpu.memory_space<vmem>>, vector<1x32x32xbf16>
    %222 = vector.shape_cast %221 : vector<1x32x32xbf16> to vector<32x32xbf16>
    %c1_141 = arith.constant 1 : index
    %c0_142 = arith.constant 0 : index
    %c0_143 = arith.constant 0 : index
    %223 = vector.load %arg14[%c1_141, %c0_142, %c0_143] : memref<2x1x32xf32, #tpu.memory_space<vmem>>, vector<1x1x32xf32>
    %224 = vector.shape_cast %223 : vector<1x1x32xf32> to vector<1x32xf32>
    %225 = arith.truncf %216 : vector<5x32xf32> to vector<5x32xbf16>
    %cst_144 = arith.constant dense<0.000000e+00> : vector<5x32xf32>
    %226 = tpu.matmul %225, %218, %cst_144 {dimension_numbers = #tpu.dot_dimension_numbers<[1], [0], [0], [1], [0, 0, 1, 1], [], []>} : vector<5x32xbf16>, vector<32x32xbf16>, vector<5x32xf32> -> vector<5x32xf32>
    %227 = vector.broadcast %220 : vector<1x32xf32> to vector<5x32xf32>
    %228 = arith.addf %226, %227 : vector<5x32xf32>
    %cst_145 = arith.constant 0.000000e+00 : f32
    %229 = vector.broadcast %cst_145 : f32 to vector<5x32xf32>
    %230 = arith.maximumf %228, %229 : vector<5x32xf32>
    %231 = arith.truncf %230 : vector<5x32xf32> to vector<5x32xbf16>
    %cst_146 = arith.constant dense<0.000000e+00> : vector<5x32xf32>
    %232 = tpu.matmul %231, %222, %cst_146 {dimension_numbers = #tpu.dot_dimension_numbers<[1], [0], [0], [1], [0, 0, 1, 1], [], []>} : vector<5x32xbf16>, vector<32x32xbf16>, vector<5x32xf32> -> vector<5x32xf32>
    %233 = vector.broadcast %224 : vector<1x32xf32> to vector<5x32xf32>
    %234 = arith.addf %232, %233 : vector<5x32xf32>
    %235 = arith.addf %216, %234 : vector<5x32xf32>
    %c3 = arith.constant 3 : index
    %c0_147 = arith.constant 0 : index
    %c0_148 = arith.constant 0 : index
    %236 = vector.load %arg15[%c3, %c0_147, %c0_148] : memref<5x1x32xf32, #tpu.memory_space<vmem>>, vector<1x1x32xf32>
    %237 = vector.shape_cast %236 : vector<1x1x32xf32> to vector<1x32xf32>
    %c3_149 = arith.constant 3 : index
    %c0_150 = arith.constant 0 : index
    %c0_151 = arith.constant 0 : index
    %238 = vector.load %arg16[%c3_149, %c0_150, %c0_151] : memref<5x1x32xf32, #tpu.memory_space<vmem>>, vector<1x1x32xf32>
    %239 = vector.shape_cast %238 : vector<1x1x32xf32> to vector<1x32xf32>
    %cst_152 = arith.constant dense<0.000000e+00> : vector<5xf32>
    %240 = vector.multi_reduction <add>, %235, %cst_152 [1] : vector<5x32xf32> to vector<5xf32>
    %241 = vector.shape_cast %240 : vector<5xf32> to vector<5x1xf32>
    %cst_153 = arith.constant 3.200000e+01 : f32
    %242 = vector.broadcast %cst_153 : f32 to vector<5x1xf32>
    %243 = arith.divf %241, %242 : vector<5x1xf32>
    %244 = vector.broadcast %243 : vector<5x1xf32> to vector<5x32xf32>
    %245 = arith.subf %235, %244 : vector<5x32xf32>
    %246 = arith.mulf %245, %245 : vector<5x32xf32>
    %cst_154 = arith.constant dense<0.000000e+00> : vector<5xf32>
    %247 = vector.multi_reduction <add>, %246, %cst_154 [1] : vector<5x32xf32> to vector<5xf32>
    %248 = vector.shape_cast %247 : vector<5xf32> to vector<5x1xf32>
    %cst_155 = arith.constant 3.200000e+01 : f32
    %249 = vector.broadcast %cst_155 : f32 to vector<5x1xf32>
    %250 = arith.divf %248, %249 : vector<5x1xf32>
    %251 = vector.broadcast %243 : vector<5x1xf32> to vector<5x32xf32>
    %252 = arith.subf %235, %251 : vector<5x32xf32>
    %cst_156 = arith.constant 9.99999974E-6 : f32
    %253 = vector.broadcast %cst_156 : f32 to vector<5x1xf32>
    %254 = arith.addf %250, %253 : vector<5x1xf32>
    %255 = math.rsqrt %254 : vector<5x1xf32>
    %256 = vector.broadcast %255 : vector<5x1xf32> to vector<5x32xf32>
    %257 = arith.mulf %252, %256 : vector<5x32xf32>
    %258 = vector.broadcast %237 : vector<1x32xf32> to vector<5x32xf32>
    %259 = arith.mulf %257, %258 : vector<5x32xf32>
    %260 = vector.broadcast %239 : vector<1x32xf32> to vector<5x32xf32>
    %261 = arith.addf %259, %260 : vector<5x32xf32>
    %c4 = arith.constant 4 : index
    %c0_157 = arith.constant 0 : index
    %c0_158 = arith.constant 0 : index
    %262 = vector.load %arg15[%c4, %c0_157, %c0_158] : memref<5x1x32xf32, #tpu.memory_space<vmem>>, vector<1x1x32xf32>
    %263 = vector.shape_cast %262 : vector<1x1x32xf32> to vector<1x32xf32>
    %c4_159 = arith.constant 4 : index
    %c0_160 = arith.constant 0 : index
    %c0_161 = arith.constant 0 : index
    %264 = vector.load %arg16[%c4_159, %c0_160, %c0_161] : memref<5x1x32xf32, #tpu.memory_space<vmem>>, vector<1x1x32xf32>
    %265 = vector.shape_cast %264 : vector<1x1x32xf32> to vector<1x32xf32>
    %cst_162 = arith.constant dense<0.000000e+00> : vector<5xf32>
    %266 = vector.multi_reduction <add>, %261, %cst_162 [1] : vector<5x32xf32> to vector<5xf32>
    %267 = vector.shape_cast %266 : vector<5xf32> to vector<5x1xf32>
    %cst_163 = arith.constant 3.200000e+01 : f32
    %268 = vector.broadcast %cst_163 : f32 to vector<5x1xf32>
    %269 = arith.divf %267, %268 : vector<5x1xf32>
    %270 = vector.broadcast %269 : vector<5x1xf32> to vector<5x32xf32>
    %271 = arith.subf %261, %270 : vector<5x32xf32>
    %272 = arith.mulf %271, %271 : vector<5x32xf32>
    %cst_164 = arith.constant dense<0.000000e+00> : vector<5xf32>
    %273 = vector.multi_reduction <add>, %272, %cst_164 [1] : vector<5x32xf32> to vector<5xf32>
    %274 = vector.shape_cast %273 : vector<5xf32> to vector<5x1xf32>
    %cst_165 = arith.constant 3.200000e+01 : f32
    %275 = vector.broadcast %cst_165 : f32 to vector<5x1xf32>
    %276 = arith.divf %274, %275 : vector<5x1xf32>
    %277 = vector.broadcast %269 : vector<5x1xf32> to vector<5x32xf32>
    %278 = arith.subf %261, %277 : vector<5x32xf32>
    %cst_166 = arith.constant 9.99999974E-6 : f32
    %279 = vector.broadcast %cst_166 : f32 to vector<5x1xf32>
    %280 = arith.addf %276, %279 : vector<5x1xf32>
    %281 = math.rsqrt %280 : vector<5x1xf32>
    %282 = vector.broadcast %281 : vector<5x1xf32> to vector<5x32xf32>
    %283 = arith.mulf %278, %282 : vector<5x32xf32>
    %284 = vector.broadcast %263 : vector<1x32xf32> to vector<5x32xf32>
    %285 = arith.mulf %283, %284 : vector<5x32xf32>
    %286 = vector.broadcast %265 : vector<1x32xf32> to vector<5x32xf32>
    %287 = arith.addf %285, %286 : vector<5x32xf32>
    %c0_167 = arith.constant 0 : index
    %c0_168 = arith.constant 0 : index
    %c0_169 = arith.constant 0 : index
    %288 = vector.load %arg17[%c0_167, %c0_168, %c0_169] : memref<1x5x32xf32, #tpu.memory_space<vmem>>, vector<1x5x32xf32>
    %289 = vector.shape_cast %288 : vector<1x5x32xf32> to vector<5x32xf32>
    %290 = vector.shape_cast %287 : vector<5x32xf32> to vector<1x5x32xf32>
    tpu.vector_store %arg17[%c0_167, %c0_168, %c0_169], %290 {strides = array<i32>} : memref<1x5x32xf32, #tpu.memory_space<vmem>>, vector<1x5x32xf32>,
    return
  }
  func.func @transform_0(%arg0: i32) -> (i32, i32, i32) {
    %c0_i32 = arith.constant 0 : i32
    %c0_i32_0 = arith.constant 0 : i32
    %c0_i32_1 = arith.constant 0 : i32
    return %arg0, %c0_i32, %c0_i32_0 : i32, i32, i32
  }
  func.func @transform_1(%arg0: i32) -> (i32, i32) {
    %c0_i32 = arith.constant 0 : i32
    %c0_i32_0 = arith.constant 0 : i32
    %c0_i32_1 = arith.constant 0 : i32
    return %c0_i32, %c0_i32_0 : i32, i32
  }
  func.func @transform_2(%arg0: i32) -> (i32, i32, i32, i32) {
    %c0_i32 = arith.constant 0 : i32
    %c0_i32_0 = arith.constant 0 : i32
    %c0_i32_1 = arith.constant 0 : i32
    %c0_i32_2 = arith.constant 0 : i32
    %c0_i32_3 = arith.constant 0 : i32
    return %c0_i32, %c0_i32_0, %c0_i32_1, %c0_i32_2 : i32, i32, i32, i32
  }
  func.func @transform_3(%arg0: i32) -> (i32, i32, i32, i32) {
    %c0_i32 = arith.constant 0 : i32
    %c0_i32_0 = arith.constant 0 : i32
    %c0_i32_1 = arith.constant 0 : i32
    %c0_i32_2 = arith.constant 0 : i32
    %c0_i32_3 = arith.constant 0 : i32
    return %c0_i32, %c0_i32_0, %c0_i32_1, %c0_i32_2 : i32, i32, i32, i32
  }
  func.func @transform_4(%arg0: i32) -> (i32, i32, i32, i32) {
    %c0_i32 = arith.constant 0 : i32
    %c0_i32_0 = arith.constant 0 : i32
    %c0_i32_1 = arith.constant 0 : i32
    %c0_i32_2 = arith.constant 0 : i32
    %c0_i32_3 = arith.constant 0 : i32
    return %c0_i32, %c0_i32_0, %c0_i32_1, %c0_i32_2 : i32, i32, i32, i32
  }
  func.func @transform_5(%arg0: i32) -> (i32, i32, i32, i32) {
    %c0_i32 = arith.constant 0 : i32
    %c0_i32_0 = arith.constant 0 : i32
    %c0_i32_1 = arith.constant 0 : i32
    %c0_i32_2 = arith.constant 0 : i32
    %c0_i32_3 = arith.constant 0 : i32
    return %c0_i32, %c0_i32_0, %c0_i32_1, %c0_i32_2 : i32, i32, i32, i32
  }
  func.func @transform_6(%arg0: i32) -> (i32, i32, i32, i32) {
    %c0_i32 = arith.constant 0 : i32
    %c0_i32_0 = arith.constant 0 : i32
    %c0_i32_1 = arith.constant 0 : i32
    %c0_i32_2 = arith.constant 0 : i32
    %c0_i32_3 = arith.constant 0 : i32
    return %c0_i32, %c0_i32_0, %c0_i32_1, %c0_i32_2 : i32, i32, i32, i32
  }
  func.func @transform_7(%arg0: i32) -> (i32, i32, i32, i32) {
    %c0_i32 = arith.constant 0 : i32
    %c0_i32_0 = arith.constant 0 : i32
    %c0_i32_1 = arith.constant 0 : i32
    %c0_i32_2 = arith.constant 0 : i32
    %c0_i32_3 = arith.constant 0 : i32
    return %c0_i32, %c0_i32_0, %c0_i32_1, %c0_i32_2 : i32, i32, i32, i32
  }
  func.func @transform_8(%arg0: i32) -> (i32, i32, i32, i32) {
    %c0_i32 = arith.constant 0 : i32
    %c0_i32_0 = arith.constant 0 : i32
    %c0_i32_1 = arith.constant 0 : i32
    %c0_i32_2 = arith.constant 0 : i32
    %c0_i32_3 = arith.constant 0 : i32
    return %c0_i32, %c0_i32_0, %c0_i32_1, %c0_i32_2 : i32, i32, i32, i32
  }
  func.func @transform_9(%arg0: i32) -> (i32, i32, i32) {
    %c0_i32 = arith.constant 0 : i32
    %c0_i32_0 = arith.constant 0 : i32
    %c0_i32_1 = arith.constant 0 : i32
    %c0_i32_2 = arith.constant 0 : i32
    return %c0_i32, %c0_i32_0, %c0_i32_1 : i32, i32, i32
  }
  func.func @transform_10(%arg0: i32) -> (i32, i32, i32) {
    %c0_i32 = arith.constant 0 : i32
    %c0_i32_0 = arith.constant 0 : i32
    %c0_i32_1 = arith.constant 0 : i32
    %c0_i32_2 = arith.constant 0 : i32
    return %c0_i32, %c0_i32_0, %c0_i32_1 : i32, i32, i32
  }
  func.func @transform_11(%arg0: i32) -> (i32, i32, i32) {
    %c0_i32 = arith.constant 0 : i32
    %c0_i32_0 = arith.constant 0 : i32
    %c0_i32_1 = arith.constant 0 : i32
    %c0_i32_2 = arith.constant 0 : i32
    return %c0_i32, %c0_i32_0, %c0_i32_1 : i32, i32, i32
  }
  func.func @transform_12(%arg0: i32) -> (i32, i32, i32) {
    %c0_i32 = arith.constant 0 : i32
    %c0_i32_0 = arith.constant 0 : i32
    %c0_i32_1 = arith.constant 0 : i32
    %c0_i32_2 = arith.constant 0 : i32
    return %c0_i32, %c0_i32_0, %c0_i32_1 : i32, i32, i32
  }
  func.func @transform_13(%arg0: i32) -> (i32, i32, i32) {
    %c0_i32 = arith.constant 0 : i32
    %c0_i32_0 = arith.constant 0 : i32
    %c0_i32_1 = arith.constant 0 : i32
    %c0_i32_2 = arith.constant 0 : i32
    return %c0_i32, %c0_i32_0, %c0_i32_1 : i32, i32, i32
  }
  func.func @transform_14(%arg0: i32) -> (i32, i32, i32) {
    %c0_i32 = arith.constant 0 : i32
    %c0_i32_0 = arith.constant 0 : i32
    %c0_i32_1 = arith.constant 0 : i32
    %c0_i32_2 = arith.constant 0 : i32
    return %c0_i32, %c0_i32_0, %c0_i32_1 : i32, i32, i32
  }
  func.func @transform_15(%arg0: i32) -> (i32, i32, i32) {
    %c0_i32 = arith.constant 0 : i32
    %c0_i32_0 = arith.constant 0 : i32
    %c0_i32_1 = arith.constant 0 : i32
    %c0_i32_2 = arith.constant 0 : i32
    return %c0_i32, %c0_i32_0, %c0_i32_1 : i32, i32, i32
  }
  func.func @transform_16(%arg0: i32) -> (i32, i32, i32) {
    %c0_i32 = arith.constant 0 : i32
    %c0_i32_0 = arith.constant 0 : i32
    %c0_i32_1 = arith.constant 0 : i32
    return %arg0, %c0_i32, %c0_i32_0 : i32, i32, i32
  }
}

module attributes {stable_mosaic.version = 11 : i64} {
  func.func @_decoder_stack_kernel(%arg0: i32, %arg1: memref<4x32xf32, #tpu.memory_space<vmem>>, %arg2: memref<1x5x32xf32, #tpu.memory_space<vmem>>, %arg3: memref<2x8x32x4xbf16, #tpu.memory_space<vmem>>, %arg4: memref<2x8x32x4xbf16, #tpu.memory_space<vmem>>, %arg5: memref<2x8x32x4xbf16, #tpu.memory_space<vmem>>, %arg6: memref<2x8x1x4xf32, #tpu.memory_space<vmem>>, %arg7: memref<2x8x1x4xf32, #tpu.memory_space<vmem>>, %arg8: memref<2x8x1x4xf32, #tpu.memory_space<vmem>>, %arg9: memref<2x8x4x32xbf16, #tpu.memory_space<vmem>>, %arg10: memref<2x1x32xf32, #tpu.memory_space<vmem>>, %arg11: memref<2x8x32x4xbf16, #tpu.memory_space<vmem>>, %arg12: memref<2x8x32x4xbf16, #tpu.memory_space<vmem>>, %arg13: memref<2x8x32x4xbf16, #tpu.memory_space<vmem>>, %arg14: memref<2x8x1x4xf32, #tpu.memory_space<vmem>>, %arg15: memref<2x8x1x4xf32, #tpu.memory_space<vmem>>, %arg16: memref<2x8x1x4xf32, #tpu.memory_space<vmem>>, %arg17: memref<2x8x4x32xbf16, #tpu.memory_space<vmem>>, %arg18: memref<2x1x32xf32, #tpu.memory_space<vmem>>, %arg19: memref<2x32x32xbf16, #tpu.memory_space<vmem>>, %arg20: memref<2x1x32xf32, #tpu.memory_space<vmem>>, %arg21: memref<2x32x32xbf16, #tpu.memory_space<vmem>>, %arg22: memref<2x1x32xf32, #tpu.memory_space<vmem>>, %arg23: memref<7x1x32xf32, #tpu.memory_space<vmem>>, %arg24: memref<7x1x32xf32, #tpu.memory_space<vmem>>, %arg25: memref<1x4x32xf32, #tpu.memory_space<vmem>>) attributes {dimension_semantics = [#tpu.dimension_semantics<parallel>], iteration_bounds = array<i64: 2>, scalar_prefetch = 0 : i64, scratch_operands = 0 : i64, tpu.core_type = #tpu.core_type<tc>, window_params = [{pipeline_mode = #tpu.pipeline_mode<synchronous>, transform_indices = @transform_0, window_bounds = array<i64: 4, 32>}, {transform_indices = @transform_1, window_bounds = array<i64: 1, 5, 32>}, {pipeline_mode = #tpu.pipeline_mode<synchronous>, transform_indices = @transform_2, window_bounds = array<i64: 2, 8, 32, 4>}, {pipeline_mode = #tpu.pipeline_mode<synchronous>, transform_indices = @transform_3, window_bounds = array<i64: 2, 8, 32, 4>}, {pipeline_mode = #tpu.pipeline_mode<synchronous>, transform_indices = @transform_4, window_bounds = array<i64: 2, 8, 32, 4>}, {pipeline_mode = #tpu.pipeline_mode<synchronous>, transform_indices = @transform_5, window_bounds = array<i64: 2, 8, 1, 4>}, {pipeline_mode = #tpu.pipeline_mode<synchronous>, transform_indices = @transform_6, window_bounds = array<i64: 2, 8, 1, 4>}, {pipeline_mode = #tpu.pipeline_mode<synchronous>, transform_indices = @transform_7, window_bounds = array<i64: 2, 8, 1, 4>}, {pipeline_mode = #tpu.pipeline_mode<synchronous>, transform_indices = @transform_8, window_bounds = array<i64: 2, 8, 4, 32>}, {pipeline_mode = #tpu.pipeline_mode<synchronous>, transform_indices = @transform_9, window_bounds = array<i64: 2, 1, 32>}, {pipeline_mode = #tpu.pipeline_mode<synchronous>, transform_indices = @transform_10, window_bounds = array<i64: 2, 8, 32, 4>}, {pipeline_mode = #tpu.pipeline_mode<synchronous>, transform_indices = @transform_11, window_bounds = array<i64: 2, 8, 32, 4>}, {pipeline_mode = #tpu.pipeline_mode<synchronous>, transform_indices = @transform_12, window_bounds = array<i64: 2, 8, 32, 4>}, {pipeline_mode = #tpu.pipeline_mode<synchronous>, transform_indices = @transform_13, window_bounds = array<i64: 2, 8, 1, 4>}, {pipeline_mode = #tpu.pipeline_mode<synchronous>, transform_indices = @transform_14, window_bounds = array<i64: 2, 8, 1, 4>}, {pipeline_mode = #tpu.pipeline_mode<synchronous>, transform_indices = @transform_15, window_bounds = array<i64: 2, 8, 1, 4>}, {pipeline_mode = #tpu.pipeline_mode<synchronous>, transform_indices = @transform_16, window_bounds = array<i64: 2, 8, 4, 32>}, {pipeline_mode = #tpu.pipeline_mode<synchronous>, transform_indices = @transform_17, window_bounds = array<i64: 2, 1, 32>}, {pipeline_mode = #tpu.pipeline_mode<synchronous>, transform_indices = @transform_18, window_bounds = array<i64: 2, 32, 32>}, {pipeline_mode = #tpu.pipeline_mode<synchronous>, transform_indices = @transform_19, window_bounds = array<i64: 2, 1, 32>}, {pipeline_mode = #tpu.pipeline_mode<synchronous>, transform_indices = @transform_20, window_bounds = array<i64: 2, 32, 32>}, {pipeline_mode = #tpu.pipeline_mode<synchronous>, transform_indices = @transform_21, window_bounds = array<i64: 2, 1, 32>}, {pipeline_mode = #tpu.pipeline_mode<synchronous>, transform_indices = @transform_22, window_bounds = array<i64: 7, 1, 32>}, {pipeline_mode = #tpu.pipeline_mode<synchronous>, transform_indices = @transform_23, window_bounds = array<i64: 7, 1, 32>}, {transform_indices = @transform_24, window_bounds = array<i64: 1, 4, 32>}]} {
    %c0 = arith.constant 0 : index
    %c0_0 = arith.constant 0 : index
    %0 = vector.load %arg1[%c0, %c0_0] : memref<4x32xf32, #tpu.memory_space<vmem>>, vector<4x32xf32>
    %c0_1 = arith.constant 0 : index
    %c0_2 = arith.constant 0 : index
    %c0_3 = arith.constant 0 : index
    %1 = vector.load %arg2[%c0_1, %c0_2, %c0_3] : memref<1x5x32xf32, #tpu.memory_space<vmem>>, vector<1x5x32xf32>
    %2 = vector.shape_cast %1 : vector<1x5x32xf32> to vector<5x32xf32>
    %c0_4 = arith.constant 0 : index
    %c0_5 = arith.constant 0 : index
    %c0_6 = arith.constant 0 : index
    %c0_7 = arith.constant 0 : index
    %3 = vector.load %arg3[%c0_4, %c0_5, %c0_6, %c0_7] : memref<2x8x32x4xbf16, #tpu.memory_space<vmem>>, vector<1x8x32x4xbf16>
    %4 = vector.shape_cast %3 : vector<1x8x32x4xbf16> to vector<8x32x4xbf16>
    %c0_8 = arith.constant 0 : index
    %c0_9 = arith.constant 0 : index
    %c0_10 = arith.constant 0 : index
    %c0_11 = arith.constant 0 : index
    %5 = vector.load %arg4[%c0_8, %c0_9, %c0_10, %c0_11] : memref<2x8x32x4xbf16, #tpu.memory_space<vmem>>, vector<1x8x32x4xbf16>
    %6 = vector.shape_cast %5 : vector<1x8x32x4xbf16> to vector<8x32x4xbf16>
    %c0_12 = arith.constant 0 : index
    %c0_13 = arith.constant 0 : index
    %c0_14 = arith.constant 0 : index
    %c0_15 = arith.constant 0 : index
    %7 = vector.load %arg5[%c0_12, %c0_13, %c0_14, %c0_15] : memref<2x8x32x4xbf16, #tpu.memory_space<vmem>>, vector<1x8x32x4xbf16>
    %8 = vector.shape_cast %7 : vector<1x8x32x4xbf16> to vector<8x32x4xbf16>
    %c0_16 = arith.constant 0 : index
    %c0_17 = arith.constant 0 : index
    %c0_18 = arith.constant 0 : index
    %c0_19 = arith.constant 0 : index
    %9 = vector.load %arg6[%c0_16, %c0_17, %c0_18, %c0_19] : memref<2x8x1x4xf32, #tpu.memory_space<vmem>>, vector<1x8x1x4xf32>
    %10 = vector.shape_cast %9 : vector<1x8x1x4xf32> to vector<8x1x4xf32>
    %c0_20 = arith.constant 0 : index
    %c0_21 = arith.constant 0 : index
    %c0_22 = arith.constant 0 : index
    %c0_23 = arith.constant 0 : index
    %11 = vector.load %arg7[%c0_20, %c0_21, %c0_22, %c0_23] : memref<2x8x1x4xf32, #tpu.memory_space<vmem>>, vector<1x8x1x4xf32>
    %12 = vector.shape_cast %11 : vector<1x8x1x4xf32> to vector<8x1x4xf32>
    %c0_24 = arith.constant 0 : index
    %c0_25 = arith.constant 0 : index
    %c0_26 = arith.constant 0 : index
    %c0_27 = arith.constant 0 : index
    %13 = vector.load %arg8[%c0_24, %c0_25, %c0_26, %c0_27] : memref<2x8x1x4xf32, #tpu.memory_space<vmem>>, vector<1x8x1x4xf32>
    %14 = vector.shape_cast %13 : vector<1x8x1x4xf32> to vector<8x1x4xf32>
    %c0_28 = arith.constant 0 : index
    %c0_29 = arith.constant 0 : index
    %c0_30 = arith.constant 0 : index
    %c0_31 = arith.constant 0 : index
    %15 = vector.load %arg9[%c0_28, %c0_29, %c0_30, %c0_31] : memref<2x8x4x32xbf16, #tpu.memory_space<vmem>>, vector<1x8x4x32xbf16>
    %16 = vector.shape_cast %15 : vector<1x8x4x32xbf16> to vector<8x4x32xbf16>
    %c0_32 = arith.constant 0 : index
    %c0_33 = arith.constant 0 : index
    %c0_34 = arith.constant 0 : index
    %17 = vector.load %arg10[%c0_32, %c0_33, %c0_34] : memref<2x1x32xf32, #tpu.memory_space<vmem>>, vector<1x1x32xf32>
    %18 = vector.shape_cast %17 : vector<1x1x32xf32> to vector<1x32xf32>
    %19 = arith.truncf %0 : vector<4x32xf32> to vector<4x32xbf16>
    %20 = vector.shape_cast %19 : vector<4x32xbf16> to vector<1x4x32xbf16>
    %21 = vector.shape_cast %20 : vector<1x4x32xbf16> to vector<1x4x32xbf16>
    %22 = vector.broadcast %21 : vector<1x4x32xbf16> to vector<8x4x32xbf16>
    %23 = arith.truncf %0 : vector<4x32xf32> to vector<4x32xbf16>
    %24 = vector.shape_cast %23 : vector<4x32xbf16> to vector<1x4x32xbf16>
    %25 = vector.shape_cast %24 : vector<1x4x32xbf16> to vector<1x4x32xbf16>
    %26 = vector.broadcast %25 : vector<1x4x32xbf16> to vector<8x4x32xbf16>
    "tpu.trace_start"() <{level = 10 : i32, message = "htd,hdc->htc"}> : () -> ()
    %cst = arith.constant dense<0.000000e+00> : vector<8x4x4xf32>
    %27 = tpu.matmul %22, %4, %cst {dimension_numbers = #tpu.dot_dimension_numbers<[2], [1], [1], [2], [0, 0, 0, 1, 1, 2], [0], [0]>} : vector<8x4x32xbf16>, vector<8x32x4xbf16>, vector<8x4x4xf32> -> vector<8x4x4xf32>
    "tpu.trace_stop"() : () -> ()
    %28 = vector.broadcast %10 : vector<8x1x4xf32> to vector<8x4x4xf32>
    %29 = arith.addf %27, %28 : vector<8x4x4xf32>
    "tpu.trace_start"() <{level = 10 : i32, message = "htd,hdc->htc"}> : () -> ()
    %cst_35 = arith.constant dense<0.000000e+00> : vector<8x4x4xf32>
    %30 = tpu.matmul %26, %6, %cst_35 {dimension_numbers = #tpu.dot_dimension_numbers<[2], [1], [1], [2], [0, 0, 0, 1, 1, 2], [0], [0]>} : vector<8x4x32xbf16>, vector<8x32x4xbf16>, vector<8x4x4xf32> -> vector<8x4x4xf32>
    "tpu.trace_stop"() : () -> ()
    %31 = vector.broadcast %12 : vector<8x1x4xf32> to vector<8x4x4xf32>
    %32 = arith.addf %30, %31 : vector<8x4x4xf32>
    "tpu.trace_start"() <{level = 10 : i32, message = "htd,hdc->htc"}> : () -> ()
    %cst_36 = arith.constant dense<0.000000e+00> : vector<8x4x4xf32>
    %33 = tpu.matmul %26, %8, %cst_36 {dimension_numbers = #tpu.dot_dimension_numbers<[2], [1], [1], [2], [0, 0, 0, 1, 1, 2], [0], [0]>} : vector<8x4x32xbf16>, vector<8x32x4xbf16>, vector<8x4x4xf32> -> vector<8x4x4xf32>
    "tpu.trace_stop"() : () -> ()
    %34 = vector.broadcast %14 : vector<8x1x4xf32> to vector<8x4x4xf32>
    %35 = arith.addf %33, %34 : vector<8x4x4xf32>
    %cst_37 = arith.constant 5.000000e-01 : f32
    %36 = vector.broadcast %cst_37 : f32 to vector<8x4x4xf32>
    %37 = arith.mulf %29, %36 : vector<8x4x4xf32>
    %38 = arith.truncf %37 : vector<8x4x4xf32> to vector<8x4x4xbf16>
    %39 = arith.truncf %32 : vector<8x4x4xf32> to vector<8x4x4xbf16>
    "tpu.trace_start"() <{level = 10 : i32, message = "hqc,hkc->hqk"}> : () -> ()
    %cst_38 = arith.constant dense<0.000000e+00> : vector<8x4x4xf32>
    %40 = tpu.matmul %38, %39, %cst_38 {dimension_numbers = #tpu.dot_dimension_numbers<[2], [2], [1], [1], [0, 0, 0, 1, 1, 1], [0], [0]>} : vector<8x4x4xbf16>, vector<8x4x4xbf16>, vector<8x4x4xf32> -> vector<8x4x4xf32>
    "tpu.trace_stop"() : () -> ()
    %cst_39 = arith.constant dense<0xFF800000> : vector<8x4xf32>
    %41 = vector.multi_reduction <maximumf>, %40, %cst_39 [2] : vector<8x4x4xf32> to vector<8x4xf32>
    %42 = vector.shape_cast %41 : vector<8x4xf32> to vector<8x4x1xf32>
    %43 = vector.broadcast %42 : vector<8x4x1xf32> to vector<8x4x4xf32>
    %44 = arith.subf %40, %43 : vector<8x4x4xf32>
    %45 = math.exp %44 : vector<8x4x4xf32>
    %cst_40 = arith.constant dense<0.000000e+00> : vector<8x4xf32>
    %46 = vector.multi_reduction <add>, %45, %cst_40 [2] : vector<8x4x4xf32> to vector<8x4xf32>
    %47 = vector.shape_cast %46 : vector<8x4xf32> to vector<8x4x1xf32>
    %48 = tpu.reciprocal %47 {approx = true} : vector<8x4x1xf32> -> vector<8x4x1xf32>
    %49 = vector.broadcast %48 : vector<8x4x1xf32> to vector<8x4x4xf32>
    %50 = arith.mulf %45, %49 : vector<8x4x4xf32>
    %51 = arith.truncf %50 : vector<8x4x4xf32> to vector<8x4x4xbf16>
    %52 = arith.truncf %35 : vector<8x4x4xf32> to vector<8x4x4xbf16>
    "tpu.trace_start"() <{level = 10 : i32, message = "hqk,hkc->hqc"}> : () -> ()
    %cst_41 = arith.constant dense<0.000000e+00> : vector<8x4x4xf32>
    %53 = tpu.matmul %51, %52, %cst_41 {dimension_numbers = #tpu.dot_dimension_numbers<[2], [1], [1], [2], [0, 0, 0, 1, 1, 2], [0], [0]>} : vector<8x4x4xbf16>, vector<8x4x4xbf16>, vector<8x4x4xf32> -> vector<8x4x4xf32>
    "tpu.trace_stop"() : () -> ()
    %54 = arith.truncf %53 : vector<8x4x4xf32> to vector<8x4x4xbf16>
    "tpu.trace_start"() <{level = 10 : i32, message = "htc,hcd->htd"}> : () -> ()
    %cst_42 = arith.constant dense<0.000000e+00> : vector<8x4x32xf32>
    %55 = tpu.matmul %54, %16, %cst_42 {dimension_numbers = #tpu.dot_dimension_numbers<[2], [1], [1], [2], [0, 0, 0, 1, 1, 2], [0], [0]>} : vector<8x4x4xbf16>, vector<8x4x32xbf16>, vector<8x4x32xf32> -> vector<8x4x32xf32>
    "tpu.trace_stop"() : () -> ()
    %cst_43 = arith.constant dense<0.000000e+00> : vector<4x32xf32>
    %56 = vector.multi_reduction <add>, %55, %cst_43 [0] : vector<8x4x32xf32> to vector<4x32xf32>
    %57 = vector.broadcast %18 : vector<1x32xf32> to vector<4x32xf32>
    %58 = arith.addf %56, %57 : vector<4x32xf32>
    %59 = arith.addf %0, %58 : vector<4x32xf32>
    %c0_44 = arith.constant 0 : index
    %c0_45 = arith.constant 0 : index
    %c0_46 = arith.constant 0 : index
    %60 = vector.load %arg23[%c0_44, %c0_45, %c0_46] : memref<7x1x32xf32, #tpu.memory_space<vmem>>, vector<1x1x32xf32>
    %61 = vector.shape_cast %60 : vector<1x1x32xf32> to vector<1x32xf32>
    %c0_47 = arith.constant 0 : index
    %c0_48 = arith.constant 0 : index
    %c0_49 = arith.constant 0 : index
    %62 = vector.load %arg24[%c0_47, %c0_48, %c0_49] : memref<7x1x32xf32, #tpu.memory_space<vmem>>, vector<1x1x32xf32>
    %63 = vector.shape_cast %62 : vector<1x1x32xf32> to vector<1x32xf32>
    %cst_50 = arith.constant dense<0.000000e+00> : vector<4xf32>
    %64 = vector.multi_reduction <add>, %59, %cst_50 [1] : vector<4x32xf32> to vector<4xf32>
    %65 = vector.shape_cast %64 : vector<4xf32> to vector<4x1xf32>
    %cst_51 = arith.constant 3.200000e+01 : f32
    %66 = vector.broadcast %cst_51 : f32 to vector<4x1xf32>
    %67 = arith.divf %65, %66 : vector<4x1xf32>
    %68 = vector.broadcast %67 : vector<4x1xf32> to vector<4x32xf32>
    %69 = arith.subf %59, %68 : vector<4x32xf32>
    %70 = arith.mulf %69, %69 : vector<4x32xf32>
    %cst_52 = arith.constant dense<0.000000e+00> : vector<4xf32>
    %71 = vector.multi_reduction <add>, %70, %cst_52 [1] : vector<4x32xf32> to vector<4xf32>
    %72 = vector.shape_cast %71 : vector<4xf32> to vector<4x1xf32>
    %cst_53 = arith.constant 3.200000e+01 : f32
    %73 = vector.broadcast %cst_53 : f32 to vector<4x1xf32>
    %74 = arith.divf %72, %73 : vector<4x1xf32>
    %75 = vector.broadcast %67 : vector<4x1xf32> to vector<4x32xf32>
    %76 = arith.subf %59, %75 : vector<4x32xf32>
    %cst_54 = arith.constant 9.99999974E-6 : f32
    %77 = vector.broadcast %cst_54 : f32 to vector<4x1xf32>
    %78 = arith.addf %74, %77 : vector<4x1xf32>
    %79 = math.rsqrt %78 : vector<4x1xf32>
    %80 = vector.broadcast %79 : vector<4x1xf32> to vector<4x32xf32>
    %81 = arith.mulf %76, %80 : vector<4x32xf32>
    %82 = vector.broadcast %61 : vector<1x32xf32> to vector<4x32xf32>
    %83 = arith.mulf %81, %82 : vector<4x32xf32>
    %84 = vector.broadcast %63 : vector<1x32xf32> to vector<4x32xf32>
    %85 = arith.addf %83, %84 : vector<4x32xf32>
    %c0_55 = arith.constant 0 : index
    %c0_56 = arith.constant 0 : index
    %c0_57 = arith.constant 0 : index
    %c0_58 = arith.constant 0 : index
    %86 = vector.load %arg11[%c0_55, %c0_56, %c0_57, %c0_58] : memref<2x8x32x4xbf16, #tpu.memory_space<vmem>>, vector<1x8x32x4xbf16>
    %87 = vector.shape_cast %86 : vector<1x8x32x4xbf16> to vector<8x32x4xbf16>
    %c0_59 = arith.constant 0 : index
    %c0_60 = arith.constant 0 : index
    %c0_61 = arith.constant 0 : index
    %c0_62 = arith.constant 0 : index
    %88 = vector.load %arg12[%c0_59, %c0_60, %c0_61, %c0_62] : memref<2x8x32x4xbf16, #tpu.memory_space<vmem>>, vector<1x8x32x4xbf16>
    %89 = vector.shape_cast %88 : vector<1x8x32x4xbf16> to vector<8x32x4xbf16>
    %c0_63 = arith.constant 0 : index
    %c0_64 = arith.constant 0 : index
    %c0_65 = arith.constant 0 : index
    %c0_66 = arith.constant 0 : index
    %90 = vector.load %arg13[%c0_63, %c0_64, %c0_65, %c0_66] : memref<2x8x32x4xbf16, #tpu.memory_space<vmem>>, vector<1x8x32x4xbf16>
    %91 = vector.shape_cast %90 : vector<1x8x32x4xbf16> to vector<8x32x4xbf16>
    %c0_67 = arith.constant 0 : index
    %c0_68 = arith.constant 0 : index
    %c0_69 = arith.constant 0 : index
    %c0_70 = arith.constant 0 : index
    %92 = vector.load %arg14[%c0_67, %c0_68, %c0_69, %c0_70] : memref<2x8x1x4xf32, #tpu.memory_space<vmem>>, vector<1x8x1x4xf32>
    %93 = vector.shape_cast %92 : vector<1x8x1x4xf32> to vector<8x1x4xf32>
    %c0_71 = arith.constant 0 : index
    %c0_72 = arith.constant 0 : index
    %c0_73 = arith.constant 0 : index
    %c0_74 = arith.constant 0 : index
    %94 = vector.load %arg15[%c0_71, %c0_72, %c0_73, %c0_74] : memref<2x8x1x4xf32, #tpu.memory_space<vmem>>, vector<1x8x1x4xf32>
    %95 = vector.shape_cast %94 : vector<1x8x1x4xf32> to vector<8x1x4xf32>
    %c0_75 = arith.constant 0 : index
    %c0_76 = arith.constant 0 : index
    %c0_77 = arith.constant 0 : index
    %c0_78 = arith.constant 0 : index
    %96 = vector.load %arg16[%c0_75, %c0_76, %c0_77, %c0_78] : memref<2x8x1x4xf32, #tpu.memory_space<vmem>>, vector<1x8x1x4xf32>
    %97 = vector.shape_cast %96 : vector<1x8x1x4xf32> to vector<8x1x4xf32>
    %c0_79 = arith.constant 0 : index
    %c0_80 = arith.constant 0 : index
    %c0_81 = arith.constant 0 : index
    %c0_82 = arith.constant 0 : index
    %98 = vector.load %arg17[%c0_79, %c0_80, %c0_81, %c0_82] : memref<2x8x4x32xbf16, #tpu.memory_space<vmem>>, vector<1x8x4x32xbf16>
    %99 = vector.shape_cast %98 : vector<1x8x4x32xbf16> to vector<8x4x32xbf16>
    %c0_83 = arith.constant 0 : index
    %c0_84 = arith.constant 0 : index
    %c0_85 = arith.constant 0 : index
    %100 = vector.load %arg18[%c0_83, %c0_84, %c0_85] : memref<2x1x32xf32, #tpu.memory_space<vmem>>, vector<1x1x32xf32>
    %101 = vector.shape_cast %100 : vector<1x1x32xf32> to vector<1x32xf32>
    %102 = arith.truncf %85 : vector<4x32xf32> to vector<4x32xbf16>
    %103 = vector.shape_cast %102 : vector<4x32xbf16> to vector<1x4x32xbf16>
    %104 = vector.shape_cast %103 : vector<1x4x32xbf16> to vector<1x4x32xbf16>
    %105 = vector.broadcast %104 : vector<1x4x32xbf16> to vector<8x4x32xbf16>
    %106 = arith.truncf %2 : vector<5x32xf32> to vector<5x32xbf16>
    %107 = vector.shape_cast %106 : vector<5x32xbf16> to vector<1x5x32xbf16>
    %108 = vector.shape_cast %107 : vector<1x5x32xbf16> to vector<1x5x32xbf16>
    %109 = vector.broadcast %108 : vector<1x5x32xbf16> to vector<8x5x32xbf16>
    "tpu.trace_start"() <{level = 10 : i32, message = "htd,hdc->htc"}> : () -> ()
    %cst_86 = arith.constant dense<0.000000e+00> : vector<8x4x4xf32>
    %110 = tpu.matmul %105, %87, %cst_86 {dimension_numbers = #tpu.dot_dimension_numbers<[2], [1], [1], [2], [0, 0, 0, 1, 1, 2], [0], [0]>} : vector<8x4x32xbf16>, vector<8x32x4xbf16>, vector<8x4x4xf32> -> vector<8x4x4xf32>
    "tpu.trace_stop"() : () -> ()
    %111 = vector.broadcast %93 : vector<8x1x4xf32> to vector<8x4x4xf32>
    %112 = arith.addf %110, %111 : vector<8x4x4xf32>
    "tpu.trace_start"() <{level = 10 : i32, message = "htd,hdc->htc"}> : () -> ()
    %cst_87 = arith.constant dense<0.000000e+00> : vector<8x5x4xf32>
    %113 = tpu.matmul %109, %89, %cst_87 {dimension_numbers = #tpu.dot_dimension_numbers<[2], [1], [1], [2], [0, 0, 0, 1, 1, 2], [0], [0]>} : vector<8x5x32xbf16>, vector<8x32x4xbf16>, vector<8x5x4xf32> -> vector<8x5x4xf32>
    "tpu.trace_stop"() : () -> ()
    %114 = vector.broadcast %95 : vector<8x1x4xf32> to vector<8x5x4xf32>
    %115 = arith.addf %113, %114 : vector<8x5x4xf32>
    "tpu.trace_start"() <{level = 10 : i32, message = "htd,hdc->htc"}> : () -> ()
    %cst_88 = arith.constant dense<0.000000e+00> : vector<8x5x4xf32>
    %116 = tpu.matmul %109, %91, %cst_88 {dimension_numbers = #tpu.dot_dimension_numbers<[2], [1], [1], [2], [0, 0, 0, 1, 1, 2], [0], [0]>} : vector<8x5x32xbf16>, vector<8x32x4xbf16>, vector<8x5x4xf32> -> vector<8x5x4xf32>
    "tpu.trace_stop"() : () -> ()
    %117 = vector.broadcast %97 : vector<8x1x4xf32> to vector<8x5x4xf32>
    %118 = arith.addf %116, %117 : vector<8x5x4xf32>
    %cst_89 = arith.constant 5.000000e-01 : f32
    %119 = vector.broadcast %cst_89 : f32 to vector<8x4x4xf32>
    %120 = arith.mulf %112, %119 : vector<8x4x4xf32>
    %121 = arith.truncf %120 : vector<8x4x4xf32> to vector<8x4x4xbf16>
    %122 = arith.truncf %115 : vector<8x5x4xf32> to vector<8x5x4xbf16>
    "tpu.trace_start"() <{level = 10 : i32, message = "hqc,hkc->hqk"}> : () -> ()
    %cst_90 = arith.constant dense<0.000000e+00> : vector<8x4x5xf32>
    %123 = tpu.matmul %121, %122, %cst_90 {dimension_numbers = #tpu.dot_dimension_numbers<[2], [2], [1], [1], [0, 0, 0, 1, 1, 1], [0], [0]>} : vector<8x4x4xbf16>, vector<8x5x4xbf16>, vector<8x4x5xf32> -> vector<8x4x5xf32>
    "tpu.trace_stop"() : () -> ()
    %cst_91 = arith.constant dense<0xFF800000> : vector<8x4xf32>
    %124 = vector.multi_reduction <maximumf>, %123, %cst_91 [2] : vector<8x4x5xf32> to vector<8x4xf32>
    %125 = vector.shape_cast %124 : vector<8x4xf32> to vector<8x4x1xf32>
    %126 = vector.broadcast %125 : vector<8x4x1xf32> to vector<8x4x5xf32>
    %127 = arith.subf %123, %126 : vector<8x4x5xf32>
    %128 = math.exp %127 : vector<8x4x5xf32>
    %cst_92 = arith.constant dense<0.000000e+00> : vector<8x4xf32>
    %129 = vector.multi_reduction <add>, %128, %cst_92 [2] : vector<8x4x5xf32> to vector<8x4xf32>
    %130 = vector.shape_cast %129 : vector<8x4xf32> to vector<8x4x1xf32>
    %131 = tpu.reciprocal %130 {approx = true} : vector<8x4x1xf32> -> vector<8x4x1xf32>
    %132 = vector.broadcast %131 : vector<8x4x1xf32> to vector<8x4x5xf32>
    %133 = arith.mulf %128, %132 : vector<8x4x5xf32>
    %134 = arith.truncf %133 : vector<8x4x5xf32> to vector<8x4x5xbf16>
    %135 = arith.truncf %118 : vector<8x5x4xf32> to vector<8x5x4xbf16>
    "tpu.trace_start"() <{level = 10 : i32, message = "hqk,hkc->hqc"}> : () -> ()
    %cst_93 = arith.constant dense<0.000000e+00> : vector<8x4x4xf32>
    %136 = tpu.matmul %134, %135, %cst_93 {dimension_numbers = #tpu.dot_dimension_numbers<[2], [1], [1], [2], [0, 0, 0, 1, 1, 2], [0], [0]>} : vector<8x4x5xbf16>, vector<8x5x4xbf16>, vector<8x4x4xf32> -> vector<8x4x4xf32>
    "tpu.trace_stop"() : () -> ()
    %137 = arith.truncf %136 : vector<8x4x4xf32> to vector<8x4x4xbf16>
    "tpu.trace_start"() <{level = 10 : i32, message = "htc,hcd->htd"}> : () -> ()
    %cst_94 = arith.constant dense<0.000000e+00> : vector<8x4x32xf32>
    %138 = tpu.matmul %137, %99, %cst_94 {dimension_numbers = #tpu.dot_dimension_numbers<[2], [1], [1], [2], [0, 0, 0, 1, 1, 2], [0], [0]>} : vector<8x4x4xbf16>, vector<8x4x32xbf16>, vector<8x4x32xf32> -> vector<8x4x32xf32>
    "tpu.trace_stop"() : () -> ()
    %cst_95 = arith.constant dense<0.000000e+00> : vector<4x32xf32>
    %139 = vector.multi_reduction <add>, %138, %cst_95 [0] : vector<8x4x32xf32> to vector<4x32xf32>
    %140 = vector.broadcast %101 : vector<1x32xf32> to vector<4x32xf32>
    %141 = arith.addf %139, %140 : vector<4x32xf32>
    %142 = arith.addf %85, %141 : vector<4x32xf32>
    %c1 = arith.constant 1 : index
    %c0_96 = arith.constant 0 : index
    %c0_97 = arith.constant 0 : index
    %143 = vector.load %arg23[%c1, %c0_96, %c0_97] : memref<7x1x32xf32, #tpu.memory_space<vmem>>, vector<1x1x32xf32>
    %144 = vector.shape_cast %143 : vector<1x1x32xf32> to vector<1x32xf32>
    %c1_98 = arith.constant 1 : index
    %c0_99 = arith.constant 0 : index
    %c0_100 = arith.constant 0 : index
    %145 = vector.load %arg24[%c1_98, %c0_99, %c0_100] : memref<7x1x32xf32, #tpu.memory_space<vmem>>, vector<1x1x32xf32>
    %146 = vector.shape_cast %145 : vector<1x1x32xf32> to vector<1x32xf32>
    %cst_101 = arith.constant dense<0.000000e+00> : vector<4xf32>
    %147 = vector.multi_reduction <add>, %142, %cst_101 [1] : vector<4x32xf32> to vector<4xf32>
    %148 = vector.shape_cast %147 : vector<4xf32> to vector<4x1xf32>
    %cst_102 = arith.constant 3.200000e+01 : f32
    %149 = vector.broadcast %cst_102 : f32 to vector<4x1xf32>
    %150 = arith.divf %148, %149 : vector<4x1xf32>
    %151 = vector.broadcast %150 : vector<4x1xf32> to vector<4x32xf32>
    %152 = arith.subf %142, %151 : vector<4x32xf32>
    %153 = arith.mulf %152, %152 : vector<4x32xf32>
    %cst_103 = arith.constant dense<0.000000e+00> : vector<4xf32>
    %154 = vector.multi_reduction <add>, %153, %cst_103 [1] : vector<4x32xf32> to vector<4xf32>
    %155 = vector.shape_cast %154 : vector<4xf32> to vector<4x1xf32>
    %cst_104 = arith.constant 3.200000e+01 : f32
    %156 = vector.broadcast %cst_104 : f32 to vector<4x1xf32>
    %157 = arith.divf %155, %156 : vector<4x1xf32>
    %158 = vector.broadcast %150 : vector<4x1xf32> to vector<4x32xf32>
    %159 = arith.subf %142, %158 : vector<4x32xf32>
    %cst_105 = arith.constant 9.99999974E-6 : f32
    %160 = vector.broadcast %cst_105 : f32 to vector<4x1xf32>
    %161 = arith.addf %157, %160 : vector<4x1xf32>
    %162 = math.rsqrt %161 : vector<4x1xf32>
    %163 = vector.broadcast %162 : vector<4x1xf32> to vector<4x32xf32>
    %164 = arith.mulf %159, %163 : vector<4x32xf32>
    %165 = vector.broadcast %144 : vector<1x32xf32> to vector<4x32xf32>
    %166 = arith.mulf %164, %165 : vector<4x32xf32>
    %167 = vector.broadcast %146 : vector<1x32xf32> to vector<4x32xf32>
    %168 = arith.addf %166, %167 : vector<4x32xf32>
    %c0_106 = arith.constant 0 : index
    %c0_107 = arith.constant 0 : index
    %c0_108 = arith.constant 0 : index
    %169 = vector.load %arg19[%c0_106, %c0_107, %c0_108] : memref<2x32x32xbf16, #tpu.memory_space<vmem>>, vector<1x32x32xbf16>
    %170 = vector.shape_cast %169 : vector<1x32x32xbf16> to vector<32x32xbf16>
    %c0_109 = arith.constant 0 : index
    %c0_110 = arith.constant 0 : index
    %c0_111 = arith.constant 0 : index
    %171 = vector.load %arg20[%c0_109, %c0_110, %c0_111] : memref<2x1x32xf32, #tpu.memory_space<vmem>>, vector<1x1x32xf32>
    %172 = vector.shape_cast %171 : vector<1x1x32xf32> to vector<1x32xf32>
    %c0_112 = arith.constant 0 : index
    %c0_113 = arith.constant 0 : index
    %c0_114 = arith.constant 0 : index
    %173 = vector.load %arg21[%c0_112, %c0_113, %c0_114] : memref<2x32x32xbf16, #tpu.memory_space<vmem>>, vector<1x32x32xbf16>
    %174 = vector.shape_cast %173 : vector<1x32x32xbf16> to vector<32x32xbf16>
    %c0_115 = arith.constant 0 : index
    %c0_116 = arith.constant 0 : index
    %c0_117 = arith.constant 0 : index
    %175 = vector.load %arg22[%c0_115, %c0_116, %c0_117] : memref<2x1x32xf32, #tpu.memory_space<vmem>>, vector<1x1x32xf32>
    %176 = vector.shape_cast %175 : vector<1x1x32xf32> to vector<1x32xf32>
    %177 = arith.truncf %168 : vector<4x32xf32> to vector<4x32xbf16>
    %cst_118 = arith.constant dense<0.000000e+00> : vector<4x32xf32>
    %178 = tpu.matmul %177, %170, %cst_118 {dimension_numbers = #tpu.dot_dimension_numbers<[1], [0], [0], [1], [0, 0, 1, 1], [], []>} : vector<4x32xbf16>, vector<32x32xbf16>, vector<4x32xf32> -> vector<4x32xf32>
    %179 = vector.broadcast %172 : vector<1x32xf32> to vector<4x32xf32>
    %180 = arith.addf %178, %179 : vector<4x32xf32>
    %cst_119 = arith.constant 0.000000e+00 : f32
    %181 = vector.broadcast %cst_119 : f32 to vector<4x32xf32>
    %182 = arith.maximumf %180, %181 : vector<4x32xf32>
    %183 = arith.truncf %182 : vector<4x32xf32> to vector<4x32xbf16>
    %cst_120 = arith.constant dense<0.000000e+00> : vector<4x32xf32>
    %184 = tpu.matmul %183, %174, %cst_120 {dimension_numbers = #tpu.dot_dimension_numbers<[1], [0], [0], [1], [0, 0, 1, 1], [], []>} : vector<4x32xbf16>, vector<32x32xbf16>, vector<4x32xf32> -> vector<4x32xf32>
    %185 = vector.broadcast %176 : vector<1x32xf32> to vector<4x32xf32>
    %186 = arith.addf %184, %185 : vector<4x32xf32>
    %187 = arith.addf %168, %186 : vector<4x32xf32>
    %c2 = arith.constant 2 : index
    %c0_121 = arith.constant 0 : index
    %c0_122 = arith.constant 0 : index
    %188 = vector.load %arg23[%c2, %c0_121, %c0_122] : memref<7x1x32xf32, #tpu.memory_space<vmem>>, vector<1x1x32xf32>
    %189 = vector.shape_cast %188 : vector<1x1x32xf32> to vector<1x32xf32>
    %c2_123 = arith.constant 2 : index
    %c0_124 = arith.constant 0 : index
    %c0_125 = arith.constant 0 : index
    %190 = vector.load %arg24[%c2_123, %c0_124, %c0_125] : memref<7x1x32xf32, #tpu.memory_space<vmem>>, vector<1x1x32xf32>
    %191 = vector.shape_cast %190 : vector<1x1x32xf32> to vector<1x32xf32>
    %cst_126 = arith.constant dense<0.000000e+00> : vector<4xf32>
    %192 = vector.multi_reduction <add>, %187, %cst_126 [1] : vector<4x32xf32> to vector<4xf32>
    %193 = vector.shape_cast %192 : vector<4xf32> to vector<4x1xf32>
    %cst_127 = arith.constant 3.200000e+01 : f32
    %194 = vector.broadcast %cst_127 : f32 to vector<4x1xf32>
    %195 = arith.divf %193, %194 : vector<4x1xf32>
    %196 = vector.broadcast %195 : vector<4x1xf32> to vector<4x32xf32>
    %197 = arith.subf %187, %196 : vector<4x32xf32>
    %198 = arith.mulf %197, %197 : vector<4x32xf32>
    %cst_128 = arith.constant dense<0.000000e+00> : vector<4xf32>
    %199 = vector.multi_reduction <add>, %198, %cst_128 [1] : vector<4x32xf32> to vector<4xf32>
    %200 = vector.shape_cast %199 : vector<4xf32> to vector<4x1xf32>
    %cst_129 = arith.constant 3.200000e+01 : f32
    %201 = vector.broadcast %cst_129 : f32 to vector<4x1xf32>
    %202 = arith.divf %200, %201 : vector<4x1xf32>
    %203 = vector.broadcast %195 : vector<4x1xf32> to vector<4x32xf32>
    %204 = arith.subf %187, %203 : vector<4x32xf32>
    %cst_130 = arith.constant 9.99999974E-6 : f32
    %205 = vector.broadcast %cst_130 : f32 to vector<4x1xf32>
    %206 = arith.addf %202, %205 : vector<4x1xf32>
    %207 = math.rsqrt %206 : vector<4x1xf32>
    %208 = vector.broadcast %207 : vector<4x1xf32> to vector<4x32xf32>
    %209 = arith.mulf %204, %208 : vector<4x32xf32>
    %210 = vector.broadcast %189 : vector<1x32xf32> to vector<4x32xf32>
    %211 = arith.mulf %209, %210 : vector<4x32xf32>
    %212 = vector.broadcast %191 : vector<1x32xf32> to vector<4x32xf32>
    %213 = arith.addf %211, %212 : vector<4x32xf32>
    %c1_131 = arith.constant 1 : index
    %c0_132 = arith.constant 0 : index
    %c0_133 = arith.constant 0 : index
    %c0_134 = arith.constant 0 : index
    %214 = vector.load %arg3[%c1_131, %c0_132, %c0_133, %c0_134] : memref<2x8x32x4xbf16, #tpu.memory_space<vmem>>, vector<1x8x32x4xbf16>
    %215 = vector.shape_cast %214 : vector<1x8x32x4xbf16> to vector<8x32x4xbf16>
    %c1_135 = arith.constant 1 : index
    %c0_136 = arith.constant 0 : index
    %c0_137 = arith.constant 0 : index
    %c0_138 = arith.constant 0 : index
    %216 = vector.load %arg4[%c1_135, %c0_136, %c0_137, %c0_138] : memref<2x8x32x4xbf16, #tpu.memory_space<vmem>>, vector<1x8x32x4xbf16>
    %217 = vector.shape_cast %216 : vector<1x8x32x4xbf16> to vector<8x32x4xbf16>
    %c1_139 = arith.constant 1 : index
    %c0_140 = arith.constant 0 : index
    %c0_141 = arith.constant 0 : index
    %c0_142 = arith.constant 0 : index
    %218 = vector.load %arg5[%c1_139, %c0_140, %c0_141, %c0_142] : memref<2x8x32x4xbf16, #tpu.memory_space<vmem>>, vector<1x8x32x4xbf16>
    %219 = vector.shape_cast %218 : vector<1x8x32x4xbf16> to vector<8x32x4xbf16>
    %c1_143 = arith.constant 1 : index
    %c0_144 = arith.constant 0 : index
    %c0_145 = arith.constant 0 : index
    %c0_146 = arith.constant 0 : index
    %220 = vector.load %arg6[%c1_143, %c0_144, %c0_145, %c0_146] : memref<2x8x1x4xf32, #tpu.memory_space<vmem>>, vector<1x8x1x4xf32>
    %221 = vector.shape_cast %220 : vector<1x8x1x4xf32> to vector<8x1x4xf32>
    %c1_147 = arith.constant 1 : index
    %c0_148 = arith.constant 0 : index
    %c0_149 = arith.constant 0 : index
    %c0_150 = arith.constant 0 : index
    %222 = vector.load %arg7[%c1_147, %c0_148, %c0_149, %c0_150] : memref<2x8x1x4xf32, #tpu.memory_space<vmem>>, vector<1x8x1x4xf32>
    %223 = vector.shape_cast %222 : vector<1x8x1x4xf32> to vector<8x1x4xf32>
    %c1_151 = arith.constant 1 : index
    %c0_152 = arith.constant 0 : index
    %c0_153 = arith.constant 0 : index
    %c0_154 = arith.constant 0 : index
    %224 = vector.load %arg8[%c1_151, %c0_152, %c0_153, %c0_154] : memref<2x8x1x4xf32, #tpu.memory_space<vmem>>, vector<1x8x1x4xf32>
    %225 = vector.shape_cast %224 : vector<1x8x1x4xf32> to vector<8x1x4xf32>
    %c1_155 = arith.constant 1 : index
    %c0_156 = arith.constant 0 : index
    %c0_157 = arith.constant 0 : index
    %c0_158 = arith.constant 0 : index
    %226 = vector.load %arg9[%c1_155, %c0_156, %c0_157, %c0_158] : memref<2x8x4x32xbf16, #tpu.memory_space<vmem>>, vector<1x8x4x32xbf16>
    %227 = vector.shape_cast %226 : vector<1x8x4x32xbf16> to vector<8x4x32xbf16>
    %c1_159 = arith.constant 1 : index
    %c0_160 = arith.constant 0 : index
    %c0_161 = arith.constant 0 : index
    %228 = vector.load %arg10[%c1_159, %c0_160, %c0_161] : memref<2x1x32xf32, #tpu.memory_space<vmem>>, vector<1x1x32xf32>
    %229 = vector.shape_cast %228 : vector<1x1x32xf32> to vector<1x32xf32>
    %230 = arith.truncf %213 : vector<4x32xf32> to vector<4x32xbf16>
    %231 = vector.shape_cast %230 : vector<4x32xbf16> to vector<1x4x32xbf16>
    %232 = vector.shape_cast %231 : vector<1x4x32xbf16> to vector<1x4x32xbf16>
    %233 = vector.broadcast %232 : vector<1x4x32xbf16> to vector<8x4x32xbf16>
    %234 = arith.truncf %213 : vector<4x32xf32> to vector<4x32xbf16>
    %235 = vector.shape_cast %234 : vector<4x32xbf16> to vector<1x4x32xbf16>
    %236 = vector.shape_cast %235 : vector<1x4x32xbf16> to vector<1x4x32xbf16>
    %237 = vector.broadcast %236 : vector<1x4x32xbf16> to vector<8x4x32xbf16>
    "tpu.trace_start"() <{level = 10 : i32, message = "htd,hdc->htc"}> : () -> ()
    %cst_162 = arith.constant dense<0.000000e+00> : vector<8x4x4xf32>
    %238 = tpu.matmul %233, %215, %cst_162 {dimension_numbers = #tpu.dot_dimension_numbers<[2], [1], [1], [2], [0, 0, 0, 1, 1, 2], [0], [0]>} : vector<8x4x32xbf16>, vector<8x32x4xbf16>, vector<8x4x4xf32> -> vector<8x4x4xf32>
    "tpu.trace_stop"() : () -> ()
    %239 = vector.broadcast %221 : vector<8x1x4xf32> to vector<8x4x4xf32>
    %240 = arith.addf %238, %239 : vector<8x4x4xf32>
    "tpu.trace_start"() <{level = 10 : i32, message = "htd,hdc->htc"}> : () -> ()
    %cst_163 = arith.constant dense<0.000000e+00> : vector<8x4x4xf32>
    %241 = tpu.matmul %237, %217, %cst_163 {dimension_numbers = #tpu.dot_dimension_numbers<[2], [1], [1], [2], [0, 0, 0, 1, 1, 2], [0], [0]>} : vector<8x4x32xbf16>, vector<8x32x4xbf16>, vector<8x4x4xf32> -> vector<8x4x4xf32>
    "tpu.trace_stop"() : () -> ()
    %242 = vector.broadcast %223 : vector<8x1x4xf32> to vector<8x4x4xf32>
    %243 = arith.addf %241, %242 : vector<8x4x4xf32>
    "tpu.trace_start"() <{level = 10 : i32, message = "htd,hdc->htc"}> : () -> ()
    %cst_164 = arith.constant dense<0.000000e+00> : vector<8x4x4xf32>
    %244 = tpu.matmul %237, %219, %cst_164 {dimension_numbers = #tpu.dot_dimension_numbers<[2], [1], [1], [2], [0, 0, 0, 1, 1, 2], [0], [0]>} : vector<8x4x32xbf16>, vector<8x32x4xbf16>, vector<8x4x4xf32> -> vector<8x4x4xf32>
    "tpu.trace_stop"() : () -> ()
    %245 = vector.broadcast %225 : vector<8x1x4xf32> to vector<8x4x4xf32>
    %246 = arith.addf %244, %245 : vector<8x4x4xf32>
    %cst_165 = arith.constant 5.000000e-01 : f32
    %247 = vector.broadcast %cst_165 : f32 to vector<8x4x4xf32>
    %248 = arith.mulf %240, %247 : vector<8x4x4xf32>
    %249 = arith.truncf %248 : vector<8x4x4xf32> to vector<8x4x4xbf16>
    %250 = arith.truncf %243 : vector<8x4x4xf32> to vector<8x4x4xbf16>
    "tpu.trace_start"() <{level = 10 : i32, message = "hqc,hkc->hqk"}> : () -> ()
    %cst_166 = arith.constant dense<0.000000e+00> : vector<8x4x4xf32>
    %251 = tpu.matmul %249, %250, %cst_166 {dimension_numbers = #tpu.dot_dimension_numbers<[2], [2], [1], [1], [0, 0, 0, 1, 1, 1], [0], [0]>} : vector<8x4x4xbf16>, vector<8x4x4xbf16>, vector<8x4x4xf32> -> vector<8x4x4xf32>
    "tpu.trace_stop"() : () -> ()
    %cst_167 = arith.constant dense<0xFF800000> : vector<8x4xf32>
    %252 = vector.multi_reduction <maximumf>, %251, %cst_167 [2] : vector<8x4x4xf32> to vector<8x4xf32>
    %253 = vector.shape_cast %252 : vector<8x4xf32> to vector<8x4x1xf32>
    %254 = vector.broadcast %253 : vector<8x4x1xf32> to vector<8x4x4xf32>
    %255 = arith.subf %251, %254 : vector<8x4x4xf32>
    %256 = math.exp %255 : vector<8x4x4xf32>
    %cst_168 = arith.constant dense<0.000000e+00> : vector<8x4xf32>
    %257 = vector.multi_reduction <add>, %256, %cst_168 [2] : vector<8x4x4xf32> to vector<8x4xf32>
    %258 = vector.shape_cast %257 : vector<8x4xf32> to vector<8x4x1xf32>
    %259 = tpu.reciprocal %258 {approx = true} : vector<8x4x1xf32> -> vector<8x4x1xf32>
    %260 = vector.broadcast %259 : vector<8x4x1xf32> to vector<8x4x4xf32>
    %261 = arith.mulf %256, %260 : vector<8x4x4xf32>
    %262 = arith.truncf %261 : vector<8x4x4xf32> to vector<8x4x4xbf16>
    %263 = arith.truncf %246 : vector<8x4x4xf32> to vector<8x4x4xbf16>
    "tpu.trace_start"() <{level = 10 : i32, message = "hqk,hkc->hqc"}> : () -> ()
    %cst_169 = arith.constant dense<0.000000e+00> : vector<8x4x4xf32>
    %264 = tpu.matmul %262, %263, %cst_169 {dimension_numbers = #tpu.dot_dimension_numbers<[2], [1], [1], [2], [0, 0, 0, 1, 1, 2], [0], [0]>} : vector<8x4x4xbf16>, vector<8x4x4xbf16>, vector<8x4x4xf32> -> vector<8x4x4xf32>
    "tpu.trace_stop"() : () -> ()
    %265 = arith.truncf %264 : vector<8x4x4xf32> to vector<8x4x4xbf16>
    "tpu.trace_start"() <{level = 10 : i32, message = "htc,hcd->htd"}> : () -> ()
    %cst_170 = arith.constant dense<0.000000e+00> : vector<8x4x32xf32>
    %266 = tpu.matmul %265, %227, %cst_170 {dimension_numbers = #tpu.dot_dimension_numbers<[2], [1], [1], [2], [0, 0, 0, 1, 1, 2], [0], [0]>} : vector<8x4x4xbf16>, vector<8x4x32xbf16>, vector<8x4x32xf32> -> vector<8x4x32xf32>
    "tpu.trace_stop"() : () -> ()
    %cst_171 = arith.constant dense<0.000000e+00> : vector<4x32xf32>
    %267 = vector.multi_reduction <add>, %266, %cst_171 [0] : vector<8x4x32xf32> to vector<4x32xf32>
    %268 = vector.broadcast %229 : vector<1x32xf32> to vector<4x32xf32>
    %269 = arith.addf %267, %268 : vector<4x32xf32>
    %270 = arith.addf %213, %269 : vector<4x32xf32>
    %c3 = arith.constant 3 : index
    %c0_172 = arith.constant 0 : index
    %c0_173 = arith.constant 0 : index
    %271 = vector.load %arg23[%c3, %c0_172, %c0_173] : memref<7x1x32xf32, #tpu.memory_space<vmem>>, vector<1x1x32xf32>
    %272 = vector.shape_cast %271 : vector<1x1x32xf32> to vector<1x32xf32>
    %c3_174 = arith.constant 3 : index
    %c0_175 = arith.constant 0 : index
    %c0_176 = arith.constant 0 : index
    %273 = vector.load %arg24[%c3_174, %c0_175, %c0_176] : memref<7x1x32xf32, #tpu.memory_space<vmem>>, vector<1x1x32xf32>
    %274 = vector.shape_cast %273 : vector<1x1x32xf32> to vector<1x32xf32>
    %cst_177 = arith.constant dense<0.000000e+00> : vector<4xf32>
    %275 = vector.multi_reduction <add>, %270, %cst_177 [1] : vector<4x32xf32> to vector<4xf32>
    %276 = vector.shape_cast %275 : vector<4xf32> to vector<4x1xf32>
    %cst_178 = arith.constant 3.200000e+01 : f32
    %277 = vector.broadcast %cst_178 : f32 to vector<4x1xf32>
    %278 = arith.divf %276, %277 : vector<4x1xf32>
    %279 = vector.broadcast %278 : vector<4x1xf32> to vector<4x32xf32>
    %280 = arith.subf %270, %279 : vector<4x32xf32>
    %281 = arith.mulf %280, %280 : vector<4x32xf32>
    %cst_179 = arith.constant dense<0.000000e+00> : vector<4xf32>
    %282 = vector.multi_reduction <add>, %281, %cst_179 [1] : vector<4x32xf32> to vector<4xf32>
    %283 = vector.shape_cast %282 : vector<4xf32> to vector<4x1xf32>
    %cst_180 = arith.constant 3.200000e+01 : f32
    %284 = vector.broadcast %cst_180 : f32 to vector<4x1xf32>
    %285 = arith.divf %283, %284 : vector<4x1xf32>
    %286 = vector.broadcast %278 : vector<4x1xf32> to vector<4x32xf32>
    %287 = arith.subf %270, %286 : vector<4x32xf32>
    %cst_181 = arith.constant 9.99999974E-6 : f32
    %288 = vector.broadcast %cst_181 : f32 to vector<4x1xf32>
    %289 = arith.addf %285, %288 : vector<4x1xf32>
    %290 = math.rsqrt %289 : vector<4x1xf32>
    %291 = vector.broadcast %290 : vector<4x1xf32> to vector<4x32xf32>
    %292 = arith.mulf %287, %291 : vector<4x32xf32>
    %293 = vector.broadcast %272 : vector<1x32xf32> to vector<4x32xf32>
    %294 = arith.mulf %292, %293 : vector<4x32xf32>
    %295 = vector.broadcast %274 : vector<1x32xf32> to vector<4x32xf32>
    %296 = arith.addf %294, %295 : vector<4x32xf32>
    %c1_182 = arith.constant 1 : index
    %c0_183 = arith.constant 0 : index
    %c0_184 = arith.constant 0 : index
    %c0_185 = arith.constant 0 : index
    %297 = vector.load %arg11[%c1_182, %c0_183, %c0_184, %c0_185] : memref<2x8x32x4xbf16, #tpu.memory_space<vmem>>, vector<1x8x32x4xbf16>
    %298 = vector.shape_cast %297 : vector<1x8x32x4xbf16> to vector<8x32x4xbf16>
    %c1_186 = arith.constant 1 : index
    %c0_187 = arith.constant 0 : index
    %c0_188 = arith.constant 0 : index
    %c0_189 = arith.constant 0 : index
    %299 = vector.load %arg12[%c1_186, %c0_187, %c0_188, %c0_189] : memref<2x8x32x4xbf16, #tpu.memory_space<vmem>>, vector<1x8x32x4xbf16>
    %300 = vector.shape_cast %299 : vector<1x8x32x4xbf16> to vector<8x32x4xbf16>
    %c1_190 = arith.constant 1 : index
    %c0_191 = arith.constant 0 : index
    %c0_192 = arith.constant 0 : index
    %c0_193 = arith.constant 0 : index
    %301 = vector.load %arg13[%c1_190, %c0_191, %c0_192, %c0_193] : memref<2x8x32x4xbf16, #tpu.memory_space<vmem>>, vector<1x8x32x4xbf16>
    %302 = vector.shape_cast %301 : vector<1x8x32x4xbf16> to vector<8x32x4xbf16>
    %c1_194 = arith.constant 1 : index
    %c0_195 = arith.constant 0 : index
    %c0_196 = arith.constant 0 : index
    %c0_197 = arith.constant 0 : index
    %303 = vector.load %arg14[%c1_194, %c0_195, %c0_196, %c0_197] : memref<2x8x1x4xf32, #tpu.memory_space<vmem>>, vector<1x8x1x4xf32>
    %304 = vector.shape_cast %303 : vector<1x8x1x4xf32> to vector<8x1x4xf32>
    %c1_198 = arith.constant 1 : index
    %c0_199 = arith.constant 0 : index
    %c0_200 = arith.constant 0 : index
    %c0_201 = arith.constant 0 : index
    %305 = vector.load %arg15[%c1_198, %c0_199, %c0_200, %c0_201] : memref<2x8x1x4xf32, #tpu.memory_space<vmem>>, vector<1x8x1x4xf32>
    %306 = vector.shape_cast %305 : vector<1x8x1x4xf32> to vector<8x1x4xf32>
    %c1_202 = arith.constant 1 : index
    %c0_203 = arith.constant 0 : index
    %c0_204 = arith.constant 0 : index
    %c0_205 = arith.constant 0 : index
    %307 = vector.load %arg16[%c1_202, %c0_203, %c0_204, %c0_205] : memref<2x8x1x4xf32, #tpu.memory_space<vmem>>, vector<1x8x1x4xf32>
    %308 = vector.shape_cast %307 : vector<1x8x1x4xf32> to vector<8x1x4xf32>
    %c1_206 = arith.constant 1 : index
    %c0_207 = arith.constant 0 : index
    %c0_208 = arith.constant 0 : index
    %c0_209 = arith.constant 0 : index
    %309 = vector.load %arg17[%c1_206, %c0_207, %c0_208, %c0_209] : memref<2x8x4x32xbf16, #tpu.memory_space<vmem>>, vector<1x8x4x32xbf16>
    %310 = vector.shape_cast %309 : vector<1x8x4x32xbf16> to vector<8x4x32xbf16>
    %c1_210 = arith.constant 1 : index
    %c0_211 = arith.constant 0 : index
    %c0_212 = arith.constant 0 : index
    %311 = vector.load %arg18[%c1_210, %c0_211, %c0_212] : memref<2x1x32xf32, #tpu.memory_space<vmem>>, vector<1x1x32xf32>
    %312 = vector.shape_cast %311 : vector<1x1x32xf32> to vector<1x32xf32>
    %313 = arith.truncf %296 : vector<4x32xf32> to vector<4x32xbf16>
    %314 = vector.shape_cast %313 : vector<4x32xbf16> to vector<1x4x32xbf16>
    %315 = vector.shape_cast %314 : vector<1x4x32xbf16> to vector<1x4x32xbf16>
    %316 = vector.broadcast %315 : vector<1x4x32xbf16> to vector<8x4x32xbf16>
    %317 = arith.truncf %2 : vector<5x32xf32> to vector<5x32xbf16>
    %318 = vector.shape_cast %317 : vector<5x32xbf16> to vector<1x5x32xbf16>
    %319 = vector.shape_cast %318 : vector<1x5x32xbf16> to vector<1x5x32xbf16>
    %320 = vector.broadcast %319 : vector<1x5x32xbf16> to vector<8x5x32xbf16>
    "tpu.trace_start"() <{level = 10 : i32, message = "htd,hdc->htc"}> : () -> ()
    %cst_213 = arith.constant dense<0.000000e+00> : vector<8x4x4xf32>
    %321 = tpu.matmul %316, %298, %cst_213 {dimension_numbers = #tpu.dot_dimension_numbers<[2], [1], [1], [2], [0, 0, 0, 1, 1, 2], [0], [0]>} : vector<8x4x32xbf16>, vector<8x32x4xbf16>, vector<8x4x4xf32> -> vector<8x4x4xf32>
    "tpu.trace_stop"() : () -> ()
    %322 = vector.broadcast %304 : vector<8x1x4xf32> to vector<8x4x4xf32>
    %323 = arith.addf %321, %322 : vector<8x4x4xf32>
    "tpu.trace_start"() <{level = 10 : i32, message = "htd,hdc->htc"}> : () -> ()
    %cst_214 = arith.constant dense<0.000000e+00> : vector<8x5x4xf32>
    %324 = tpu.matmul %320, %300, %cst_214 {dimension_numbers = #tpu.dot_dimension_numbers<[2], [1], [1], [2], [0, 0, 0, 1, 1, 2], [0], [0]>} : vector<8x5x32xbf16>, vector<8x32x4xbf16>, vector<8x5x4xf32> -> vector<8x5x4xf32>
    "tpu.trace_stop"() : () -> ()
    %325 = vector.broadcast %306 : vector<8x1x4xf32> to vector<8x5x4xf32>
    %326 = arith.addf %324, %325 : vector<8x5x4xf32>
    "tpu.trace_start"() <{level = 10 : i32, message = "htd,hdc->htc"}> : () -> ()
    %cst_215 = arith.constant dense<0.000000e+00> : vector<8x5x4xf32>
    %327 = tpu.matmul %320, %302, %cst_215 {dimension_numbers = #tpu.dot_dimension_numbers<[2], [1], [1], [2], [0, 0, 0, 1, 1, 2], [0], [0]>} : vector<8x5x32xbf16>, vector<8x32x4xbf16>, vector<8x5x4xf32> -> vector<8x5x4xf32>
    "tpu.trace_stop"() : () -> ()
    %328 = vector.broadcast %308 : vector<8x1x4xf32> to vector<8x5x4xf32>
    %329 = arith.addf %327, %328 : vector<8x5x4xf32>
    %cst_216 = arith.constant 5.000000e-01 : f32
    %330 = vector.broadcast %cst_216 : f32 to vector<8x4x4xf32>
    %331 = arith.mulf %323, %330 : vector<8x4x4xf32>
    %332 = arith.truncf %331 : vector<8x4x4xf32> to vector<8x4x4xbf16>
    %333 = arith.truncf %326 : vector<8x5x4xf32> to vector<8x5x4xbf16>
    "tpu.trace_start"() <{level = 10 : i32, message = "hqc,hkc->hqk"}> : () -> ()
    %cst_217 = arith.constant dense<0.000000e+00> : vector<8x4x5xf32>
    %334 = tpu.matmul %332, %333, %cst_217 {dimension_numbers = #tpu.dot_dimension_numbers<[2], [2], [1], [1], [0, 0, 0, 1, 1, 1], [0], [0]>} : vector<8x4x4xbf16>, vector<8x5x4xbf16>, vector<8x4x5xf32> -> vector<8x4x5xf32>
    "tpu.trace_stop"() : () -> ()
    %cst_218 = arith.constant dense<0xFF800000> : vector<8x4xf32>
    %335 = vector.multi_reduction <maximumf>, %334, %cst_218 [2] : vector<8x4x5xf32> to vector<8x4xf32>
    %336 = vector.shape_cast %335 : vector<8x4xf32> to vector<8x4x1xf32>
    %337 = vector.broadcast %336 : vector<8x4x1xf32> to vector<8x4x5xf32>
    %338 = arith.subf %334, %337 : vector<8x4x5xf32>
    %339 = math.exp %338 : vector<8x4x5xf32>
    %cst_219 = arith.constant dense<0.000000e+00> : vector<8x4xf32>
    %340 = vector.multi_reduction <add>, %339, %cst_219 [2] : vector<8x4x5xf32> to vector<8x4xf32>
    %341 = vector.shape_cast %340 : vector<8x4xf32> to vector<8x4x1xf32>
    %342 = tpu.reciprocal %341 {approx = true} : vector<8x4x1xf32> -> vector<8x4x1xf32>
    %343 = vector.broadcast %342 : vector<8x4x1xf32> to vector<8x4x5xf32>
    %344 = arith.mulf %339, %343 : vector<8x4x5xf32>
    %345 = arith.truncf %344 : vector<8x4x5xf32> to vector<8x4x5xbf16>
    %346 = arith.truncf %329 : vector<8x5x4xf32> to vector<8x5x4xbf16>
    "tpu.trace_start"() <{level = 10 : i32, message = "hqk,hkc->hqc"}> : () -> ()
    %cst_220 = arith.constant dense<0.000000e+00> : vector<8x4x4xf32>
    %347 = tpu.matmul %345, %346, %cst_220 {dimension_numbers = #tpu.dot_dimension_numbers<[2], [1], [1], [2], [0, 0, 0, 1, 1, 2], [0], [0]>} : vector<8x4x5xbf16>, vector<8x5x4xbf16>, vector<8x4x4xf32> -> vector<8x4x4xf32>
    "tpu.trace_stop"() : () -> ()
    %348 = arith.truncf %347 : vector<8x4x4xf32> to vector<8x4x4xbf16>
    "tpu.trace_start"() <{level = 10 : i32, message = "htc,hcd->htd"}> : () -> ()
    %cst_221 = arith.constant dense<0.000000e+00> : vector<8x4x32xf32>
    %349 = tpu.matmul %348, %310, %cst_221 {dimension_numbers = #tpu.dot_dimension_numbers<[2], [1], [1], [2], [0, 0, 0, 1, 1, 2], [0], [0]>} : vector<8x4x4xbf16>, vector<8x4x32xbf16>, vector<8x4x32xf32> -> vector<8x4x32xf32>
    "tpu.trace_stop"() : () -> ()
    %cst_222 = arith.constant dense<0.000000e+00> : vector<4x32xf32>
    %350 = vector.multi_reduction <add>, %349, %cst_222 [0] : vector<8x4x32xf32> to vector<4x32xf32>
    %351 = vector.broadcast %312 : vector<1x32xf32> to vector<4x32xf32>
    %352 = arith.addf %350, %351 : vector<4x32xf32>
    %353 = arith.addf %296, %352 : vector<4x32xf32>
    %c4 = arith.constant 4 : index
    %c0_223 = arith.constant 0 : index
    %c0_224 = arith.constant 0 : index
    %354 = vector.load %arg23[%c4, %c0_223, %c0_224] : memref<7x1x32xf32, #tpu.memory_space<vmem>>, vector<1x1x32xf32>
    %355 = vector.shape_cast %354 : vector<1x1x32xf32> to vector<1x32xf32>
    %c4_225 = arith.constant 4 : index
    %c0_226 = arith.constant 0 : index
    %c0_227 = arith.constant 0 : index
    %356 = vector.load %arg24[%c4_225, %c0_226, %c0_227] : memref<7x1x32xf32, #tpu.memory_space<vmem>>, vector<1x1x32xf32>
    %357 = vector.shape_cast %356 : vector<1x1x32xf32> to vector<1x32xf32>
    %cst_228 = arith.constant dense<0.000000e+00> : vector<4xf32>
    %358 = vector.multi_reduction <add>, %353, %cst_228 [1] : vector<4x32xf32> to vector<4xf32>
    %359 = vector.shape_cast %358 : vector<4xf32> to vector<4x1xf32>
    %cst_229 = arith.constant 3.200000e+01 : f32
    %360 = vector.broadcast %cst_229 : f32 to vector<4x1xf32>
    %361 = arith.divf %359, %360 : vector<4x1xf32>
    %362 = vector.broadcast %361 : vector<4x1xf32> to vector<4x32xf32>
    %363 = arith.subf %353, %362 : vector<4x32xf32>
    %364 = arith.mulf %363, %363 : vector<4x32xf32>
    %cst_230 = arith.constant dense<0.000000e+00> : vector<4xf32>
    %365 = vector.multi_reduction <add>, %364, %cst_230 [1] : vector<4x32xf32> to vector<4xf32>
    %366 = vector.shape_cast %365 : vector<4xf32> to vector<4x1xf32>
    %cst_231 = arith.constant 3.200000e+01 : f32
    %367 = vector.broadcast %cst_231 : f32 to vector<4x1xf32>
    %368 = arith.divf %366, %367 : vector<4x1xf32>
    %369 = vector.broadcast %361 : vector<4x1xf32> to vector<4x32xf32>
    %370 = arith.subf %353, %369 : vector<4x32xf32>
    %cst_232 = arith.constant 9.99999974E-6 : f32
    %371 = vector.broadcast %cst_232 : f32 to vector<4x1xf32>
    %372 = arith.addf %368, %371 : vector<4x1xf32>
    %373 = math.rsqrt %372 : vector<4x1xf32>
    %374 = vector.broadcast %373 : vector<4x1xf32> to vector<4x32xf32>
    %375 = arith.mulf %370, %374 : vector<4x32xf32>
    %376 = vector.broadcast %355 : vector<1x32xf32> to vector<4x32xf32>
    %377 = arith.mulf %375, %376 : vector<4x32xf32>
    %378 = vector.broadcast %357 : vector<1x32xf32> to vector<4x32xf32>
    %379 = arith.addf %377, %378 : vector<4x32xf32>
    %c1_233 = arith.constant 1 : index
    %c0_234 = arith.constant 0 : index
    %c0_235 = arith.constant 0 : index
    %380 = vector.load %arg19[%c1_233, %c0_234, %c0_235] : memref<2x32x32xbf16, #tpu.memory_space<vmem>>, vector<1x32x32xbf16>
    %381 = vector.shape_cast %380 : vector<1x32x32xbf16> to vector<32x32xbf16>
    %c1_236 = arith.constant 1 : index
    %c0_237 = arith.constant 0 : index
    %c0_238 = arith.constant 0 : index
    %382 = vector.load %arg20[%c1_236, %c0_237, %c0_238] : memref<2x1x32xf32, #tpu.memory_space<vmem>>, vector<1x1x32xf32>
    %383 = vector.shape_cast %382 : vector<1x1x32xf32> to vector<1x32xf32>
    %c1_239 = arith.constant 1 : index
    %c0_240 = arith.constant 0 : index
    %c0_241 = arith.constant 0 : index
    %384 = vector.load %arg21[%c1_239, %c0_240, %c0_241] : memref<2x32x32xbf16, #tpu.memory_space<vmem>>, vector<1x32x32xbf16>
    %385 = vector.shape_cast %384 : vector<1x32x32xbf16> to vector<32x32xbf16>
    %c1_242 = arith.constant 1 : index
    %c0_243 = arith.constant 0 : index
    %c0_244 = arith.constant 0 : index
    %386 = vector.load %arg22[%c1_242, %c0_243, %c0_244] : memref<2x1x32xf32, #tpu.memory_space<vmem>>, vector<1x1x32xf32>
    %387 = vector.shape_cast %386 : vector<1x1x32xf32> to vector<1x32xf32>
    %388 = arith.truncf %379 : vector<4x32xf32> to vector<4x32xbf16>
    %cst_245 = arith.constant dense<0.000000e+00> : vector<4x32xf32>
    %389 = tpu.matmul %388, %381, %cst_245 {dimension_numbers = #tpu.dot_dimension_numbers<[1], [0], [0], [1], [0, 0, 1, 1], [], []>} : vector<4x32xbf16>, vector<32x32xbf16>, vector<4x32xf32> -> vector<4x32xf32>
    %390 = vector.broadcast %383 : vector<1x32xf32> to vector<4x32xf32>
    %391 = arith.addf %389, %390 : vector<4x32xf32>
    %cst_246 = arith.constant 0.000000e+00 : f32
    %392 = vector.broadcast %cst_246 : f32 to vector<4x32xf32>
    %393 = arith.maximumf %391, %392 : vector<4x32xf32>
    %394 = arith.truncf %393 : vector<4x32xf32> to vector<4x32xbf16>
    %cst_247 = arith.constant dense<0.000000e+00> : vector<4x32xf32>
    %395 = tpu.matmul %394, %385, %cst_247 {dimension_numbers = #tpu.dot_dimension_numbers<[1], [0], [0], [1], [0, 0, 1, 1], [], []>} : vector<4x32xbf16>, vector<32x32xbf16>, vector<4x32xf32> -> vector<4x32xf32>
    %396 = vector.broadcast %387 : vector<1x32xf32> to vector<4x32xf32>
    %397 = arith.addf %395, %396 : vector<4x32xf32>
    %398 = arith.addf %379, %397 : vector<4x32xf32>
    %c5 = arith.constant 5 : index
    %c0_248 = arith.constant 0 : index
    %c0_249 = arith.constant 0 : index
    %399 = vector.load %arg23[%c5, %c0_248, %c0_249] : memref<7x1x32xf32, #tpu.memory_space<vmem>>, vector<1x1x32xf32>
    %400 = vector.shape_cast %399 : vector<1x1x32xf32> to vector<1x32xf32>
    %c5_250 = arith.constant 5 : index
    %c0_251 = arith.constant 0 : index
    %c0_252 = arith.constant 0 : index
    %401 = vector.load %arg24[%c5_250, %c0_251, %c0_252] : memref<7x1x32xf32, #tpu.memory_space<vmem>>, vector<1x1x32xf32>
    %402 = vector.shape_cast %401 : vector<1x1x32xf32> to vector<1x32xf32>
    %cst_253 = arith.constant dense<0.000000e+00> : vector<4xf32>
    %403 = vector.multi_reduction <add>, %398, %cst_253 [1] : vector<4x32xf32> to vector<4xf32>
    %404 = vector.shape_cast %403 : vector<4xf32> to vector<4x1xf32>
    %cst_254 = arith.constant 3.200000e+01 : f32
    %405 = vector.broadcast %cst_254 : f32 to vector<4x1xf32>
    %406 = arith.divf %404, %405 : vector<4x1xf32>
    %407 = vector.broadcast %406 : vector<4x1xf32> to vector<4x32xf32>
    %408 = arith.subf %398, %407 : vector<4x32xf32>
    %409 = arith.mulf %408, %408 : vector<4x32xf32>
    %cst_255 = arith.constant dense<0.000000e+00> : vector<4xf32>
    %410 = vector.multi_reduction <add>, %409, %cst_255 [1] : vector<4x32xf32> to vector<4xf32>
    %411 = vector.shape_cast %410 : vector<4xf32> to vector<4x1xf32>
    %cst_256 = arith.constant 3.200000e+01 : f32
    %412 = vector.broadcast %cst_256 : f32 to vector<4x1xf32>
    %413 = arith.divf %411, %412 : vector<4x1xf32>
    %414 = vector.broadcast %406 : vector<4x1xf32> to vector<4x32xf32>
    %415 = arith.subf %398, %414 : vector<4x32xf32>
    %cst_257 = arith.constant 9.99999974E-6 : f32
    %416 = vector.broadcast %cst_257 : f32 to vector<4x1xf32>
    %417 = arith.addf %413, %416 : vector<4x1xf32>
    %418 = math.rsqrt %417 : vector<4x1xf32>
    %419 = vector.broadcast %418 : vector<4x1xf32> to vector<4x32xf32>
    %420 = arith.mulf %415, %419 : vector<4x32xf32>
    %421 = vector.broadcast %400 : vector<1x32xf32> to vector<4x32xf32>
    %422 = arith.mulf %420, %421 : vector<4x32xf32>
    %423 = vector.broadcast %402 : vector<1x32xf32> to vector<4x32xf32>
    %424 = arith.addf %422, %423 : vector<4x32xf32>
    %c6 = arith.constant 6 : index
    %c0_258 = arith.constant 0 : index
    %c0_259 = arith.constant 0 : index
    %425 = vector.load %arg23[%c6, %c0_258, %c0_259] : memref<7x1x32xf32, #tpu.memory_space<vmem>>, vector<1x1x32xf32>
    %426 = vector.shape_cast %425 : vector<1x1x32xf32> to vector<1x32xf32>
    %c6_260 = arith.constant 6 : index
    %c0_261 = arith.constant 0 : index
    %c0_262 = arith.constant 0 : index
    %427 = vector.load %arg24[%c6_260, %c0_261, %c0_262] : memref<7x1x32xf32, #tpu.memory_space<vmem>>, vector<1x1x32xf32>
    %428 = vector.shape_cast %427 : vector<1x1x32xf32> to vector<1x32xf32>
    %cst_263 = arith.constant dense<0.000000e+00> : vector<4xf32>
    %429 = vector.multi_reduction <add>, %424, %cst_263 [1] : vector<4x32xf32> to vector<4xf32>
    %430 = vector.shape_cast %429 : vector<4xf32> to vector<4x1xf32>
    %cst_264 = arith.constant 3.200000e+01 : f32
    %431 = vector.broadcast %cst_264 : f32 to vector<4x1xf32>
    %432 = arith.divf %430, %431 : vector<4x1xf32>
    %433 = vector.broadcast %432 : vector<4x1xf32> to vector<4x32xf32>
    %434 = arith.subf %424, %433 : vector<4x32xf32>
    %435 = arith.mulf %434, %434 : vector<4x32xf32>
    %cst_265 = arith.constant dense<0.000000e+00> : vector<4xf32>
    %436 = vector.multi_reduction <add>, %435, %cst_265 [1] : vector<4x32xf32> to vector<4xf32>
    %437 = vector.shape_cast %436 : vector<4xf32> to vector<4x1xf32>
    %cst_266 = arith.constant 3.200000e+01 : f32
    %438 = vector.broadcast %cst_266 : f32 to vector<4x1xf32>
    %439 = arith.divf %437, %438 : vector<4x1xf32>
    %440 = vector.broadcast %432 : vector<4x1xf32> to vector<4x32xf32>
    %441 = arith.subf %424, %440 : vector<4x32xf32>
    %cst_267 = arith.constant 9.99999974E-6 : f32
    %442 = vector.broadcast %cst_267 : f32 to vector<4x1xf32>
    %443 = arith.addf %439, %442 : vector<4x1xf32>
    %444 = math.rsqrt %443 : vector<4x1xf32>
    %445 = vector.broadcast %444 : vector<4x1xf32> to vector<4x32xf32>
    %446 = arith.mulf %441, %445 : vector<4x32xf32>
    %447 = vector.broadcast %426 : vector<1x32xf32> to vector<4x32xf32>
    %448 = arith.mulf %446, %447 : vector<4x32xf32>
    %449 = vector.broadcast %428 : vector<1x32xf32> to vector<4x32xf32>
    %450 = arith.addf %448, %449 : vector<4x32xf32>
    %c0_268 = arith.constant 0 : index
    %c0_269 = arith.constant 0 : index
    %c0_270 = arith.constant 0 : index
    %451 = vector.load %arg25[%c0_268, %c0_269, %c0_270] : memref<1x4x32xf32, #tpu.memory_space<vmem>>, vector<1x4x32xf32>
    %452 = vector.shape_cast %451 : vector<1x4x32xf32> to vector<4x32xf32>
    %453 = vector.shape_cast %450 : vector<4x32xf32> to vector<1x4x32xf32>
    tpu.vector_store %arg25[%c0_268, %c0_269, %c0_270], %453 {strides = array<i32>} : memref<1x4x32xf32, #tpu.memory_space<vmem>>, vector<1x4x32xf32>,
    return
  }
  func.func @transform_0(%arg0: i32) -> (i32, i32) {
    %c0_i32 = arith.constant 0 : i32
    %c0_i32_0 = arith.constant 0 : i32
    %c0_i32_1 = arith.constant 0 : i32
    return %c0_i32, %c0_i32_0 : i32, i32
  }
  func.func @transform_1(%arg0: i32) -> (i32, i32, i32) {
    %c0_i32 = arith.constant 0 : i32
    %c0_i32_0 = arith.constant 0 : i32
    %c0_i32_1 = arith.constant 0 : i32
    return %arg0, %c0_i32, %c0_i32_0 : i32, i32, i32
  }
  func.func @transform_2(%arg0: i32) -> (i32, i32, i32, i32) {
    %c0_i32 = arith.constant 0 : i32
    %c0_i32_0 = arith.constant 0 : i32
    %c0_i32_1 = arith.constant 0 : i32
    %c0_i32_2 = arith.constant 0 : i32
    %c0_i32_3 = arith.constant 0 : i32
    return %c0_i32, %c0_i32_0, %c0_i32_1, %c0_i32_2 : i32, i32, i32, i32
  }
  func.func @transform_3(%arg0: i32) -> (i32, i32, i32, i32) {
    %c0_i32 = arith.constant 0 : i32
    %c0_i32_0 = arith.constant 0 : i32
    %c0_i32_1 = arith.constant 0 : i32
    %c0_i32_2 = arith.constant 0 : i32
    %c0_i32_3 = arith.constant 0 : i32
    return %c0_i32, %c0_i32_0, %c0_i32_1, %c0_i32_2 : i32, i32, i32, i32
  }
  func.func @transform_4(%arg0: i32) -> (i32, i32, i32, i32) {
    %c0_i32 = arith.constant 0 : i32
    %c0_i32_0 = arith.constant 0 : i32
    %c0_i32_1 = arith.constant 0 : i32
    %c0_i32_2 = arith.constant 0 : i32
    %c0_i32_3 = arith.constant 0 : i32
    return %c0_i32, %c0_i32_0, %c0_i32_1, %c0_i32_2 : i32, i32, i32, i32
  }
  func.func @transform_5(%arg0: i32) -> (i32, i32, i32, i32) {
    %c0_i32 = arith.constant 0 : i32
    %c0_i32_0 = arith.constant 0 : i32
    %c0_i32_1 = arith.constant 0 : i32
    %c0_i32_2 = arith.constant 0 : i32
    %c0_i32_3 = arith.constant 0 : i32
    return %c0_i32, %c0_i32_0, %c0_i32_1, %c0_i32_2 : i32, i32, i32, i32
  }
  func.func @transform_6(%arg0: i32) -> (i32, i32, i32, i32) {
    %c0_i32 = arith.constant 0 : i32
    %c0_i32_0 = arith.constant 0 : i32
    %c0_i32_1 = arith.constant 0 : i32
    %c0_i32_2 = arith.constant 0 : i32
    %c0_i32_3 = arith.constant 0 : i32
    return %c0_i32, %c0_i32_0, %c0_i32_1, %c0_i32_2 : i32, i32, i32, i32
  }
  func.func @transform_7(%arg0: i32) -> (i32, i32, i32, i32) {
    %c0_i32 = arith.constant 0 : i32
    %c0_i32_0 = arith.constant 0 : i32
    %c0_i32_1 = arith.constant 0 : i32
    %c0_i32_2 = arith.constant 0 : i32
    %c0_i32_3 = arith.constant 0 : i32
    return %c0_i32, %c0_i32_0, %c0_i32_1, %c0_i32_2 : i32, i32, i32, i32
  }
  func.func @transform_8(%arg0: i32) -> (i32, i32, i32, i32) {
    %c0_i32 = arith.constant 0 : i32
    %c0_i32_0 = arith.constant 0 : i32
    %c0_i32_1 = arith.constant 0 : i32
    %c0_i32_2 = arith.constant 0 : i32
    %c0_i32_3 = arith.constant 0 : i32
    return %c0_i32, %c0_i32_0, %c0_i32_1, %c0_i32_2 : i32, i32, i32, i32
  }
  func.func @transform_9(%arg0: i32) -> (i32, i32, i32) {
    %c0_i32 = arith.constant 0 : i32
    %c0_i32_0 = arith.constant 0 : i32
    %c0_i32_1 = arith.constant 0 : i32
    %c0_i32_2 = arith.constant 0 : i32
    return %c0_i32, %c0_i32_0, %c0_i32_1 : i32, i32, i32
  }
  func.func @transform_10(%arg0: i32) -> (i32, i32, i32, i32) {
    %c0_i32 = arith.constant 0 : i32
    %c0_i32_0 = arith.constant 0 : i32
    %c0_i32_1 = arith.constant 0 : i32
    %c0_i32_2 = arith.constant 0 : i32
    %c0_i32_3 = arith.constant 0 : i32
    return %c0_i32, %c0_i32_0, %c0_i32_1, %c0_i32_2 : i32, i32, i32, i32
  }
  func.func @transform_11(%arg0: i32) -> (i32, i32, i32, i32) {
    %c0_i32 = arith.constant 0 : i32
    %c0_i32_0 = arith.constant 0 : i32
    %c0_i32_1 = arith.constant 0 : i32
    %c0_i32_2 = arith.constant 0 : i32
    %c0_i32_3 = arith.constant 0 : i32
    return %c0_i32, %c0_i32_0, %c0_i32_1, %c0_i32_2 : i32, i32, i32, i32
  }
  func.func @transform_12(%arg0: i32) -> (i32, i32, i32, i32) {
    %c0_i32 = arith.constant 0 : i32
    %c0_i32_0 = arith.constant 0 : i32
    %c0_i32_1 = arith.constant 0 : i32
    %c0_i32_2 = arith.constant 0 : i32
    %c0_i32_3 = arith.constant 0 : i32
    return %c0_i32, %c0_i32_0, %c0_i32_1, %c0_i32_2 : i32, i32, i32, i32
  }
  func.func @transform_13(%arg0: i32) -> (i32, i32, i32, i32) {
    %c0_i32 = arith.constant 0 : i32
    %c0_i32_0 = arith.constant 0 : i32
    %c0_i32_1 = arith.constant 0 : i32
    %c0_i32_2 = arith.constant 0 : i32
    %c0_i32_3 = arith.constant 0 : i32
    return %c0_i32, %c0_i32_0, %c0_i32_1, %c0_i32_2 : i32, i32, i32, i32
  }
  func.func @transform_14(%arg0: i32) -> (i32, i32, i32, i32) {
    %c0_i32 = arith.constant 0 : i32
    %c0_i32_0 = arith.constant 0 : i32
    %c0_i32_1 = arith.constant 0 : i32
    %c0_i32_2 = arith.constant 0 : i32
    %c0_i32_3 = arith.constant 0 : i32
    return %c0_i32, %c0_i32_0, %c0_i32_1, %c0_i32_2 : i32, i32, i32, i32
  }
  func.func @transform_15(%arg0: i32) -> (i32, i32, i32, i32) {
    %c0_i32 = arith.constant 0 : i32
    %c0_i32_0 = arith.constant 0 : i32
    %c0_i32_1 = arith.constant 0 : i32
    %c0_i32_2 = arith.constant 0 : i32
    %c0_i32_3 = arith.constant 0 : i32
    return %c0_i32, %c0_i32_0, %c0_i32_1, %c0_i32_2 : i32, i32, i32, i32
  }
  func.func @transform_16(%arg0: i32) -> (i32, i32, i32, i32) {
    %c0_i32 = arith.constant 0 : i32
    %c0_i32_0 = arith.constant 0 : i32
    %c0_i32_1 = arith.constant 0 : i32
    %c0_i32_2 = arith.constant 0 : i32
    %c0_i32_3 = arith.constant 0 : i32
    return %c0_i32, %c0_i32_0, %c0_i32_1, %c0_i32_2 : i32, i32, i32, i32
  }
  func.func @transform_17(%arg0: i32) -> (i32, i32, i32) {
    %c0_i32 = arith.constant 0 : i32
    %c0_i32_0 = arith.constant 0 : i32
    %c0_i32_1 = arith.constant 0 : i32
    %c0_i32_2 = arith.constant 0 : i32
    return %c0_i32, %c0_i32_0, %c0_i32_1 : i32, i32, i32
  }
  func.func @transform_18(%arg0: i32) -> (i32, i32, i32) {
    %c0_i32 = arith.constant 0 : i32
    %c0_i32_0 = arith.constant 0 : i32
    %c0_i32_1 = arith.constant 0 : i32
    %c0_i32_2 = arith.constant 0 : i32
    return %c0_i32, %c0_i32_0, %c0_i32_1 : i32, i32, i32
  }
  func.func @transform_19(%arg0: i32) -> (i32, i32, i32) {
    %c0_i32 = arith.constant 0 : i32
    %c0_i32_0 = arith.constant 0 : i32
    %c0_i32_1 = arith.constant 0 : i32
    %c0_i32_2 = arith.constant 0 : i32
    return %c0_i32, %c0_i32_0, %c0_i32_1 : i32, i32, i32
  }
  func.func @transform_20(%arg0: i32) -> (i32, i32, i32) {
    %c0_i32 = arith.constant 0 : i32
    %c0_i32_0 = arith.constant 0 : i32
    %c0_i32_1 = arith.constant 0 : i32
    %c0_i32_2 = arith.constant 0 : i32
    return %c0_i32, %c0_i32_0, %c0_i32_1 : i32, i32, i32
  }
  func.func @transform_21(%arg0: i32) -> (i32, i32, i32) {
    %c0_i32 = arith.constant 0 : i32
    %c0_i32_0 = arith.constant 0 : i32
    %c0_i32_1 = arith.constant 0 : i32
    %c0_i32_2 = arith.constant 0 : i32
    return %c0_i32, %c0_i32_0, %c0_i32_1 : i32, i32, i32
  }
  func.func @transform_22(%arg0: i32) -> (i32, i32, i32) {
    %c0_i32 = arith.constant 0 : i32
    %c0_i32_0 = arith.constant 0 : i32
    %c0_i32_1 = arith.constant 0 : i32
    %c0_i32_2 = arith.constant 0 : i32
    return %c0_i32, %c0_i32_0, %c0_i32_1 : i32, i32, i32
  }
  func.func @transform_23(%arg0: i32) -> (i32, i32, i32) {
    %c0_i32 = arith.constant 0 : i32
    %c0_i32_0 = arith.constant 0 : i32
    %c0_i32_1 = arith.constant 0 : i32
    %c0_i32_2 = arith.constant 0 : i32
    return %c0_i32, %c0_i32_0, %c0_i32_1 : i32, i32, i32
  }
  func.func @transform_24(%arg0: i32) -> (i32, i32, i32) {
    %c0_i32 = arith.constant 0 : i32
    %c0_i32_0 = arith.constant 0 : i32
    %c0_i32_1 = arith.constant 0 : i32
    return %arg0, %c0_i32, %c0_i32_0 : i32, i32, i32
  }
}

module attributes {stable_mosaic.version = 11 : i64} {
  func.func @_head_kernel(%arg0: i32, %arg1: memref<2x36xf32, #tpu.memory_space<vmem>>, %arg2: memref<36x7xbf16, #tpu.memory_space<vmem>>, %arg3: memref<1x7xf32, #tpu.memory_space<vmem>>, %arg4: memref<2x7xf32, #tpu.memory_space<vmem>>) attributes {dimension_semantics = [#tpu.dimension_semantics<arbitrary>], iteration_bounds = array<i64: 1>, scalar_prefetch = 0 : i64, scratch_operands = 0 : i64, tpu.core_type = #tpu.core_type<tc>, window_params = [{pipeline_mode = #tpu.pipeline_mode<synchronous>, transform_indices = @transform_0, window_bounds = array<i64: 2, 36>}, {pipeline_mode = #tpu.pipeline_mode<synchronous>, transform_indices = @transform_1, window_bounds = array<i64: 36, 7>}, {pipeline_mode = #tpu.pipeline_mode<synchronous>, transform_indices = @transform_2, window_bounds = array<i64: 1, 7>}, {pipeline_mode = #tpu.pipeline_mode<synchronous>, transform_indices = @transform_3, window_bounds = array<i64: 2, 7>}]} {
    %c0 = arith.constant 0 : index
    %c0_0 = arith.constant 0 : index
    %0 = vector.load %arg1[%c0, %c0_0] : memref<2x36xf32, #tpu.memory_space<vmem>>, vector<2x36xf32>
    %cst = arith.constant 0.000000e+00 : f32
    %1 = vector.broadcast %cst : f32 to vector<2x36xf32>
    %2 = arith.maximumf %0, %1 : vector<2x36xf32>
    %3 = arith.truncf %2 : vector<2x36xf32> to vector<2x36xbf16>
    %c0_1 = arith.constant 0 : index
    %c0_2 = arith.constant 0 : index
    %4 = vector.load %arg2[%c0_1, %c0_2] : memref<36x7xbf16, #tpu.memory_space<vmem>>, vector<36x7xbf16>
    %cst_3 = arith.constant dense<0.000000e+00> : vector<2x7xf32>
    %5 = tpu.matmul %3, %4, %cst_3 {dimension_numbers = #tpu.dot_dimension_numbers<[1], [0], [0], [1], [0, 0, 1, 1], [], []>} : vector<2x36xbf16>, vector<36x7xbf16>, vector<2x7xf32> -> vector<2x7xf32>
    %c0_4 = arith.constant 0 : index
    %c0_5 = arith.constant 0 : index
    %6 = vector.load %arg3[%c0_4, %c0_5] : memref<1x7xf32, #tpu.memory_space<vmem>>, vector<1x7xf32>
    %7 = vector.broadcast %6 : vector<1x7xf32> to vector<2x7xf32>
    %8 = arith.addf %5, %7 : vector<2x7xf32>
    %c0_6 = arith.constant 0 : index
    %c0_7 = arith.constant 0 : index
    %9 = vector.load %arg4[%c0_6, %c0_7] : memref<2x7xf32, #tpu.memory_space<vmem>>, vector<2x7xf32>
    tpu.vector_store %arg4[%c0_6, %c0_7], %8 {strides = array<i32>} : memref<2x7xf32, #tpu.memory_space<vmem>>, vector<2x7xf32>,
    return
  }
  func.func @transform_0(%arg0: i32) -> (i32, i32) {
    %c0_i32 = arith.constant 0 : i32
    %c0_i32_0 = arith.constant 0 : i32
    %c0_i32_1 = arith.constant 0 : i32
    return %c0_i32, %c0_i32_0 : i32, i32
  }
  func.func @transform_1(%arg0: i32) -> (i32, i32) {
    %c0_i32 = arith.constant 0 : i32
    %c0_i32_0 = arith.constant 0 : i32
    %c0_i32_1 = arith.constant 0 : i32
    return %c0_i32, %c0_i32_0 : i32, i32
  }
  func.func @transform_2(%arg0: i32) -> (i32, i32) {
    %c0_i32 = arith.constant 0 : i32
    %c0_i32_0 = arith.constant 0 : i32
    %c0_i32_1 = arith.constant 0 : i32
    return %c0_i32, %c0_i32_0 : i32, i32
  }
  func.func @transform_3(%arg0: i32) -> (i32, i32) {
    %c0_i32 = arith.constant 0 : i32
    %c0_i32_0 = arith.constant 0 : i32
    %c0_i32_1 = arith.constant 0 : i32
    return %c0_i32, %c0_i32_0 : i32, i32
  }
}

</mosaic_0001>

<bundles_post_ra>
// kernel: full_transformer_forward.7
= control target key start
LH: loop header
LB: loop body
LE: loop exit
PB: predicated region body
PF: predicated region fallthrough
CT: control target
= control target key end

     0   :  { %v159_v1 = vmov 0.0   ;;  %vm160_vm0 = vmmov 0   ;;  %vm50_vm1 = vcmask 1041408   ;;  %s209_s0 = inlined_call_operand.vmem [shape: f32[2,36], index: 0, kind: input, shape index: {}]   ;;  %s210_s1 = inlined_call_operand.vmem [shape: bf16[36,7], index: 1, kind: input, shape index: {}]   ;;  %s211_s2 = inlined_call_operand.vmem [shape: f32[1,7], index: 2, kind: input, shape index: {}]   ;;  %s212_s3 = inlined_call_operand.hbm [shape: f32[2,7], index: 3, kind: output, shape index: {}]  }
   0x1   :  { %v132_v0 = vld [vmem:[%s210_s1] sm:$0xff]   ;;  %119 = vmatprep.subr.bf16.mxu0 %v159_v1  ;;  %v133_v2 = vld [vmem:[%s210_s1 + $0x8] sm:$0xff]   ;;  %v134_v3 = vld [vmem:[%s210_s1 + $0x10] ss:$0 sps:$4 sm:$0x33]   ;;  %125 = vmatprep.mubr.msk.bf16.mxu0 %vm160_vm0, %v159_v1 }
   0x2   :  { %120 = vmatpush3.bf16.msra.mxu0 %v132_v0  ;;  %v16_v4 = vld [vmem:[%s209_s0] sm:$0x3] }
   0x3   :  { %121 = vmatprep.subr.bf16.mxu0 %v159_v1 }
   0x4   :  { %8 = vsyncpa [#allocation3], 0  ;;  %v17_v5 = vmax.f32 %v16_v4, 0.0  ;;  %v52_v6 = vsel %vm50_vm1, %v134_v3, 0  ;;  %vm46_vm2 = vcmask 293888   ;;  %s161_s1 = smov [#allocation2]  }
   0x5   :  { %v110_v8 = vld [vmem:[%s211_s2] ss:$0 sm:$0xff]  ;;  %s102_s22 = sshll.u32 %s161_s1, 4  ;;  %vm94_vm3 = vcmask 50176   ;;  %s103_s22 = int_to_ptr.vmem [resolvable:$true] %s102_s22 }
   0x6   :  { %122 = vmatpush3.bf16.msra.mxu0 %v133_v2  ;;  %v18_v7 = vpack.c.bf16 %v17_v5, %v17_v5  ;;  %s135_s0 = scalar_lea.vmem %s103_s22, 32  ;;  %p140_p1 = scmp.lt.s32.totalorder %s103_s22, %s103_s22 }
   0x7   :  { %123 = vmatprep.subr.bf16.mxu0 %v159_v1  ;;  %p136_p0 = scmp.ne.s32.totalorder %s103_s22, %s135_s0  ;;  %p141_p2 = scmp.lt.s32.totalorder %s135_s0, %s135_s0 }
   0x9   :  { %p142_p3 = por %p141_p2, %p140_p1 }
   0xa   :  { %124 = vmatpush3.bf16.msra.mxu0 %v52_v6 }
   0xb   :  { %p143_p4 = pnand %p142_p3, %p136_p0 }
   0xd   :  { %126 = vmatmul.mubr.msk.bf16.vlgmr.msra.gmra.mrb[0].mxu0 %vm46_vm2, %v18_v7 }
  0xe0   :  { %v88_v9 = vpop.f32.mrb[0].mxu0 }
  0xe1   :  { %v89_v10 = vadd.f32 %v110_v8, %v88_v9  ;;  %v127_v11 = vpop.f32.mrb[1].mxu0 }
  0xe2   :  { %v91_v12 = vpop.f32.mrb[2].mxu0 }
  0xe3   :  { %v128_v13 = vpop.f32.mrb[3].mxu0  ;;  %95 = vst.msk [vmem:[#allocation2] sm:$0x3] %vm94_vm3, %v89_v10 }
  0xe4   :  { %146 = shalt.err (!%p143_p4)
}
  0xe5   :  { %s147_s2 = scalar_lea.hbm %s212_s3, 32 }
  0xe6   :  { %p148_p5 = scmp.ne.s32.totalorder %s212_s3, %s147_s2  ;;  %p151_p6 = scmp.lt.u32.totalorder %s147_s2, %s212_s3 }
  0xe8   :  { %p153_p7 = pnand %p151_p6, %p148_p5 }
  0xea   :  { %156 = shalt.err (!%p153_p7)
}
  0xeb   :  { %105 = dma.vmem_to_hbm [thread:$0]  %s103_s22, 32, %s212_s3, [#allocation3]  }
  0xec   :  { %157 = dma.done.wait [#allocation3], 32  }
  0xed   :  { %158 = vsyncadd [#allocation3], 4294967264 }
  0xee   :  { %109 = vsyncpa [#allocation3], 1 }

// kernel: full_transformer_forward.4
= control target key start
LH: loop header
LB: loop body
LE: loop exit
PB: predicated region body
PF: predicated region fallthrough
CT: control target
= control target key end

     0   :  { %s2060_s18 = smov 0   ;;  %s2062_s19 = smov 0   ;;  %s2341_s0 = inlined_call_operand.vmem [shape: f32[10,768], index: 0, kind: input, shape index: {}]   ;;  %s2342_s1 = inlined_call_operand.vmem [shape: bf16[768,512], index: 1, kind: input, shape index: {}]   ;;  %s2343_s2 = inlined_call_operand.vmem [shape: f32[1,512], index: 2, kind: input, shape index: {}]   ;;  %s2344_s3 = inlined_call_operand.vmem [shape: bf16[512,32], index: 3, kind: input, shape index: {}]   ;;  %s2345_s4 = inlined_call_operand.vmem [shape: f32[1,32], index: 4, kind: input, shape index: {}]   ;;  %s2346_s5 = inlined_call_operand.vmem [shape: f32[10,32], index: 5, kind: output, shape index: {}]  }
   0x1   :  { %s2064_s20 = smov 0   ;;  %s2066_s21 = smov 0  }
   0x2   :  { %s2068_s22 = smov 0  }
   0x3 LB: > { %s24_s23 = sadd.s32 1, %s2022_s21  ;;  %p43_p1 = scmp.ne.s32.totalorder %s2014_s19, %s2010_s18  ;;  %s2026_s22 = sphi %s2068_s22, %s15_s22   ;;  %s2022_s21 = sphi %s2066_s21, %s2350_s21   ;;  %s2018_s20 = sphi %s2064_s20, %s2349_s20   ;;  %s2014_s19 = sphi %s2062_s19, %s2348_s19   ;;  %s2010_s18 = sphi %s2060_s18, %s2347_s18  }
   0x4   : > { %p25_p0 = scmp.ge.s32.totalorder %s24_s23, 2  ;;  %p44_p2 = scmp.eq.s32.totalorder %s2026_s22, 0 }
   0x5   : > { %s36_s25 = sadd.s32 1, %s2014_s19  ;;  %p1574_p5 = scmp.ge.s32.totalorder %s2026_s22, 2 }
   0x6   : > { %s2352_s23 = smov (%p25_p0, %s24_s23), 0  ;;  %p45_p3 = por %p44_p2, %p43_p1 }
   0x7   : > { %s32_s24 = ssub.s32 %s2022_s21, %s2352_s23  ;;  %193 = sbr.rel (%p1574_p5) target bundleno = 22 (0x16), region = 28 }
   0x8   : > { %p34_p4 = scmp.eq.s32.totalorder %s32_s24, 0 }
   0xa   : > { %s2095_s26 = scalar_select %p34_p4, %s2014_s19, %s36_s25  }
   0xe   : > { %196 = sbr.rel (!%p45_p3) target bundleno = 22 (0x16), region = 32  ;;  %s198_s27 = sand.u32 (%p45_p3), 1, %s2014_s19  }
   0xf   : > { %s1714_s28 = smul.u32 (%p45_p3), 24, %s2022_s21 }
  0x10   : > { %s1768_s29 = smul.u32 (%p45_p3), 48, %s198_s27 }
  0x11   : > { %s206_s7 = scalar_lea.vmem (%p45_p3), %s2341_s0, %s1714_s28 }
  0x12   : > { %v219_v0 = vld [vmem:[%s206_s7] sm:$0xff] (%p45_p3)  ;;  %v221_v1 = vld [vmem:[%s206_s7 + $0x8] sm:$0xff] (%p45_p3)  ;;  %v223_v2 = vld [vmem:[%s206_s7 + $0x10] sm:$0xff] (%p45_p3)  ;;  %s200_s8 = scalar_lea.vmem (%p45_p3), [#allocation3], %s1768_s29 }
  0x13   : > { %220 = vst [vmem:[%s200_s8] sm:$0xff] (%p45_p3), %v219_v0  ;;  %222 = vst [vmem:[%s200_s8 + $0x8] sm:$0xff] (%p45_p3), %v221_v1  ;;  %v225_v3 = vld [vmem:[%s206_s7 + $0x30] sm:$0xff] (%p45_p3)  ;;  %v227_v4 = vld [vmem:[%s206_s7 + $0x38] sm:$0xff] (%p45_p3) }
  0x14   : > { %224 = vst [vmem:[%s200_s8 + $0x10] sm:$0xff] (%p45_p3), %v223_v2  ;;  %v229_v5 = vld [vmem:[%s206_s7 + $0x40] sm:$0xff] (%p45_p3)  ;;  %226 = vst [vmem:[%s200_s8 + $0x18] sm:$0xff] (%p45_p3), %v225_v3 }
  0x15   : > { %228 = vst [vmem:[%s200_s8 + $0x20] sm:$0xff] %v227_v4  ;;  %230 = vst [vmem:[%s200_s8 + $0x28] sm:$0xff] %v229_v5 }
  0x16 PF: > { %p1576_p6 = scmp.ge.s32.totalorder %s2026_s22, 1  ;;  %p245_p7 = scmp.lt.s32.totalorder %s2026_s22, 3 }
  0x18   : > { %p246_p8 = pnand %p1576_p6, %p245_p7 }
  0x19   : > { %s252_s9 = sand.u32 (!%p246_p8), 1, %s2010_s18   ;;  %s287_s10 = smul.u32 (!%p246_p8), 48, %s2018_s20 }
  0x1a   : > { %249 = sbr.rel (%p246_p8) target bundleno = 589 (0x24d), region = 59  ;;  %p1579_p10 = scmp.ne.s32.totalorder (!%p246_p8), %s2018_s20, 0 }
  0x1b   : > { %s1769_s11 = smul.u32 (!%p246_p8), 48, %s252_s9  ;;  %p288_p9 = scmp.lt.s32.totalorder (!%p246_p8), %s287_s10, 95 }
  0x1d   : > { %s2112_s16 = scalar_lea.vmem (!%p246_p8), [#allocation3], %s1769_s11 }
  0x21   : > { %s2354_s10 = smov (!%p288_p9, %s287_s10), 95  ;;  %304 = sbr.rel (%p1579_p10) target bundleno = 40 (0x28), region = 67 }
  0x22   : > { %s1715_s12 = sshll.u32 %s2354_s10, 4  ;;  %v2028_v6 = vmov (!%p1579_p10), 0.0  }
  0x23   : > { %s2110_s15 = scalar_lea.vmem %s2342_s1, %s1715_s12  ;;  %305 = vst [vmem:[#allocation2] sm:$0xff] (!%p1579_p10), %v2028_v6  ;;  %306 = vst [vmem:[#allocation2 + $0x8] sm:$0xff] (!%p1579_p10), %v2028_v6 }
  0x24   : > { %307 = vst [vmem:[#allocation2 + $0x10] sm:$0xff] (!%p1579_p10), %v2028_v6  ;;  %308 = vst [vmem:[#allocation2 + $0x18] sm:$0xff] (!%p1579_p10), %v2028_v6 }
  0x25   : > { %309 = vst [vmem:[#allocation2 + $0x20] sm:$0x3] (!%p1579_p10), %v2028_v6  ;;  %310 = vst [vmem:[#allocation2 + $0x28] sm:$0x3] (!%p1579_p10), %v2028_v6 }
  0x26   : > { %311 = vst [vmem:[#allocation2 + $0x30] sm:$0x3] (!%p1579_p10), %v2028_v6  ;;  %312 = vst [vmem:[#allocation2 + $0x38] sm:$0x3] (!%p1579_p10), %v2028_v6 }
  0x28 PF: > { %v1812_v7 = vld [vmem:[%s2110_s15 + $0x4] ss:$16 sps:$4 sm:$0xff]   ;;  %v1814_v8 = vld [vmem:[%s2110_s15 + $0xc] ss:$16 sps:$4 sm:$0xff]   ;;  %v1816_v9 = vld [vmem:[%s2110_s15] ss:$16 sps:$4 sm:$0xff]  }
  0x29   : > { %906 = vmatprep.subr.bf16.mxu0 %v1812_v7  ;;  %v1817_v10 = vld [vmem:[%s2110_s15 + $0x8] ss:$16 sps:$4 sm:$0xff]   ;;  %992 = vmatprep.subr.bf16.mxu1 %v1814_v8  ;;  %v1818_v11 = vld [vmem:[%s2110_s15 + $0x24] ss:$16 sps:$4 sm:$0xff]   ;;  %v1820_v12 = vld [vmem:[%s2110_s15 + $0x2c] ss:$16 sps:$4 sm:$0xff]  }
  0x2a   : > { %907 = vmatpush1.bf16.msra.mxu0 %v1816_v9  ;;  %993 = vmatpush1.bf16.msra.mxu1 %v1817_v10  ;;  %v1822_v13 = vld [vmem:[%s2110_s15 + $0x20] ss:$16 sps:$4 sm:$0xff]   ;;  %v1823_v14 = vld [vmem:[%s2110_s15 + $0x28] ss:$16 sps:$4 sm:$0xff]   ;;  %v1824_v15 = vld [vmem:[%s2110_s15 + $0x44] ss:$16 sps:$4 sm:$0xff]  }
  0x2b   : > { %908 = vmatprep.subr.bf16.mxu0 %v1818_v11  ;;  %994 = vmatprep.subr.bf16.mxu1 %v1820_v12  ;;  %v1826_v16 = vld [vmem:[%s2110_s15 + $0x4c] ss:$16 sps:$4 sm:$0xff]   ;;  %v1828_v17 = vld [vmem:[%s2110_s15 + $0x40] ss:$16 sps:$4 sm:$0xff]   ;;  %v1829_v18 = vld [vmem:[%s2110_s15 + $0x48] ss:$16 sps:$4 sm:$0xff]  }
  0x2c   : > { %v1830_v19 = vld [vmem:[%s2110_s15 + $0x64] ss:$16 sps:$4 sm:$0xff]   ;;  %v1832_v20 = vld [vmem:[%s2110_s15 + $0x6c] ss:$16 sps:$4 sm:$0xff]   ;;  %v1834_v21 = vld [vmem:[%s2110_s15 + $0x60] ss:$16 sps:$4 sm:$0xff]  }
  0x2d   : > { %v1835_v22 = vld [vmem:[%s2110_s15 + $0x68] ss:$16 sps:$4 sm:$0xff]   ;;  %v1836_v23 = vld [vmem:[%s2110_s15 + $0x84] ss:$16 sps:$4 sm:$0xff]   ;;  %v1838_v24 = vld [vmem:[%s2110_s15 + $0x8c] ss:$16 sps:$4 sm:$0xff]  }
  0x2e   : > { %909 = vmatpush1.bf16.msra.mxu0 %v1822_v13  ;;  %995 = vmatpush1.bf16.msra.mxu1 %v1823_v14  ;;  %v1840_v25 = vld [vmem:[%s2110_s15 + $0x80] ss:$16 sps:$4 sm:$0xff]   ;;  %v1841_v26 = vld [vmem:[%s2110_s15 + $0x88] ss:$16 sps:$4 sm:$0xff]   ;;  %v1842_v27 = vld [vmem:[%s2110_s15 + $0xa4] ss:$16 sps:$4 sm:$0xff]  }
  0x2f   : > { %910 = vmatprep.subr.bf16.mxu0 %v1824_v15  ;;  %996 = vmatprep.subr.bf16.mxu1 %v1826_v16  ;;  %v1844_v28 = vld [vmem:[%s2110_s15 + $0xac] ss:$16 sps:$4 sm:$0xff]   ;;  %v1846_v29 = vld [vmem:[%s2110_s15 + $0xa0] ss:$16 sps:$4 sm:$0xff]   ;;  %v1847_v30 = vld [vmem:[%s2110_s15 + $0xa8] ss:$16 sps:$4 sm:$0xff]  }
  0x30   : > { %v1848_v31 = vld [vmem:[%s2110_s15 + $0xc4] ss:$16 sps:$4 sm:$0xff]   ;;  %v1850_v32 = vld [vmem:[%s2110_s15 + $0xcc] ss:$16 sps:$4 sm:$0xff]   ;;  %v1852_v33 = vld [vmem:[%s2110_s15 + $0xc0] ss:$16 sps:$4 sm:$0xff]  }
  0x31   : > { %v1853_v34 = vld [vmem:[%s2110_s15 + $0xc8] ss:$16 sps:$4 sm:$0xff]   ;;  %v1854_v35 = vld [vmem:[%s2110_s15 + $0xe4] ss:$16 sps:$4 sm:$0xff]   ;;  %v1856_v36 = vld [vmem:[%s2110_s15 + $0xec] ss:$16 sps:$4 sm:$0xff]  }
  0x32   : > { %911 = vmatpush1.bf16.msra.mxu0 %v1828_v17  ;;  %997 = vmatpush1.bf16.msra.mxu1 %v1829_v18  ;;  %v1858_v37 = vld [vmem:[%s2110_s15 + $0xe0] ss:$16 sps:$4 sm:$0xff]   ;;  %v1859_v38 = vld [vmem:[%s2110_s15 + $0xe8] ss:$16 sps:$4 sm:$0xff]   ;;  %v1860_v39 = vld [vmem:[%s2110_s15 + $0x104] ss:$16 sps:$4 sm:$0xff]  }
  0x33   : > { %912 = vmatprep.subr.bf16.mxu0 %v1830_v19  ;;  %998 = vmatprep.subr.bf16.mxu1 %v1832_v20  ;;  %v1862_v40 = vld [vmem:[%s2110_s15 + $0x10c] ss:$16 sps:$4 sm:$0xff]   ;;  %v1864_v41 = vld [vmem:[%s2110_s15 + $0x100] ss:$16 sps:$4 sm:$0xff]   ;;  %v1865_v42 = vld [vmem:[%s2110_s15 + $0x108] ss:$16 sps:$4 sm:$0xff]  }
  0x34   : > { %v1866_v43 = vld [vmem:[%s2110_s15 + $0x124] ss:$16 sps:$4 sm:$0xff]   ;;  %v1868_v44 = vld [vmem:[%s2110_s15 + $0x12c] ss:$16 sps:$4 sm:$0xff]   ;;  %v1870_v45 = vld [vmem:[%s2110_s15 + $0x120] ss:$16 sps:$4 sm:$0xff]  }
  0x35   : > { %v1871_v46 = vld [vmem:[%s2110_s15 + $0x128] ss:$16 sps:$4 sm:$0xff]   ;;  %v1872_v47 = vld [vmem:[%s2110_s15 + $0x144] ss:$16 sps:$4 sm:$0xff]   ;;  %v1874_v48 = vld [vmem:[%s2110_s15 + $0x14c] ss:$16 sps:$4 sm:$0xff]  }
  0x36   : > { %913 = vmatpush1.bf16.msra.mxu0 %v1834_v21  ;;  %999 = vmatpush1.bf16.msra.mxu1 %v1835_v22  ;;  %v1876_v49 = vld [vmem:[%s2110_s15 + $0x140] ss:$16 sps:$4 sm:$0xff]   ;;  %v1877_v50 = vld [vmem:[%s2110_s15 + $0x148] ss:$16 sps:$4 sm:$0xff]   ;;  %v1878_v51 = vld [vmem:[%s2110_s15 + $0x164] ss:$16 sps:$4 sm:$0xff]  }
  0x37   : > { %914 = vmatprep.subr.bf16.mxu0 %v1836_v23  ;;  %1000 = vmatprep.subr.bf16.mxu1 %v1838_v24  ;;  %v1880_v52 = vld [vmem:[%s2110_s15 + $0x16c] ss:$16 sps:$4 sm:$0xff]   ;;  %v325_v54 = vld [vmem:[%s2112_s16 + $0x20] sm:$0x3]  ;;  %v1883_v56 = vld [vmem:[%s2110_s15 + $0x168] ss:$16 sps:$4 sm:$0xff]  }
  0x38   : > { %v322_v53 = vld [vmem:[%s2112_s16 + $0x8] sm:$0xff]  ;;  %v1882_v55 = vld [vmem:[%s2110_s15 + $0x160] ss:$16 sps:$4 sm:$0xff]   ;;  %v1884_v58 = vld [vmem:[%s2110_s15 + $0x184] ss:$16 sps:$4 sm:$0xff]   ;;  %v2029_v23 = vmov 0  }
  0x39   : > { %v328_v57 = vpack.c.bf16 %v325_v54, %v322_v53  ;;  %v1886_v59 = vld [vmem:[%s2110_s15 + $0x18c] ss:$16 sps:$4 sm:$0xff]   ;;  %v1888_v60 = vld [vmem:[%s2110_s15 + $0x180] ss:$16 sps:$4 sm:$0xff]   ;;  %v1889_v61 = vld [vmem:[%s2110_s15 + $0x188] ss:$16 sps:$4 sm:$0xff]  }
  0x3a   : > { %915 = vmatpush1.bf16.msra.mxu0 %v1840_v25  ;;  %1001 = vmatpush1.bf16.msra.mxu1 %v1841_v26  ;;  %v1890_v62 = vld [vmem:[%s2110_s15 + $0x1a4] ss:$16 sps:$4 sm:$0xff]   ;;  %v1892_v63 = vld [vmem:[%s2110_s15 + $0x1ac] ss:$16 sps:$4 sm:$0xff]   ;;  %v1894_v0 = vld [vmem:[%s2110_s15 + $0x1a0] ss:$16 sps:$4 sm:$0xff]  }
  0x3b   : > { %916 = vmatprep.subr.bf16.mxu0 %v1842_v27  ;;  %1002 = vmatprep.subr.bf16.mxu1 %v1844_v28  ;;  %v1895_v1 = vld [vmem:[%s2110_s15 + $0x1a8] ss:$16 sps:$4 sm:$0xff]   ;;  %v1896_v2 = vld [vmem:[%s2110_s15 + $0x1c4] ss:$16 sps:$4 sm:$0xff]   ;;  %v1898_v3 = vld [vmem:[%s2110_s15 + $0x1cc] ss:$16 sps:$4 sm:$0xff]  }
  0x3c   : > { %938 = vmatprep.mubr.bf16.mxu0 %v328_v57  ;;  %1024 = vmatprep.mubr.bf16.mxu1 %v328_v57  ;;  %v1900_v4 = vld [vmem:[%s2110_s15 + $0x1c0] ss:$16 sps:$4 sm:$0xff]   ;;  %v1901_v5 = vld [vmem:[%s2110_s15 + $0x1c8] ss:$16 sps:$4 sm:$0xff]   ;;  %v1902_v6 = vld [vmem:[%s2110_s15 + $0x1e4] ss:$16 sps:$4 sm:$0xff]  }
  0x3d   : > { %v1904_v7 = vld [vmem:[%s2110_s15 + $0x1ec] ss:$16 sps:$4 sm:$0xff]   ;;  %v1906_v8 = vld [vmem:[%s2110_s15 + $0x1e0] ss:$16 sps:$4 sm:$0xff]   ;;  %v1907_v9 = vld [vmem:[%s2110_s15 + $0x1e8] ss:$16 sps:$4 sm:$0xff]  }
  0x3e   : > { %917 = vmatpush1.bf16.msra.mxu0 %v1846_v29  ;;  %1003 = vmatpush1.bf16.msra.mxu1 %v1847_v30  ;;  %v1910_v10 = vld [vmem:[%s2110_s15 + $0x204] ss:$16 sps:$4 sm:$0xff]   ;;  %v324_v12 = vld [vmem:[%s2112_s16 + $0x18] sm:$0x3]  ;;  %v1913_v13 = vld [vmem:[%s2110_s15 + $0x20c] ss:$16 sps:$4 sm:$0xff]  }
  0x3f   : > { %918 = vmatprep.subr.bf16.mxu0 %v1848_v31  ;;  %1004 = vmatprep.subr.bf16.mxu1 %v1850_v32  ;;  %v321_v11 = vld [vmem:[%s2112_s16] sm:$0xff]  ;;  %v1911_v16 = vld [vmem:[%s2110_s15 + $0x208] ss:$16 sps:$4 sm:$0xff]   ;;  %v1919_v18 = vld [vmem:[%s2110_s15 + $0x22c] ss:$16 sps:$4 sm:$0xff]   ;;  %p1676_p11 = scmp.ne.s32.totalorder %s2018_s20, 1 }
  0x40   : > { %v1908_v14 = vld [vmem:[%s2110_s15 + $0x200] ss:$16 sps:$4 sm:$0xff]   ;;  %v327_v15 = vpack.c.bf16 %v324_v12, %v321_v11  ;;  %v1916_v17 = vld [vmem:[%s2110_s15 + $0x224] ss:$16 sps:$4 sm:$0xff]   ;;  %v1917_v20 = vld [vmem:[%s2110_s15 + $0x228] ss:$16 sps:$4 sm:$0xff]  }
  0x41   : > { %v1914_v19 = vld [vmem:[%s2110_s15 + $0x220] ss:$16 sps:$4 sm:$0xff]   ;;  %v1922_v21 = vld [vmem:[%s2110_s15 + $0x244] ss:$16 sps:$4 sm:$0xff]   ;;  %v1925_v22 = vld [vmem:[%s2110_s15 + $0x24c] ss:$16 sps:$4 sm:$0xff]  }
  0x42   : > { %919 = vmatpush1.bf16.msra.mxu0 %v1852_v33  ;;  %1005 = vmatpush1.bf16.msra.mxu1 %v1853_v34  ;;  %v1920_v24 = vld [vmem:[%s2110_s15 + $0x240] ss:$16 sps:$4 sm:$0xff]   ;;  %v1923_v25 = vld [vmem:[%s2110_s15 + $0x248] ss:$16 sps:$4 sm:$0xff]   ;;  %v1928_v26 = vld [vmem:[%s2110_s15 + $0x264] ss:$16 sps:$4 sm:$0xff]  }
  0x43   : > { %920 = vmatprep.subr.bf16.mxu0 %v1854_v35  ;;  %1006 = vmatprep.subr.bf16.mxu1 %v1856_v36  ;;  %v1931_v27 = vld [vmem:[%s2110_s15 + $0x26c] ss:$16 sps:$4 sm:$0xff]   ;;  %v1926_v28 = vld [vmem:[%s2110_s15 + $0x260] ss:$16 sps:$4 sm:$0xff]   ;;  %v1929_v29 = vld [vmem:[%s2110_s15 + $0x268] ss:$16 sps:$4 sm:$0xff]  }
  0x44   : > { %v1934_v30 = vld [vmem:[%s2110_s15 + $0x284] ss:$16 sps:$4 sm:$0xff]   ;;  %v1937_v31 = vld [vmem:[%s2110_s15 + $0x28c] ss:$16 sps:$4 sm:$0xff]   ;;  %v1932_v32 = vld [vmem:[%s2110_s15 + $0x280] ss:$16 sps:$4 sm:$0xff]  }
  0x45   : > { %v1935_v33 = vld [vmem:[%s2110_s15 + $0x288] ss:$16 sps:$4 sm:$0xff]   ;;  %v1940_v34 = vld [vmem:[%s2110_s15 + $0x2a4] ss:$16 sps:$4 sm:$0xff]   ;;  %v1943_v35 = vld [vmem:[%s2110_s15 + $0x2ac] ss:$16 sps:$4 sm:$0xff]  }
  0x46   : > { %921 = vmatpush1.bf16.msra.mxu0 %v1858_v37  ;;  %1007 = vmatpush1.bf16.msra.mxu1 %v1859_v38  ;;  %v1938_v36 = vld [vmem:[%s2110_s15 + $0x2a0] ss:$16 sps:$4 sm:$0xff]   ;;  %v1941_v37 = vld [vmem:[%s2110_s15 + $0x2a8] ss:$16 sps:$4 sm:$0xff]   ;;  %v1946_v38 = vld [vmem:[%s2110_s15 + $0x2c4] ss:$16 sps:$4 sm:$0xff]  }
  0x47   : > { %922 = vmatprep.subr.bf16.mxu0 %v1860_v39  ;;  %1008 = vmatprep.subr.bf16.mxu1 %v1862_v40  ;;  %v1949_v39 = vld [vmem:[%s2110_s15 + $0x2cc] ss:$16 sps:$4 sm:$0xff]   ;;  %v1944_v40 = vld [vmem:[%s2110_s15 + $0x2c0] ss:$16 sps:$4 sm:$0xff]   ;;  %vm1485_vm0 = vcmask (!%p1676_p11), 261120   ;;  %vm1487_vm1 = vcmask (!%p1676_p11), 254976  }
  0x48   : > { %v1958_v11 = vld [vmem:[%s2344_s3] sm:$0xff] (!%p1676_p11)  }
  0x49   : > { %v1959_v12 = vld [vmem:[%s2344_s3 + $0x80] sm:$0xff] (!%p1676_p11)  }
  0x4a   : > { %923 = vmatpush1.bf16.msra.mxu0 %v1864_v41  ;;  %1009 = vmatpush1.bf16.msra.mxu1 %v1865_v42  ;;  %v1947_v41 = vld [vmem:[%s2110_s15 + $0x2c8] ss:$16 sps:$4 sm:$0xff]   ;;  %v1952_v42 = vld [vmem:[%s2110_s15 + $0x2e4] ss:$16 sps:$4 sm:$0xff]  }
  0x4b   : > { %924 = vmatprep.subr.bf16.mxu0 %v1866_v43  ;;  %1010 = vmatprep.subr.bf16.mxu1 %v1868_v44  ;;  %v1955_v43 = vld [vmem:[%s2110_s15 + $0x2ec] ss:$16 sps:$4 sm:$0xff]   ;;  %v1950_v44 = vld [vmem:[%s2110_s15 + $0x2e0] ss:$16 sps:$4 sm:$0xff]  }
  0x4e   : > { %925 = vmatpush1.bf16.msra.mxu0 %v1870_v45  ;;  %1011 = vmatpush1.bf16.msra.mxu1 %v1871_v46  ;;  %v1953_v45 = vld [vmem:[%s2110_s15 + $0x2e8] ss:$16 sps:$4 sm:$0xff]   ;;  %v323_v46 = vld [vmem:[%s2112_s16 + $0x10] sm:$0xff] }
  0x4f   : > { %926 = vmatprep.subr.bf16.mxu0 %v1872_v47  ;;  %1012 = vmatprep.subr.bf16.mxu1 %v1874_v48  ;;  %v326_v47 = vld [vmem:[%s2112_s16 + $0x28] sm:$0x3] }
  0x50   : > { %v329_v48 = vpack.c.bf16 %v326_v47, %v323_v46  ;;  %v1987_v46 = vld [vmem:[%s2344_s3 + $0xb8] sm:$0xff] (!%p1676_p11)  }
  0x52   : > { %927 = vmatpush1.bf16.msra.mxu0 %v1876_v49  ;;  %1013 = vmatpush1.bf16.msra.mxu1 %v1877_v50  ;;  %v313_v49 = vld [vmem:[#allocation2] sm:$0xff]  ;;  %v315_v50 = vld [vmem:[#allocation2 + $0x10] sm:$0xff] }
  0x53   : > { %928 = vmatprep.subr.bf16.mxu0 %v1878_v51  ;;  %1014 = vmatprep.subr.bf16.mxu1 %v1880_v52  ;;  %v314_v51 = vld [vmem:[#allocation2 + $0x8] sm:$0xff]  ;;  %v316_v52 = vld [vmem:[#allocation2 + $0x18] sm:$0xff] }
  0x56   : > { %929 = vmatpush1.bf16.msra.mxu0 %v1882_v55  ;;  %1015 = vmatpush1.bf16.msra.mxu1 %v1883_v56  ;;  %v317_v55 = vld [vmem:[#allocation2 + $0x20] sm:$0x3]  ;;  %v319_v56 = vld [vmem:[#allocation2 + $0x30] sm:$0x3] }
  0x57   : > { %930 = vmatprep.subr.bf16.mxu0 %v1884_v58  ;;  %1016 = vmatprep.subr.bf16.mxu1 %v1886_v59 }
  0x5a   : > { %931 = vmatpush1.bf16.msra.mxu0 %v1888_v60  ;;  %1017 = vmatpush1.bf16.msra.mxu1 %v1889_v61  ;;  %v318_v61 = vld [vmem:[#allocation2 + $0x28] sm:$0x3] }
  0x5b   : > { %932 = vmatprep.subr.bf16.mxu0 %v1890_v62  ;;  %1018 = vmatprep.subr.bf16.mxu1 %v1892_v63  ;;  %v320_v62 = vld [vmem:[#allocation2 + $0x38] sm:$0x3] }
  0x5e   : > { %933 = vmatpush1.bf16.msra.mxu0 %v1894_v0  ;;  %1019 = vmatpush1.bf16.msra.mxu1 %v1895_v1 }
  0x5f   : > { %934 = vmatprep.subr.bf16.mxu0 %v1896_v2  ;;  %1020 = vmatprep.subr.bf16.mxu1 %v1898_v3 }
  0x62   : > { %935 = vmatpush1.bf16.msra.mxu0 %v1900_v4  ;;  %1021 = vmatpush1.bf16.msra.mxu1 %v1901_v5 }
  0x63   : > { %936 = vmatprep.subr.bf16.mxu0 %v1902_v6  ;;  %1022 = vmatprep.subr.bf16.mxu1 %v1904_v7 }
  0x66   : > { %937 = vmatpush1.bf16.msra.mxu0 %v1906_v8  ;;  %1023 = vmatpush1.bf16.msra.mxu1 %v1907_v9  ;;  %v1956_v9 = vld [vmem:[%s2344_s3 + $0x40] sm:$0xff] (!%p1676_p11)  }
  0x67   : > { %949 = vmatprep.subr.bf16.mxu0 %v1910_v10  ;;  %1035 = vmatprep.subr.bf16.mxu1 %v1913_v13  ;;  %v1957_v10 = vld [vmem:[%s2344_s3 + $0xc0] sm:$0xff] (!%p1676_p11)   ;;  %v1960_v13 = vld [vmem:[%s2344_s3 + $0x48] sm:$0xff] (!%p1676_p11)  }
  0x69   : > { %939 = vmatmul.mubr.bf16.vlgmr.msra.gmra.mrb[0].mxu0 %v327_v15  ;;  %1025 = vmatmul.mubr.bf16.vlgmr.msra.gmra.mrb[0].mxu1 %v327_v15  ;;  %v1962_v15 = vld [vmem:[%s2344_s3 + $0x8] sm:$0xff] (!%p1676_p11)  }
  0x6a   : > { %950 = vmatpush1.bf16.msra.mxu0 %v1908_v14  ;;  %1036 = vmatpush1.bf16.msra.mxu1 %v1911_v16  ;;  %v1961_v14 = vld [vmem:[%s2344_s3 + $0xc8] sm:$0xff] (!%p1676_p11)  }
  0x6b   : > { %951 = vmatprep.subr.bf16.mxu0 %v1916_v17  ;;  %1037 = vmatprep.subr.bf16.mxu1 %v1919_v18  ;;  %v1963_v16 = vld [vmem:[%s2344_s3 + $0x88] sm:$0xff] (!%p1676_p11)   ;;  %v1964_v17 = vld [vmem:[%s2344_s3 + $0x50] sm:$0xff] (!%p1676_p11)  }
  0x6c   : > { %981 = vmatprep.mubr.bf16.mxu0 %v2029_v23  ;;  %1067 = vmatprep.mubr.bf16.mxu1 %v2029_v23  ;;  %v1965_v18 = vld [vmem:[%s2344_s3 + $0xd0] sm:$0xff] (!%p1676_p11)   ;;  %v1970_v23 = vld [vmem:[%s2344_s3 + $0x18] sm:$0xff] (!%p1676_p11)  }
  0x6e   : > { %952 = vmatpush1.bf16.msra.mxu0 %v1914_v19  ;;  %1038 = vmatpush1.bf16.msra.mxu1 %v1917_v20  ;;  %v1966_v19 = vld [vmem:[%s2344_s3 + $0x10] sm:$0xff] (!%p1676_p11)  }
  0x6f   : > { %953 = vmatprep.subr.bf16.mxu0 %v1922_v21  ;;  %1039 = vmatprep.subr.bf16.mxu1 %v1925_v22  ;;  %v1967_v20 = vld [vmem:[%s2344_s3 + $0x90] sm:$0xff] (!%p1676_p11)   ;;  %v1968_v21 = vld [vmem:[%s2344_s3 + $0x58] sm:$0xff] (!%p1676_p11)  }
  0x70   : > { %v1969_v22 = vld [vmem:[%s2344_s3 + $0xd8] sm:$0xff] (!%p1676_p11)  }
  0x72   : > { %954 = vmatpush1.bf16.msra.mxu0 %v1920_v24  ;;  %1040 = vmatpush1.bf16.msra.mxu1 %v1923_v25  ;;  %v1971_v24 = vld [vmem:[%s2344_s3 + $0x98] sm:$0xff] (!%p1676_p11)   ;;  %v1972_v25 = vld [vmem:[%s2344_s3 + $0x60] sm:$0xff] (!%p1676_p11)  }
  0x73   : > { %955 = vmatprep.subr.bf16.mxu0 %v1928_v26  ;;  %1041 = vmatprep.subr.bf16.mxu1 %v1931_v27  ;;  %v1973_v26 = vld [vmem:[%s2344_s3 + $0xe0] sm:$0xff] (!%p1676_p11)  }
  0x74   : > { %v1974_v27 = vld [vmem:[%s2344_s3 + $0x20] sm:$0xff] (!%p1676_p11)  }
  0x76   : > { %956 = vmatpush1.bf16.msra.mxu0 %v1926_v28  ;;  %1042 = vmatpush1.bf16.msra.mxu1 %v1929_v29  ;;  %v1108_v28 = vlaneseq (!%p1676_p11)  ;;  %v1975_v29 = vld [vmem:[%s2344_s3 + $0xa0] sm:$0xff] (!%p1676_p11)  }
  0x77   : > { %957 = vmatprep.subr.bf16.mxu0 %v1934_v30  ;;  %1043 = vmatprep.subr.bf16.mxu1 %v1937_v31  ;;  %v1976_v30 = vld [vmem:[%s2344_s3 + $0x68] sm:$0xff] (!%p1676_p11)  }
  0x78   : > { %v1977_v31 = vld [vmem:[%s2344_s3 + $0xe8] sm:$0xff] (!%p1676_p11)  }
  0x7a   : > { %958 = vmatpush1.bf16.msra.mxu0 %v1932_v32  ;;  %1044 = vmatpush1.bf16.msra.mxu1 %v1935_v33  ;;  %v1978_v32 = vld [vmem:[%s2344_s3 + $0x28] sm:$0xff] (!%p1676_p11)   ;;  %v1109_v33 = vshrl.u32 (!%p1676_p11), %v1108_v28, 7 }
  0x7b   : > { %959 = vmatprep.subr.bf16.mxu0 %v1940_v34  ;;  %1045 = vmatprep.subr.bf16.mxu1 %v1943_v35  ;;  %v1979_v34 = vld [vmem:[%s2344_s3 + $0xa8] sm:$0xff] (!%p1676_p11)   ;;  %v1980_v35 = vld [vmem:[%s2344_s3 + $0x70] sm:$0xff] (!%p1676_p11)  }
  0x7e   : > { %960 = vmatpush1.bf16.msra.mxu0 %v1938_v36  ;;  %1046 = vmatpush1.bf16.msra.mxu1 %v1941_v37  ;;  %v1981_v36 = vld [vmem:[%s2344_s3 + $0xf0] sm:$0xff] (!%p1676_p11)  }
  0x7f   : > { %961 = vmatprep.subr.bf16.mxu0 %v1946_v38  ;;  %1047 = vmatprep.subr.bf16.mxu1 %v1949_v39  ;;  %v1982_v37 = vld [vmem:[%s2344_s3 + $0x30] sm:$0xff] (!%p1676_p11)   ;;  %v1114_v38 = vsub.s32 (!%p1676_p11), 1, %v1109_v33 }
  0x80   : > { %v1983_v39 = vld [vmem:[%s2344_s3 + $0xb0] sm:$0xff] (!%p1676_p11)  }
  0x82   : > { %962 = vmatpush1.bf16.msra.mxu0 %v1944_v40  ;;  %1048 = vmatpush1.bf16.msra.mxu1 %v1947_v41  ;;  %v1122_v40 = vsub.s32 (!%p1676_p11), 3, %v1109_v33  ;;  %v1984_v41 = vld [vmem:[%s2344_s3 + $0x78] sm:$0xff] (!%p1676_p11)  }
  0x83   : > { %963 = vmatprep.subr.bf16.mxu0 %v1952_v42  ;;  %1049 = vmatprep.subr.bf16.mxu1 %v1955_v43  ;;  %v1110_v42 = vsub.s32 (!%p1676_p11), 0, %v1109_v33  ;;  %v1985_v43 = vld [vmem:[%s2344_s3 + $0xf8] sm:$0xff] (!%p1676_p11)  }
  0x86   : > { %964 = vmatpush1.bf16.msra.mxu0 %v1950_v44  ;;  %1050 = vmatpush1.bf16.msra.mxu1 %v1953_v45  ;;  %v1118_v44 = vsub.s32 (!%p1676_p11), 2, %v1109_v33  ;;  %v1986_v45 = vld [vmem:[%s2344_s3 + $0x38] sm:$0xff] (!%p1676_p11)  }
  0x87   : > { %1716 = vmatprep.subr.bf16.mxu0 (!%p1676_p11), %v1956_v9  ;;  %1738 = vmatprep.subr.bf16.mxu1 (!%p1676_p11), %v1957_v10  ;;  %v1677_v10 = vld [vmem:[%s2345_s4] ss:$0 sm:$0xff] (!%p1676_p11) }
  0x89   : > { %982 = vmatmul.mubr.bf16.vlgmr.msra.gmra.mrb[0].mxu0 %v329_v48  ;;  %1068 = vmatmul.mubr.bf16.vlgmr.msra.gmra.mrb[0].mxu1 %v329_v48 }
  0x8a   : > { %1717 = vmatpush3.bf16.msra.mxu0 (!%p1676_p11), %v1958_v11  ;;  %1739 = vmatpush3.bf16.msra.mxu1 (!%p1676_p11), %v1959_v12 }
  0x8b   : > { %1718 = vmatprep.subr.bf16.mxu0 (!%p1676_p11), %v1960_v13  ;;  %1740 = vmatprep.subr.bf16.mxu1 (!%p1676_p11), %v1961_v14 }
  0x8e   : > { %1719 = vmatpush3.bf16.msra.mxu0 (!%p1676_p11), %v1962_v15  ;;  %1741 = vmatpush3.bf16.msra.mxu1 (!%p1676_p11), %v1963_v16 }
  0x8f   : > { %1720 = vmatprep.subr.bf16.mxu0 (!%p1676_p11), %v1964_v17  ;;  %1742 = vmatprep.subr.bf16.mxu1 (!%p1676_p11), %v1965_v18 }
  0x92   : > { %1721 = vmatpush3.bf16.msra.mxu0 (!%p1676_p11), %v1966_v19  ;;  %1743 = vmatpush3.bf16.msra.mxu1 (!%p1676_p11), %v1967_v20 }
  0x93   : > { %1722 = vmatprep.subr.bf16.mxu0 (!%p1676_p11), %v1968_v21  ;;  %1744 = vmatprep.subr.bf16.mxu1 (!%p1676_p11), %v1969_v22 }
  0x96   : > { %1723 = vmatpush3.bf16.msra.mxu0 (!%p1676_p11), %v1970_v23  ;;  %1745 = vmatpush3.bf16.msra.mxu1 (!%p1676_p11), %v1971_v24 }
  0x97   : > { %1724 = vmatprep.subr.bf16.mxu0 (!%p1676_p11), %v1972_v25  ;;  %1746 = vmatprep.subr.bf16.mxu1 (!%p1676_p11), %v1973_v26 }
  0x9a   : > { %1725 = vmatpush3.bf16.msra.mxu0 (!%p1676_p11), %v1974_v27  ;;  %1747 = vmatpush3.bf16.msra.mxu1 (!%p1676_p11), %v1975_v29 }
  0x9b   : > { %1726 = vmatprep.subr.bf16.mxu0 (!%p1676_p11), %v1976_v30  ;;  %1748 = vmatprep.subr.bf16.mxu1 (!%p1676_p11), %v1977_v31 }
  0x9e   : > { %1727 = vmatpush3.bf16.msra.mxu0 (!%p1676_p11), %v1978_v32  ;;  %1749 = vmatpush3.bf16.msra.mxu1 (!%p1676_p11), %v1979_v34 }
  0x9f   : > { %1728 = vmatprep.subr.bf16.mxu0 (!%p1676_p11), %v1980_v35  ;;  %1750 = vmatprep.subr.bf16.mxu1 (!%p1676_p11), %v1981_v36 }
  0xa2   : > { %1729 = vmatpush3.bf16.msra.mxu0 (!%p1676_p11), %v1982_v37  ;;  %1751 = vmatpush3.bf16.msra.mxu1 (!%p1676_p11), %v1983_v39 }
  0xa3   : > { %1730 = vmatprep.subr.bf16.mxu0 (!%p1676_p11), %v1984_v41  ;;  %1752 = vmatprep.subr.bf16.mxu1 (!%p1676_p11), %v1985_v43 }
  0xa6   : > { %1731 = vmatpush3.bf16.msra.mxu0 (!%p1676_p11), %v1986_v45  ;;  %1753 = vmatpush3.bf16.msra.mxu1 (!%p1676_p11), %v1987_v46 }
 0x15c   : > { %v983_v53 = vpop.f32.mrb[0].mxu0  ;;  %v1069_v54 = vpop.f32.mrb[0].mxu1  ;;  %1097 = sbr.rel (%p1676_p11) target bundleno = 589 (0x24d), region = 71 }
 0x15d   : > { %v1078_v57 = vadd.f32 %v983_v53, %v313_v49  ;;  %v1080_v58 = vadd.f32 %v1069_v54, %v315_v50  ;;  %v985_v59 = vpop.f32.mrb[1].mxu0  ;;  %v1071_v60 = vpop.f32.mrb[1].mxu1  ;;  %v1106_v49 = vld [vmem:[%s2343_s2] sm:$0xf] (!%p1676_p11) }
 0x15e   : > { %v1079_v63 = vadd.f32 %v985_v59, %v314_v51  ;;  %v1081_v0 = vadd.f32 %v1071_v60, %v316_v52  ;;  %v987_v1 = vpop.f32.mrb[2].mxu0  ;;  %v1073_v2 = vpop.f32.mrb[2].mxu1  ;;  %v1115_v50 = vrot.slane (!%p1676_p11), %v1106_v49, %v1114_v38  ;;  %v1123_v53 = vrot.slane (!%p1676_p11), %v1106_v49, %v1122_v40 }
 0x15f   : > { %1086 = vst [vmem:[#allocation2] sm:$0xff] %v1078_v57  ;;  %1088 = vst [vmem:[#allocation2 + $0x10] sm:$0xff] %v1080_v58  ;;  %v1082_v3 = vadd.f32 %v987_v1, %v317_v55  ;;  %v1084_v4 = vadd.f32 %v1073_v2, %v319_v56  ;;  %v989_v5 = vpop.f32.mrb[3].mxu0  ;;  %v1075_v6 = vpop.f32.mrb[3].mxu1  ;;  %v1111_v55 = vrot.slane (!%p1676_p11), %v1106_v49, %v1110_v42 }
 0x160   : > { %1087 = vst [vmem:[#allocation2 + $0x8] sm:$0xff] %v1079_v63  ;;  %1089 = vst [vmem:[#allocation2 + $0x18] sm:$0xff] %v1081_v0  ;;  %v1083_v7 = vadd.f32 %v989_v5, %v318_v61  ;;  %v1085_v8 = vadd.f32 %v1075_v6, %v320_v62  ;;  %v1119_v56 = vrot.slane (!%p1676_p11), %v1106_v49, %v1118_v44 }
 0x161   : > { %1090 = vst [vmem:[#allocation2 + $0x20] sm:$0x3] %v1082_v3  ;;  %1092 = vst [vmem:[#allocation2 + $0x30] sm:$0x3] %v1084_v4 }
 0x162   : > { %1091 = vst [vmem:[#allocation2 + $0x28] sm:$0x3] %v1083_v7  ;;  %1093 = vst [vmem:[#allocation2 + $0x38] sm:$0x3] %v1085_v8 }
 0x166   : > { %v1098_v54 = vld [vmem:[#allocation2] sm:$0xff]  ;;  %v1100_v58 = vld [vmem:[#allocation2 + $0x10] sm:$0xff] }
 0x167   : > { %v1099_v47 = vld [vmem:[#allocation2 + $0x8] sm:$0xff]  ;;  %v1101_v51 = vld [vmem:[#allocation2 + $0x18] sm:$0xff]  ;;  %v1128_v0 = vadd.f32 %v1111_v55, %v1098_v54  ;;  %v1130_v2 = vadd.f32 %v1119_v56, %v1100_v58 }
 0x168   : > { %v1102_v57 = vld [vmem:[#allocation2 + $0x20] sm:$0x3]  ;;  %v1104_v59 = vld [vmem:[#allocation2 + $0x30] sm:$0x3]  ;;  %v1129_v60 = vadd.f32 %v1115_v50, %v1099_v47  ;;  %v1131_v62 = vadd.f32 %v1123_v53, %v1101_v51 }
 0x169   : > { %v1103_v48 = vld [vmem:[#allocation2 + $0x28] sm:$0x3]  ;;  %v1105_v52 = vld [vmem:[#allocation2 + $0x38] sm:$0x3]  ;;  %v1132_v1 = vadd.f32 %v1111_v55, %v1102_v57  ;;  %v1134_v3 = vadd.f32 %v1119_v56, %v1104_v59 }
 0x16a   : > { %v1133_v61 = vadd.f32 %v1115_v50, %v1103_v48  ;;  %v1135_v63 = vadd.f32 %v1123_v53, %v1105_v52 }
 0x16b   : > { %v1136_v6 = vpack.c.bf16 %v1132_v1, %v1128_v0  ;;  %v1138_v7 = vpack.c.bf16 %v1134_v3, %v1130_v2 }
 0x16c   : > { %v1137_v4 = vpack.c.bf16 %v1133_v61, %v1129_v60  ;;  %v1139_v5 = vpack.c.bf16 %v1135_v63, %v1131_v62 }
 0x16e   : > { %1435 = vmatprep.mubr.bf16.mxu0 %v1137_v4  ;;  %1476 = vmatprep.mubr.bf16.mxu1 %v1139_v5 }
 0x16f   : > { %1436 = vmatmul.mubr.bf16.vlgmr.msra.gmra.mrb[0].mxu0 %v1136_v6  ;;  %1477 = vmatmul.mubr.bf16.vlgmr.msra.gmra.mrb[0].mxu1 %v1138_v7 }
 0x242   : > { %v1732_v8 = vpop.f32.mrb[0].mxu0  ;;  %v1754_v9 = vpop.f32.mrb[0].mxu1 }
 0x243   : > { %v1733_v11 = vpop.f32.mrb[1].mxu0  ;;  %v1755_v12 = vpop.f32.mrb[1].mxu1 }
 0x244   : > { %v1734_v13 = vadd.f32 %v1733_v11, %v1732_v8  ;;  %v1756_v14 = vadd.f32 %v1755_v12, %v1754_v9  ;;  %v1735_v15 = vpop.f32.mrb[2].mxu0  ;;  %v1757_v16 = vpop.f32.mrb[2].mxu1 }
 0x245   : > { %v1736_v17 = vpop.f32.mrb[3].mxu0  ;;  %v1758_v18 = vpop.f32.mrb[3].mxu1 }
 0x246   : > { %v1438_v19 = vadd.f32 %v1734_v13, %v1677_v10  ;;  %v1737_v20 = vadd.f32 %v1736_v17, %v1735_v15  ;;  %v1759_v21 = vadd.f32 %v1758_v18, %v1757_v16 }
 0x248   : > { %v1479_v22 = vadd.f32 %v1756_v14, %v1438_v19  ;;  %v1441_v23 = vadd.f32 %v1737_v20, %v1677_v10 }
 0x24a   : > { %1486 = vst.msk [vmem:[%s2346_s5] sm:$0xff] %vm1485_vm0, %v1479_v22  ;;  %v1482_v24 = vadd.f32 %v1759_v21, %v1441_v23 }
 0x24c   : > { %1488 = vst.msk [vmem:[%s2346_s5 + $0x8] sm:$0x3] %vm1487_vm1, %v1482_v24 }
 0x24d PF: > { %s15_s22 = sadd.s32 1, %s2026_s22   ;;  %s2347_s18 = smov %s2014_s19 }
 0x24e   : > { %p12_p12 = scmp.ge.s32.totalorder %s15_s22, 4   ;;  %s2348_s19 = smov %s2095_s26 }
 0x24f   : > { %s2349_s20 = smov %s2022_s21  ;;  %s2350_s21 = smov %s2352_s23 }
 0x250   :  { %14 = sbr.rel (!%p12_p12) target bundleno = 3 (0x3), region = 109 }

// kernel: full_transformer_forward.5
= control target key start
LH: loop header
LB: loop body
LE: loop exit
PB: predicated region body
PF: predicated region fallthrough
CT: control target
= control target key end

     0   :  { %s8264_s21 = smov 0   ;;  %s9587_s0 = inlined_call_operand.vmem [shape: f32[2,5,32], index: 0, kind: input, shape index: {}]   ;;  %s9588_s1 = inlined_call_operand.vmem [shape: f32[5,32], index: 1, kind: input, shape index: {}]   ;;  %s9589_s2 = inlined_call_operand.vmem [shape: bf16[2,8,32,4], index: 2, kind: input, shape index: {}]   ;;  %s9590_s3 = inlined_call_operand.vmem [shape: bf16[2,8,32,4], index: 3, kind: input, shape index: {}]   ;;  %s9591_s4 = inlined_call_operand.vmem [shape: bf16[2,8,32,4], index: 4, kind: input, shape index: {}]   ;;  %s9592_s5 = inlined_call_operand.vmem [shape: f32[2,8,1,4], index: 5, kind: input, shape index: {}]   ;;  %s9593_s6 = inlined_call_operand.vmem [shape: f32[2,8,1,4], index: 6, kind: input, shape index: {}]   ;;  %s9594_s7 = inlined_call_operand.vmem [shape: f32[2,8,1,4], index: 7, kind: input, shape index: {}]   ;;  %s9595_s8 = inlined_call_operand.vmem [shape: bf16[2,8,4,32], index: 8, kind: input, shape index: {}]   ;;  %s9596_s9 = inlined_call_operand.vmem [shape: f32[2,1,32], index: 9, kind: input, shape index: {}]   ;;  %s9597_s10 = inlined_call_operand.vmem [shape: bf16[2,32,32], index: 10, kind: input, shape index: {}]   ;;  %s9598_s11 = inlined_call_operand.vmem [shape: f32[2,1,32], index: 11, kind: input, shape index: {}]   ;;  %s9599_s12 = inlined_call_operand.vmem [shape: bf16[2,32,32], index: 12, kind: input, shape index: {}]   ;;  %s9600_s13 = inlined_call_operand.vmem [shape: f32[2,1,32], index: 13, kind: input, shape index: {}]   ;;  %s9601_s14 = inlined_call_operand.vmem [shape: f32[5,1,32], index: 14, kind: input, shape index: {}]   ;;  %s9602_s15 = inlined_call_operand.vmem [shape: f32[5,1,32], index: 15, kind: input, shape index: {}]   ;;  %s9603_s16 = inlined_call_operand.vmem [shape: f32[2,5,32], index: 16, kind: output, shape index: {}]  }
   0x1   :  { %9604 = sst [smem:[#allocation2_spill]] %s9587_s0 }
   0x2 LB: > { %s6599_s22 = sadd.s32 4294967295, %s8174_s21   ;;  %p6603_p0 = scmp.ge.s32.totalorder %s8174_s21, 1  ;;  %s8174_s21 = sphi %s8264_s21, %s26_s21  }
   0x3   : > { %p461_p1 = scmp.lt.s32.totalorder %s8174_s21, 3 }
   0x5   : > { %p462_p2 = pnand %p6603_p0, %p461_p1 }
   0x6   : > { %v7990_v0 = vld [vmem:[%s9589_s2] sm:$0xff] (!%p462_p2)   ;;  %v8176_v1 = vmov (!%p462_p2), 0.0   ;;  %v7991_v2 = vld [vmem:[%s9589_s2 + $0x10] sm:$0xff] (!%p462_p2)   ;;  %v7992_v3 = vld [vmem:[%s9589_s2 + $0x8] sm:$0xff] (!%p462_p2)   ;;  %vm8177_vm0 = vmmov (!%p462_p2), 0   ;;  %p509_p3 = scmp.lt.s32.totalorder (!%p462_p2), %s6599_s22, 1 }
   0x7   : > { %465 = sbr.rel (%p462_p2) target bundleno = 4953 (0x1359), region = 84  ;;  %7275 = vmatprep.subr.bf16.mxu0 (!%p462_p2), %v8176_v1  ;;  %7283 = vmatprep.subr.bf16.mxu1 (!%p462_p2), %v8176_v1  ;;  %v7993_v4 = vld [vmem:[%s9589_s2 + $0x18] sm:$0xff] (!%p462_p2)   ;;  %v519_v5 = vld [vmem:[%s9588_s1] sm:$0x1f] (!%p462_p2)  ;;  %s9605_s23 = sld [smem:[#allocation2_spill]] (!%p462_p2)  ;;  %vm712_vm1 = vcmask (!%p462_p2), 261120  }
   0x8   : > { %7276 = vmatpush3.bf16.msra.mxu0 (!%p462_p2), %v7990_v0  ;;  %7279 = vmatprep.mubr.msk.bf16.mxu0 (!%p462_p2), %vm8177_vm0, %v8176_v1  ;;  %v7994_v9 = vld [vmem:[%s9589_s2 + $0x20] sm:$0xff] (!%p462_p2)   ;;  %v7995_v10 = vld [vmem:[%s9589_s2 + $0x30] sm:$0xff] (!%p462_p2)   ;;  %v7996_v12 = vld [vmem:[%s9589_s2 + $0x28] sm:$0xff] (!%p462_p2)   ;;  %vm2072_vm2 = vcmask (!%p462_p2), 31744   ;;  %vm2550_vm3 = vcmask (!%p462_p2), 1041408   ;;  %vm2551_vm4 = vcmask (!%p462_p2), 1042432  }
   0x9   : > { %7284 = vmatpush3.bf16.msra.mxu1 (!%p462_p2), %v7991_v2  ;;  %7277 = vmatprep.subr.bf16.mxu0 (!%p462_p2), %v8176_v1  ;;  %v7997_v13 = vld [vmem:[%s9589_s2 + $0x38] sm:$0xff] (!%p462_p2)   ;;  %v7998_v14 = vld [vmem:[%s9589_s2 + $0x40] sm:$0xff] (!%p462_p2)   ;;  %v7999_v15 = vld [vmem:[%s9589_s2 + $0x50] sm:$0xff] (!%p462_p2)   ;;  %vm2441_vm5 = vcmask (!%p462_p2), 36864   ;;  %vm2546_vm6 = vcmask (!%p462_p2), 39936   ;;  %vm3295_vm7 = vcmask (!%p462_p2), 258048  }
   0xa   : > { %7285 = vmatprep.subr.bf16.mxu1 (!%p462_p2), %v8176_v1  ;;  %7287 = vmatprep.mubr.msk.bf16.mxu1 (!%p462_p2), %vm8177_vm0, %v8176_v1  ;;  %v8000_v16 = vld [vmem:[%s9589_s2 + $0x48] sm:$0xff] (!%p462_p2)   ;;  %v8001_v17 = vld [vmem:[%s9589_s2 + $0x58] sm:$0xff] (!%p462_p2)   ;;  %v8002_v18 = vld [vmem:[%s9589_s2 + $0x60] sm:$0xff] (!%p462_p2)  }
   0xb   : > { %v8003_v19 = vld [vmem:[%s9589_s2 + $0x70] sm:$0xff] (!%p462_p2)   ;;  %v8004_v20 = vld [vmem:[%s9589_s2 + $0x68] sm:$0xff] (!%p462_p2)   ;;  %v8005_v21 = vld [vmem:[%s9589_s2 + $0x78] sm:$0xff] (!%p462_p2)  }
   0xc   : > { %7278 = vmatpush3.bf16.msra.mxu0 (!%p462_p2), %v7992_v3  ;;  %v8006_v22 = vld [vmem:[%s9590_s3] sm:$0xff] (!%p462_p2)   ;;  %v8007_v23 = vld [vmem:[%s9590_s3 + $0x10] sm:$0xff] (!%p462_p2)   ;;  %v8008_v24 = vld [vmem:[%s9590_s3 + $0x8] sm:$0xff] (!%p462_p2)  }
   0xd   : > { %7286 = vmatpush3.bf16.msra.mxu1 (!%p462_p2), %v7993_v4  ;;  %7291 = vmatprep.subr.bf16.mxu0 (!%p462_p2), %v8176_v1  ;;  %v8009_v25 = vld [vmem:[%s9590_s3 + $0x18] sm:$0xff] (!%p462_p2)   ;;  %v8010_v26 = vld [vmem:[%s9590_s3 + $0x20] sm:$0xff] (!%p462_p2)   ;;  %v8011_v27 = vld [vmem:[%s9590_s3 + $0x30] sm:$0xff] (!%p462_p2)  }
   0xe   : > { %s9607_s22 = smov (!%p509_p3, %s6599_s22), 1  ;;  %7299 = vmatprep.subr.bf16.mxu1 %v8176_v1  ;;  %v8012_v28 = vld [vmem:[%s9590_s3 + $0x28] sm:$0xff]   ;;  %v8013_v29 = vld [vmem:[%s9590_s3 + $0x38] sm:$0xff]   ;;  %v8014_v30 = vld [vmem:[%s9590_s3 + $0x40] sm:$0xff]  }
   0xf   : > { %s6604_s18 = sshll.u32 %s9607_s22, 3  ;;  %v8015_v31 = vld [vmem:[%s9590_s3 + $0x50] sm:$0xff]   ;;  %v8016_v32 = vld [vmem:[%s9590_s3 + $0x48] sm:$0xff]   ;;  %v8017_v33 = vld [vmem:[%s9590_s3 + $0x58] sm:$0xff]  }
  0x10   : > { %s512_s24 = scalar_lea.vmem %s9605_s23, %s6604_s18  ;;  %v8018_v34 = vld [vmem:[%s9590_s3 + $0x60] sm:$0xff]   ;;  %v8019_v35 = vld [vmem:[%s9590_s3 + $0x70] sm:$0xff]   ;;  %v8020_v36 = vld [vmem:[%s9590_s3 + $0x68] sm:$0xff]   ;;  %s516_s27 = scalar_lea.vmem %s9603_s16, %s6604_s18 }
  0x11   : > { %v518_v6 = vld [vmem:[%s512_s24] sm:$0x1f]  ;;  %v8021_v37 = vld [vmem:[%s9590_s3 + $0x78] sm:$0xff]   ;;  %v8023_v39 = vld [vmem:[%s9591_s4 + $0x10] sm:$0xff]  }
  0x12   : > { %v520_v7 = vadd.f32 %v519_v5, %v518_v6  ;;  %v8022_v38 = vld [vmem:[%s9591_s4] sm:$0xff]   ;;  %v8024_v40 = vld [vmem:[%s9591_s4 + $0x8] sm:$0xff]   ;;  %v8025_v41 = vld [vmem:[%s9591_s4 + $0x18] sm:$0xff]  }
  0x13   : > { %v8026_v42 = vld [vmem:[%s9591_s4 + $0x20] sm:$0xff]   ;;  %v8027_v43 = vld [vmem:[%s9591_s4 + $0x30] sm:$0xff]   ;;  %v8028_v44 = vld [vmem:[%s9591_s4 + $0x28] sm:$0xff]  }
  0x14   : > { %v8305_v8 = vmax.f32 %v520_v7, 0.0  ;;  %v8029_v45 = vld [vmem:[%s9591_s4 + $0x38] sm:$0xff]   ;;  %v8030_v46 = vld [vmem:[%s9591_s4 + $0x40] sm:$0xff]   ;;  %v8031_v47 = vld [vmem:[%s9591_s4 + $0x50] sm:$0xff]  }
  0x15   : > { %v8032_v48 = vld [vmem:[%s9591_s4 + $0x48] sm:$0xff]   ;;  %v8033_v49 = vld [vmem:[%s9591_s4 + $0x58] sm:$0xff]   ;;  %v8034_v50 = vld [vmem:[%s9591_s4 + $0x60] sm:$0xff]  }
  0x16   : > { %v8315_v11 = vpack.c.bf16 %v8305_v8, %v8305_v8  ;;  %v8035_v51 = vld [vmem:[%s9591_s4 + $0x70] sm:$0xff]   ;;  %v8036_v52 = vld [vmem:[%s9591_s4 + $0x68] sm:$0xff]   ;;  %v8037_v53 = vld [vmem:[%s9591_s4 + $0x78] sm:$0xff]  }
  0x18   : > { %7280 = vmatmul.mubr.msk.bf16.vlgmr.msra.gmra.mrb[0].mxu0 %vm712_vm1, %v8315_v11  ;;  %7288 = vmatmul.mubr.msk.bf16.vlgmr.msra.gmra.mrb[0].mxu1 %vm712_vm1, %v8315_v11 }
  0x19   : > { %7292 = vmatpush3.bf16.msra.mxu0 %v7994_v9  ;;  %7300 = vmatpush3.bf16.msra.mxu1 %v7995_v10 }
  0x1a   : > { %7293 = vmatprep.subr.bf16.mxu0 %v8176_v1  ;;  %7301 = vmatprep.subr.bf16.mxu1 %v8176_v1 }
  0x1b   : > { %7295 = vmatprep.mubr.msk.bf16.mxu0 %vm8177_vm0, %v8176_v1  ;;  %7303 = vmatprep.mubr.msk.bf16.mxu1 %vm8177_vm0, %v8176_v1 }
  0x1d   : > { %7294 = vmatpush3.bf16.msra.mxu0 %v7996_v12  ;;  %7302 = vmatpush3.bf16.msra.mxu1 %v7997_v13 }
  0x1e   : > { %7307 = vmatprep.subr.bf16.mxu0 %v8176_v1  ;;  %7315 = vmatprep.subr.bf16.mxu1 %v8176_v1 }
  0x20   : > { %7296 = vmatmul.mubr.msk.bf16.vlgmr.msra.gmra.mrb[4].mxu0 %vm712_vm1, %v8315_v11  ;;  %7304 = vmatmul.mubr.msk.bf16.vlgmr.msra.gmra.mrb[4].mxu1 %vm712_vm1, %v8315_v11 }
  0x21   : > { %7308 = vmatpush3.bf16.msra.mxu0 %v7998_v14  ;;  %7316 = vmatpush3.bf16.msra.mxu1 %v7999_v15 }
  0x22   : > { %7309 = vmatprep.subr.bf16.mxu0 %v8176_v1  ;;  %7317 = vmatprep.subr.bf16.mxu1 %v8176_v1 }
  0x23   : > { %7311 = vmatprep.mubr.msk.bf16.mxu0 %vm8177_vm0, %v8176_v1  ;;  %7319 = vmatprep.mubr.msk.bf16.mxu1 %vm8177_vm0, %v8176_v1 }
  0x25   : > { %7310 = vmatpush3.bf16.msra.mxu0 %v8000_v16  ;;  %7318 = vmatpush3.bf16.msra.mxu1 %v8001_v17 }
  0x26   : > { %7323 = vmatprep.subr.bf16.mxu0 %v8176_v1  ;;  %7331 = vmatprep.subr.bf16.mxu1 %v8176_v1 }
  0x28   : > { %7312 = vmatmul.mubr.msk.bf16.vlgmr.msra.gmra.mrb[8].mxu0 %vm712_vm1, %v8315_v11  ;;  %7320 = vmatmul.mubr.msk.bf16.vlgmr.msra.gmra.mrb[8].mxu1 %vm712_vm1, %v8315_v11 }
  0x29   : > { %7324 = vmatpush3.bf16.msra.mxu0 %v8002_v18  ;;  %7332 = vmatpush3.bf16.msra.mxu1 %v8003_v19 }
  0x2a   : > { %7325 = vmatprep.subr.bf16.mxu0 %v8176_v1  ;;  %7333 = vmatprep.subr.bf16.mxu1 %v8176_v1 }
  0x2b   : > { %7327 = vmatprep.mubr.msk.bf16.mxu0 %vm8177_vm0, %v8176_v1  ;;  %7335 = vmatprep.mubr.msk.bf16.mxu1 %vm8177_vm0, %v8176_v1 }
  0x2d   : > { %7326 = vmatpush3.bf16.msra.mxu0 %v8004_v20  ;;  %7334 = vmatpush3.bf16.msra.mxu1 %v8005_v21 }
  0x2e   : > { %7339 = vmatprep.subr.bf16.mxu0 %v8176_v1  ;;  %7347 = vmatprep.subr.bf16.mxu1 %v8176_v1 }
  0x30   : > { %7328 = vmatmul.mubr.msk.bf16.vlgmr.msra.gmra.mrb[12].mxu0 %vm712_vm1, %v8315_v11  ;;  %7336 = vmatmul.mubr.msk.bf16.vlgmr.msra.gmra.mrb[12].mxu1 %vm712_vm1, %v8315_v11 }
  0x31   : > { %7340 = vmatpush3.bf16.msra.mxu0 %v8006_v22  ;;  %7348 = vmatpush3.bf16.msra.mxu1 %v8007_v23 }
  0x32   : > { %7341 = vmatprep.subr.bf16.mxu0 %v8176_v1  ;;  %7349 = vmatprep.subr.bf16.mxu1 %v8176_v1 }
  0x33   : > { %7343 = vmatprep.mubr.msk.bf16.mxu0 %vm8177_vm0, %v8176_v1  ;;  %7351 = vmatprep.mubr.msk.bf16.mxu1 %vm8177_vm0, %v8176_v1 }
  0x35   : > { %7342 = vmatpush3.bf16.msra.mxu0 %v8008_v24  ;;  %7350 = vmatpush3.bf16.msra.mxu1 %v8009_v25  ;;  %v6638_v24 = vld [vmem:[%s9593_s6] ss:$0 sm:$0xff]  ;;  %v6639_v25 = vld [vmem:[%s9593_s6 + $0x1] ss:$0 sm:$0xff] }
  0x36   : > { %7355 = vmatprep.subr.bf16.mxu0 %v8176_v1  ;;  %7363 = vmatprep.subr.bf16.mxu1 %v8176_v1 }
  0x38   : > { %7344 = vmatmul.mubr.msk.bf16.vlgmr.msra.gmra.mrb[16].mxu0 %vm712_vm1, %v8315_v11  ;;  %7352 = vmatmul.mubr.msk.bf16.vlgmr.msra.gmra.mrb[16].mxu1 %vm712_vm1, %v8315_v11 }
  0x39   : > { %7356 = vmatpush3.bf16.msra.mxu0 %v8010_v26  ;;  %7364 = vmatpush3.bf16.msra.mxu1 %v8011_v27  ;;  %v6606_v26 = vld [vmem:[%s9592_s5] ss:$0 sm:$0xff]  ;;  %v6607_v27 = vld [vmem:[%s9592_s5 + $0x1] ss:$0 sm:$0xff] }
  0x3a   : > { %7357 = vmatprep.subr.bf16.mxu0 %v8176_v1  ;;  %7365 = vmatprep.subr.bf16.mxu1 %v8176_v1 }
  0x3b   : > { %7359 = vmatprep.mubr.msk.bf16.mxu0 %vm8177_vm0, %v8176_v1  ;;  %7367 = vmatprep.mubr.msk.bf16.mxu1 %vm8177_vm0, %v8176_v1 }
  0x3d   : > { %7358 = vmatpush3.bf16.msra.mxu0 %v8012_v28  ;;  %7366 = vmatpush3.bf16.msra.mxu1 %v8013_v29 }
  0x3e   : > { %7371 = vmatprep.subr.bf16.mxu0 %v8176_v1  ;;  %7379 = vmatprep.subr.bf16.mxu1 %v8176_v1 }
  0x40   : > { %7360 = vmatmul.mubr.msk.bf16.vlgmr.msra.gmra.mrb[20].mxu0 %vm712_vm1, %v8315_v11  ;;  %7368 = vmatmul.mubr.msk.bf16.vlgmr.msra.gmra.mrb[20].mxu1 %vm712_vm1, %v8315_v11 }
  0x41   : > { %7372 = vmatpush3.bf16.msra.mxu0 %v8014_v30  ;;  %7380 = vmatpush3.bf16.msra.mxu1 %v8015_v31 }
  0x42   : > { %7373 = vmatprep.subr.bf16.mxu0 %v8176_v1  ;;  %7381 = vmatprep.subr.bf16.mxu1 %v8176_v1 }
  0x43   : > { %7375 = vmatprep.mubr.msk.bf16.mxu0 %vm8177_vm0, %v8176_v1  ;;  %7383 = vmatprep.mubr.msk.bf16.mxu1 %vm8177_vm0, %v8176_v1 }
  0x45   : > { %7374 = vmatpush3.bf16.msra.mxu0 %v8016_v32  ;;  %7382 = vmatpush3.bf16.msra.mxu1 %v8017_v33 }
  0x46   : > { %7387 = vmatprep.subr.bf16.mxu0 %v8176_v1  ;;  %7395 = vmatprep.subr.bf16.mxu1 %v8176_v1 }
  0x48   : > { %7376 = vmatmul.mubr.msk.bf16.vlgmr.msra.gmra.mrb[24].mxu0 %vm712_vm1, %v8315_v11  ;;  %7384 = vmatmul.mubr.msk.bf16.vlgmr.msra.gmra.mrb[24].mxu1 %vm712_vm1, %v8315_v11 }
  0x49   : > { %7388 = vmatpush3.bf16.msra.mxu0 %v8018_v34  ;;  %7396 = vmatpush3.bf16.msra.mxu1 %v8019_v35 }
  0x4a   : > { %7389 = vmatprep.subr.bf16.mxu0 %v8176_v1  ;;  %7397 = vmatprep.subr.bf16.mxu1 %v8176_v1 }
  0x4b   : > { %7391 = vmatprep.mubr.msk.bf16.mxu0 %vm8177_vm0, %v8176_v1  ;;  %7399 = vmatprep.mubr.msk.bf16.mxu1 %vm8177_vm0, %v8176_v1 }
  0x4d   : > { %7390 = vmatpush3.bf16.msra.mxu0 %v8020_v36  ;;  %7398 = vmatpush3.bf16.msra.mxu1 %v8021_v37 }
  0x4e   : > { %7403 = vmatprep.subr.bf16.mxu0 %v8176_v1  ;;  %7411 = vmatprep.subr.bf16.mxu1 %v8176_v1 }
  0x50   : > { %7392 = vmatmul.mubr.msk.bf16.vlgmr.msra.gmra.mrb[28].mxu0 %vm712_vm1, %v8315_v11  ;;  %7400 = vmatmul.mubr.msk.bf16.vlgmr.msra.gmra.mrb[28].mxu1 %vm712_vm1, %v8315_v11 }
  0x51   : > { %7404 = vmatpush3.bf16.msra.mxu0 %v8022_v38  ;;  %7407 = vmatprep.mubr.msk.bf16.mxu0 %vm8177_vm0, %v8176_v1 }
  0x52   : > { %7405 = vmatprep.subr.bf16.mxu0 %v8176_v1  ;;  %7415 = vmatprep.mubr.msk.bf16.mxu1 %vm8177_vm0, %v8176_v1 }
  0x53   : > { %7412 = vmatpush3.bf16.msra.mxu1 %v8023_v39 }
  0x54   : > { %7413 = vmatprep.subr.bf16.mxu1 %v8176_v1 }
  0x55   : > { %7406 = vmatpush3.bf16.msra.mxu0 %v8024_v40 }
  0x56   : > { %7419 = vmatprep.subr.bf16.mxu0 %v8176_v1 }
  0x57   : > { %7414 = vmatpush3.bf16.msra.mxu1 %v8025_v41 }
  0x58   : > { %7408 = vmatmul.mubr.msk.bf16.vlgmr.msra.gmra.mrb[32].mxu0 %vm712_vm1, %v8315_v11  ;;  %7427 = vmatprep.subr.bf16.mxu1 %v8176_v1 }
  0x59   : > { %7420 = vmatpush3.bf16.msra.mxu0 %v8026_v42  ;;  %7423 = vmatprep.mubr.msk.bf16.mxu0 %vm8177_vm0, %v8176_v1 }
  0x5a   : > { %7416 = vmatmul.mubr.msk.bf16.vlgmr.msra.gmra.mrb[32].mxu1 %vm712_vm1, %v8315_v11  ;;  %7421 = vmatprep.subr.bf16.mxu0 %v8176_v1 }
  0x5b   : > { %7428 = vmatpush3.bf16.msra.mxu1 %v8027_v43  ;;  %7431 = vmatprep.mubr.msk.bf16.mxu1 %vm8177_vm0, %v8176_v1 }
  0x5c   : > { %7429 = vmatprep.subr.bf16.mxu1 %v8176_v1 }
  0x5d   : > { %7422 = vmatpush3.bf16.msra.mxu0 %v8028_v44 }
  0x5e   : > { %7435 = vmatprep.subr.bf16.mxu0 %v8176_v1 }
  0x5f   : > { %7430 = vmatpush3.bf16.msra.mxu1 %v8029_v45 }
  0x60   : > { %7424 = vmatmul.mubr.msk.bf16.vlgmr.msra.gmra.mrb[36].mxu0 %vm712_vm1, %v8315_v11  ;;  %7443 = vmatprep.subr.bf16.mxu1 %v8176_v1 }
  0x61   : > { %7436 = vmatpush3.bf16.msra.mxu0 %v8030_v46  ;;  %7439 = vmatprep.mubr.msk.bf16.mxu0 %vm8177_vm0, %v8176_v1  ;;  %v6640_v46 = vld [vmem:[%s9593_s6 + $0x2] ss:$0 sm:$0xff] }
  0x62   : > { %7432 = vmatmul.mubr.msk.bf16.vlgmr.msra.gmra.mrb[36].mxu1 %vm712_vm1, %v8315_v11  ;;  %7437 = vmatprep.subr.bf16.mxu0 %v8176_v1 }
  0x63   : > { %7444 = vmatpush3.bf16.msra.mxu1 %v8031_v47  ;;  %7447 = vmatprep.mubr.msk.bf16.mxu1 %vm8177_vm0, %v8176_v1  ;;  %v6641_v47 = vld [vmem:[%s9593_s6 + $0x3] ss:$0 sm:$0xff] }
  0x64   : > { %7445 = vmatprep.subr.bf16.mxu1 %v8176_v1 }
  0x65   : > { %7438 = vmatpush3.bf16.msra.mxu0 %v8032_v48  ;;  %v6608_v48 = vld [vmem:[%s9592_s5 + $0x2] ss:$0 sm:$0xff] }
  0x66   : > { %7451 = vmatprep.subr.bf16.mxu0 %v8176_v1 }
  0x67   : > { %7446 = vmatpush3.bf16.msra.mxu1 %v8033_v49  ;;  %v6609_v49 = vld [vmem:[%s9592_s5 + $0x3] ss:$0 sm:$0xff] }
  0x68   : > { %7440 = vmatmul.mubr.msk.bf16.vlgmr.msra.gmra.mrb[40].mxu0 %vm712_vm1, %v8315_v11  ;;  %7459 = vmatprep.subr.bf16.mxu1 %v8176_v1 }
  0x69   : > { %7455 = vmatprep.mubr.msk.bf16.mxu0 %vm8177_vm0, %v8176_v1  ;;  %7452 = vmatpush3.bf16.msra.mxu0 %v8034_v50 }
  0x6a   : > { %7448 = vmatmul.mubr.msk.bf16.vlgmr.msra.gmra.mrb[40].mxu1 %vm712_vm1, %v8315_v11  ;;  %7453 = vmatprep.subr.bf16.mxu0 %v8176_v1 }
  0x6b   : > { %7460 = vmatpush3.bf16.msra.mxu1 %v8035_v51  ;;  %7463 = vmatprep.mubr.msk.bf16.mxu1 %vm8177_vm0, %v8176_v1 }
  0x6c   : > { %7461 = vmatprep.subr.bf16.mxu1 %v8176_v1 }
  0x6d   : > { %7454 = vmatpush3.bf16.msra.mxu0 %v8036_v52 }
  0x6e   : > { %7467 = vmatprep.subr.bf16.mxu0 %v8176_v1 }
  0x6f   : > { %7462 = vmatpush3.bf16.msra.mxu1 %v8037_v53 }
  0x70   : > { %7473 = vmatprep.subr.bf16.mxu1 %v8176_v1  ;;  %7456 = vmatmul.mubr.msk.bf16.vlgmr.msra.gmra.mrb[44].mxu0 %vm712_vm1, %v8315_v11 }
  0x71   : > { %7469 = vmatprep.mubr.msk.bf16.mxu0 %vm8177_vm0, %v8176_v1 }
  0x72   : > { %7464 = vmatmul.mubr.msk.bf16.vlgmr.msra.gmra.mrb[44].mxu1 %vm712_vm1, %v8315_v11 }
  0x73   : > { %7475 = vmatprep.mubr.msk.bf16.mxu1 %vm8177_vm0, %v8176_v1 }
  0xeb   : > { %v750_v54 = vpop.f32.mrb[0].mxu0  ;;  %v802_v55 = vpop.f32.mrb[0].mxu1 }
  0xec   : > { %v7281_v56 = vpop.f32.mrb[1].mxu0  ;;  %v7289_v57 = vpop.f32.mrb[1].mxu1  ;;  %v751_v34 = vadd.f32 %v6606_v26, %v750_v54  ;;  %v803_v35 = vadd.f32 %v6607_v27, %v802_v55 }
  0xed   : > { %v753_v58 = vpop.f32.mrb[2].mxu0  ;;  %v805_v59 = vpop.f32.mrb[2].mxu1 }
  0xee   : > { %v7282_v60 = vpop.f32.mrb[3].mxu0  ;;  %v7290_v61 = vpop.f32.mrb[3].mxu1  ;;  %v2048_v44 = vmul.f32 0.5, %v751_v34  ;;  %v2049_v45 = vmul.f32 0.5, %v803_v35  ;;  %v6645_v35 = vld [vmem:[%s9593_s6 + $0x7] ss:$0 sm:$0xff] }
  0xf0   : > { %v2056_v56 = vpack.c.bf16 %v2048_v44, %v2048_v44  ;;  %v2057_v57 = vpack.c.bf16 %v2049_v45, %v2049_v45 }
  0xf3   : > { %v8583_v62 = vpop.f32.mrb[4].mxu0  ;;  %v8585_v63 = vpop.f32.mrb[4].mxu1 }
  0xf4   : > { %v7297_v0 = vpop.f32.mrb[5].mxu0  ;;  %v7305_v2 = vpop.f32.mrb[5].mxu1  ;;  %v855_v60 = vadd.f32 %v6608_v48, %v8583_v62  ;;  %v907_v61 = vadd.f32 %v6609_v49, %v8585_v63  ;;  %v6642_v62 = vld [vmem:[%s9593_s6 + $0x4] ss:$0 sm:$0xff]  ;;  %v6643_v63 = vld [vmem:[%s9593_s6 + $0x5] ss:$0 sm:$0xff] }
  0xf5   : > { %v857_v3 = vpop.f32.mrb[6].mxu0  ;;  %v909_v4 = vpop.f32.mrb[6].mxu1 }
  0xf6   : > { %v7298_v5 = vpop.f32.mrb[7].mxu0  ;;  %v7306_v6 = vpop.f32.mrb[7].mxu1 }
  0xfb   : > { %v8587_v7 = vpop.f32.mrb[8].mxu0  ;;  %v8589_v9 = vpop.f32.mrb[8].mxu1 }
  0xfc   : > { %v7313_v10 = vpop.f32.mrb[9].mxu0  ;;  %v7321_v11 = vpop.f32.mrb[9].mxu1 }
  0xfd   : > { %v961_v12 = vpop.f32.mrb[10].mxu0  ;;  %v1013_v13 = vpop.f32.mrb[10].mxu1  ;;  %v2050_v10 = vmul.f32 0.5, %v855_v60  ;;  %v2051_v11 = vmul.f32 0.5, %v907_v61 }
  0xfe   : > { %v7314_v14 = vpop.f32.mrb[11].mxu0  ;;  %v7322_v15 = vpop.f32.mrb[11].mxu1  ;;  %v6610_v12 = vld [vmem:[%s9592_s5 + $0x4] ss:$0 sm:$0xff]  ;;  %v6611_v13 = vld [vmem:[%s9592_s5 + $0x5] ss:$0 sm:$0xff] }
  0xff   : > { %v2058_v26 = vpack.c.bf16 %v2050_v10, %v2050_v10  ;;  %v2059_v27 = vpack.c.bf16 %v2051_v11, %v2051_v11 }
 0x103   : > { %v8591_v16 = vpop.f32.mrb[12].mxu0  ;;  %v8593_v17 = vpop.f32.mrb[12].mxu1 }
 0x104   : > { %v7329_v18 = vpop.f32.mrb[13].mxu0  ;;  %v7337_v19 = vpop.f32.mrb[13].mxu1 }
 0x105   : > { %v1065_v20 = vpop.f32.mrb[14].mxu0  ;;  %v1117_v21 = vpop.f32.mrb[14].mxu1 }
 0x106   : > { %v7330_v22 = vpop.f32.mrb[15].mxu0  ;;  %v7338_v23 = vpop.f32.mrb[15].mxu1 }
 0x107   : > { %v959_v22 = vadd.f32 %v6610_v12, %v8587_v7  ;;  %v1011_v23 = vadd.f32 %v6611_v13, %v8589_v9  ;;  %v6644_v9 = vld [vmem:[%s9593_s6 + $0x6] ss:$0 sm:$0xff] }
 0x109   : > { %v2052_v34 = vmul.f32 0.5, %v959_v22  ;;  %v2053_v7 = vmul.f32 0.5, %v1011_v23 }
 0x10b   : > { %v1214_v28 = vpop.f32.mrb[16].mxu0  ;;  %v1266_v29 = vpop.f32.mrb[16].mxu1  ;;  %v2060_v44 = vpack.c.bf16 %v2052_v34, %v2052_v34  ;;  %v2061_v45 = vpack.c.bf16 %v2053_v7, %v2053_v7 }
 0x10c   : > { %v1215_v30 = vadd.f32 %v6638_v24, %v1214_v28  ;;  %v1267_v31 = vadd.f32 %v6639_v25, %v1266_v29  ;;  %v7345_v32 = vpop.f32.mrb[17].mxu0  ;;  %v7353_v33 = vpop.f32.mrb[17].mxu1 }
 0x10d   : > { %v1217_v36 = vpop.f32.mrb[18].mxu0  ;;  %v1269_v37 = vpop.f32.mrb[18].mxu1 }
 0x10e   : > { %v2064_v38 = vpack.c.bf16 %v1215_v30, %v1215_v30  ;;  %v2065_v39 = vpack.c.bf16 %v1267_v31, %v1267_v31  ;;  %v7346_v40 = vpop.f32.mrb[19].mxu0  ;;  %v7354_v41 = vpop.f32.mrb[19].mxu1  ;;  %v6612_v36 = vld [vmem:[%s9592_s5 + $0x6] ss:$0 sm:$0xff]  ;;  %v6613_v37 = vld [vmem:[%s9592_s5 + $0x7] ss:$0 sm:$0xff] }
 0x10f   : > { %v1063_v48 = vadd.f32 %v6612_v36, %v8591_v16  ;;  %v1115_v49 = vadd.f32 %v6613_v37, %v8593_v17 }
 0x110   : > { %v2077_v42 = vsel %vm2072_vm2, %v2064_v38, 0  ;;  %v2123_v43 = vsel %vm2072_vm2, %v2065_v39, 0 }
 0x111   : > { %7468 = vmatpush3.bf16.xpose.msra.mxu0 %v2077_v42  ;;  %7474 = vmatpush3.bf16.xpose.msra.mxu1 %v2123_v43 }
 0x112   : > { %7479 = vmatprep.subr.bf16.mxu0 %v8176_v1  ;;  %7485 = vmatprep.subr.bf16.mxu1 %v8176_v1 }
 0x113   : > { %v1318_v50 = vpop.f32.mrb[20].mxu0  ;;  %v1370_v51 = vpop.f32.mrb[20].mxu1 }
 0x114   : > { %v1319_v52 = vadd.f32 %v6640_v46, %v1318_v50  ;;  %v1371_v53 = vadd.f32 %v6641_v47, %v1370_v51  ;;  %v7361_v54 = vpop.f32.mrb[21].mxu0  ;;  %v7369_v55 = vpop.f32.mrb[21].mxu1 }
 0x115   : > { %v1321_v58 = vpop.f32.mrb[22].mxu0  ;;  %v1373_v59 = vpop.f32.mrb[22].mxu1 }
 0x116   : > { %v2066_v0 = vpack.c.bf16 %v1319_v52, %v1319_v52  ;;  %v2067_v2 = vpack.c.bf16 %v1371_v53, %v1371_v53  ;;  %v7362_v3 = vpop.f32.mrb[23].mxu0  ;;  %v7370_v4 = vpop.f32.mrb[23].mxu1  ;;  %v6670_v58 = vld [vmem:[%s9594_s7] ss:$0 sm:$0xff]  ;;  %v8178_v59 = vmov 65535  }
 0x117   : > { %v2552_v60 = vsel %vm2550_vm3, 4294967295, %v8178_v59 }
 0x118   : > { %v2169_v5 = vsel %vm2072_vm2, %v2066_v0, 0  ;;  %v2215_v6 = vsel %vm2072_vm2, %v2067_v2, 0  ;;  %7470 = vmatmul.mubr.msk.bf16.vlgmr.msra.gmra.mrb[48].mxu0 %vm2072_vm2, %v2056_v56  ;;  %7476 = vmatmul.mubr.msk.bf16.vlgmr.msra.gmra.mrb[48].mxu1 %vm2072_vm2, %v2057_v57  ;;  %v2054_v56 = vmul.f32 0.5, %v1063_v48  ;;  %v2055_v57 = vmul.f32 0.5, %v1115_v49  ;;  %v6671_v0 = vld [vmem:[%s9594_s7 + $0x1] ss:$0 sm:$0xff] }
 0x119   : > { %7480 = vmatpush3.bf16.xpose.msra.mxu0 %v2169_v5  ;;  %7486 = vmatpush3.bf16.xpose.msra.mxu1 %v2215_v6  ;;  %v8696_v4 = vsel %vm2551_vm4, %v2552_v60, 0 }
 0x11a   : > { %7481 = vmatprep.mubr.msk.bf16.mxu0 %vm8177_vm0, %v8176_v1  ;;  %7487 = vmatprep.mubr.msk.bf16.mxu1 %vm8177_vm0, %v8176_v1  ;;  %v2062_v16 = vpack.c.bf16 %v2054_v56, %v2054_v56  ;;  %v2063_v17 = vpack.c.bf16 %v2055_v57, %v2055_v57 }
 0x11b   : > { %v1422_v14 = vpop.f32.mrb[24].mxu0  ;;  %v1474_v15 = vpop.f32.mrb[24].mxu1  ;;  %7491 = vmatprep.subr.bf16.mxu0 %v8176_v1  ;;  %7497 = vmatprep.subr.bf16.mxu1 %v8176_v1 }
 0x11c   : > { %v1423_v18 = vadd.f32 %v6642_v62, %v1422_v14  ;;  %v1475_v19 = vadd.f32 %v6643_v63, %v1474_v15  ;;  %v7377_v20 = vpop.f32.mrb[25].mxu0  ;;  %v7385_v21 = vpop.f32.mrb[25].mxu1 }
 0x11d   : > { %v1425_v24 = vpop.f32.mrb[26].mxu0  ;;  %v1477_v25 = vpop.f32.mrb[26].mxu1 }
 0x11e   : > { %v2068_v28 = vpack.c.bf16 %v1423_v18, %v1423_v18  ;;  %v2069_v29 = vpack.c.bf16 %v1475_v19, %v1475_v19  ;;  %v7378_v30 = vpop.f32.mrb[27].mxu0  ;;  %v7386_v31 = vpop.f32.mrb[27].mxu1 }
 0x120   : > { %v2261_v32 = vsel %vm2072_vm2, %v2068_v28, 0  ;;  %v2307_v33 = vsel %vm2072_vm2, %v2069_v29, 0  ;;  %7482 = vmatmul.mubr.msk.bf16.vlgmr.msra.gmra.mrb[52].mxu0 %vm2072_vm2, %v2058_v26  ;;  %7488 = vmatmul.mubr.msk.bf16.vlgmr.msra.gmra.mrb[52].mxu1 %vm2072_vm2, %v2059_v27 }
 0x121   : > { %7492 = vmatpush3.bf16.xpose.msra.mxu0 %v2261_v32  ;;  %7498 = vmatpush3.bf16.xpose.msra.mxu1 %v2307_v33 }
 0x122   : > { %7493 = vmatprep.mubr.msk.bf16.mxu0 %vm8177_vm0, %v8176_v1  ;;  %7499 = vmatprep.mubr.msk.bf16.mxu1 %vm8177_vm0, %v8176_v1 }
 0x123   : > { %v1526_v38 = vpop.f32.mrb[28].mxu0  ;;  %v1578_v39 = vpop.f32.mrb[28].mxu1  ;;  %7503 = vmatprep.subr.bf16.mxu0 %v8176_v1  ;;  %7509 = vmatprep.subr.bf16.mxu1 %v8176_v1 }
 0x124   : > { %v1527_v40 = vadd.f32 %v6644_v9, %v1526_v38  ;;  %v1579_v41 = vadd.f32 %v6645_v35, %v1578_v39  ;;  %v7393_v42 = vpop.f32.mrb[29].mxu0  ;;  %v7401_v43 = vpop.f32.mrb[29].mxu1 }
 0x125   : > { %v1529_v46 = vpop.f32.mrb[30].mxu0  ;;  %v1581_v47 = vpop.f32.mrb[30].mxu1 }
 0x126   : > { %v2070_v50 = vpack.c.bf16 %v1527_v40, %v1527_v40  ;;  %v2071_v51 = vpack.c.bf16 %v1579_v41, %v1579_v41  ;;  %v7394_v52 = vpop.f32.mrb[31].mxu0  ;;  %v7402_v53 = vpop.f32.mrb[31].mxu1 }
 0x128   : > { %v2353_v54 = vsel %vm2072_vm2, %v2070_v50, 0  ;;  %v2399_v55 = vsel %vm2072_vm2, %v2071_v51, 0  ;;  %7494 = vmatmul.mubr.msk.bf16.vlgmr.msra.gmra.mrb[56].mxu0 %vm2072_vm2, %v2060_v44  ;;  %7500 = vmatmul.mubr.msk.bf16.vlgmr.msra.gmra.mrb[56].mxu1 %vm2072_vm2, %v2061_v45 }
 0x129   : > { %7504 = vmatpush3.bf16.xpose.msra.mxu0 %v2353_v54  ;;  %7510 = vmatpush3.bf16.xpose.msra.mxu1 %v2399_v55 }
 0x12a   : > { %7505 = vmatprep.mubr.msk.bf16.mxu0 %vm8177_vm0, %v8176_v1  ;;  %7511 = vmatprep.mubr.msk.bf16.mxu1 %vm8177_vm0, %v8176_v1 }
 0x12b   : > { %7515 = vmatprep.subr.bf16.mxu0 %v8176_v1  ;;  %7521 = vmatprep.subr.bf16.mxu1 %v8176_v1  ;;  %v1678_v61 = vpop.f32.mrb[32].mxu0 }
 0x12c   : > { %v1679_v2 = vadd.f32 %v6670_v58, %v1678_v61  ;;  %v7409_v3 = vpop.f32.mrb[33].mxu0 }
 0x12d   : > { %v1681_v5 = vpop.f32.mrb[34].mxu0  ;;  %v1730_v6 = vpop.f32.mrb[32].mxu1 }
 0x12e   : > { %v2538_v62 = vpack.c.bf16 %v1679_v2, %v1679_v2  ;;  %v7410_v63 = vpop.f32.mrb[35].mxu0  ;;  %v1731_v10 = vadd.f32 %v6671_v0, %v1730_v6  ;;  %v7417_v11 = vpop.f32.mrb[33].mxu1 }
 0x12f   : > { %v1733_v12 = vpop.f32.mrb[34].mxu1 }
 0x130   : > { %7506 = vmatmul.mubr.msk.bf16.vlgmr.msra.gmra.mrb[60].mxu0 %vm2072_vm2, %v2062_v16  ;;  %7512 = vmatmul.mubr.msk.bf16.vlgmr.msra.gmra.mrb[60].mxu1 %vm2072_vm2, %v2063_v17  ;;  %v2555_v13 = vand.u32 %v8696_v4, %v2538_v62  ;;  %v2539_v14 = vpack.c.bf16 %v1731_v10, %v1731_v10  ;;  %v7418_v15 = vpop.f32.mrb[35].mxu1 }
 0x131   : > { %7517 = vmatprep.mubr.msk.bf16.mxu0 %vm8177_vm0, %v8176_v1  ;;  %7523 = vmatprep.mubr.msk.bf16.mxu1 %vm8177_vm0, %v8176_v1 }
 0x132   : > { %v2601_v18 = vand.u32 %v8696_v4, %v2539_v14  ;;  %7516 = vmatpush3.bf16.msra.mxu0 %v2555_v13 }
 0x133   : > { %v8700_v19 = vpop.f32.mrb[36].mxu0  ;;  %7527 = vmatprep.subr.bf16.mxu0 %v8176_v1 }
 0x134   : > { %v7425_v20 = vpop.f32.mrb[37].mxu0  ;;  %7522 = vmatpush3.bf16.msra.mxu1 %v2601_v18 }
 0x135   : > { %v1785_v21 = vpop.f32.mrb[38].mxu0  ;;  %v8703_v22 = vpop.f32.mrb[36].mxu1  ;;  %7533 = vmatprep.subr.bf16.mxu1 %v8176_v1 }
 0x136   : > { %v7426_v23 = vpop.f32.mrb[39].mxu0  ;;  %v7433_v24 = vpop.f32.mrb[37].mxu1 }
 0x137   : > { %v1837_v25 = vpop.f32.mrb[38].mxu1 }
 0x138   : > { %v7434_v26 = vpop.f32.mrb[39].mxu1 }
 0x13b   : > { %v8706_v27 = vpop.f32.mrb[40].mxu0 }
 0x13c   : > { %v7441_v28 = vpop.f32.mrb[41].mxu0 }
 0x13d   : > { %v1889_v29 = vpop.f32.mrb[42].mxu0  ;;  %v8708_v30 = vpop.f32.mrb[40].mxu1 }
 0x13e   : > { %v7442_v31 = vpop.f32.mrb[43].mxu0  ;;  %v7449_v32 = vpop.f32.mrb[41].mxu1 }
 0x13f   : > { %v1941_v33 = vpop.f32.mrb[42].mxu1 }
 0x140   : > { %v7450_v34 = vpop.f32.mrb[43].mxu1 }
 0x143   : > { %v8710_v7 = vpop.f32.mrb[44].mxu0 }
 0x144   : > { %v7457_v35 = vpop.f32.mrb[45].mxu0 }
 0x145   : > { %v8712_v9 = vpop.f32.mrb[44].mxu1  ;;  %v1993_v37 = vpop.f32.mrb[46].mxu0 }
 0x146   : > { %v7465_v36 = vpop.f32.mrb[45].mxu1  ;;  %v7458_v39 = vpop.f32.mrb[47].mxu0 }
 0x147   : > { %v2045_v38 = vpop.f32.mrb[46].mxu1 }
 0x148   : > { %v7466_v40 = vpop.f32.mrb[47].mxu1 }
 0x1eb   : > { %v2113_v41 = vpop.f32.mrb[48].mxu0  ;;  %v2159_v42 = vpop.f32.mrb[48].mxu1 }
 0x1ec   : > { %v7471_v43 = vpop.f32.mrb[49].mxu0  ;;  %v7477_v44 = vpop.f32.mrb[49].mxu1  ;;  %v2442_v45 = vsel %vm2441_vm5, %v2113_v41, -inf  ;;  %v2445_v50 = vsel %vm2441_vm5, %v2159_v42, -inf }
 0x1ed   : > { %v2162_v46 = vpop.f32.mrb[50].mxu1  ;;  %2443 = vmax.xlane.f32.xlu0 %v2442_v45  ;;  %v2116_v47 = vpop.f32.mrb[50].mxu0 }
 0x1ee   : > { %v7472_v48 = vpop.f32.mrb[51].mxu0  ;;  %v7478_v49 = vpop.f32.mrb[51].mxu1 }
 0x1f1   : > { %2446 = vmax.xlane.f32.xlu0 %v2445_v50 }
 0x1f3   : > { %v2205_v51 = vpop.f32.mrb[52].mxu0  ;;  %v2251_v52 = vpop.f32.mrb[52].mxu1 }
 0x1f4   : > { %v7483_v53 = vpop.f32.mrb[53].mxu0  ;;  %v7489_v54 = vpop.f32.mrb[53].mxu1  ;;  %v2448_v55 = vsel %vm2441_vm5, %v2205_v51, -inf  ;;  %v2451_v58 = vsel %vm2441_vm5, %v2251_v52, -inf }
 0x1f5   : > { %v2254_v56 = vpop.f32.mrb[54].mxu1  ;;  %2449 = vmax.xlane.f32.xlu1 %v2448_v55  ;;  %v2208_v57 = vpop.f32.mrb[54].mxu0 }
 0x1f6   : > { %v7484_v16 = vpop.f32.mrb[55].mxu0  ;;  %v7490_v17 = vpop.f32.mrb[55].mxu1 }
 0x1f9   : > { %2452 = vmax.xlane.f32.xlu1 %v2451_v58 }
 0x1fb   : > { %v2297_v59 = vpop.f32.mrb[56].mxu0  ;;  %v2343_v60 = vpop.f32.mrb[56].mxu1 }
 0x1fc   : > { %v7495_v61 = vpop.f32.mrb[57].mxu0  ;;  %v7501_v0 = vpop.f32.mrb[57].mxu1  ;;  %v2457_v2 = vsel %vm2441_vm5, %v2343_v60, -inf  ;;  %v2454_v3 = vsel %vm2441_vm5, %v2297_v59, -inf }
 0x1fd   : > { %v2346_v5 = vpop.f32.mrb[58].mxu1  ;;  %2458 = vmax.xlane.f32.xlu1 %v2457_v2  ;;  %2455 = vmax.xlane.f32.xlu0 %v2454_v3  ;;  %v2300_v6 = vpop.f32.mrb[58].mxu0 }
 0x1fe   : > { %v7496_v62 = vpop.f32.mrb[59].mxu0  ;;  %v7502_v63 = vpop.f32.mrb[59].mxu1  ;;  %v6672_v5 = vld [vmem:[%s9594_s7 + $0x2] ss:$0 sm:$0xff] }
 0x1ff   : > { %v1783_v62 = vadd.f32 %v6672_v5, %v8700_v19  ;;  %v6673_v63 = vld [vmem:[%s9594_s7 + $0x3] ss:$0 sm:$0xff] }
 0x203   : > { %v2389_v10 = vpop.f32.mrb[60].mxu0  ;;  %v2435_v11 = vpop.f32.mrb[60].mxu1 }
 0x204   : > { %v7507_v12 = vpop.f32.mrb[61].mxu0  ;;  %v7513_v13 = vpop.f32.mrb[61].mxu1  ;;  %v2463_v14 = vsel %vm2441_vm5, %v2435_v11, -inf  ;;  %v2460_v15 = vsel %vm2441_vm5, %v2389_v10, -inf }
 0x205   : > { %v2438_v18 = vpop.f32.mrb[62].mxu1  ;;  %2464 = vmax.xlane.f32.xlu1 %v2463_v14  ;;  %2461 = vmax.xlane.f32.xlu0 %v2460_v15  ;;  %v2392_v20 = vpop.f32.mrb[62].mxu0  ;;  %v2540_v12 = vpack.c.bf16 %v1783_v62, %v1783_v62  ;;  %v1835_v13 = vadd.f32 %v6673_v63, %v8703_v22  ;;  %v6674_v14 = vld [vmem:[%s9594_s7 + $0x4] ss:$0 sm:$0xff] }
 0x206   : > { %v7508_v21 = vpop.f32.mrb[63].mxu0  ;;  %v7514_v23 = vpop.f32.mrb[63].mxu1 }
 0x207   : > { %v2647_v21 = vand.u32 %v8696_v4, %v2540_v12  ;;  %v2541_v23 = vpack.c.bf16 %v1835_v13, %v1835_v13 }
 0x27a   : > { %v2444_v24 = vpop.xlane.xlu0 %2443 }
 0x27b   : > { %v2466_v25 = vsub.f32 %v2113_v41, %v2444_v24  ;;  %v1887_v24 = vadd.f32 %v6674_v14, %v8706_v27  ;;  %v2693_v27 = vand.u32 %v8696_v4, %v2541_v23 }
 0x27d   : > { %v2474_v26 = vmul.f32 1.442695, %v2466_v25  ;;  %v6675_v25 = vld [vmem:[%s9594_s7 + $0x5] ss:$0 sm:$0xff] }
 0x27e   : > { %v2447_v28 = vpop.xlane.xlu0 %2446 }
 0x27f   : > { %8094 = vpow2.f32 %v2474_v26  ;;  %v2467_v29 = vsub.f32 %v2159_v42, %v2447_v28 }
 0x281   : > { %v2476_v31 = vmul.f32 1.442695, %v2467_v29 }
 0x282   : > { %v2450_v32 = vpop.xlane.xlu1 %2449 }
 0x283   : > { %8096 = vpow2.f32 %v2476_v31  ;;  %v2468_v33 = vsub.f32 %v2205_v51, %v2450_v32  ;;  %v2542_v32 = vpack.c.bf16 %v1887_v24, %v1887_v24 }
 0x285   : > { %v2478_v34 = vmul.f32 1.442695, %v2468_v33  ;;  %v1939_v33 = vadd.f32 %v6675_v25, %v8708_v30 }
 0x286   : > { %v2453_v35 = vpop.xlane.xlu1 %2452 }
 0x287   : > { %8098 = vpow2.f32 %v2478_v34  ;;  %v2469_v36 = vsub.f32 %v2251_v52, %v2453_v35  ;;  %v6676_v35 = vld [vmem:[%s9594_s7 + $0x6] ss:$0 sm:$0xff] }
 0x288   : > { %v1991_v30 = vadd.f32 %v6676_v35, %v8710_v7  ;;  %v648_v35 = vld [vmem:[%s9595_s8 + $0xc] sm:$0x3] }
 0x289   : > { %v8095_v37 = vpop.eup %8094  ;;  %v2480_v38 = vmul.f32 1.442695, %v2469_v36 }
 0x28a   : > { %v2459_v39 = vpop.xlane.xlu1 %2458  ;;  %v2456_v40 = vpop.xlane.xlu0 %2455  ;;  %v2490_v43 = vsel %vm2441_vm5, %v8095_v37, 0.0 }
 0x28b   : > { %8100 = vpow2.f32 %v2480_v38  ;;  %v2471_v41 = vsub.f32 %v2343_v60, %v2459_v39  ;;  %v2470_v44 = vsub.f32 %v2297_v59, %v2456_v40  ;;  %2491 = vadd.xlane.f32.xlu0 %v2490_v43  ;;  %v2739_v38 = vand.u32 %v8696_v4, %v2542_v32  ;;  %v6677_v40 = vld [vmem:[%s9594_s7 + $0x7] ss:$0 sm:$0xff] }
 0x28c   : > { %v2543_v39 = vpack.c.bf16 %v1939_v33, %v1939_v33 }
 0x28d   : > { %v8097_v45 = vpop.eup %8096  ;;  %v2484_v42 = vmul.f32 1.442695, %v2471_v41  ;;  %v2482_v46 = vmul.f32 1.442695, %v2470_v44 }
 0x28e   : > { %v2493_v47 = vsel %vm2441_vm5, %v8097_v45, 0.0 }
 0x28f   : > { %8102 = vpow2.f32 %v2484_v42  ;;  %2494 = vadd.xlane.f32.xlu1 %v2493_v47  ;;  %v2785_v42 = vand.u32 %v8696_v4, %v2543_v39  ;;  %v3207_v39 = vsel %vm2550_vm3, %v648_v35, 0 }
 0x290   : > { %8104 = vpow2.f32 %v2482_v46  ;;  %v2043_v46 = vadd.f32 %v6677_v40, %v8712_v9 }
 0x291   : > { %v8724_v48 = vpop.eup %8098 }
 0x292   : > { %v2465_v49 = vpop.xlane.xlu1 %2464  ;;  %v2462_v50 = vpop.xlane.xlu0 %2461  ;;  %v2496_v51 = vsel %vm2441_vm5, %v8724_v48, 0.0 }
 0x293   : > { %v2473_v52 = vsub.f32 %v2435_v11, %v2465_v49  ;;  %v2472_v53 = vsub.f32 %v2389_v10, %v2462_v50  ;;  %2497 = vadd.xlane.f32.xlu0 %v2496_v51  ;;  %v2545_v51 = vpack.c.bf16 %v2043_v46, %v2043_v46 }
 0x295   : > { %v8728_v54 = vpop.eup %8100  ;;  %v2488_v55 = vmul.f32 1.442695, %v2473_v52  ;;  %v2486_v56 = vmul.f32 1.442695, %v2472_v53 }
 0x296   : > { %v2499_v57 = vsel %vm2441_vm5, %v8728_v54, 0.0 }
 0x297   : > { %8106 = vpow2.f32 %v2488_v55  ;;  %2500 = vadd.xlane.f32.xlu1 %v2499_v57  ;;  %v2877_v55 = vand.u32 %v8696_v4, %v2545_v51  ;;  %v642_v57 = vld [vmem:[%s9595_s8] sm:$0x3] }
 0x298   : > { %8108 = vpow2.f32 %v2486_v56 }
 0x299   : > { %v8732_v16 = vpop.eup %8102 }
 0x29a   : > { %v8734_v17 = vpop.eup %8104  ;;  %v2505_v58 = vsel %vm2441_vm5, %v8732_v16, 0.0 }
 0x29b   : > { %2506 = vadd.xlane.f32.xlu1 %v2505_v58  ;;  %v2502_v59 = vsel %vm2441_vm5, %v8734_v17, 0.0 }
 0x29c   : > { %2503 = vadd.xlane.f32.xlu0 %v2502_v59  ;;  %v2931_v59 = vsel %vm2550_vm3, %v642_v57, 0 }
 0x2a1   : > { %v8740_v60 = vpop.eup %8106 }
 0x2a2   : > { %v8742_v61 = vpop.eup %8108  ;;  %v2511_v0 = vsel %vm2441_vm5, %v8740_v60, 0.0 }
 0x2a3   : > { %2512 = vadd.xlane.f32.xlu1 %v2511_v0  ;;  %v2508_v2 = vsel %vm2441_vm5, %v8742_v61, 0.0 }
 0x2a4   : > { %2509 = vadd.xlane.f32.xlu0 %v2508_v2  ;;  %v644_v2 = vld [vmem:[%s9595_s8 + $0x4] sm:$0x3] }
 0x2a5   : > { %v3023_v62 = vsel %vm2550_vm3, %v644_v2, 0 }
 0x318   : > { %v2492_v3 = vpop.xlane.xlu0 %2491 }
 0x319   : > { %8110 = vrcp.f32 %v2492_v3 }
 0x31c   : > { %v2495_v6 = vpop.xlane.xlu1 %2494 }
 0x31d   : > { %8112 = vrcp.f32 %v2495_v6 }
 0x320   : > { %v2498_v10 = vpop.xlane.xlu0 %2497 }
 0x321   : > { %8114 = vrcp.f32 %v2498_v10  ;;  %v645_v10 = vld [vmem:[%s9595_s8 + $0x6] sm:$0x3] }
 0x323   : > { %v8111_v11 = vpop.eup %8110 }
 0x324   : > { %v2522_v15 = vmul.f32 %v8111_v11, %v8095_v37  ;;  %v2501_v18 = vpop.xlane.xlu1 %2500 }
 0x325   : > { %8116 = vrcp.f32 %v2501_v18 }
 0x326   : > { %v2530_v20 = vpack.c.bf16 %v2522_v15, %v2522_v15  ;;  %v3069_v15 = vsel %vm2550_vm3, %v645_v10, 0 }
 0x327   : > { %v8113_v19 = vpop.eup %8112 }
 0x328   : > { %v2523_v22 = vmul.f32 %v8113_v19, %v8097_v45  ;;  %v2507_v26 = vpop.xlane.xlu1 %2506  ;;  %7518 = vmatmul.mubr.msk.bf16.vlgmr.msra.gmra.mrb[64].mxu0 %vm2546_vm6, %v2530_v20  ;;  %v646_v20 = vld [vmem:[%s9595_s8 + $0x8] sm:$0x3] }
 0x329   : > { %8118 = vrcp.f32 %v2507_v26  ;;  %7528 = vmatpush3.bf16.msra.mxu0 %v2647_v21  ;;  %v2504_v28 = vpop.xlane.xlu0 %2503  ;;  %7529 = vmatprep.mubr.msk.bf16.mxu0 %vm8177_vm0, %v8176_v1  ;;  %v3115_v25 = vsel %vm2550_vm3, %v646_v20, 0  ;;  %v647_v26 = vld [vmem:[%s9595_s8 + $0xa] sm:$0x3] }
 0x32a   : > { %8120 = vrcp.f32 %v2504_v28  ;;  %v2531_v29 = vpack.c.bf16 %v2523_v22, %v2523_v22  ;;  %7539 = vmatprep.subr.bf16.mxu0 %v8176_v1  ;;  %v3161_v32 = vsel %vm2550_vm3, %v647_v26, 0 }
 0x32b   : > { %v8115_v31 = vpop.eup %8114 }
 0x32c   : > { %v2524_v34 = vmul.f32 %v8115_v31, %v8724_v48  ;;  %7524 = vmatmul.mubr.msk.bf16.vlgmr.msra.gmra.mrb[64].mxu1 %vm2546_vm6, %v2531_v29  ;;  %v2544_v48 = vpack.c.bf16 %v1991_v30, %v1991_v30  ;;  %v649_v30 = vld [vmem:[%s9595_s8 + $0xe] sm:$0x3] }
 0x32d   : > { %7534 = vmatpush3.bf16.msra.mxu1 %v2693_v27  ;;  %7535 = vmatprep.mubr.msk.bf16.mxu1 %vm8177_vm0, %v8176_v1 }
 0x32e   : > { %v2532_v36 = vpack.c.bf16 %v2524_v34, %v2524_v34  ;;  %7545 = vmatprep.subr.bf16.mxu1 %v8176_v1  ;;  %v2831_v53 = vand.u32 %v8696_v4, %v2544_v48 }
 0x32f   : > { %v8117_v37 = vpop.eup %8116 }
 0x330   : > { %v2525_v43 = vmul.f32 %v8117_v37, %v8728_v54  ;;  %v2513_v41 = vpop.xlane.xlu1 %2512  ;;  %7530 = vmatmul.mubr.msk.bf16.vlgmr.msra.gmra.mrb[68].mxu0 %vm2546_vm6, %v2532_v36 }
 0x331   : > { %8122 = vrcp.f32 %v2513_v41  ;;  %7540 = vmatpush3.bf16.msra.mxu0 %v2739_v38  ;;  %v2510_v44 = vpop.xlane.xlu0 %2509  ;;  %7541 = vmatprep.mubr.msk.bf16.mxu0 %vm8177_vm0, %v8176_v1 }
 0x332   : > { %8124 = vrcp.f32 %v2510_v44  ;;  %v2533_v45 = vpack.c.bf16 %v2525_v43, %v2525_v43  ;;  %7551 = vmatprep.subr.bf16.mxu0 %v8176_v1 }
 0x333   : > { %v8119_v7 = vpop.eup %8118 }
 0x334   : > { %v8121_v47 = vpop.eup %8120  ;;  %7536 = vmatmul.mubr.msk.bf16.vlgmr.msra.gmra.mrb[68].mxu1 %vm2546_vm6, %v2533_v45  ;;  %v2527_v50 = vmul.f32 %v8119_v7, %v8732_v16  ;;  %v3253_v7 = vsel %vm2550_vm3, %v649_v30, 0  ;;  %v6726_v30 = vld [vmem:[%s9596_s9] ss:$0 sm:$0xff] }
 0x335   : > { %v2526_v49 = vmul.f32 %v8121_v47, %v8734_v17  ;;  %7546 = vmatpush3.bf16.msra.mxu1 %v2785_v42  ;;  %7547 = vmatprep.mubr.msk.bf16.mxu1 %vm8177_vm0, %v8176_v1 }
 0x336   : > { %7557 = vmatprep.subr.bf16.mxu1 %v8176_v1  ;;  %v2535_v9 = vpack.c.bf16 %v2527_v50, %v2527_v50 }
 0x337   : > { %v2534_v52 = vpack.c.bf16 %v2526_v49, %v2526_v49 }
 0x339   : > { %7542 = vmatmul.mubr.msk.bf16.vlgmr.msra.gmra.mrb[72].mxu0 %vm2546_vm6, %v2534_v52 }
 0x33a   : > { %7552 = vmatpush3.bf16.msra.mxu0 %v2831_v53  ;;  %7553 = vmatprep.mubr.msk.bf16.mxu0 %vm8177_vm0, %v8176_v1 }
 0x33b   : > { %v8123_v54 = vpop.eup %8122  ;;  %7563 = vmatprep.subr.bf16.mxu0 %v8176_v1 }
 0x33c   : > { %v8125_v56 = vpop.eup %8124  ;;  %7548 = vmatmul.mubr.msk.bf16.vlgmr.msra.gmra.mrb[72].mxu1 %vm2546_vm6, %v2535_v9  ;;  %v2529_v17 = vmul.f32 %v8123_v54, %v8740_v60  ;;  %v643_v60 = vld [vmem:[%s9595_s8 + $0x2] sm:$0x3] }
 0x33d   : > { %v2528_v16 = vmul.f32 %v8125_v56, %v8742_v61  ;;  %7558 = vmatpush3.bf16.msra.mxu1 %v2877_v55  ;;  %7559 = vmatprep.mubr.msk.bf16.mxu1 %vm8177_vm0, %v8176_v1  ;;  %v2977_v61 = vsel %vm2550_vm3, %v643_v60, 0 }
 0x33e   : > { %7569 = vmatprep.subr.bf16.mxu1 %v8176_v1  ;;  %v2537_v0 = vpack.c.bf16 %v2529_v17, %v2529_v17 }
 0x33f   : > { %v2536_v58 = vpack.c.bf16 %v2528_v16, %v2528_v16 }
 0x341   : > { %7554 = vmatmul.mubr.msk.bf16.vlgmr.msra.gmra.mrb[76].mxu0 %vm2546_vm6, %v2536_v58 }
 0x342   : > { %7564 = vmatpush3.bf16.msra.mxu0 %v2931_v59  ;;  %7565 = vmatprep.mubr.msk.bf16.mxu0 %vm8177_vm0, %v8176_v1 }
 0x343   : > { %7575 = vmatprep.subr.bf16.mxu0 %v8176_v1 }
 0x344   : > { %7560 = vmatmul.mubr.msk.bf16.vlgmr.msra.gmra.mrb[76].mxu1 %vm2546_vm6, %v2537_v0 }
 0x345   : > { %7571 = vmatprep.mubr.msk.bf16.mxu1 %vm8177_vm0, %v8176_v1  ;;  %7570 = vmatpush3.bf16.msra.mxu1 %v2977_v61 }
 0x346   : > { %7581 = vmatprep.subr.bf16.mxu1 %v8176_v1 }
 0x3fb   : > { %v2591_v3 = vpop.f32.mrb[64].mxu0 }
 0x3fc   : > { %v2919_v5 = vpack.c.bf16 %v2591_v3, %v2591_v3  ;;  %v7519_v6 = vpop.f32.mrb[65].mxu0 }
 0x3fd   : > { %v2594_v63 = vpop.f32.mrb[66].mxu0 }
 0x3fe   : > { %v7520_v11 = vpop.f32.mrb[67].mxu0  ;;  %7566 = vmatmul.mubr.msk.bf16.vlgmr.msra.gmra.mrb[80].mxu0 %vm2072_vm2, %v2919_v5 }
 0x3ff   : > { %v2637_v12 = vpop.f32.mrb[64].mxu1  ;;  %7576 = vmatpush3.bf16.msra.mxu0 %v3023_v62  ;;  %7577 = vmatprep.mubr.msk.bf16.mxu0 %vm8177_vm0, %v8176_v1 }
 0x400   : > { %v2920_v13 = vpack.c.bf16 %v2637_v12, %v2637_v12  ;;  %v7525_v14 = vpop.f32.mrb[65].mxu1  ;;  %7587 = vmatprep.subr.bf16.mxu0 %v8176_v1 }
 0x401   : > { %v2640_v18 = vpop.f32.mrb[66].mxu1 }
 0x402   : > { %v7526_v19 = vpop.f32.mrb[67].mxu1  ;;  %7572 = vmatmul.mubr.msk.bf16.vlgmr.msra.gmra.mrb[80].mxu1 %vm2072_vm2, %v2920_v13 }
 0x403   : > { %v2683_v21 = vpop.f32.mrb[68].mxu0  ;;  %7582 = vmatpush3.bf16.msra.mxu1 %v3069_v15  ;;  %7583 = vmatprep.mubr.msk.bf16.mxu1 %vm8177_vm0, %v8176_v1 }
 0x404   : > { %v2921_v23 = vpack.c.bf16 %v2683_v21, %v2683_v21  ;;  %v7531_v24 = vpop.f32.mrb[69].mxu0  ;;  %7593 = vmatprep.subr.bf16.mxu1 %v8176_v1 }
 0x405   : > { %v2686_v22 = vpop.f32.mrb[70].mxu0 }
 0x406   : > { %v7532_v28 = vpop.f32.mrb[71].mxu0  ;;  %7578 = vmatmul.mubr.msk.bf16.vlgmr.msra.gmra.mrb[84].mxu0 %vm2072_vm2, %v2921_v23 }
 0x407   : > { %v2729_v29 = vpop.f32.mrb[68].mxu1  ;;  %7588 = vmatpush3.bf16.msra.mxu0 %v3115_v25  ;;  %7589 = vmatprep.mubr.msk.bf16.mxu0 %vm8177_vm0, %v8176_v1 }
 0x408   : > { %v2922_v31 = vpack.c.bf16 %v2729_v29, %v2729_v29  ;;  %v7537_v27 = vpop.f32.mrb[69].mxu1  ;;  %7599 = vmatprep.subr.bf16.mxu0 %v8176_v1 }
 0x409   : > { %v2732_v33 = vpop.f32.mrb[70].mxu1 }
 0x40a   : > { %v7538_v34 = vpop.f32.mrb[71].mxu1  ;;  %7584 = vmatmul.mubr.msk.bf16.vlgmr.msra.gmra.mrb[84].mxu1 %vm2072_vm2, %v2922_v31 }
 0x40b   : > { %7594 = vmatpush3.bf16.msra.mxu1 %v3161_v32  ;;  %7595 = vmatprep.mubr.msk.bf16.mxu1 %vm8177_vm0, %v8176_v1 }
 0x40c   : > { %v2775_v36 = vpop.f32.mrb[72].mxu0  ;;  %7605 = vmatprep.subr.bf16.mxu1 %v8176_v1 }
 0x40d   : > { %v2923_v37 = vpack.c.bf16 %v2775_v36, %v2775_v36  ;;  %v7543_v38 = vpop.f32.mrb[73].mxu0 }
 0x40e   : > { %v2778_v40 = vpop.f32.mrb[74].mxu0 }
 0x40f   : > { %v7544_v43 = vpop.f32.mrb[75].mxu0  ;;  %7590 = vmatmul.mubr.msk.bf16.vlgmr.msra.gmra.mrb[88].mxu0 %vm2072_vm2, %v2923_v37  ;;  %v2821_v41 = vpop.f32.mrb[72].mxu1 }
 0x410   : > { %v2924_v44 = vpack.c.bf16 %v2821_v41, %v2821_v41  ;;  %v7549_v45 = vpop.f32.mrb[73].mxu1  ;;  %7600 = vmatpush3.bf16.msra.mxu0 %v3207_v39  ;;  %7601 = vmatprep.mubr.msk.bf16.mxu0 %vm8177_vm0, %v8176_v1 }
 0x411   : > { %v2824_v42 = vpop.f32.mrb[74].mxu1  ;;  %7611 = vmatprep.subr.bf16.mxu0 %v8176_v1 }
 0x412   : > { %v7550_v46 = vpop.f32.mrb[75].mxu1  ;;  %7596 = vmatmul.mubr.msk.bf16.vlgmr.msra.gmra.mrb[88].mxu1 %vm2072_vm2, %v2924_v44 }
 0x413   : > { %7606 = vmatpush3.bf16.msra.mxu1 %v3253_v7  ;;  %7607 = vmatprep.mubr.msk.bf16.mxu1 %vm8177_vm0, %v8176_v1 }
 0x414   : > { %v2867_v47 = vpop.f32.mrb[76].mxu0  ;;  %7619 = vmatprep.subr.bf16.mxu1 %v8176_v1 }
 0x415   : > { %v2925_v48 = vpack.c.bf16 %v2867_v47, %v2867_v47  ;;  %v7555_v49 = vpop.f32.mrb[77].mxu0 }
 0x416   : > { %v2870_v50 = vpop.f32.mrb[78].mxu0 }
 0x417   : > { %v7556_v51 = vpop.f32.mrb[79].mxu0  ;;  %7602 = vmatmul.mubr.msk.bf16.vlgmr.msra.gmra.mrb[92].mxu0 %vm2072_vm2, %v2925_v48  ;;  %v2913_v52 = vpop.f32.mrb[76].mxu1 }
 0x418   : > { %v2926_v53 = vpack.c.bf16 %v2913_v52, %v2913_v52  ;;  %v7561_v9 = vpop.f32.mrb[77].mxu1  ;;  %7615 = vmatprep.mubr.msk.bf16.mxu0 %vm8177_vm0, %v8176_v1  ;;  %v8038_v52 = vld [vmem:[%s9597_s10] sm:$0xff]  }
 0x419   : > { %v2916_v54 = vpop.f32.mrb[78].mxu1  ;;  %7612 = vmatpush3.bf16.msra.mxu0 %v8038_v52  ;;  %v8059_v52 = vld [vmem:[%s9590_s3 + $0x90] sm:$0xff]  }
 0x41a   : > { %v7562_v55 = vpop.f32.mrb[79].mxu1  ;;  %7608 = vmatmul.mubr.msk.bf16.vlgmr.msra.gmra.mrb[92].mxu1 %vm2072_vm2, %v2926_v53  ;;  %v8039_v53 = vld [vmem:[%s9597_s10 + $0x8] sm:$0xff]   ;;  %7613 = vmatprep.subr.bf16.mxu0 %v8176_v1 }
 0x41b   : > { %7623 = vmatprep.mubr.msk.bf16.mxu1 %vm8177_vm0, %v8176_v1 }
 0x41d   : > { %7614 = vmatpush3.bf16.msra.mxu0 %v8039_v53  ;;  %v8060_v53 = vld [vmem:[%s9590_s3 + $0x88] sm:$0xff]  }
 0x41e   : > { %7627 = vmatprep.subr.bf16.mxu0 %v8176_v1 }
 0x4d1   : > { %v2967_v56 = vpop.f32.mrb[80].mxu0 }
 0x4d2   : > { %v7567_v57 = vpop.f32.mrb[81].mxu0  ;;  %v3296_v59 = vsel %vm3295_vm7, %v2967_v56, 0.0  ;;  %v6727_v56 = vld [vmem:[%s9601_s14] ss:$0 sm:$0xff] }
 0x4d3   : > { %v2970_v16 = vpop.f32.mrb[82].mxu0 }
 0x4d4   : > { %v7568_v17 = vpop.f32.mrb[83].mxu0  ;;  %v6728_v16 = vld [vmem:[%s9602_s15] ss:$0 sm:$0xff] }
 0x4d5   : > { %v3013_v58 = vpop.f32.mrb[80].mxu1 }
 0x4d6   : > { %v3297_v0 = vsel %vm3295_vm7, %v3013_v58, 0.0  ;;  %v7573_v60 = vpop.f32.mrb[81].mxu1 }
 0x4d7   : > { %v3298_v61 = vadd.f32 %v3297_v0, %v3296_v59  ;;  %v3016_v2 = vpop.f32.mrb[82].mxu1  ;;  %v8040_v0 = vld [vmem:[%s9599_s12] sm:$0xff]   ;;  %v8041_v60 = vld [vmem:[%s9599_s12 + $0x8] sm:$0xff]  }
 0x4d8   : > { %v7574_v3 = vpop.f32.mrb[83].mxu1  ;;  %7620 = vmatpush3.bf16.msra.mxu1 %v8040_v0  ;;  %v8071_v0 = vld [vmem:[%s9590_s3 + $0xf0] sm:$0xff]  }
 0x4d9   : > { %v3059_v5 = vpop.f32.mrb[84].mxu0  ;;  %7621 = vmatprep.subr.bf16.mxu1 %v8176_v1 }
 0x4da   : > { %v3299_v6 = vsel %vm3295_vm7, %v3059_v5, 0.0  ;;  %v7579_v62 = vpop.f32.mrb[85].mxu0 }
 0x4db   : > { %v3300_v63 = vadd.f32 %v3299_v6, %v3298_v61  ;;  %v3062_v10 = vpop.f32.mrb[86].mxu0  ;;  %v6729_v61 = vld [vmem:[%s9598_s11] ss:$0 sm:$0xff] }
 0x4dc   : > { %v7580_v11 = vpop.f32.mrb[87].mxu0  ;;  %7622 = vmatpush3.bf16.msra.mxu1 %v8041_v60  ;;  %v8072_v60 = vld [vmem:[%s9590_s3 + $0xe8] sm:$0xff]  }
 0x4dd   : > { %v3105_v12 = vpop.f32.mrb[84].mxu1  ;;  %7635 = vmatprep.subr.bf16.mxu1 %v8176_v1  ;;  %v6733_v11 = vld [vmem:[%s9600_s13] ss:$0 sm:$0xff] }
 0x4de   : > { %v3301_v13 = vsel %vm3295_vm7, %v3105_v12, 0.0  ;;  %v7585_v14 = vpop.f32.mrb[85].mxu1 }
 0x4df   : > { %v3302_v15 = vadd.f32 %v3301_v13, %v3300_v63  ;;  %v3108_v18 = vpop.f32.mrb[86].mxu1 }
 0x4e0   : > { %v7586_v20 = vpop.f32.mrb[87].mxu1 }
 0x4e2   : > { %v3151_v19 = vpop.f32.mrb[88].mxu0 }
 0x4e3   : > { %v3303_v21 = vsel %vm3295_vm7, %v3151_v19, 0.0  ;;  %v7591_v23 = vpop.f32.mrb[89].mxu0 }
 0x4e4   : > { %v3304_v24 = vadd.f32 %v3303_v21, %v3302_v15  ;;  %v3154_v25 = vpop.f32.mrb[90].mxu0 }
 0x4e5   : > { %v7592_v22 = vpop.f32.mrb[91].mxu0  ;;  %v3197_v26 = vpop.f32.mrb[88].mxu1 }
 0x4e6   : > { %v3305_v28 = vsel %vm3295_vm7, %v3197_v26, 0.0  ;;  %v7597_v29 = vpop.f32.mrb[89].mxu1  ;;  %v8042_v26 = vld [vmem:[%s9589_s2 + $0x80] sm:$0xff]  }
 0x4e7   : > { %v3306_v31 = vadd.f32 %v3305_v28, %v3304_v24  ;;  %v3200_v27 = vpop.f32.mrb[90].mxu1  ;;  %v8043_v28 = vld [vmem:[%s9589_s2 + $0x90] sm:$0xff]   ;;  %v8044_v29 = vld [vmem:[%s9589_s2 + $0x88] sm:$0xff]  }
 0x4e8   : > { %v7598_v32 = vpop.f32.mrb[91].mxu1 }
 0x4ea   : > { %v3243_v33 = vpop.f32.mrb[92].mxu0 }
 0x4eb   : > { %v3307_v34 = vsel %vm3295_vm7, %v3243_v33, 0.0  ;;  %v7603_v35 = vpop.f32.mrb[93].mxu0 }
 0x4ec   : > { %v3308_v36 = vadd.f32 %v3307_v34, %v3306_v31  ;;  %v3246_v37 = vpop.f32.mrb[94].mxu0  ;;  %v8045_v31 = vld [vmem:[%s9589_s2 + $0x98] sm:$0xff]   ;;  %v6739_v35 = vld [vmem:[%s9601_s14 + $0x1] ss:$0 sm:$0xff] }
 0x4ed   : > { %v7604_v38 = vpop.f32.mrb[95].mxu0  ;;  %v3289_v39 = vpop.f32.mrb[92].mxu1  ;;  %v6740_v37 = vld [vmem:[%s9602_s15 + $0x1] ss:$0 sm:$0xff] }
 0x4ee   : > { %v3309_v40 = vsel %vm3295_vm7, %v3289_v39, 0.0  ;;  %v7609_v43 = vpop.f32.mrb[93].mxu1 }
 0x4ef   : > { %v3310_v41 = vadd.f32 %v3309_v40, %v3308_v36  ;;  %v3292_v44 = vpop.f32.mrb[94].mxu1  ;;  %v8047_v40 = vld [vmem:[%s9589_s2 + $0xb0] sm:$0xff]  }
 0x4f0   : > { %v7610_v45 = vpop.f32.mrb[95].mxu1  ;;  %v8049_v44 = vld [vmem:[%s9589_s2 + $0xb8] sm:$0xff]  }
 0x4f1   : > { %v3317_v7 = vadd.f32 %v6726_v30, %v3310_v41  ;;  %v8046_v30 = vld [vmem:[%s9589_s2 + $0xa0] sm:$0xff]   ;;  %v8048_v41 = vld [vmem:[%s9589_s2 + $0xa8] sm:$0xff]  }
 0x4f2   : > { %v8050_v45 = vld [vmem:[%s9589_s2 + $0xc0] sm:$0xff]  }
 0x4f3   : > { %v3318_v42 = vadd.f32 %v3317_v7, %v8305_v8  ;;  %v8051_v7 = vld [vmem:[%s9589_s2 + $0xd0] sm:$0xff]  }
 0x4f5   : > { %v3321_v46 = vsel %vm3295_vm7, %v3318_v42, 0.0 }
 0x4f6   : > { %3322 = vadd.xlane.f32.xlu0 %v3321_v46  ;;  %v8053_v46 = vld [vmem:[%s9589_s2 + $0xd8] sm:$0xff]  }
 0x583   : > { %v3323_v47 = vpop.xlane.xlu0 %3322 }
 0x584   : > { %v3325_v48 = vmul.f32 0.03125, %v3323_v47  ;;  %v8054_v47 = vld [vmem:[%s9589_s2 + $0xe0] sm:$0xff]  }
 0x586   : > { %v3326_v49 = vsub.f32 %v3318_v42, %v3325_v48  ;;  %v8052_v42 = vld [vmem:[%s9589_s2 + $0xc8] sm:$0xff]   ;;  %v8055_v48 = vld [vmem:[%s9589_s2 + $0xf0] sm:$0xff]  }
 0x588   : > { %v3327_v50 = vmul.f32 %v3326_v49, %v3326_v49 }
 0x58a   : > { %v3328_v51 = vsel %vm3295_vm7, %v3327_v50, 0.0  ;;  %v8057_v50 = vld [vmem:[%s9589_s2 + $0xf8] sm:$0xff]  }
 0x58b   : > { %3329 = vadd.xlane.f32.xlu1 %v3328_v51  ;;  %v8058_v51 = vld [vmem:[%s9590_s3 + $0x80] sm:$0xff]  }
 0x618   : > { %v3330_v8 = vpop.xlane.xlu1 %3329 }
 0x619   : > { %v3331_v9 = vmul.f32 0.03125, %v3330_v8  ;;  %v8061_v8 = vld [vmem:[%s9590_s3 + $0x98] sm:$0xff]  }
 0x61b   : > { %v3332_v54 = vadd.f32 1e-05, %v3331_v9  ;;  %v8062_v9 = vld [vmem:[%s9590_s3 + $0xa0] sm:$0xff]  }
 0x61d   : > { %8126 = vrsqrt.f32 %v3332_v54  ;;  %v8063_v54 = vld [vmem:[%s9590_s3 + $0xb0] sm:$0xff]  }
 0x627   : > { %v8127_v55 = vpop.eup %8126 }
 0x628   : > { %v3334_v57 = vmul.f32 %v8127_v55, %v3326_v49  ;;  %v8056_v49 = vld [vmem:[%s9589_s2 + $0xe8] sm:$0xff]  }
 0x629   : > { %v8064_v55 = vld [vmem:[%s9590_s3 + $0xa8] sm:$0xff]  }
 0x62a   : > { %v3341_v17 = vmul.f32 %v6727_v56, %v3334_v57  ;;  %v8065_v56 = vld [vmem:[%s9590_s3 + $0xb8] sm:$0xff]   ;;  %v8066_v57 = vld [vmem:[%s9590_s3 + $0xc0] sm:$0xff]  }
 0x62c   : > { %v3348_v58 = vadd.f32 %v6728_v16, %v3341_v17  ;;  %v8067_v16 = vld [vmem:[%s9590_s3 + $0xd0] sm:$0xff]   ;;  %v8068_v17 = vld [vmem:[%s9590_s3 + $0xc8] sm:$0xff]  }
 0x62e   : > { %v3359_v59 = vpack.c.bf16 %v3348_v58, %v3348_v58 }
 0x630   : > { %7616 = vmatmul.mubr.msk.bf16.vlgmr.msra.gmra.mrb[96].mxu0 %vm712_vm1, %v3359_v59  ;;  %v8070_v59 = vld [vmem:[%s9590_s3 + $0xe0] sm:$0xff]  }
 0x631   : > { %7631 = vmatprep.mubr.msk.bf16.mxu0 %vm8177_vm0, %v8176_v1  ;;  %7628 = vmatpush3.bf16.msra.mxu0 %v8042_v26 }
 0x632   : > { %7629 = vmatprep.subr.bf16.mxu0 %v8176_v1 }
 0x635   : > { %7630 = vmatpush3.bf16.msra.mxu0 %v8044_v29 }
 0x636   : > { %7643 = vmatprep.subr.bf16.mxu0 %v8176_v1 }
 0x703   : > { %v3415_v2 = vpop.f32.mrb[96].mxu0 }
 0x704   : > { %v3416_v3 = vadd.f32 %v6729_v61, %v3415_v2  ;;  %v7617_v5 = vpop.f32.mrb[97].mxu0  ;;  %v8073_v61 = vld [vmem:[%s9590_s3 + $0xf8] sm:$0xff]   ;;  %v8074_v2 = vld [vmem:[%s9591_s4 + $0x80] sm:$0xff]  }
 0x705   : > { %v3418_v6 = vpop.f32.mrb[98].mxu0  ;;  %v8076_v5 = vld [vmem:[%s9591_s4 + $0x88] sm:$0xff]  }
 0x706   : > { %v3421_v62 = vmax.f32 %v3416_v3, 0.0  ;;  %v7618_v63 = vpop.f32.mrb[99].mxu0  ;;  %v8075_v3 = vld [vmem:[%s9591_s4 + $0x90] sm:$0xff]   ;;  %v8077_v6 = vld [vmem:[%s9591_s4 + $0x98] sm:$0xff]  }
 0x707   : > { %v8079_v63 = vld [vmem:[%s9591_s4 + $0xb0] sm:$0xff]  }
 0x708   : > { %v3422_v10 = vpack.c.bf16 %v3421_v62, %v3421_v62  ;;  %v8078_v62 = vld [vmem:[%s9591_s4 + $0xa0] sm:$0xff]  }
 0x70a   : > { %7624 = vmatmul.mubr.msk.bf16.vlgmr.msra.gmra.mrb[96].mxu1 %vm712_vm1, %v3422_v10  ;;  %v8080_v10 = vld [vmem:[%s9591_s4 + $0xa8] sm:$0xff]  }
 0x70b   : > { %7639 = vmatprep.mubr.msk.bf16.mxu1 %vm8177_vm0, %v8176_v1  ;;  %7636 = vmatpush3.bf16.msra.mxu1 %v8043_v28 }
 0x70c   : > { %7637 = vmatprep.subr.bf16.mxu1 %v8176_v1 }
 0x70f   : > { %7638 = vmatpush3.bf16.msra.mxu1 %v8045_v31 }
 0x710   : > { %7651 = vmatprep.subr.bf16.mxu1 %v8176_v1 }
 0x7dd   : > { %v3478_v12 = vpop.f32.mrb[96].mxu1 }
 0x7de   : > { %v3479_v13 = vadd.f32 %v6733_v11, %v3478_v12  ;;  %v7625_v14 = vpop.f32.mrb[97].mxu1  ;;  %v8081_v11 = vld [vmem:[%s9591_s4 + $0xb8] sm:$0xff]   ;;  %v8082_v12 = vld [vmem:[%s9591_s4 + $0xc0] sm:$0xff]  }
 0x7df   : > { %v3481_v15 = vpop.f32.mrb[98].mxu1  ;;  %v8084_v14 = vld [vmem:[%s9591_s4 + $0xc8] sm:$0xff]  }
 0x7e0   : > { %v7626_v18 = vpop.f32.mrb[99].mxu1  ;;  %v3484_v20 = vadd.f32 %v3479_v13, %v3348_v58  ;;  %v8069_v58 = vld [vmem:[%s9590_s3 + $0xd8] sm:$0xff]   ;;  %v8083_v13 = vld [vmem:[%s9591_s4 + $0xd0] sm:$0xff]  }
 0x7e1   : > { %v8085_v15 = vld [vmem:[%s9591_s4 + $0xd8] sm:$0xff]   ;;  %v8086_v18 = vld [vmem:[%s9591_s4 + $0xe0] sm:$0xff]  }
 0x7e2   : > { %v3489_v19 = vsel %vm3295_vm7, %v3484_v20, 0.0 }
 0x7e3   : > { %3490 = vadd.xlane.f32.xlu0 %v3489_v19  ;;  %v8088_v19 = vld [vmem:[%s9591_s4 + $0xe8] sm:$0xff]  }
 0x870   : > { %v3491_v21 = vpop.xlane.xlu0 %3490 }
 0x871   : > { %v3492_v23 = vmul.f32 0.03125, %v3491_v21  ;;  %v8089_v21 = vld [vmem:[%s9591_s4 + $0xf8] sm:$0xff]  }
 0x873   : > { %v3493_v24 = vsub.f32 %v3484_v20, %v3492_v23  ;;  %v8087_v20 = vld [vmem:[%s9591_s4 + $0xf0] sm:$0xff]  }
 0x875   : > { %v3494_v25 = vmul.f32 %v3493_v24, %v3493_v24 }
 0x877   : > { %v3495_v22 = vsel %vm3295_vm7, %v3494_v25, 0.0 }
 0x878   : > { %3496 = vadd.xlane.f32.xlu1 %v3495_v22 }
 0x905   : > { %v3497_v27 = vpop.xlane.xlu1 %3496 }
 0x906   : > { %v3498_v32 = vmul.f32 0.03125, %v3497_v27 }
 0x908   : > { %v3499_v33 = vadd.f32 1e-05, %v3498_v32 }
 0x90a   : > { %8128 = vrsqrt.f32 %v3499_v33 }
 0x914   : > { %v8129_v34 = vpop.eup %8128 }
 0x915   : > { %v3501_v36 = vmul.f32 %v8129_v34, %v3493_v24 }
 0x917   : > { %v3508_v38 = vmul.f32 %v6739_v35, %v3501_v36 }
 0x919   : > { %v8950_v39 = vadd.f32 %v6740_v37, %v3508_v38 }
 0x91b   : > { %v8960_v43 = vpack.c.bf16 %v8950_v39, %v8950_v39 }
 0x91d   : > { %7632 = vmatmul.mubr.msk.bf16.vlgmr.msra.gmra.mrb[100].mxu0 %vm712_vm1, %v8960_v43  ;;  %7640 = vmatmul.mubr.msk.bf16.vlgmr.msra.gmra.mrb[100].mxu1 %vm712_vm1, %v8960_v43 }
 0x91e   : > { %7644 = vmatpush3.bf16.msra.mxu0 %v8046_v30  ;;  %7652 = vmatpush3.bf16.msra.mxu1 %v8047_v40 }
 0x91f   : > { %7645 = vmatprep.subr.bf16.mxu0 %v8176_v1  ;;  %7653 = vmatprep.subr.bf16.mxu1 %v8176_v1 }
 0x920   : > { %7647 = vmatprep.mubr.msk.bf16.mxu0 %vm8177_vm0, %v8176_v1  ;;  %7655 = vmatprep.mubr.msk.bf16.mxu1 %vm8177_vm0, %v8176_v1 }
 0x922   : > { %7646 = vmatpush3.bf16.msra.mxu0 %v8048_v41  ;;  %7654 = vmatpush3.bf16.msra.mxu1 %v8049_v44 }
 0x923   : > { %7659 = vmatprep.subr.bf16.mxu0 %v8176_v1  ;;  %7667 = vmatprep.subr.bf16.mxu1 %v8176_v1 }
 0x925   : > { %7648 = vmatmul.mubr.msk.bf16.vlgmr.msra.gmra.mrb[104].mxu0 %vm712_vm1, %v8960_v43  ;;  %7656 = vmatmul.mubr.msk.bf16.vlgmr.msra.gmra.mrb[104].mxu1 %vm712_vm1, %v8960_v43 }
 0x926   : > { %7660 = vmatpush3.bf16.msra.mxu0 %v8050_v45  ;;  %7668 = vmatpush3.bf16.msra.mxu1 %v8051_v7 }
 0x927   : > { %7661 = vmatprep.subr.bf16.mxu0 %v8176_v1  ;;  %7669 = vmatprep.subr.bf16.mxu1 %v8176_v1 }
 0x928   : > { %7663 = vmatprep.mubr.msk.bf16.mxu0 %vm8177_vm0, %v8176_v1  ;;  %7671 = vmatprep.mubr.msk.bf16.mxu1 %vm8177_vm0, %v8176_v1 }
 0x92a   : > { %7662 = vmatpush3.bf16.msra.mxu0 %v8052_v42  ;;  %7670 = vmatpush3.bf16.msra.mxu1 %v8053_v46 }
 0x92b   : > { %7675 = vmatprep.subr.bf16.mxu0 %v8176_v1  ;;  %7683 = vmatprep.subr.bf16.mxu1 %v8176_v1 }
 0x92d   : > { %7664 = vmatmul.mubr.msk.bf16.vlgmr.msra.gmra.mrb[108].mxu0 %vm712_vm1, %v8960_v43  ;;  %7672 = vmatmul.mubr.msk.bf16.vlgmr.msra.gmra.mrb[108].mxu1 %vm712_vm1, %v8960_v43 }
 0x92e   : > { %7676 = vmatpush3.bf16.msra.mxu0 %v8054_v47  ;;  %7684 = vmatpush3.bf16.msra.mxu1 %v8055_v48 }
 0x92f   : > { %7677 = vmatprep.subr.bf16.mxu0 %v8176_v1  ;;  %7685 = vmatprep.subr.bf16.mxu1 %v8176_v1 }
 0x930   : > { %7679 = vmatprep.mubr.msk.bf16.mxu0 %vm8177_vm0, %v8176_v1  ;;  %7687 = vmatprep.mubr.msk.bf16.mxu1 %vm8177_vm0, %v8176_v1 }
 0x932   : > { %7678 = vmatpush3.bf16.msra.mxu0 %v8056_v49  ;;  %7686 = vmatpush3.bf16.msra.mxu1 %v8057_v50 }
 0x933   : > { %7691 = vmatprep.subr.bf16.mxu0 %v8176_v1  ;;  %7699 = vmatprep.subr.bf16.mxu1 %v8176_v1 }
 0x935   : > { %7680 = vmatmul.mubr.msk.bf16.vlgmr.msra.gmra.mrb[112].mxu0 %vm712_vm1, %v8960_v43  ;;  %7688 = vmatmul.mubr.msk.bf16.vlgmr.msra.gmra.mrb[112].mxu1 %vm712_vm1, %v8960_v43 }
 0x936   : > { %7692 = vmatpush3.bf16.msra.mxu0 %v8058_v51  ;;  %7700 = vmatpush3.bf16.msra.mxu1 %v8059_v52 }
 0x937   : > { %7693 = vmatprep.subr.bf16.mxu0 %v8176_v1  ;;  %7701 = vmatprep.subr.bf16.mxu1 %v8176_v1 }
 0x938   : > { %7695 = vmatprep.mubr.msk.bf16.mxu0 %vm8177_vm0, %v8176_v1  ;;  %7703 = vmatprep.mubr.msk.bf16.mxu1 %vm8177_vm0, %v8176_v1 }
 0x93a   : > { %7694 = vmatpush3.bf16.msra.mxu0 %v8060_v53  ;;  %7702 = vmatpush3.bf16.msra.mxu1 %v8061_v8  ;;  %v6902_v8 = vld [vmem:[%s9593_s6 + $0x8] ss:$0 sm:$0xff] }
 0x93b   : > { %7707 = vmatprep.subr.bf16.mxu0 %v8176_v1  ;;  %7715 = vmatprep.subr.bf16.mxu1 %v8176_v1 }
 0x93d   : > { %7696 = vmatmul.mubr.msk.bf16.vlgmr.msra.gmra.mrb[116].mxu0 %vm712_vm1, %v8960_v43  ;;  %7704 = vmatmul.mubr.msk.bf16.vlgmr.msra.gmra.mrb[116].mxu1 %vm712_vm1, %v8960_v43 }
 0x93e   : > { %7708 = vmatpush3.bf16.msra.mxu0 %v8062_v9  ;;  %7716 = vmatpush3.bf16.msra.mxu1 %v8063_v54  ;;  %v6903_v9 = vld [vmem:[%s9593_s6 + $0x9] ss:$0 sm:$0xff]  ;;  %v6870_v54 = vld [vmem:[%s9592_s5 + $0x8] ss:$0 sm:$0xff] }
 0x93f   : > { %7709 = vmatprep.subr.bf16.mxu0 %v8176_v1  ;;  %7717 = vmatprep.subr.bf16.mxu1 %v8176_v1 }
 0x940   : > { %7711 = vmatprep.mubr.msk.bf16.mxu0 %vm8177_vm0, %v8176_v1  ;;  %7719 = vmatprep.mubr.msk.bf16.mxu1 %vm8177_vm0, %v8176_v1 }
 0x942   : > { %7710 = vmatpush3.bf16.msra.mxu0 %v8064_v55  ;;  %7718 = vmatpush3.bf16.msra.mxu1 %v8065_v56  ;;  %v6871_v55 = vld [vmem:[%s9592_s5 + $0x9] ss:$0 sm:$0xff] }
 0x943   : > { %7723 = vmatprep.subr.bf16.mxu0 %v8176_v1  ;;  %7731 = vmatprep.subr.bf16.mxu1 %v8176_v1 }
 0x945   : > { %7712 = vmatmul.mubr.msk.bf16.vlgmr.msra.gmra.mrb[120].mxu0 %vm712_vm1, %v8960_v43  ;;  %7720 = vmatmul.mubr.msk.bf16.vlgmr.msra.gmra.mrb[120].mxu1 %vm712_vm1, %v8960_v43 }
 0x946   : > { %7724 = vmatpush3.bf16.msra.mxu0 %v8066_v57  ;;  %7732 = vmatpush3.bf16.msra.mxu1 %v8067_v16 }
 0x947   : > { %7725 = vmatprep.subr.bf16.mxu0 %v8176_v1  ;;  %7733 = vmatprep.subr.bf16.mxu1 %v8176_v1 }
 0x948   : > { %7727 = vmatprep.mubr.msk.bf16.mxu0 %vm8177_vm0, %v8176_v1  ;;  %7735 = vmatprep.mubr.msk.bf16.mxu1 %vm8177_vm0, %v8176_v1 }
 0x94a   : > { %7726 = vmatpush3.bf16.msra.mxu0 %v8068_v17  ;;  %7734 = vmatpush3.bf16.msra.mxu1 %v8069_v58 }
 0x94b   : > { %7739 = vmatprep.subr.bf16.mxu0 %v8176_v1  ;;  %7747 = vmatprep.subr.bf16.mxu1 %v8176_v1 }
 0x94d   : > { %7728 = vmatmul.mubr.msk.bf16.vlgmr.msra.gmra.mrb[124].mxu0 %vm712_vm1, %v8960_v43  ;;  %7736 = vmatmul.mubr.msk.bf16.vlgmr.msra.gmra.mrb[124].mxu1 %vm712_vm1, %v8960_v43 }
 0x94e   : > { %7740 = vmatpush3.bf16.msra.mxu0 %v8070_v59  ;;  %7748 = vmatpush3.bf16.msra.mxu1 %v8071_v0 }
 0x94f   : > { %7741 = vmatprep.subr.bf16.mxu0 %v8176_v1  ;;  %7749 = vmatprep.subr.bf16.mxu1 %v8176_v1 }
 0x950   : > { %7743 = vmatprep.mubr.msk.bf16.mxu0 %vm8177_vm0, %v8176_v1  ;;  %7751 = vmatprep.mubr.msk.bf16.mxu1 %vm8177_vm0, %v8176_v1 }
 0x952   : > { %7742 = vmatpush3.bf16.msra.mxu0 %v8072_v60  ;;  %7750 = vmatpush3.bf16.msra.mxu1 %v8073_v61 }
 0x953   : > { %7755 = vmatprep.subr.bf16.mxu0 %v8176_v1  ;;  %7763 = vmatprep.subr.bf16.mxu1 %v8176_v1 }
 0x955   : > { %7744 = vmatmul.mubr.msk.bf16.vlgmr.msra.gmra.mrb[128].mxu0 %vm712_vm1, %v8960_v43  ;;  %7752 = vmatmul.mubr.msk.bf16.vlgmr.msra.gmra.mrb[128].mxu1 %vm712_vm1, %v8960_v43 }
 0x956   : > { %7756 = vmatpush3.bf16.msra.mxu0 %v8074_v2  ;;  %7764 = vmatpush3.bf16.msra.mxu1 %v8075_v3 }
 0x957   : > { %7757 = vmatprep.subr.bf16.mxu0 %v8176_v1  ;;  %7765 = vmatprep.subr.bf16.mxu1 %v8176_v1 }
 0x958   : > { %7759 = vmatprep.mubr.msk.bf16.mxu0 %vm8177_vm0, %v8176_v1  ;;  %7767 = vmatprep.mubr.msk.bf16.mxu1 %vm8177_vm0, %v8176_v1 }
 0x95a   : > { %7758 = vmatpush3.bf16.msra.mxu0 %v8076_v5  ;;  %7766 = vmatpush3.bf16.msra.mxu1 %v8077_v6 }
 0x95b   : > { %7771 = vmatprep.subr.bf16.mxu0 %v8176_v1  ;;  %7779 = vmatprep.subr.bf16.mxu1 %v8176_v1 }
 0x95d   : > { %7760 = vmatmul.mubr.msk.bf16.vlgmr.msra.gmra.mrb[132].mxu0 %vm712_vm1, %v8960_v43  ;;  %7768 = vmatmul.mubr.msk.bf16.vlgmr.msra.gmra.mrb[132].mxu1 %vm712_vm1, %v8960_v43 }
 0x95e   : > { %7772 = vmatpush3.bf16.msra.mxu0 %v8078_v62  ;;  %7780 = vmatpush3.bf16.msra.mxu1 %v8079_v63 }
 0x95f   : > { %7773 = vmatprep.subr.bf16.mxu0 %v8176_v1  ;;  %7781 = vmatprep.subr.bf16.mxu1 %v8176_v1 }
 0x960   : > { %7775 = vmatprep.mubr.msk.bf16.mxu0 %vm8177_vm0, %v8176_v1  ;;  %7783 = vmatprep.mubr.msk.bf16.mxu1 %vm8177_vm0, %v8176_v1 }
 0x962   : > { %7774 = vmatpush3.bf16.msra.mxu0 %v8080_v10  ;;  %7782 = vmatpush3.bf16.msra.mxu1 %v8081_v11 }
 0x963   : > { %7787 = vmatprep.subr.bf16.mxu0 %v8176_v1  ;;  %7795 = vmatprep.subr.bf16.mxu1 %v8176_v1 }
 0x965   : > { %7776 = vmatmul.mubr.msk.bf16.vlgmr.msra.gmra.mrb[136].mxu0 %vm712_vm1, %v8960_v43  ;;  %7784 = vmatmul.mubr.msk.bf16.vlgmr.msra.gmra.mrb[136].mxu1 %vm712_vm1, %v8960_v43 }
 0x966   : > { %7788 = vmatpush3.bf16.msra.mxu0 %v8082_v12  ;;  %7796 = vmatpush3.bf16.msra.mxu1 %v8083_v13  ;;  %v6904_v13 = vld [vmem:[%s9593_s6 + $0xa] ss:$0 sm:$0xff] }
 0x967   : > { %7789 = vmatprep.subr.bf16.mxu0 %v8176_v1  ;;  %7797 = vmatprep.subr.bf16.mxu1 %v8176_v1 }
 0x968   : > { %7791 = vmatprep.mubr.msk.bf16.mxu0 %vm8177_vm0, %v8176_v1  ;;  %7799 = vmatprep.mubr.msk.bf16.mxu1 %vm8177_vm0, %v8176_v1 }
 0x96a   : > { %7790 = vmatpush3.bf16.msra.mxu0 %v8084_v14  ;;  %7798 = vmatpush3.bf16.msra.mxu1 %v8085_v15  ;;  %v6905_v14 = vld [vmem:[%s9593_s6 + $0xb] ss:$0 sm:$0xff]  ;;  %v6872_v15 = vld [vmem:[%s9592_s5 + $0xa] ss:$0 sm:$0xff] }
 0x96b   : > { %7803 = vmatprep.subr.bf16.mxu0 %v8176_v1  ;;  %7811 = vmatprep.subr.bf16.mxu1 %v8176_v1 }
 0x96d   : > { %7792 = vmatmul.mubr.msk.bf16.vlgmr.msra.gmra.mrb[140].mxu0 %vm712_vm1, %v8960_v43  ;;  %7800 = vmatmul.mubr.msk.bf16.vlgmr.msra.gmra.mrb[140].mxu1 %vm712_vm1, %v8960_v43 }
 0x96e   : > { %7804 = vmatpush3.bf16.msra.mxu0 %v8086_v18  ;;  %7812 = vmatpush3.bf16.msra.mxu1 %v8087_v20  ;;  %v6873_v18 = vld [vmem:[%s9592_s5 + $0xb] ss:$0 sm:$0xff] }
 0x96f   : > { %7805 = vmatprep.subr.bf16.mxu0 %v8176_v1  ;;  %7813 = vmatprep.subr.bf16.mxu1 %v8176_v1 }
 0x970   : > { %7807 = vmatprep.mubr.msk.bf16.mxu0 %vm8177_vm0, %v8176_v1  ;;  %7815 = vmatprep.mubr.msk.bf16.mxu1 %vm8177_vm0, %v8176_v1 }
 0x972   : > { %7806 = vmatpush3.bf16.msra.mxu0 %v8088_v19  ;;  %7814 = vmatpush3.bf16.msra.mxu1 %v8089_v21 }
 0x973   : > { %7819 = vmatprep.subr.bf16.mxu0 %v8176_v1  ;;  %7825 = vmatprep.subr.bf16.mxu1 %v8176_v1 }
 0x975   : > { %7808 = vmatmul.mubr.msk.bf16.vlgmr.msra.gmra.mrb[144].mxu0 %vm712_vm1, %v8960_v43  ;;  %7816 = vmatmul.mubr.msk.bf16.vlgmr.msra.gmra.mrb[144].mxu1 %vm712_vm1, %v8960_v43 }
 0x976   : > { %7821 = vmatprep.mubr.msk.bf16.mxu0 %vm8177_vm0, %v8176_v1  ;;  %7827 = vmatprep.mubr.msk.bf16.mxu1 %vm8177_vm0, %v8176_v1 }
 0x9f0   : > { %v3751_v23 = vpop.f32.mrb[100].mxu0  ;;  %v3803_v24 = vpop.f32.mrb[100].mxu1 }
 0x9f1   : > { %v7633_v25 = vpop.f32.mrb[101].mxu0  ;;  %v7641_v22 = vpop.f32.mrb[101].mxu1  ;;  %v3752_v0 = vadd.f32 %v6870_v54, %v3751_v23  ;;  %v3804_v60 = vadd.f32 %v6871_v55, %v3803_v24 }
 0x9f2   : > { %v3754_v26 = vpop.f32.mrb[102].mxu0  ;;  %v3806_v28 = vpop.f32.mrb[102].mxu1 }
 0x9f3   : > { %v7634_v29 = vpop.f32.mrb[103].mxu0  ;;  %v7642_v31 = vpop.f32.mrb[103].mxu1  ;;  %v5049_v11 = vmul.f32 0.5, %v3752_v0  ;;  %v5050_v12 = vmul.f32 0.5, %v3804_v60 }
 0x9f5   : > { %v5057_v22 = vpack.c.bf16 %v5049_v11, %v5049_v11  ;;  %v5058_v26 = vpack.c.bf16 %v5050_v12, %v5050_v12 }
 0x9f8   : > { %v9228_v27 = vpop.f32.mrb[104].mxu0  ;;  %v9230_v32 = vpop.f32.mrb[104].mxu1 }
 0x9f9   : > { %v7649_v33 = vpop.f32.mrb[105].mxu0  ;;  %v7657_v34 = vpop.f32.mrb[105].mxu1  ;;  %v3856_v31 = vadd.f32 %v6872_v15, %v9228_v27  ;;  %v6906_v27 = vld [vmem:[%s9593_s6 + $0xc] ss:$0 sm:$0xff] }
 0x9fa   : > { %v3858_v35 = vpop.f32.mrb[106].mxu0  ;;  %v3910_v36 = vpop.f32.mrb[106].mxu1  ;;  %v3908_v33 = vadd.f32 %v6873_v18, %v9230_v32  ;;  %v6907_v32 = vld [vmem:[%s9593_s6 + $0xd] ss:$0 sm:$0xff] }
 0x9fb   : > { %v7650_v37 = vpop.f32.mrb[107].mxu0  ;;  %v7658_v38 = vpop.f32.mrb[107].mxu1 }
 0xa00   : > { %v9232_v30 = vpop.f32.mrb[108].mxu0  ;;  %v9234_v40 = vpop.f32.mrb[108].mxu1 }
 0xa01   : > { %v7665_v43 = vpop.f32.mrb[109].mxu0  ;;  %v7673_v41 = vpop.f32.mrb[109].mxu1 }
 0xa02   : > { %v3962_v44 = vpop.f32.mrb[110].mxu0  ;;  %v4014_v45 = vpop.f32.mrb[110].mxu1  ;;  %v5051_v41 = vmul.f32 0.5, %v3856_v31 }
 0xa03   : > { %v7666_v7 = vpop.f32.mrb[111].mxu0  ;;  %v7674_v42 = vpop.f32.mrb[111].mxu1  ;;  %v5052_v44 = vmul.f32 0.5, %v3908_v33  ;;  %v6874_v45 = vld [vmem:[%s9592_s5 + $0xc] ss:$0 sm:$0xff] }
 0xa04   : > { %v6875_v7 = vld [vmem:[%s9592_s5 + $0xd] ss:$0 sm:$0xff]  ;;  %v5059_v55 = vpack.c.bf16 %v5051_v41, %v5051_v41 }
 0xa08   : > { %v9236_v46 = vpop.f32.mrb[112].mxu0  ;;  %v9238_v47 = vpop.f32.mrb[112].mxu1 }
 0xa09   : > { %v7681_v48 = vpop.f32.mrb[113].mxu0  ;;  %v7689_v49 = vpop.f32.mrb[113].mxu1 }
 0xa0a   : > { %v4066_v50 = vpop.f32.mrb[114].mxu0  ;;  %v4118_v51 = vpop.f32.mrb[114].mxu1 }
 0xa0b   : > { %v7682_v52 = vpop.f32.mrb[115].mxu0  ;;  %v7690_v53 = vpop.f32.mrb[115].mxu1 }
 0xa0c   : > { %v3960_v53 = vadd.f32 %v6874_v45, %v9232_v30 }
 0xa0e   : > { %v5053_v60 = vmul.f32 0.5, %v3960_v53 }
 0xa10   : > { %v4215_v56 = vpop.f32.mrb[116].mxu0  ;;  %v4267_v57 = vpop.f32.mrb[116].mxu1  ;;  %v5061_v12 = vpack.c.bf16 %v5053_v60, %v5053_v60 }
 0xa11   : > { %v4216_v16 = vadd.f32 %v6902_v8, %v4215_v56  ;;  %v4268_v17 = vadd.f32 %v6903_v9, %v4267_v57  ;;  %v7697_v58 = vpop.f32.mrb[117].mxu0  ;;  %v7705_v59 = vpop.f32.mrb[117].mxu1  ;;  %v4012_v8 = vadd.f32 %v6875_v7, %v9234_v40  ;;  %v5060_v56 = vpack.c.bf16 %v5052_v44, %v5052_v44  ;;  %v6908_v40 = vld [vmem:[%s9593_s6 + $0xe] ss:$0 sm:$0xff] }
 0xa12   : > { %v4218_v61 = vpop.f32.mrb[118].mxu0  ;;  %v4270_v2 = vpop.f32.mrb[118].mxu1 }
 0xa13   : > { %v5065_v3 = vpack.c.bf16 %v4216_v16, %v4216_v16  ;;  %v5066_v5 = vpack.c.bf16 %v4268_v17, %v4268_v17  ;;  %v7698_v6 = vpop.f32.mrb[119].mxu0  ;;  %v7706_v62 = vpop.f32.mrb[119].mxu1  ;;  %v5054_v30 = vmul.f32 0.5, %v4012_v8  ;;  %v6909_v61 = vld [vmem:[%s9593_s6 + $0xf] ss:$0 sm:$0xff] }
 0xa14   : > { %v6876_v2 = vld [vmem:[%s9592_s5 + $0xe] ss:$0 sm:$0xff] }
 0xa15   : > { %v5077_v63 = vsel %vm2072_vm2, %v5065_v3, 0  ;;  %v5123_v10 = vsel %vm2072_vm2, %v5066_v5, 0  ;;  %v6877_v3 = vld [vmem:[%s9592_s5 + $0xf] ss:$0 sm:$0xff]  ;;  %v4064_v18 = vadd.f32 %v6876_v2, %v9236_v46  ;;  %v6934_v46 = vld [vmem:[%s9594_s7 + $0x8] ss:$0 sm:$0xff] }
 0xa16   : > { %7820 = vmatpush3.bf16.xpose.msra.mxu0 %v5077_v63  ;;  %7826 = vmatpush3.bf16.xpose.msra.mxu1 %v5123_v10 }
 0xa17   : > { %7831 = vmatprep.subr.bf16.mxu0 %v8176_v1  ;;  %7837 = vmatprep.subr.bf16.mxu1 %v8176_v1 }
 0xa18   : > { %v4319_v20 = vpop.f32.mrb[120].mxu0  ;;  %v4371_v19 = vpop.f32.mrb[120].mxu1 }
 0xa19   : > { %v4320_v21 = vadd.f32 %v6904_v13, %v4319_v20  ;;  %v4372_v23 = vadd.f32 %v6905_v14, %v4371_v19  ;;  %v7713_v24 = vpop.f32.mrb[121].mxu0  ;;  %v7721_v25 = vpop.f32.mrb[121].mxu1  ;;  %v5062_v13 = vpack.c.bf16 %v5054_v30, %v5054_v30  ;;  %v4116_v20 = vadd.f32 %v6877_v3, %v9238_v47  ;;  %v6935_v47 = vld [vmem:[%s9594_s7 + $0x9] ss:$0 sm:$0xff] }
 0xa1a   : > { %v4322_v28 = vpop.f32.mrb[122].mxu0  ;;  %v4374_v29 = vpop.f32.mrb[122].mxu1 }
 0xa1b   : > { %v5067_v34 = vpack.c.bf16 %v4320_v21, %v4320_v21  ;;  %v5068_v35 = vpack.c.bf16 %v4372_v23, %v4372_v23  ;;  %v7714_v36 = vpop.f32.mrb[123].mxu0  ;;  %v7722_v37 = vpop.f32.mrb[123].mxu1  ;;  %v5056_v28 = vmul.f32 0.5, %v4116_v20 }
 0xa1d   : > { %v5169_v38 = vsel %vm2072_vm2, %v5067_v34, 0  ;;  %v5215_v43 = vsel %vm2072_vm2, %v5068_v35, 0  ;;  %7822 = vmatmul.mubr.msk.bf16.vlgmr.msra.gmra.mrb[148].mxu0 %vm2072_vm2, %v5057_v22  ;;  %7828 = vmatmul.mubr.msk.bf16.vlgmr.msra.gmra.mrb[148].mxu1 %vm2072_vm2, %v5058_v26  ;;  %v5055_v26 = vmul.f32 0.5, %v4064_v18 }
 0xa1e   : > { %7832 = vmatpush3.bf16.xpose.msra.mxu0 %v5169_v38  ;;  %7838 = vmatpush3.bf16.xpose.msra.mxu1 %v5215_v43 }
 0xa1f   : > { %7833 = vmatprep.mubr.msk.bf16.mxu0 %vm8177_vm0, %v8176_v1  ;;  %7839 = vmatprep.mubr.msk.bf16.mxu1 %vm8177_vm0, %v8176_v1  ;;  %v5063_v43 = vpack.c.bf16 %v5055_v26, %v5055_v26 }
 0xa20   : > { %v4423_v42 = vpop.f32.mrb[124].mxu0  ;;  %v4475_v48 = vpop.f32.mrb[124].mxu1  ;;  %7843 = vmatprep.subr.bf16.mxu0 %v8176_v1  ;;  %7849 = vmatprep.subr.bf16.mxu1 %v8176_v1 }
 0xa21   : > { %v4424_v49 = vadd.f32 %v6906_v27, %v4423_v42  ;;  %v4476_v50 = vadd.f32 %v6907_v32, %v4475_v48  ;;  %v7729_v51 = vpop.f32.mrb[125].mxu0  ;;  %v7737_v52 = vpop.f32.mrb[125].mxu1  ;;  %v5064_v27 = vpack.c.bf16 %v5056_v28, %v5056_v28 }
 0xa22   : > { %v4426_v9 = vpop.f32.mrb[126].mxu0  ;;  %v4478_v54 = vpop.f32.mrb[126].mxu1 }
 0xa23   : > { %v5069_v57 = vpack.c.bf16 %v4424_v49, %v4424_v49  ;;  %v5070_v16 = vpack.c.bf16 %v4476_v50, %v4476_v50  ;;  %v7730_v17 = vpop.f32.mrb[127].mxu0  ;;  %v7738_v58 = vpop.f32.mrb[127].mxu1 }
 0xa25   : > { %v5261_v59 = vsel %vm2072_vm2, %v5069_v57, 0  ;;  %v5307_v0 = vsel %vm2072_vm2, %v5070_v16, 0  ;;  %7834 = vmatmul.mubr.msk.bf16.vlgmr.msra.gmra.mrb[152].mxu0 %vm2072_vm2, %v5059_v55  ;;  %7840 = vmatmul.mubr.msk.bf16.vlgmr.msra.gmra.mrb[152].mxu1 %vm2072_vm2, %v5060_v56 }
 0xa26   : > { %7844 = vmatpush3.bf16.xpose.msra.mxu0 %v5261_v59  ;;  %7850 = vmatpush3.bf16.xpose.msra.mxu1 %v5307_v0 }
 0xa27   : > { %7845 = vmatprep.mubr.msk.bf16.mxu0 %vm8177_vm0, %v8176_v1  ;;  %7851 = vmatprep.mubr.msk.bf16.mxu1 %vm8177_vm0, %v8176_v1 }
 0xa28   : > { %v4527_v5 = vpop.f32.mrb[128].mxu0  ;;  %v4579_v6 = vpop.f32.mrb[128].mxu1  ;;  %7855 = vmatprep.subr.bf16.mxu0 %v8176_v1  ;;  %7861 = vmatprep.subr.bf16.mxu1 %v8176_v1 }
 0xa29   : > { %v4528_v62 = vadd.f32 %v6908_v40, %v4527_v5  ;;  %v4580_v63 = vadd.f32 %v6909_v61, %v4579_v6  ;;  %v7745_v10 = vpop.f32.mrb[129].mxu0  ;;  %v7753_v11 = vpop.f32.mrb[129].mxu1 }
 0xa2a   : > { %v4530_v14 = vpop.f32.mrb[130].mxu0  ;;  %v4582_v15 = vpop.f32.mrb[130].mxu1 }
 0xa2b   : > { %v5071_v19 = vpack.c.bf16 %v4528_v62, %v4528_v62  ;;  %v5072_v21 = vpack.c.bf16 %v4580_v63, %v4580_v63  ;;  %v7746_v23 = vpop.f32.mrb[131].mxu0  ;;  %v7754_v24 = vpop.f32.mrb[131].mxu1 }
 0xa2d   : > { %v5353_v25 = vsel %vm2072_vm2, %v5071_v19, 0  ;;  %v5399_v22 = vsel %vm2072_vm2, %v5072_v21, 0  ;;  %7846 = vmatmul.mubr.msk.bf16.vlgmr.msra.gmra.mrb[156].mxu0 %vm2072_vm2, %v5061_v12  ;;  %7852 = vmatmul.mubr.msk.bf16.vlgmr.msra.gmra.mrb[156].mxu1 %vm2072_vm2, %v5062_v13 }
 0xa2e   : > { %7856 = vmatpush3.bf16.xpose.msra.mxu0 %v5353_v25  ;;  %7862 = vmatpush3.bf16.xpose.msra.mxu1 %v5399_v22 }
 0xa2f   : > { %7857 = vmatprep.mubr.msk.bf16.mxu0 %vm8177_vm0, %v8176_v1  ;;  %7863 = vmatprep.mubr.msk.bf16.mxu1 %vm8177_vm0, %v8176_v1 }
 0xa30   : > { %v4679_v29 = vpop.f32.mrb[132].mxu0  ;;  %v4731_v31 = vpop.f32.mrb[132].mxu1  ;;  %7867 = vmatprep.subr.bf16.mxu0 %v8176_v1  ;;  %7873 = vmatprep.subr.bf16.mxu1 %v8176_v1 }
 0xa31   : > { %v4680_v33 = vadd.f32 %v6934_v46, %v4679_v29  ;;  %v4732_v34 = vadd.f32 %v6935_v47, %v4731_v31  ;;  %v7761_v35 = vpop.f32.mrb[133].mxu0  ;;  %v7769_v36 = vpop.f32.mrb[133].mxu1 }
 0xa32   : > { %v4682_v37 = vpop.f32.mrb[134].mxu0  ;;  %v4734_v38 = vpop.f32.mrb[134].mxu1 }
 0xa33   : > { %v5537_v32 = vpack.c.bf16 %v4680_v33, %v4680_v33  ;;  %v5538_v41 = vpack.c.bf16 %v4732_v34, %v4732_v34  ;;  %v7762_v44 = vpop.f32.mrb[135].mxu0  ;;  %v7770_v45 = vpop.f32.mrb[135].mxu1 }
 0xa35   : > { %v5549_v7 = vand.u32 %v5537_v32, %v8696_v4  ;;  %v5595_v42 = vand.u32 %v5538_v41, %v8696_v4  ;;  %7858 = vmatmul.mubr.msk.bf16.vlgmr.msra.gmra.mrb[160].mxu0 %vm2072_vm2, %v5063_v43  ;;  %7864 = vmatmul.mubr.msk.bf16.vlgmr.msra.gmra.mrb[160].mxu1 %vm2072_vm2, %v5064_v27 }
 0xa36   : > { %7869 = vmatprep.mubr.msk.bf16.mxu0 %vm8177_vm0, %v8176_v1  ;;  %7875 = vmatprep.mubr.msk.bf16.mxu1 %vm8177_vm0, %v8176_v1 }
 0xa37   : > { %7868 = vmatpush3.bf16.msra.mxu0 %v5549_v7  ;;  %7874 = vmatpush3.bf16.msra.mxu1 %v5595_v42 }
 0xa38   : > { %v9342_v48 = vpop.f32.mrb[136].mxu0  ;;  %v9344_v49 = vpop.f32.mrb[136].mxu1  ;;  %7879 = vmatprep.subr.bf16.mxu0 %v8176_v1  ;;  %7885 = vmatprep.subr.bf16.mxu1 %v8176_v1 }
 0xa39   : > { %v7777_v50 = vpop.f32.mrb[137].mxu0  ;;  %v7785_v51 = vpop.f32.mrb[137].mxu1 }
 0xa3a   : > { %v4786_v52 = vpop.f32.mrb[138].mxu0  ;;  %v4838_v53 = vpop.f32.mrb[138].mxu1 }
 0xa3b   : > { %v7778_v8 = vpop.f32.mrb[139].mxu0  ;;  %v7786_v9 = vpop.f32.mrb[139].mxu1 }
 0xa40   : > { %v9348_v54 = vpop.f32.mrb[140].mxu0  ;;  %v9350_v55 = vpop.f32.mrb[140].mxu1 }
 0xa41   : > { %v7793_v56 = vpop.f32.mrb[141].mxu0  ;;  %v7801_v57 = vpop.f32.mrb[141].mxu1 }
 0xa42   : > { %v4890_v16 = vpop.f32.mrb[142].mxu0  ;;  %v4942_v17 = vpop.f32.mrb[142].mxu1 }
 0xa43   : > { %v7794_v58 = vpop.f32.mrb[143].mxu0  ;;  %v7802_v59 = vpop.f32.mrb[143].mxu1 }
 0xa48   : > { %v9352_v0 = vpop.f32.mrb[144].mxu0  ;;  %v9354_v60 = vpop.f32.mrb[144].mxu1 }
 0xa49   : > { %v7809_v30 = vpop.f32.mrb[145].mxu0  ;;  %v7817_v40 = vpop.f32.mrb[145].mxu1 }
 0xa4a   : > { %v4994_v61 = vpop.f32.mrb[146].mxu0  ;;  %v5046_v2 = vpop.f32.mrb[146].mxu1 }
 0xa4b   : > { %v7810_v3 = vpop.f32.mrb[147].mxu0  ;;  %v7818_v5 = vpop.f32.mrb[147].mxu1 }
 0xaf0   : > { %v5113_v6 = vpop.f32.mrb[148].mxu0  ;;  %v5159_v62 = vpop.f32.mrb[148].mxu1 }
 0xaf1   : > { %v7823_v63 = vpop.f32.mrb[149].mxu0  ;;  %v7829_v10 = vpop.f32.mrb[149].mxu1  ;;  %v5444_v11 = vsel %vm2441_vm5, %v5159_v62, -inf  ;;  %v5441_v12 = vsel %vm2441_vm5, %v5113_v6, -inf }
 0xaf2   : > { %5445 = vmax.xlane.f32.xlu1 %v5444_v11  ;;  %v5162_v13 = vpop.f32.mrb[150].mxu1  ;;  %5442 = vmax.xlane.f32.xlu0 %v5441_v12  ;;  %v5116_v14 = vpop.f32.mrb[150].mxu0 }
 0xaf3   : > { %v7824_v15 = vpop.f32.mrb[151].mxu0  ;;  %v7830_v18 = vpop.f32.mrb[151].mxu1 }
 0xaf8   : > { %v5205_v20 = vpop.f32.mrb[152].mxu0  ;;  %v5251_v19 = vpop.f32.mrb[152].mxu1 }
 0xaf9   : > { %v7835_v21 = vpop.f32.mrb[153].mxu0  ;;  %v7841_v23 = vpop.f32.mrb[153].mxu1  ;;  %v5450_v24 = vsel %vm2441_vm5, %v5251_v19, -inf  ;;  %v5447_v25 = vsel %vm2441_vm5, %v5205_v20, -inf }
 0xafa   : > { %5451 = vmax.xlane.f32.xlu1 %v5450_v24  ;;  %v5254_v22 = vpop.f32.mrb[154].mxu1  ;;  %5448 = vmax.xlane.f32.xlu0 %v5447_v25  ;;  %v5208_v46 = vpop.f32.mrb[154].mxu0 }
 0xafb   : > { %v7836_v47 = vpop.f32.mrb[155].mxu0  ;;  %v7842_v26 = vpop.f32.mrb[155].mxu1 }
 0xb00   : > { %v5297_v28 = vpop.f32.mrb[156].mxu0  ;;  %v5343_v29 = vpop.f32.mrb[156].mxu1 }
 0xb01   : > { %v7847_v31 = vpop.f32.mrb[157].mxu0  ;;  %v7853_v33 = vpop.f32.mrb[157].mxu1  ;;  %v5456_v34 = vsel %vm2441_vm5, %v5343_v29, -inf  ;;  %v5453_v35 = vsel %vm2441_vm5, %v5297_v28, -inf }
 0xb02   : > { %5457 = vmax.xlane.f32.xlu1 %v5456_v34  ;;  %v5346_v36 = vpop.f32.mrb[158].mxu1  ;;  %5454 = vmax.xlane.f32.xlu0 %v5453_v35  ;;  %v5300_v37 = vpop.f32.mrb[158].mxu0 }
 0xb03   : > { %v7848_v38 = vpop.f32.mrb[159].mxu0  ;;  %v7854_v43 = vpop.f32.mrb[159].mxu1  ;;  %v6937_v37 = vld [vmem:[%s9594_s7 + $0xb] ss:$0 sm:$0xff] }
 0xb04   : > { %v6936_v38 = vld [vmem:[%s9594_s7 + $0xa] ss:$0 sm:$0xff]  ;;  %v4836_v43 = vadd.f32 %v6937_v37, %v9344_v49 }
 0xb08   : > { %v5389_v27 = vpop.f32.mrb[160].mxu0  ;;  %v5435_v32 = vpop.f32.mrb[160].mxu1 }
 0xb09   : > { %v7859_v41 = vpop.f32.mrb[161].mxu0  ;;  %v7865_v44 = vpop.f32.mrb[161].mxu1  ;;  %v5462_v45 = vsel %vm2441_vm5, %v5435_v32, -inf  ;;  %v5459_v7 = vsel %vm2441_vm5, %v5389_v27, -inf }
 0xb0a   : > { %5463 = vmax.xlane.f32.xlu1 %v5462_v45  ;;  %v5438_v42 = vpop.f32.mrb[162].mxu1  ;;  %5460 = vmax.xlane.f32.xlu0 %v5459_v7  ;;  %v5392_v50 = vpop.f32.mrb[162].mxu0  ;;  %v5540_v45 = vpack.c.bf16 %v4836_v43, %v4836_v43 }
 0xb0b   : > { %v7860_v51 = vpop.f32.mrb[163].mxu0  ;;  %v7866_v52 = vpop.f32.mrb[163].mxu1  ;;  %v6939_v50 = vld [vmem:[%s9594_s7 + $0xd] ss:$0 sm:$0xff] }
 0xb0c   : > { %v6938_v52 = vld [vmem:[%s9594_s7 + $0xc] ss:$0 sm:$0xff] }
 0xb7f   : > { %v5446_v53 = vpop.xlane.xlu1 %5445  ;;  %v5443_v8 = vpop.xlane.xlu0 %5442 }
 0xb80   : > { %v5466_v9 = vsub.f32 %v5159_v62, %v5446_v53  ;;  %v5465_v56 = vsub.f32 %v5113_v6, %v5443_v8  ;;  %v4940_v8 = vadd.f32 %v6939_v50, %v9350_v55  ;;  %v6866_v50 = vld [vmem:[%s9595_s8 + $0x1a] sm:$0x3] }
 0xb82   : > { %v5475_v57 = vmul.f32 1.442695, %v5466_v9  ;;  %v5473_v16 = vmul.f32 1.442695, %v5465_v56  ;;  %v5542_v55 = vpack.c.bf16 %v4940_v8, %v4940_v8  ;;  %v6155_v8 = vsel %vm2550_vm3, %v6866_v50, 0 }
 0xb84   : > { %8130 = vpow2.f32 %v5475_v57  ;;  %v4888_v57 = vadd.f32 %v6938_v52, %v9348_v54 }
 0xb85   : > { %8132 = vpow2.f32 %v5473_v16 }
 0xb87   : > { %v5452_v17 = vpop.xlane.xlu1 %5451  ;;  %v5449_v58 = vpop.xlane.xlu0 %5448 }
 0xb88   : > { %v5468_v59 = vsub.f32 %v5251_v19, %v5452_v17  ;;  %v5467_v30 = vsub.f32 %v5205_v20, %v5449_v58 }
 0xb8a   : > { %v5479_v40 = vmul.f32 1.442695, %v5468_v59  ;;  %v5477_v61 = vmul.f32 1.442695, %v5467_v30  ;;  %v5541_v59 = vpack.c.bf16 %v4888_v57, %v4888_v57  ;;  %v6941_v30 = vld [vmem:[%s9594_s7 + $0xf] ss:$0 sm:$0xff] }
 0xb8c   : > { %8134 = vpow2.f32 %v5479_v40 }
 0xb8d   : > { %8136 = vpow2.f32 %v5477_v61  ;;  %v6940_v61 = vld [vmem:[%s9594_s7 + $0xe] ss:$0 sm:$0xff] }
 0xb8e   : > { %v8131_v2 = vpop.eup %8130 }
 0xb8f   : > { %v8133_v3 = vpop.eup %8132  ;;  %v5458_v5 = vpop.xlane.xlu1 %5457  ;;  %v5492_v10 = vsel %vm2441_vm5, %v8131_v2, 0.0 }
 0xb90   : > { %v5455_v63 = vpop.xlane.xlu0 %5454  ;;  %v5470_v62 = vsub.f32 %v5343_v29, %v5458_v5  ;;  %5493 = vadd.xlane.f32.xlu1 %v5492_v10  ;;  %v5489_v11 = vsel %vm2441_vm5, %v8133_v3, 0.0  ;;  %v5779_v5 = vand.u32 %v5542_v55, %v8696_v4 }
 0xb91   : > { %v5469_v6 = vsub.f32 %v5297_v28, %v5455_v63  ;;  %5490 = vadd.xlane.f32.xlu0 %v5489_v11  ;;  %v5044_v63 = vadd.f32 %v6941_v30, %v9354_v60 }
 0xb92   : > { %v5483_v12 = vmul.f32 1.442695, %v5470_v62  ;;  %v5733_v62 = vand.u32 %v5541_v59, %v8696_v4  ;;  %v6867_v59 = vld [vmem:[%s9595_s8 + $0x1c] sm:$0x3] }
 0xb93   : > { %v5481_v13 = vmul.f32 1.442695, %v5469_v6  ;;  %v4992_v6 = vadd.f32 %v6940_v61, %v9352_v0  ;;  %v5544_v60 = vpack.c.bf16 %v5044_v63, %v5044_v63 }
 0xb94   : > { %8138 = vpow2.f32 %v5483_v12 }
 0xb95   : > { %8140 = vpow2.f32 %v5481_v13 }
 0xb96   : > { %v9366_v14 = vpop.eup %8134 }
 0xb97   : > { %v9368_v15 = vpop.eup %8136  ;;  %v5464_v18 = vpop.xlane.xlu1 %5463  ;;  %v5498_v19 = vsel %vm2441_vm5, %v9366_v14, 0.0 }
 0xb98   : > { %v5461_v20 = vpop.xlane.xlu0 %5460  ;;  %v5472_v21 = vsub.f32 %v5435_v32, %v5464_v18  ;;  %5499 = vadd.xlane.f32.xlu1 %v5498_v19  ;;  %v5495_v24 = vsel %vm2441_vm5, %v9368_v15, 0.0  ;;  %v5871_v19 = vand.u32 %v5544_v60, %v8696_v4 }
 0xb99   : > { %v5471_v23 = vsub.f32 %v5389_v27, %v5461_v20  ;;  %5496 = vadd.xlane.f32.xlu0 %v5495_v24  ;;  %v4784_v27 = vadd.f32 %v6936_v38, %v9342_v48  ;;  %v5687_v48 = vand.u32 %v5540_v45, %v8696_v4 }
 0xb9a   : > { %v5487_v25 = vmul.f32 1.442695, %v5472_v21 }
 0xb9b   : > { %v5485_v22 = vmul.f32 1.442695, %v5471_v23  ;;  %v5539_v42 = vpack.c.bf16 %v4784_v27, %v4784_v27 }
 0xb9c   : > { %8142 = vpow2.f32 %v5487_v25  ;;  %v6862_v25 = vld [vmem:[%s9595_s8 + $0x12] sm:$0x3] }
 0xb9d   : > { %8144 = vpow2.f32 %v5485_v22  ;;  %v5641_v56 = vand.u32 %v5539_v42, %v8696_v4 }
 0xb9e   : > { %v9374_v46 = vpop.eup %8138 }
 0xb9f   : > { %v9376_v47 = vpop.eup %8140  ;;  %v5504_v26 = vsel %vm2441_vm5, %v9374_v46, 0.0 }
 0xba0   : > { %5505 = vadd.xlane.f32.xlu1 %v5504_v26  ;;  %v5501_v28 = vsel %vm2441_vm5, %v9376_v47, 0.0 }
 0xba1   : > { %5502 = vadd.xlane.f32.xlu0 %v5501_v28  ;;  %v5971_v28 = vsel %vm2550_vm3, %v6862_v25, 0 }
 0xba6   : > { %v9382_v29 = vpop.eup %8142 }
 0xba7   : > { %v9384_v31 = vpop.eup %8144  ;;  %v5510_v33 = vsel %vm2441_vm5, %v9382_v29, 0.0 }
 0xba8   : > { %5511 = vadd.xlane.f32.xlu1 %v5510_v33  ;;  %v5507_v34 = vsel %vm2441_vm5, %v9384_v31, 0.0 }
 0xba9   : > { %5508 = vadd.xlane.f32.xlu0 %v5507_v34 }
 0xc1d   : > { %v5494_v35 = vpop.xlane.xlu1 %5493 }
 0xc1e   : > { %8146 = vrcp.f32 %v5494_v35  ;;  %v5491_v36 = vpop.xlane.xlu0 %5490 }
 0xc1f   : > { %8148 = vrcp.f32 %v5491_v36 }
 0xc25   : > { %v5500_v32 = vpop.xlane.xlu1 %5499 }
 0xc26   : > { %8150 = vrcp.f32 %v5500_v32  ;;  %v5497_v41 = vpop.xlane.xlu0 %5496 }
 0xc27   : > { %8152 = vrcp.f32 %v5497_v41 }
 0xc28   : > { %v8147_v44 = vpop.eup %8146 }
 0xc29   : > { %v8149_v7 = vpop.eup %8148  ;;  %v5522_v51 = vmul.f32 %v8147_v44, %v8131_v2 }
 0xc2a   : > { %v5521_v49 = vmul.f32 %v8149_v7, %v8133_v3 }
 0xc2b   : > { %v5530_v53 = vpack.c.bf16 %v5522_v51, %v5522_v51  ;;  %v6865_v51 = vld [vmem:[%s9595_s8 + $0x18] sm:$0x3] }
 0xc2c   : > { %v5529_v9 = vpack.c.bf16 %v5521_v49, %v5521_v49 }
 0xc2d   : > { %7876 = vmatmul.mubr.msk.bf16.vlgmr.msra.gmra.mrb[164].mxu1 %vm2546_vm6, %v5530_v53  ;;  %v5506_v16 = vpop.xlane.xlu1 %5505 }
 0xc2e   : > { %7886 = vmatpush3.bf16.msra.mxu1 %v5687_v48  ;;  %8154 = vrcp.f32 %v5506_v16  ;;  %7870 = vmatmul.mubr.msk.bf16.vlgmr.msra.gmra.mrb[164].mxu0 %vm2546_vm6, %v5529_v9  ;;  %v5503_v17 = vpop.xlane.xlu0 %5502  ;;  %v6109_v16 = vsel %vm2550_vm3, %v6865_v51, 0 }
 0xc2f   : > { %7880 = vmatpush3.bf16.msra.mxu0 %v5641_v56  ;;  %8156 = vrcp.f32 %v5503_v17  ;;  %7881 = vmatprep.mubr.msk.bf16.mxu0 %vm8177_vm0, %v8176_v1 }
 0xc30   : > { %v8151_v58 = vpop.eup %8150  ;;  %7887 = vmatprep.mubr.msk.bf16.mxu1 %vm8177_vm0, %v8176_v1  ;;  %7891 = vmatprep.subr.bf16.mxu0 %v8176_v1 }
 0xc31   : > { %v8153_v54 = vpop.eup %8152  ;;  %v5524_v40 = vmul.f32 %v8151_v58, %v9366_v14  ;;  %7897 = vmatprep.subr.bf16.mxu1 %v8176_v1  ;;  %v5543_v14 = vpack.c.bf16 %v4992_v6, %v4992_v6 }
 0xc32   : > { %v5523_v2 = vmul.f32 %v8153_v54, %v9368_v15  ;;  %v6868_v54 = vld [vmem:[%s9595_s8 + $0x1e] sm:$0x3] }
 0xc33   : > { %v5532_v3 = vpack.c.bf16 %v5524_v40, %v5524_v40  ;;  %v5825_v23 = vand.u32 %v5543_v14, %v8696_v4 }
 0xc34   : > { %v5531_v10 = vpack.c.bf16 %v5523_v2, %v5523_v2 }
 0xc35   : > { %7888 = vmatmul.mubr.msk.bf16.vlgmr.msra.gmra.mrb[168].mxu1 %vm2546_vm6, %v5532_v3  ;;  %v5512_v11 = vpop.xlane.xlu1 %5511  ;;  %v6247_v3 = vsel %vm2550_vm3, %v6868_v54, 0 }
 0xc36   : > { %7898 = vmatpush3.bf16.msra.mxu1 %v5779_v5  ;;  %8158 = vrcp.f32 %v5512_v11  ;;  %7882 = vmatmul.mubr.msk.bf16.vlgmr.msra.gmra.mrb[168].mxu0 %vm2546_vm6, %v5531_v10  ;;  %v5509_v12 = vpop.xlane.xlu0 %5508 }
 0xc37   : > { %7892 = vmatpush3.bf16.msra.mxu0 %v5733_v62  ;;  %8160 = vrcp.f32 %v5509_v12  ;;  %7893 = vmatprep.mubr.msk.bf16.mxu0 %vm8177_vm0, %v8176_v1  ;;  %v6201_v62 = vsel %vm2550_vm3, %v6867_v59, 0 }
 0xc38   : > { %v8155_v13 = vpop.eup %8154  ;;  %7899 = vmatprep.mubr.msk.bf16.mxu1 %vm8177_vm0, %v8176_v1  ;;  %7903 = vmatprep.subr.bf16.mxu0 %v8176_v1 }
 0xc39   : > { %v8157_v0 = vpop.eup %8156  ;;  %v5526_v15 = vmul.f32 %v8155_v13, %v9374_v46  ;;  %7909 = vmatprep.subr.bf16.mxu1 %v8176_v1  ;;  %v6861_v46 = vld [vmem:[%s9595_s8 + $0x10] sm:$0x3] }
 0xc3a   : > { %v5525_v18 = vmul.f32 %v8157_v0, %v9376_v47  ;;  %v5925_v34 = vsel %vm2550_vm3, %v6861_v46, 0 }
 0xc3b   : > { %v5534_v20 = vpack.c.bf16 %v5526_v15, %v5526_v15 }
 0xc3c   : > { %v5533_v21 = vpack.c.bf16 %v5525_v18, %v5525_v18 }
 0xc3d   : > { %7900 = vmatmul.mubr.msk.bf16.vlgmr.msra.gmra.mrb[172].mxu1 %vm2546_vm6, %v5534_v20 }
 0xc3e   : > { %7894 = vmatmul.mubr.msk.bf16.vlgmr.msra.gmra.mrb[172].mxu0 %vm2546_vm6, %v5533_v21  ;;  %7910 = vmatpush3.bf16.msra.mxu1 %v5871_v19 }
 0xc3f   : > { %7904 = vmatpush3.bf16.msra.mxu0 %v5825_v23  ;;  %7905 = vmatprep.mubr.msk.bf16.mxu0 %vm8177_vm0, %v8176_v1 }
 0xc40   : > { %v8159_v24 = vpop.eup %8158  ;;  %7911 = vmatprep.mubr.msk.bf16.mxu1 %vm8177_vm0, %v8176_v1  ;;  %7915 = vmatprep.subr.bf16.mxu0 %v8176_v1 }
 0xc41   : > { %v8161_v4 = vpop.eup %8160  ;;  %v5528_v22 = vmul.f32 %v8159_v24, %v9382_v29  ;;  %7921 = vmatprep.subr.bf16.mxu1 %v8176_v1  ;;  %v6864_v29 = vld [vmem:[%s9595_s8 + $0x16] sm:$0x3] }
 0xc42   : > { %v5527_v47 = vmul.f32 %v8161_v4, %v9384_v31  ;;  %v6863_v31 = vld [vmem:[%s9595_s8 + $0x14] sm:$0x3]  ;;  %v6063_v43 = vsel %vm2550_vm3, %v6864_v29, 0 }
 0xc43   : > { %v5536_v26 = vpack.c.bf16 %v5528_v22, %v5528_v22  ;;  %v6017_v44 = vsel %vm2550_vm3, %v6863_v31, 0 }
 0xc44   : > { %v5535_v33 = vpack.c.bf16 %v5527_v47, %v5527_v47 }
 0xc45   : > { %7912 = vmatmul.mubr.msk.bf16.vlgmr.msra.gmra.mrb[176].mxu1 %vm2546_vm6, %v5536_v26 }
 0xc46   : > { %7906 = vmatmul.mubr.msk.bf16.vlgmr.msra.gmra.mrb[176].mxu0 %vm2546_vm6, %v5535_v33  ;;  %7922 = vmatpush3.bf16.msra.mxu1 %v5971_v28 }
 0xc47   : > { %7916 = vmatpush3.bf16.msra.mxu0 %v5925_v34  ;;  %7917 = vmatprep.mubr.msk.bf16.mxu0 %vm8177_vm0, %v8176_v1 }
 0xc48   : > { %7923 = vmatprep.mubr.msk.bf16.mxu1 %vm8177_vm0, %v8176_v1  ;;  %7927 = vmatprep.subr.bf16.mxu0 %v8176_v1 }
 0xc49   : > { %7933 = vmatprep.subr.bf16.mxu1 %v8176_v1 }
 0xd00   : > { %v5631_v35 = vpop.f32.mrb[164].mxu1 }
 0xd01   : > { %v5585_v36 = vpop.f32.mrb[164].mxu0  ;;  %v5914_v37 = vpack.c.bf16 %v5631_v35, %v5631_v35  ;;  %v7877_v38 = vpop.f32.mrb[165].mxu1 }
 0xd02   : > { %v5913_v27 = vpack.c.bf16 %v5585_v36, %v5585_v36  ;;  %v7871_v32 = vpop.f32.mrb[165].mxu0  ;;  %v5634_v41 = vpop.f32.mrb[166].mxu1 }
 0xd03   : > { %v5588_v45 = vpop.f32.mrb[166].mxu0  ;;  %v7878_v7 = vpop.f32.mrb[167].mxu1  ;;  %7924 = vmatmul.mubr.msk.bf16.vlgmr.msra.gmra.mrb[180].mxu1 %vm2072_vm2, %v5914_v37 }
 0xd04   : > { %v7872_v42 = vpop.f32.mrb[167].mxu0  ;;  %7918 = vmatmul.mubr.msk.bf16.vlgmr.msra.gmra.mrb[180].mxu0 %vm2072_vm2, %v5913_v27  ;;  %7934 = vmatpush3.bf16.msra.mxu1 %v6063_v43 }
 0xd05   : > { %7928 = vmatpush3.bf16.msra.mxu0 %v6017_v44  ;;  %7929 = vmatprep.mubr.msk.bf16.mxu0 %vm8177_vm0, %v8176_v1 }
 0xd06   : > { %7935 = vmatprep.mubr.msk.bf16.mxu1 %vm8177_vm0, %v8176_v1  ;;  %7939 = vmatprep.subr.bf16.mxu0 %v8176_v1 }
 0xd07   : > { %7945 = vmatprep.subr.bf16.mxu1 %v8176_v1 }
 0xd08   : > { %v5723_v52 = vpop.f32.mrb[168].mxu1 }
 0xd09   : > { %v5677_v49 = vpop.f32.mrb[168].mxu0  ;;  %v5916_v53 = vpack.c.bf16 %v5723_v52, %v5723_v52  ;;  %v7889_v48 = vpop.f32.mrb[169].mxu1 }
 0xd0a   : > { %v5915_v9 = vpack.c.bf16 %v5677_v49, %v5677_v49  ;;  %v7883_v56 = vpop.f32.mrb[169].mxu0  ;;  %v5726_v57 = vpop.f32.mrb[170].mxu1 }
 0xd0b   : > { %v5680_v17 = vpop.f32.mrb[170].mxu0  ;;  %v7890_v58 = vpop.f32.mrb[171].mxu1  ;;  %7936 = vmatmul.mubr.msk.bf16.vlgmr.msra.gmra.mrb[184].mxu1 %vm2072_vm2, %v5916_v53 }
 0xd0c   : > { %v7884_v55 = vpop.f32.mrb[171].mxu0  ;;  %7930 = vmatmul.mubr.msk.bf16.vlgmr.msra.gmra.mrb[184].mxu0 %vm2072_vm2, %v5915_v9  ;;  %7946 = vmatpush3.bf16.msra.mxu1 %v6155_v8 }
 0xd0d   : > { %7940 = vmatpush3.bf16.msra.mxu0 %v6109_v16  ;;  %7941 = vmatprep.mubr.msk.bf16.mxu0 %vm8177_vm0, %v8176_v1 }
 0xd0e   : > { %7947 = vmatprep.mubr.msk.bf16.mxu1 %vm8177_vm0, %v8176_v1  ;;  %7951 = vmatprep.subr.bf16.mxu0 %v8176_v1 }
 0xd0f   : > { %7957 = vmatprep.subr.bf16.mxu1 %v8176_v1 }
 0xd10   : > { %v5815_v30 = vpop.f32.mrb[172].mxu1 }
 0xd11   : > { %v5769_v40 = vpop.f32.mrb[172].mxu0  ;;  %v5918_v61 = vpack.c.bf16 %v5815_v30, %v5815_v30  ;;  %v7901_v2 = vpop.f32.mrb[173].mxu1 }
 0xd12   : > { %v5917_v5 = vpack.c.bf16 %v5769_v40, %v5769_v40  ;;  %v7895_v63 = vpop.f32.mrb[173].mxu0  ;;  %v5818_v10 = vpop.f32.mrb[174].mxu1 }
 0xd13   : > { %v5772_v6 = vpop.f32.mrb[174].mxu0  ;;  %v7902_v11 = vpop.f32.mrb[175].mxu1  ;;  %7948 = vmatmul.mubr.msk.bf16.vlgmr.msra.gmra.mrb[188].mxu1 %vm2072_vm2, %v5918_v61 }
 0xd14   : > { %v7896_v12 = vpop.f32.mrb[175].mxu0  ;;  %7942 = vmatmul.mubr.msk.bf16.vlgmr.msra.gmra.mrb[188].mxu0 %vm2072_vm2, %v5917_v5  ;;  %7958 = vmatpush3.bf16.msra.mxu1 %v6247_v3  ;;  %v6990_v3 = vld [vmem:[%s9596_s9 + $0x1] ss:$0 sm:$0xff] }
 0xd15   : > { %7952 = vmatpush3.bf16.msra.mxu0 %v6201_v62  ;;  %7953 = vmatprep.mubr.msk.bf16.mxu0 %vm8177_vm0, %v8176_v1 }
 0xd16   : > { %7959 = vmatprep.mubr.msk.bf16.mxu1 %vm8177_vm0, %v8176_v1  ;;  %7963 = vmatprep.subr.bf16.mxu0 %v8176_v1 }
 0xd17   : > { %7971 = vmatprep.subr.bf16.mxu1 %v8176_v1 }
 0xd18   : > { %v5907_v13 = vpop.f32.mrb[176].mxu1 }
 0xd19   : > { %v5861_v60 = vpop.f32.mrb[176].mxu0  ;;  %v5920_v0 = vpack.c.bf16 %v5907_v13, %v5907_v13  ;;  %v7913_v14 = vpop.f32.mrb[177].mxu1 }
 0xd1a   : > { %v5919_v15 = vpack.c.bf16 %v5861_v60, %v5861_v60  ;;  %v7907_v18 = vpop.f32.mrb[177].mxu0  ;;  %v5910_v20 = vpop.f32.mrb[178].mxu1 }
 0xd1b   : > { %v5864_v19 = vpop.f32.mrb[178].mxu0  ;;  %v7914_v21 = vpop.f32.mrb[179].mxu1  ;;  %7960 = vmatmul.mubr.msk.bf16.vlgmr.msra.gmra.mrb[192].mxu1 %vm2072_vm2, %v5920_v0  ;;  %v8091_v18 = vld [vmem:[%s9597_s10 + $0x18] sm:$0xff]  }
 0xd1c   : > { %v7908_v23 = vpop.f32.mrb[179].mxu0  ;;  %7954 = vmatmul.mubr.msk.bf16.vlgmr.msra.gmra.mrb[192].mxu0 %vm2072_vm2, %v5919_v15  ;;  %7975 = vmatprep.mubr.msk.bf16.mxu1 %vm8177_vm0, %v8176_v1  ;;  %v8090_v15 = vld [vmem:[%s9597_s10 + $0x10] sm:$0xff]  }
 0xd1d   : > { %7967 = vmatprep.mubr.msk.bf16.mxu0 %vm8177_vm0, %v8176_v1  ;;  %7964 = vmatpush3.bf16.msra.mxu0 %v8090_v15  ;;  %v6993_v23 = vld [vmem:[%s9601_s14 + $0x2] ss:$0 sm:$0xff] }
 0xd1e   : > { %7965 = vmatprep.subr.bf16.mxu0 %v8176_v1 }
 0xd21   : > { %7966 = vmatpush3.bf16.msra.mxu0 %v8091_v18 }
 0xdd6   : > { %v6007_v24 = vpop.f32.mrb[180].mxu1 }
 0xdd7   : > { %v5961_v25 = vpop.f32.mrb[180].mxu0  ;;  %v6290_v4 = vsel %vm3295_vm7, %v6007_v24, 0.0  ;;  %v7925_v22 = vpop.f32.mrb[181].mxu1 }
 0xdd8   : > { %v6289_v46 = vsel %vm3295_vm7, %v5961_v25, 0.0  ;;  %v7919_v47 = vpop.f32.mrb[181].mxu0  ;;  %v6010_v26 = vpop.f32.mrb[182].mxu1  ;;  %v6994_v25 = vld [vmem:[%s9602_s15 + $0x2] ss:$0 sm:$0xff] }
 0xdd9   : > { %v6291_v28 = vadd.f32 %v6290_v4, %v6289_v46  ;;  %v5964_v33 = vpop.f32.mrb[182].mxu0  ;;  %v7926_v34 = vpop.f32.mrb[183].mxu1  ;;  %v8092_v47 = vld [vmem:[%s9599_s12 + $0x10] sm:$0xff]   ;;  %v8093_v26 = vld [vmem:[%s9599_s12 + $0x18] sm:$0xff]  }
 0xdda   : > { %v7920_v29 = vpop.f32.mrb[183].mxu0  ;;  %7972 = vmatpush3.bf16.msra.mxu1 %v8092_v47 }
 0xddb   : > { %7973 = vmatprep.subr.bf16.mxu1 %v8176_v1  ;;  %v7009_v1 = vld [vmem:[%s9600_s13 + $0x1] ss:$0 sm:$0xff] }
 0xdde   : > { %v6099_v31 = vpop.f32.mrb[184].mxu1  ;;  %7974 = vmatpush3.bf16.msra.mxu1 %v8093_v26 }
 0xddf   : > { %v6053_v35 = vpop.f32.mrb[184].mxu0  ;;  %v7937_v36 = vpop.f32.mrb[185].mxu1  ;;  %v6294_v44 = vsel %vm3295_vm7, %v6099_v31, 0.0 }
 0xde0   : > { %v6292_v37 = vsel %vm3295_vm7, %v6053_v35, 0.0  ;;  %v7931_v38 = vpop.f32.mrb[185].mxu0  ;;  %v6102_v43 = vpop.f32.mrb[186].mxu1 }
 0xde1   : > { %v6293_v27 = vadd.f32 %v6292_v37, %v6291_v28  ;;  %v6056_v32 = vpop.f32.mrb[186].mxu0  ;;  %v7938_v41 = vpop.f32.mrb[187].mxu1  ;;  %v7005_v28 = vld [vmem:[%s9598_s11 + $0x1] ss:$0 sm:$0xff] }
 0xde2   : > { %v7932_v45 = vpop.f32.mrb[187].mxu0 }
 0xde3   : > { %v6295_v7 = vadd.f32 %v6294_v44, %v6293_v27 }
 0xde6   : > { %v6191_v42 = vpop.f32.mrb[188].mxu1 }
 0xde7   : > { %v6145_v50 = vpop.f32.mrb[188].mxu0  ;;  %v7949_v51 = vpop.f32.mrb[189].mxu1  ;;  %v6298_v56 = vsel %vm3295_vm7, %v6191_v42, 0.0 }
 0xde8   : > { %v6296_v52 = vsel %vm3295_vm7, %v6145_v50, 0.0  ;;  %v7943_v49 = vpop.f32.mrb[189].mxu0  ;;  %v6194_v53 = vpop.f32.mrb[190].mxu1 }
 0xde9   : > { %v6297_v48 = vadd.f32 %v6296_v52, %v6295_v7  ;;  %v6148_v8 = vpop.f32.mrb[190].mxu0  ;;  %v7950_v9 = vpop.f32.mrb[191].mxu1 }
 0xdea   : > { %v7944_v57 = vpop.f32.mrb[191].mxu0  ;;  %v7015_v9 = vld [vmem:[%s9601_s14 + $0x3] ss:$0 sm:$0xff] }
 0xdeb   : > { %v6299_v16 = vadd.f32 %v6298_v56, %v6297_v48  ;;  %v7016_v57 = vld [vmem:[%s9602_s15 + $0x3] ss:$0 sm:$0xff] }
 0xdee   : > { %v6283_v17 = vpop.f32.mrb[192].mxu1 }
 0xdef   : > { %v6237_v58 = vpop.f32.mrb[192].mxu0  ;;  %v7961_v55 = vpop.f32.mrb[193].mxu1  ;;  %v6302_v5 = vsel %vm3295_vm7, %v6283_v17, 0.0 }
 0xdf0   : > { %v6300_v54 = vsel %vm3295_vm7, %v6237_v58, 0.0  ;;  %v7955_v59 = vpop.f32.mrb[193].mxu0  ;;  %v6286_v30 = vpop.f32.mrb[194].mxu1 }
 0xdf1   : > { %v6301_v40 = vadd.f32 %v6300_v54, %v6299_v16  ;;  %v6240_v61 = vpop.f32.mrb[194].mxu0  ;;  %v7962_v2 = vpop.f32.mrb[195].mxu1 }
 0xdf2   : > { %v7956_v63 = vpop.f32.mrb[195].mxu0 }
 0xdf3   : > { %v6303_v10 = vadd.f32 %v6302_v5, %v6301_v40  ;;  %v7019_v63 = vld [vmem:[%s9601_s14 + $0x4] ss:$0 sm:$0xff] }
 0xdf5   : > { %v6310_v62 = vadd.f32 %v6990_v3, %v6303_v10 }
 0xdf7   : > { %v6311_v6 = vadd.f32 %v6310_v62, %v8950_v39  ;;  %v7020_v62 = vld [vmem:[%s9602_s15 + $0x4] ss:$0 sm:$0xff] }
 0xdf9   : > { %v6316_v11 = vsel %vm3295_vm7, %v6311_v6, 0.0 }
 0xdfa   : > { %6317 = vadd.xlane.f32.xlu0 %v6316_v11 }
 0xe87   : > { %v6318_v12 = vpop.xlane.xlu0 %6317 }
 0xe88   : > { %v6319_v13 = vmul.f32 0.03125, %v6318_v12 }
 0xe8a   : > { %v6320_v60 = vsub.f32 %v6311_v6, %v6319_v13 }
 0xe8c   : > { %v6321_v0 = vmul.f32 %v6320_v60, %v6320_v60 }
 0xe8e   : > { %v6322_v14 = vsel %vm3295_vm7, %v6321_v0, 0.0 }
 0xe8f   : > { %6323 = vadd.xlane.f32.xlu1 %v6322_v14 }
 0xf1c   : > { %v6324_v39 = vpop.xlane.xlu1 %6323 }
 0xf1d   : > { %v6325_v20 = vmul.f32 0.03125, %v6324_v39 }
 0xf1f   : > { %v6326_v19 = vadd.f32 1e-05, %v6325_v20 }
 0xf21   : > { %8162 = vrsqrt.f32 %v6326_v19 }
 0xf2b   : > { %v8163_v21 = vpop.eup %8162 }
 0xf2c   : > { %v6328_v24 = vmul.f32 %v8163_v21, %v6320_v60 }
 0xf2e   : > { %v6335_v4 = vmul.f32 %v6993_v23, %v6328_v24 }
 0xf30   : > { %v6342_v22 = vadd.f32 %v6994_v25, %v6335_v4 }
 0xf32   : > { %v6357_v46 = vpack.c.bf16 %v6342_v22, %v6342_v22 }
 0xf34   : > { %7968 = vmatmul.mubr.msk.bf16.vlgmr.msra.gmra.mrb[196].mxu0 %vm712_vm1, %v6357_v46 }
0x1007   : > { %v6413_v33 = vpop.f32.mrb[196].mxu0 }
0x1008   : > { %v6414_v34 = vadd.f32 %v7005_v28, %v6413_v33  ;;  %v7969_v29 = vpop.f32.mrb[197].mxu0 }
0x1009   : > { %v6416_v31 = vpop.f32.mrb[198].mxu0 }
0x100a   : > { %v6419_v35 = vmax.f32 %v6414_v34, 0.0  ;;  %v7970_v36 = vpop.f32.mrb[199].mxu0 }
0x100c   : > { %v6420_v37 = vpack.c.bf16 %v6419_v35, %v6419_v35 }
0x100e   : > { %7976 = vmatmul.mubr.msk.bf16.vlgmr.msra.gmra.mrb[196].mxu1 %vm712_vm1, %v6420_v37 }
0x10e1   : > { %v6476_v38 = vpop.f32.mrb[196].mxu1 }
0x10e2   : > { %v6477_v43 = vadd.f32 %v7009_v1, %v6476_v38  ;;  %v7977_v27 = vpop.f32.mrb[197].mxu1 }
0x10e3   : > { %v6479_v32 = vpop.f32.mrb[198].mxu1 }
0x10e4   : > { %v7978_v41 = vpop.f32.mrb[199].mxu1  ;;  %v6482_v44 = vadd.f32 %v6477_v43, %v6342_v22 }
0x10e6   : > { %v6487_v45 = vsel %vm3295_vm7, %v6482_v44, 0.0 }
0x10e7   : > { %6488 = vadd.xlane.f32.xlu0 %v6487_v45 }
0x1174   : > { %v6489_v7 = vpop.xlane.xlu0 %6488 }
0x1175   : > { %v6490_v42 = vmul.f32 0.03125, %v6489_v7 }
0x1177   : > { %v6491_v50 = vsub.f32 %v6482_v44, %v6490_v42 }
0x1179   : > { %v6492_v51 = vmul.f32 %v6491_v50, %v6491_v50 }
0x117b   : > { %v6493_v52 = vsel %vm3295_vm7, %v6492_v51, 0.0 }
0x117c   : > { %6494 = vadd.xlane.f32.xlu1 %v6493_v52 }
0x1209   : > { %v6495_v49 = vpop.xlane.xlu1 %6494 }
0x120a   : > { %v6496_v53 = vmul.f32 0.03125, %v6495_v49 }
0x120c   : > { %v6497_v48 = vadd.f32 1e-05, %v6496_v53 }
0x120e   : > { %8164 = vrsqrt.f32 %v6497_v48 }
0x1218   : > { %v8165_v8 = vpop.eup %8164 }
0x1219   : > { %v6499_v56 = vmul.f32 %v8165_v8, %v6491_v50 }
0x121b   : > { %v6506_v16 = vmul.f32 %v7015_v9, %v6499_v56 }
0x121d   : > { %v6513_v17 = vadd.f32 %v7016_v57, %v6506_v16 }
0x121f   : > { %v6518_v58 = vsel %vm3295_vm7, %v6513_v17, 0.0 }
0x1220   : > { %6519 = vadd.xlane.f32.xlu0 %v6518_v58 }
0x12ad   : > { %v6520_v55 = vpop.xlane.xlu0 %6519 }
0x12ae   : > { %v6521_v54 = vmul.f32 0.03125, %v6520_v55 }
0x12b0   : > { %v6522_v59 = vsub.f32 %v6513_v17, %v6521_v54 }
0x12b2   : > { %v6523_v30 = vmul.f32 %v6522_v59, %v6522_v59 }
0x12b4   : > { %v6524_v40 = vsel %vm3295_vm7, %v6523_v30, 0.0 }
0x12b5   : > { %6525 = vadd.xlane.f32.xlu1 %v6524_v40 }
0x1342   : > { %v6526_v61 = vpop.xlane.xlu1 %6525 }
0x1343   : > { %v6527_v2 = vmul.f32 0.03125, %v6526_v61 }
0x1345   : > { %v6528_v3 = vadd.f32 1e-05, %v6527_v2 }
0x1347   : > { %8166 = vrsqrt.f32 %v6528_v3 }
0x1351   : > { %v8167_v5 = vpop.eup %8166 }
0x1352   : > { %v6530_v10 = vmul.f32 %v8167_v5, %v6522_v59 }
0x1354   : > { %v6537_v6 = vmul.f32 %v7019_v63, %v6530_v10 }
0x1356   : > { %v6544_v11 = vadd.f32 %v7020_v62, %v6537_v6 }
0x1358   : > { %6545 = vst.msk [vmem:[%s516_s27] sm:$0x1f] %vm3295_vm7, %v6544_v11 }
0x1359 PF: > { %s26_s21 = sadd.s32 1, %s8174_s21  }
0x135a   : > { %p23_p4 = scmp.ge.s32.totalorder %s26_s21, 4  }
0x135c   :  { %25 = sbr.rel (!%p23_p4) target bundleno = 2 (0x2), region = 134 }

// kernel: full_transformer_forward.6
= control target key start
LH: loop header
LB: loop body
LE: loop exit
PB: predicated region body
PF: predicated region fallthrough
CT: control target
= control target key end

     0   :  { %s18137_s0 = inlined_call_operand.vmem [shape: f32[4,32], index: 0, kind: input, shape index: {}]   ;;  %s18138_s1 = inlined_call_operand.vmem [shape: f32[2,5,32], index: 1, kind: input, shape index: {}]   ;;  %s18139_s2 = inlined_call_operand.vmem [shape: bf16[2,8,32,4], index: 2, kind: input, shape index: {}]   ;;  %s18140_s3 = inlined_call_operand.vmem [shape: bf16[2,8,32,4], index: 3, kind: input, shape index: {}]   ;;  %s18141_s4 = inlined_call_operand.vmem [shape: bf16[2,8,32,4], index: 4, kind: input, shape index: {}]   ;;  %s18142_s5 = inlined_call_operand.vmem [shape: f32[2,8,1,4], index: 5, kind: input, shape index: {}]   ;;  %s18143_s6 = inlined_call_operand.vmem [shape: f32[2,8,1,4], index: 6, kind: input, shape index: {}]   ;;  %s18144_s7 = inlined_call_operand.vmem [shape: f32[2,8,1,4], index: 7, kind: input, shape index: {}]   ;;  %s18145_s8 = inlined_call_operand.vmem [shape: bf16[2,8,4,32], index: 8, kind: input, shape index: {}]   ;;  %s18146_s9 = inlined_call_operand.vmem [shape: f32[2,1,32], index: 9, kind: input, shape index: {}]   ;;  %s18147_s10 = inlined_call_operand.vmem [shape: bf16[2,8,32,4], index: 10, kind: input, shape index: {}]   ;;  %s18148_s11 = inlined_call_operand.vmem [shape: bf16[2,8,32,4], index: 11, kind: input, shape index: {}]   ;;  %s18149_s12 = inlined_call_operand.vmem [shape: bf16[2,8,32,4], index: 12, kind: input, shape index: {}]   ;;  %s18150_s13 = inlined_call_operand.vmem [shape: f32[2,8,1,4], index: 13, kind: input, shape index: {}]   ;;  %s18151_s14 = inlined_call_operand.vmem [shape: f32[2,8,1,4], index: 14, kind: input, shape index: {}]   ;;  %s18152_s15 = inlined_call_operand.vmem [shape: f32[2,8,1,4], index: 15, kind: input, shape index: {}]   ;;  %s18153_s16 = inlined_call_operand.vmem [shape: bf16[2,8,4,32], index: 16, kind: input, shape index: {}]   ;;  %s18154_s17 = inlined_call_operand.vmem [shape: f32[2,1,32], index: 17, kind: input, shape index: {}]   ;;  %s18155_s18 = inlined_call_operand.vmem [shape: bf16[2,32,32], index: 18, kind: input, shape index: {}]   ;;  %s18156_s19 = inlined_call_operand.vmem [shape: f32[2,1,32], index: 19, kind: input, shape index: {}]   ;;  %s18157_s20 = inlined_call_operand.vmem [shape: bf16[2,32,32], index: 20, kind: input, shape index: {}]   ;;  %s18158_s21 = inlined_call_operand.vmem [shape: f32[2,1,32], index: 21, kind: input, shape index: {}]   ;;  %s18159_s22 = inlined_call_operand.vmem [shape: f32[7,1,32], index: 22, kind: input, shape index: {}]   ;;  %s18160_s23 = inlined_call_operand.vmem [shape: f32[7,1,32], index: 23, kind: input, shape index: {}]   ;;  %s18161_s24 = inlined_call_operand.vmem [shape: f32[2,4,32], index: 24, kind: output, shape index: {}]  }
   0x1   :  { %18174 = sst [smem:[#allocation3_spill]] %s18137_s0 }
   0x2   :  { %18175 = sst [smem:[#allocation4_spill]] %s18138_s1 }
   0x3   :  { %18176 = sst [smem:[#allocation5_spill]] %s18139_s2 }
   0x4   :  { %18177 = sst [smem:[#allocation6_spill]] %s18140_s3 }
   0x5   :  { %18178 = sst [smem:[#allocation7_spill]] %s18141_s4 }
   0x6   :  { %18179 = sst [smem:[#allocation8_spill]] %s18142_s5  ;;  %s15625_s5 = smov 0  }
   0x7   :  { %18180 = sst [smem:[#allocation9_spill]] %s18143_s6 }
   0x8   :  { %18181 = sst [smem:[#allocation10_spill]] %s18144_s7 }
   0x9   :  { %18182 = sst [smem:[#allocation11_spill]] %s18145_s8 }
   0xa   :  { %18183 = sst [smem:[#allocation12_spill]] %s18147_s10 }
   0xb   :  { %18184 = sst [smem:[#allocation13_spill]] %s18161_s24 }
   0xc LB: > { %18185 = sst [smem:[#allocation2_spill]] %s15495_s5  ;;  %p12468_p0 = scmp.ge.s32.totalorder %s15495_s5, 1  ;;  %s15495_s5 = sphi %s15625_s5, %s34_s5  }
   0xd   : > { %p661_p1 = scmp.lt.s32.totalorder %s15495_s5, 3 }
   0xf   : > { %p662_p2 = pnand %p12468_p0, %p661_p1 }
  0x10   : > { %s18186_s6 = sld [smem:[#allocation5_spill]] (!%p662_p2)  ;;  %v15497_v1 = vmov (!%p662_p2), 0.0   ;;  %vm15498_vm0 = vmmov (!%p662_p2), 0   ;;  %s18187_s4 = sld [smem:[#allocation3_spill]] (!%p662_p2)  ;;  %vm926_vm1 = vcmask (!%p662_p2), 261120   ;;  %vm2286_vm2 = vcmask (!%p662_p2), 31744  }
  0x11   : > { %665 = sbr.rel (%p662_p2) target bundleno = 8077 (0x1f8d), region = 116  ;;  %13759 = vmatprep.subr.bf16.mxu0 (!%p662_p2), %v15497_v1  ;;  %13767 = vmatprep.subr.bf16.mxu1 (!%p662_p2), %v15497_v1  ;;  %s18188_s29 = sld [smem:[#allocation6_spill]] (!%p662_p2)  ;;  %vm2763_vm3 = vcmask (!%p662_p2), 1041408   ;;  %vm2655_vm4 = vcmask (!%p662_p2), 27648   ;;  %vm3505_vm5 = vcmask (!%p662_p2), 257024   ;;  %vm5589_vm6 = vcmask (!%p662_p2), 1042432  }
  0x12   : > { %13763 = vmatprep.mubr.msk.bf16.mxu0 (!%p662_p2), %vm15498_vm0, %v15497_v1  ;;  %13771 = vmatprep.mubr.msk.bf16.mxu1 (!%p662_p2), %vm15498_vm0, %v15497_v1  ;;  %s18189_s30 = sld [smem:[#allocation7_spill]] (!%p662_p2)  ;;  %s18190_s28 = sld [smem:[#allocation9_spill]] (!%p662_p2)  ;;  %vm5480_vm7 = vcmask (!%p662_p2), 35840   ;;  %vm5585_vm8 = vcmask (!%p662_p2), 39936  }
  0x13   : > { %s18191_s25 = sld [smem:[#allocation8_spill]] (!%p662_p2)  ;;  %s18192_s27 = sld [smem:[#allocation10_spill]] (!%p662_p2) }
  0x14   : > { %s18193_s7 = sld [smem:[#allocation11_spill]] (!%p662_p2)  ;;  %s18194_s10 = sld [smem:[#allocation12_spill]] (!%p662_p2) }
  0x15   : > { %s18195_s24 = sadd.s32 (!%p662_p2), 4294967295, %s15495_s5   ;;  %s18197_s5 = sld [smem:[#allocation4_spill]] (!%p662_p2) }
  0x16   : > { %v15146_v0 = vld [vmem:[%s18186_s6] sm:$0xff] (!%p662_p2)   ;;  %v15147_v2 = vld [vmem:[%s18186_s6 + $0x10] sm:$0xff] (!%p662_p2)   ;;  %v15148_v3 = vld [vmem:[%s18186_s6 + $0x8] sm:$0xff] (!%p662_p2)   ;;  %p725_p3 = scmp.lt.s32.totalorder (!%p662_p2), %s18195_s24, 1  ;;  %s18196_s8 = smov (!%p662_p2), %s18195_s24 }
  0x17   : > { %13760 = vmatpush3.bf16.msra.mxu0 (!%p662_p2), %v15146_v0  ;;  %13768 = vmatpush3.bf16.msra.mxu1 (!%p662_p2), %v15147_v2  ;;  %v15149_v4 = vld [vmem:[%s18186_s6 + $0x18] sm:$0xff] (!%p662_p2)   ;;  %v734_v5 = vld [vmem:[%s18187_s4] sm:$0xf] (!%p662_p2)  ;;  %v15151_v8 = vld [vmem:[%s18186_s6 + $0x30] sm:$0xff] (!%p662_p2)  }
  0x18   : > { %13761 = vmatprep.subr.bf16.mxu0 %v15497_v1  ;;  %13769 = vmatprep.subr.bf16.mxu1 %v15497_v1  ;;  %v15656_v6 = vpack.c.bf16 %v734_v5, %v734_v5  ;;  %v15150_v7 = vld [vmem:[%s18186_s6 + $0x20] sm:$0xff]   ;;  %v15152_v9 = vld [vmem:[%s18186_s6 + $0x28] sm:$0xff]   ;;  %v15153_v10 = vld [vmem:[%s18186_s6 + $0x38] sm:$0xff]   ;;  %s18202_s8 = smov (!%p725_p3, %s18196_s8), 1 }
  0x19   : > { %v15154_v11 = vld [vmem:[%s18186_s6 + $0x40] sm:$0xff]   ;;  %v15155_v12 = vld [vmem:[%s18186_s6 + $0x50] sm:$0xff]   ;;  %v15156_v13 = vld [vmem:[%s18186_s6 + $0x48] sm:$0xff]   ;;  %s12469_s2 = sshll.u32 %s18202_s8, 3  ;;  %s12470_s24 = sshll.u32 %s18202_s8, 2 }
  0x1a   : > { %v15157_v14 = vld [vmem:[%s18186_s6 + $0x58] sm:$0xff]   ;;  %v15158_v15 = vld [vmem:[%s18186_s6 + $0x60] sm:$0xff]   ;;  %v15159_v16 = vld [vmem:[%s18186_s6 + $0x70] sm:$0xff]  }
  0x1b   : > { %13762 = vmatpush3.bf16.msra.mxu0 %v15148_v3  ;;  %13770 = vmatpush3.bf16.msra.mxu1 %v15149_v4  ;;  %v15160_v17 = vld [vmem:[%s18186_s6 + $0x68] sm:$0xff]   ;;  %v15161_v18 = vld [vmem:[%s18186_s6 + $0x78] sm:$0xff]   ;;  %v15162_v19 = vld [vmem:[%s18188_s29] sm:$0xff]  }
  0x1c   : > { %13775 = vmatprep.subr.bf16.mxu0 %v15497_v1  ;;  %13783 = vmatprep.subr.bf16.mxu1 %v15497_v1  ;;  %v15163_v20 = vld [vmem:[%s18188_s29 + $0x10] sm:$0xff]   ;;  %v15164_v21 = vld [vmem:[%s18188_s29 + $0x8] sm:$0xff]   ;;  %v15165_v22 = vld [vmem:[%s18188_s29 + $0x18] sm:$0xff]  }
  0x1d   : > { %v15166_v23 = vld [vmem:[%s18188_s29 + $0x20] sm:$0xff]   ;;  %v15167_v24 = vld [vmem:[%s18188_s29 + $0x30] sm:$0xff]   ;;  %v15168_v25 = vld [vmem:[%s18188_s29 + $0x28] sm:$0xff]  }
  0x1e   : > { %13764 = vmatmul.mubr.msk.bf16.vlgmr.msra.gmra.mrb[0].mxu0 %vm926_vm1, %v15656_v6  ;;  %13772 = vmatmul.mubr.msk.bf16.vlgmr.msra.gmra.mrb[0].mxu1 %vm926_vm1, %v15656_v6  ;;  %v15169_v26 = vld [vmem:[%s18188_s29 + $0x38] sm:$0xff]   ;;  %v15170_v27 = vld [vmem:[%s18188_s29 + $0x40] sm:$0xff]   ;;  %v15171_v28 = vld [vmem:[%s18188_s29 + $0x50] sm:$0xff]  }
  0x1f   : > { %13776 = vmatpush3.bf16.msra.mxu0 %v15150_v7  ;;  %13784 = vmatpush3.bf16.msra.mxu1 %v15151_v8  ;;  %v15172_v29 = vld [vmem:[%s18188_s29 + $0x48] sm:$0xff]   ;;  %v15173_v30 = vld [vmem:[%s18188_s29 + $0x58] sm:$0xff]   ;;  %v15174_v31 = vld [vmem:[%s18188_s29 + $0x60] sm:$0xff]  }
  0x20   : > { %13777 = vmatprep.subr.bf16.mxu0 %v15497_v1  ;;  %13785 = vmatprep.subr.bf16.mxu1 %v15497_v1  ;;  %v15175_v32 = vld [vmem:[%s18188_s29 + $0x70] sm:$0xff]   ;;  %v15176_v33 = vld [vmem:[%s18188_s29 + $0x68] sm:$0xff]   ;;  %v15177_v34 = vld [vmem:[%s18188_s29 + $0x78] sm:$0xff]  }
  0x21   : > { %13779 = vmatprep.mubr.msk.bf16.mxu0 %vm15498_vm0, %v15497_v1  ;;  %13787 = vmatprep.mubr.msk.bf16.mxu1 %vm15498_vm0, %v15497_v1  ;;  %v15178_v35 = vld [vmem:[%s18189_s30] sm:$0xff]   ;;  %v15179_v36 = vld [vmem:[%s18189_s30 + $0x10] sm:$0xff]   ;;  %v15180_v37 = vld [vmem:[%s18189_s30 + $0x8] sm:$0xff]  }
  0x22   : > { %v15181_v38 = vld [vmem:[%s18189_s30 + $0x18] sm:$0xff]   ;;  %v15182_v39 = vld [vmem:[%s18189_s30 + $0x20] sm:$0xff]   ;;  %v15183_v40 = vld [vmem:[%s18189_s30 + $0x30] sm:$0xff]  }
  0x23   : > { %13778 = vmatpush3.bf16.msra.mxu0 %v15152_v9  ;;  %13786 = vmatpush3.bf16.msra.mxu1 %v15153_v10  ;;  %v15184_v41 = vld [vmem:[%s18189_s30 + $0x28] sm:$0xff]   ;;  %v15185_v42 = vld [vmem:[%s18189_s30 + $0x38] sm:$0xff]   ;;  %v15186_v43 = vld [vmem:[%s18189_s30 + $0x40] sm:$0xff]  }
  0x24   : > { %13791 = vmatprep.subr.bf16.mxu0 %v15497_v1  ;;  %13799 = vmatprep.subr.bf16.mxu1 %v15497_v1  ;;  %v15187_v44 = vld [vmem:[%s18189_s30 + $0x50] sm:$0xff]   ;;  %v15188_v45 = vld [vmem:[%s18189_s30 + $0x48] sm:$0xff]   ;;  %v15189_v46 = vld [vmem:[%s18189_s30 + $0x58] sm:$0xff]  }
  0x25   : > { %v15190_v47 = vld [vmem:[%s18189_s30 + $0x60] sm:$0xff]   ;;  %v15191_v48 = vld [vmem:[%s18189_s30 + $0x70] sm:$0xff]   ;;  %v15192_v49 = vld [vmem:[%s18189_s30 + $0x68] sm:$0xff]  }
  0x26   : > { %13780 = vmatmul.mubr.msk.bf16.vlgmr.msra.gmra.mrb[4].mxu0 %vm926_vm1, %v15656_v6  ;;  %13788 = vmatmul.mubr.msk.bf16.vlgmr.msra.gmra.mrb[4].mxu1 %vm926_vm1, %v15656_v6  ;;  %v15193_v50 = vld [vmem:[%s18189_s30 + $0x78] sm:$0xff]  }
  0x27   : > { %13792 = vmatpush3.bf16.msra.mxu0 %v15154_v11  ;;  %13800 = vmatpush3.bf16.msra.mxu1 %v15155_v12 }
  0x28   : > { %13793 = vmatprep.subr.bf16.mxu0 %v15497_v1  ;;  %13801 = vmatprep.subr.bf16.mxu1 %v15497_v1 }
  0x29   : > { %13795 = vmatprep.mubr.msk.bf16.mxu0 %vm15498_vm0, %v15497_v1  ;;  %13803 = vmatprep.mubr.msk.bf16.mxu1 %vm15498_vm0, %v15497_v1 }
  0x2b   : > { %13794 = vmatpush3.bf16.msra.mxu0 %v15156_v13  ;;  %13802 = vmatpush3.bf16.msra.mxu1 %v15157_v14 }
  0x2c   : > { %13807 = vmatprep.subr.bf16.mxu0 %v15497_v1  ;;  %13815 = vmatprep.subr.bf16.mxu1 %v15497_v1 }
  0x2e   : > { %13796 = vmatmul.mubr.msk.bf16.vlgmr.msra.gmra.mrb[8].mxu0 %vm926_vm1, %v15656_v6  ;;  %13804 = vmatmul.mubr.msk.bf16.vlgmr.msra.gmra.mrb[8].mxu1 %vm926_vm1, %v15656_v6 }
  0x2f   : > { %13808 = vmatpush3.bf16.msra.mxu0 %v15158_v15  ;;  %13816 = vmatpush3.bf16.msra.mxu1 %v15159_v16 }
  0x30   : > { %13809 = vmatprep.subr.bf16.mxu0 %v15497_v1  ;;  %13817 = vmatprep.subr.bf16.mxu1 %v15497_v1 }
  0x31   : > { %13811 = vmatprep.mubr.msk.bf16.mxu0 %vm15498_vm0, %v15497_v1  ;;  %13819 = vmatprep.mubr.msk.bf16.mxu1 %vm15498_vm0, %v15497_v1 }
  0x33   : > { %13810 = vmatpush3.bf16.msra.mxu0 %v15160_v17  ;;  %13818 = vmatpush3.bf16.msra.mxu1 %v15161_v18 }
  0x34   : > { %13823 = vmatprep.subr.bf16.mxu0 %v15497_v1  ;;  %13831 = vmatprep.subr.bf16.mxu1 %v15497_v1 }
  0x36   : > { %13812 = vmatmul.mubr.msk.bf16.vlgmr.msra.gmra.mrb[12].mxu0 %vm926_vm1, %v15656_v6  ;;  %13820 = vmatmul.mubr.msk.bf16.vlgmr.msra.gmra.mrb[12].mxu1 %vm926_vm1, %v15656_v6 }
  0x37   : > { %13824 = vmatpush3.bf16.msra.mxu0 %v15162_v19  ;;  %13832 = vmatpush3.bf16.msra.mxu1 %v15163_v20  ;;  %v12503_v20 = vld [vmem:[%s18190_s28] ss:$0 sm:$0xff] }
  0x38   : > { %13825 = vmatprep.subr.bf16.mxu0 %v15497_v1  ;;  %13833 = vmatprep.subr.bf16.mxu1 %v15497_v1 }
  0x39   : > { %13827 = vmatprep.mubr.msk.bf16.mxu0 %vm15498_vm0, %v15497_v1  ;;  %13835 = vmatprep.mubr.msk.bf16.mxu1 %vm15498_vm0, %v15497_v1 }
  0x3b   : > { %13826 = vmatpush3.bf16.msra.mxu0 %v15164_v21  ;;  %13834 = vmatpush3.bf16.msra.mxu1 %v15165_v22  ;;  %v12504_v21 = vld [vmem:[%s18190_s28 + $0x1] ss:$0 sm:$0xff]  ;;  %v12471_v22 = vld [vmem:[%s18191_s25] ss:$0 sm:$0xff] }
  0x3c   : > { %13839 = vmatprep.subr.bf16.mxu0 %v15497_v1  ;;  %13847 = vmatprep.subr.bf16.mxu1 %v15497_v1 }
  0x3e   : > { %13828 = vmatmul.mubr.msk.bf16.vlgmr.msra.gmra.mrb[16].mxu0 %vm926_vm1, %v15656_v6  ;;  %13836 = vmatmul.mubr.msk.bf16.vlgmr.msra.gmra.mrb[16].mxu1 %vm926_vm1, %v15656_v6 }
  0x3f   : > { %13840 = vmatpush3.bf16.msra.mxu0 %v15166_v23  ;;  %13848 = vmatpush3.bf16.msra.mxu1 %v15167_v24  ;;  %v12472_v24 = vld [vmem:[%s18191_s25 + $0x1] ss:$0 sm:$0xff] }
  0x40   : > { %13841 = vmatprep.subr.bf16.mxu0 %v15497_v1  ;;  %13849 = vmatprep.subr.bf16.mxu1 %v15497_v1 }
  0x41   : > { %13843 = vmatprep.mubr.msk.bf16.mxu0 %vm15498_vm0, %v15497_v1  ;;  %13851 = vmatprep.mubr.msk.bf16.mxu1 %vm15498_vm0, %v15497_v1 }
  0x43   : > { %13842 = vmatpush3.bf16.msra.mxu0 %v15168_v25  ;;  %13850 = vmatpush3.bf16.msra.mxu1 %v15169_v26 }
  0x44   : > { %13855 = vmatprep.subr.bf16.mxu0 %v15497_v1  ;;  %13863 = vmatprep.subr.bf16.mxu1 %v15497_v1 }
  0x46   : > { %13844 = vmatmul.mubr.msk.bf16.vlgmr.msra.gmra.mrb[20].mxu0 %vm926_vm1, %v15656_v6  ;;  %13852 = vmatmul.mubr.msk.bf16.vlgmr.msra.gmra.mrb[20].mxu1 %vm926_vm1, %v15656_v6 }
  0x47   : > { %13856 = vmatpush3.bf16.msra.mxu0 %v15170_v27  ;;  %13864 = vmatpush3.bf16.msra.mxu1 %v15171_v28 }
  0x48   : > { %13857 = vmatprep.subr.bf16.mxu0 %v15497_v1  ;;  %13865 = vmatprep.subr.bf16.mxu1 %v15497_v1 }
  0x49   : > { %13859 = vmatprep.mubr.msk.bf16.mxu0 %vm15498_vm0, %v15497_v1  ;;  %13867 = vmatprep.mubr.msk.bf16.mxu1 %vm15498_vm0, %v15497_v1 }
  0x4b   : > { %13858 = vmatpush3.bf16.msra.mxu0 %v15172_v29  ;;  %13866 = vmatpush3.bf16.msra.mxu1 %v15173_v30 }
  0x4c   : > { %13871 = vmatprep.subr.bf16.mxu0 %v15497_v1  ;;  %13879 = vmatprep.subr.bf16.mxu1 %v15497_v1 }
  0x4e   : > { %13860 = vmatmul.mubr.msk.bf16.vlgmr.msra.gmra.mrb[24].mxu0 %vm926_vm1, %v15656_v6  ;;  %13868 = vmatmul.mubr.msk.bf16.vlgmr.msra.gmra.mrb[24].mxu1 %vm926_vm1, %v15656_v6 }
  0x4f   : > { %13872 = vmatpush3.bf16.msra.mxu0 %v15174_v31  ;;  %13880 = vmatpush3.bf16.msra.mxu1 %v15175_v32 }
  0x50   : > { %13873 = vmatprep.subr.bf16.mxu0 %v15497_v1  ;;  %13881 = vmatprep.subr.bf16.mxu1 %v15497_v1 }
  0x51   : > { %13875 = vmatprep.mubr.msk.bf16.mxu0 %vm15498_vm0, %v15497_v1  ;;  %13883 = vmatprep.mubr.msk.bf16.mxu1 %vm15498_vm0, %v15497_v1 }
  0x53   : > { %13874 = vmatpush3.bf16.msra.mxu0 %v15176_v33  ;;  %13882 = vmatpush3.bf16.msra.mxu1 %v15177_v34 }
  0x54   : > { %13887 = vmatprep.subr.bf16.mxu0 %v15497_v1  ;;  %13895 = vmatprep.subr.bf16.mxu1 %v15497_v1 }
  0x56   : > { %13876 = vmatmul.mubr.msk.bf16.vlgmr.msra.gmra.mrb[28].mxu0 %vm926_vm1, %v15656_v6  ;;  %13884 = vmatmul.mubr.msk.bf16.vlgmr.msra.gmra.mrb[28].mxu1 %vm926_vm1, %v15656_v6 }
  0x57   : > { %13888 = vmatpush3.bf16.msra.mxu0 %v15178_v35  ;;  %13891 = vmatprep.mubr.msk.bf16.mxu0 %vm15498_vm0, %v15497_v1 }
  0x58   : > { %13889 = vmatprep.subr.bf16.mxu0 %v15497_v1  ;;  %13899 = vmatprep.mubr.msk.bf16.mxu1 %vm15498_vm0, %v15497_v1 }
  0x59   : > { %13896 = vmatpush3.bf16.msra.mxu1 %v15179_v36 }
  0x5a   : > { %13897 = vmatprep.subr.bf16.mxu1 %v15497_v1 }
  0x5b   : > { %13890 = vmatpush3.bf16.msra.mxu0 %v15180_v37 }
  0x5c   : > { %13903 = vmatprep.subr.bf16.mxu0 %v15497_v1 }
  0x5d   : > { %13898 = vmatpush3.bf16.msra.mxu1 %v15181_v38 }
  0x5e   : > { %13892 = vmatmul.mubr.msk.bf16.vlgmr.msra.gmra.mrb[32].mxu0 %vm926_vm1, %v15656_v6  ;;  %13911 = vmatprep.subr.bf16.mxu1 %v15497_v1 }
  0x5f   : > { %13904 = vmatpush3.bf16.msra.mxu0 %v15182_v39  ;;  %13907 = vmatprep.mubr.msk.bf16.mxu0 %vm15498_vm0, %v15497_v1 }
  0x60   : > { %13900 = vmatmul.mubr.msk.bf16.vlgmr.msra.gmra.mrb[32].mxu1 %vm926_vm1, %v15656_v6  ;;  %13905 = vmatprep.subr.bf16.mxu0 %v15497_v1 }
  0x61   : > { %13912 = vmatpush3.bf16.msra.mxu1 %v15183_v40  ;;  %13915 = vmatprep.mubr.msk.bf16.mxu1 %vm15498_vm0, %v15497_v1  ;;  %v12505_v40 = vld [vmem:[%s18190_s28 + $0x2] ss:$0 sm:$0xff] }
  0x62   : > { %13913 = vmatprep.subr.bf16.mxu1 %v15497_v1 }
  0x63   : > { %13906 = vmatpush3.bf16.msra.mxu0 %v15184_v41 }
  0x64   : > { %13919 = vmatprep.subr.bf16.mxu0 %v15497_v1 }
  0x65   : > { %13914 = vmatpush3.bf16.msra.mxu1 %v15185_v42  ;;  %v12506_v42 = vld [vmem:[%s18190_s28 + $0x3] ss:$0 sm:$0xff] }
  0x66   : > { %13908 = vmatmul.mubr.msk.bf16.vlgmr.msra.gmra.mrb[36].mxu0 %vm926_vm1, %v15656_v6  ;;  %13927 = vmatprep.subr.bf16.mxu1 %v15497_v1 }
  0x67   : > { %13920 = vmatpush3.bf16.msra.mxu0 %v15186_v43  ;;  %13923 = vmatprep.mubr.msk.bf16.mxu0 %vm15498_vm0, %v15497_v1 }
  0x68   : > { %13916 = vmatmul.mubr.msk.bf16.vlgmr.msra.gmra.mrb[36].mxu1 %vm926_vm1, %v15656_v6  ;;  %13921 = vmatprep.subr.bf16.mxu0 %v15497_v1 }
  0x69   : > { %13928 = vmatpush3.bf16.msra.mxu1 %v15187_v44  ;;  %13931 = vmatprep.mubr.msk.bf16.mxu1 %vm15498_vm0, %v15497_v1  ;;  %v12473_v44 = vld [vmem:[%s18191_s25 + $0x2] ss:$0 sm:$0xff] }
  0x6a   : > { %13929 = vmatprep.subr.bf16.mxu1 %v15497_v1 }
  0x6b   : > { %13922 = vmatpush3.bf16.msra.mxu0 %v15188_v45 }
  0x6c   : > { %13935 = vmatprep.subr.bf16.mxu0 %v15497_v1 }
  0x6d   : > { %13930 = vmatpush3.bf16.msra.mxu1 %v15189_v46  ;;  %v12474_v46 = vld [vmem:[%s18191_s25 + $0x3] ss:$0 sm:$0xff] }
  0x6e   : > { %13924 = vmatmul.mubr.msk.bf16.vlgmr.msra.gmra.mrb[40].mxu0 %vm926_vm1, %v15656_v6  ;;  %13943 = vmatprep.subr.bf16.mxu1 %v15497_v1 }
  0x6f   : > { %13939 = vmatprep.mubr.msk.bf16.mxu0 %vm15498_vm0, %v15497_v1  ;;  %13936 = vmatpush3.bf16.msra.mxu0 %v15190_v47 }
  0x70   : > { %13932 = vmatmul.mubr.msk.bf16.vlgmr.msra.gmra.mrb[40].mxu1 %vm926_vm1, %v15656_v6  ;;  %13937 = vmatprep.subr.bf16.mxu0 %v15497_v1 }
  0x71   : > { %13944 = vmatpush3.bf16.msra.mxu1 %v15191_v48  ;;  %13947 = vmatprep.mubr.msk.bf16.mxu1 %vm15498_vm0, %v15497_v1 }
  0x72   : > { %13945 = vmatprep.subr.bf16.mxu1 %v15497_v1 }
  0x73   : > { %13938 = vmatpush3.bf16.msra.mxu0 %v15192_v49 }
  0x74   : > { %13951 = vmatprep.subr.bf16.mxu0 %v15497_v1 }
  0x75   : > { %13946 = vmatpush3.bf16.msra.mxu1 %v15193_v50 }
  0x76   : > { %13957 = vmatprep.subr.bf16.mxu1 %v15497_v1  ;;  %13940 = vmatmul.mubr.msk.bf16.vlgmr.msra.gmra.mrb[44].mxu0 %vm926_vm1, %v15656_v6 }
  0x77   : > { %13953 = vmatprep.mubr.msk.bf16.mxu0 %vm15498_vm0, %v15497_v1 }
  0x78   : > { %13948 = vmatmul.mubr.msk.bf16.vlgmr.msra.gmra.mrb[44].mxu1 %vm926_vm1, %v15656_v6 }
  0x79   : > { %13959 = vmatprep.mubr.msk.bf16.mxu1 %vm15498_vm0, %v15497_v1 }
  0xf1   : > { %v964_v51 = vpop.f32.mrb[0].mxu0  ;;  %v1016_v53 = vpop.f32.mrb[0].mxu1 }
  0xf2   : > { %v13765_v52 = vpop.f32.mrb[1].mxu0  ;;  %v13773_v55 = vpop.f32.mrb[1].mxu1  ;;  %v965_v31 = vadd.f32 %v12471_v22, %v964_v51  ;;  %v1017_v35 = vadd.f32 %v12472_v24, %v1016_v53 }
  0xf3   : > { %v967_v54 = vpop.f32.mrb[2].mxu0  ;;  %v1019_v57 = vpop.f32.mrb[2].mxu1 }
  0xf4   : > { %v13766_v56 = vpop.f32.mrb[3].mxu0  ;;  %v13774_v58 = vpop.f32.mrb[3].mxu1  ;;  %v2262_v41 = vmul.f32 0.5, %v965_v31  ;;  %v2263_v43 = vmul.f32 0.5, %v1017_v35  ;;  %v12477_v31 = vld [vmem:[%s18191_s25 + $0x6] ss:$0 sm:$0xff] }
  0xf6   : > { %v2270_v53 = vpack.c.bf16 %v2262_v41, %v2262_v41  ;;  %v2271_v58 = vpack.c.bf16 %v2263_v43, %v2263_v43 }
  0xf9   : > { %v15932_v59 = vpop.f32.mrb[4].mxu0  ;;  %v15934_v61 = vpop.f32.mrb[4].mxu1 }
  0xfa   : > { %v13781_v60 = vpop.f32.mrb[5].mxu0  ;;  %v13789_v63 = vpop.f32.mrb[5].mxu1  ;;  %v1069_v54 = vadd.f32 %v12473_v44, %v15932_v59  ;;  %v12507_v59 = vld [vmem:[%s18190_s28 + $0x4] ss:$0 sm:$0xff] }
  0xfb   : > { %v1071_v62 = vpop.f32.mrb[6].mxu0  ;;  %v1123_v2 = vpop.f32.mrb[6].mxu1  ;;  %v1121_v60 = vadd.f32 %v12474_v46, %v15934_v61  ;;  %v12508_v61 = vld [vmem:[%s18190_s28 + $0x5] ss:$0 sm:$0xff] }
  0xfc   : > { %v13782_v0 = vpop.f32.mrb[7].mxu0  ;;  %v13790_v3 = vpop.f32.mrb[7].mxu1 }
  0xfd   : > { %v2264_v3 = vmul.f32 0.5, %v1069_v54 }
 0x101   : > { %v15936_v4 = vpop.f32.mrb[8].mxu0  ;;  %v15938_v6 = vpop.f32.mrb[8].mxu1 }
 0x102   : > { %v13797_v5 = vpop.f32.mrb[9].mxu0  ;;  %v13805_v8 = vpop.f32.mrb[9].mxu1 }
 0x103   : > { %v1175_v7 = vpop.f32.mrb[10].mxu0  ;;  %v1227_v10 = vpop.f32.mrb[10].mxu1  ;;  %v2265_v5 = vmul.f32 0.5, %v1121_v60 }
 0x104   : > { %v13798_v9 = vpop.f32.mrb[11].mxu0  ;;  %v13806_v11 = vpop.f32.mrb[11].mxu1  ;;  %v12475_v7 = vld [vmem:[%s18191_s25 + $0x4] ss:$0 sm:$0xff] }
 0x105   : > { %v12476_v9 = vld [vmem:[%s18191_s25 + $0x5] ss:$0 sm:$0xff] }
 0x106   : > { %v1225_v24 = vadd.f32 %v12476_v9, %v15938_v6  ;;  %v12510_v6 = vld [vmem:[%s18190_s28 + $0x7] ss:$0 sm:$0xff] }
 0x109   : > { %v15940_v12 = vpop.f32.mrb[12].mxu0  ;;  %v15942_v14 = vpop.f32.mrb[12].mxu1 }
 0x10a   : > { %v13813_v13 = vpop.f32.mrb[13].mxu0  ;;  %v13821_v16 = vpop.f32.mrb[13].mxu1  ;;  %v1277_v41 = vadd.f32 %v12477_v31, %v15940_v12 }
 0x10b   : > { %v1279_v15 = vpop.f32.mrb[14].mxu0  ;;  %v1331_v18 = vpop.f32.mrb[14].mxu1 }
 0x10c   : > { %v13814_v17 = vpop.f32.mrb[15].mxu0  ;;  %v13822_v19 = vpop.f32.mrb[15].mxu1  ;;  %v2272_v18 = vpack.c.bf16 %v2264_v3, %v2264_v3 }
 0x10d   : > { %v1173_v19 = vadd.f32 %v12475_v7, %v15936_v4  ;;  %v12509_v4 = vld [vmem:[%s18190_s28 + $0x6] ss:$0 sm:$0xff] }
 0x111   : > { %v1428_v23 = vpop.f32.mrb[16].mxu0  ;;  %v1480_v26 = vpop.f32.mrb[16].mxu1 }
 0x112   : > { %v1429_v25 = vadd.f32 %v12503_v20, %v1428_v23  ;;  %v13829_v27 = vpop.f32.mrb[17].mxu0  ;;  %v1481_v28 = vadd.f32 %v12504_v21, %v1480_v26  ;;  %v13837_v30 = vpop.f32.mrb[17].mxu1  ;;  %v2273_v23 = vpack.c.bf16 %v2265_v5, %v2265_v5 }
 0x113   : > { %v1431_v29 = vpop.f32.mrb[18].mxu0  ;;  %v1483_v34 = vpop.f32.mrb[18].mxu1  ;;  %v2267_v30 = vmul.f32 0.5, %v1225_v24 }
 0x114   : > { %v2278_v32 = vpack.c.bf16 %v1429_v25, %v1429_v25  ;;  %v13830_v33 = vpop.f32.mrb[19].mxu0  ;;  %v2279_v36 = vpack.c.bf16 %v1481_v28, %v1481_v28  ;;  %v13838_v37 = vpop.f32.mrb[19].mxu1  ;;  %v2266_v29 = vmul.f32 0.5, %v1173_v19 }
 0x115   : > { %v12478_v33 = vld [vmem:[%s18191_s25 + $0x7] ss:$0 sm:$0xff] }
 0x116   : > { %v2291_v38 = vsel %vm2286_vm2, %v2278_v32, 0  ;;  %v2337_v39 = vsel %vm2286_vm2, %v2279_v36, 0  ;;  %v1329_v46 = vadd.f32 %v12478_v33, %v15942_v14 }
 0x117   : > { %13952 = vmatpush3.bf16.xpose.msra.mxu0 %v2291_v38  ;;  %13958 = vmatpush3.bf16.xpose.msra.mxu1 %v2337_v39 }
 0x118   : > { %13963 = vmatprep.subr.bf16.mxu0 %v15497_v1  ;;  %13969 = vmatprep.subr.bf16.mxu1 %v15497_v1  ;;  %v2269_v12 = vmul.f32 0.5, %v1329_v46 }
 0x119   : > { %v1532_v45 = vpop.f32.mrb[20].mxu0  ;;  %v1584_v48 = vpop.f32.mrb[20].mxu1 }
 0x11a   : > { %v1533_v47 = vadd.f32 %v12505_v40, %v1532_v45  ;;  %v13845_v49 = vpop.f32.mrb[21].mxu0  ;;  %v1585_v50 = vadd.f32 %v12506_v42, %v1584_v48  ;;  %v13853_v52 = vpop.f32.mrb[21].mxu1  ;;  %v2274_v40 = vpack.c.bf16 %v2266_v29, %v2266_v29  ;;  %v2275_v45 = vpack.c.bf16 %v2267_v30, %v2267_v30 }
 0x11b   : > { %v1535_v51 = vpop.f32.mrb[22].mxu0  ;;  %v1587_v57 = vpop.f32.mrb[22].mxu1  ;;  %v2277_v52 = vpack.c.bf16 %v2269_v12, %v2269_v12 }
 0x11c   : > { %v2280_v55 = vpack.c.bf16 %v1533_v47, %v1533_v47  ;;  %v13846_v56 = vpop.f32.mrb[23].mxu0  ;;  %v2281_v62 = vpack.c.bf16 %v1585_v50, %v1585_v50  ;;  %v13854_v63 = vpop.f32.mrb[23].mxu1  ;;  %v2268_v51 = vmul.f32 0.5, %v1277_v41 }
 0x11e   : > { %13954 = vmatmul.mubr.msk.bf16.vlgmr.msra.gmra.mrb[48].mxu0 %vm2286_vm2, %v2270_v53  ;;  %v2383_v0 = vsel %vm2286_vm2, %v2280_v55, 0  ;;  %13960 = vmatmul.mubr.msk.bf16.vlgmr.msra.gmra.mrb[48].mxu1 %vm2286_vm2, %v2271_v58  ;;  %v2429_v2 = vsel %vm2286_vm2, %v2281_v62, 0  ;;  %v2276_v14 = vpack.c.bf16 %v2268_v51, %v2268_v51  ;;  %v12535_v53 = vld [vmem:[%s18192_s27] ss:$0 sm:$0xff]  ;;  %v12536_v55 = vld [vmem:[%s18192_s27 + $0x1] ss:$0 sm:$0xff] }
 0x11f   : > { %13964 = vmatpush3.bf16.xpose.msra.mxu0 %v2383_v0  ;;  %13970 = vmatpush3.bf16.xpose.msra.mxu1 %v2429_v2 }
 0x120   : > { %13965 = vmatprep.mubr.msk.bf16.mxu0 %vm15498_vm0, %v15497_v1  ;;  %13971 = vmatprep.mubr.msk.bf16.mxu1 %vm15498_vm0, %v15497_v1 }
 0x121   : > { %v1636_v8 = vpop.f32.mrb[24].mxu0  ;;  %13975 = vmatprep.subr.bf16.mxu0 %v15497_v1  ;;  %v1688_v11 = vpop.f32.mrb[24].mxu1  ;;  %13981 = vmatprep.subr.bf16.mxu1 %v15497_v1 }
 0x122   : > { %v1637_v10 = vadd.f32 %v12507_v59, %v1636_v8  ;;  %v13861_v13 = vpop.f32.mrb[25].mxu0  ;;  %v1689_v15 = vadd.f32 %v12508_v61, %v1688_v11  ;;  %v13869_v17 = vpop.f32.mrb[25].mxu1 }
 0x123   : > { %v1639_v16 = vpop.f32.mrb[26].mxu0  ;;  %v1691_v22 = vpop.f32.mrb[26].mxu1 }
 0x124   : > { %v2282_v20 = vpack.c.bf16 %v1637_v10, %v1637_v10  ;;  %v13862_v21 = vpop.f32.mrb[27].mxu0  ;;  %v2283_v25 = vpack.c.bf16 %v1689_v15, %v1689_v15  ;;  %v13870_v26 = vpop.f32.mrb[27].mxu1 }
 0x126   : > { %13966 = vmatmul.mubr.msk.bf16.vlgmr.msra.gmra.mrb[52].mxu0 %vm2286_vm2, %v2272_v18  ;;  %v2475_v27 = vsel %vm2286_vm2, %v2282_v20, 0  ;;  %13972 = vmatmul.mubr.msk.bf16.vlgmr.msra.gmra.mrb[52].mxu1 %vm2286_vm2, %v2273_v23  ;;  %v2521_v28 = vsel %vm2286_vm2, %v2283_v25, 0 }
 0x127   : > { %13976 = vmatpush3.bf16.xpose.msra.mxu0 %v2475_v27  ;;  %13982 = vmatpush3.bf16.xpose.msra.mxu1 %v2521_v28 }
 0x128   : > { %13977 = vmatprep.mubr.msk.bf16.mxu0 %vm15498_vm0, %v15497_v1  ;;  %13983 = vmatprep.mubr.msk.bf16.mxu1 %vm15498_vm0, %v15497_v1 }
 0x129   : > { %v1740_v32 = vpop.f32.mrb[28].mxu0  ;;  %13987 = vmatprep.subr.bf16.mxu0 %v15497_v1  ;;  %v1792_v35 = vpop.f32.mrb[28].mxu1  ;;  %13993 = vmatprep.subr.bf16.mxu1 %v15497_v1 }
 0x12a   : > { %v1741_v34 = vadd.f32 %v12509_v4, %v1740_v32  ;;  %v13877_v36 = vpop.f32.mrb[29].mxu0  ;;  %v1793_v37 = vadd.f32 %v12510_v6, %v1792_v35  ;;  %v13885_v39 = vpop.f32.mrb[29].mxu1 }
 0x12b   : > { %v1743_v38 = vpop.f32.mrb[30].mxu0  ;;  %v1795_v44 = vpop.f32.mrb[30].mxu1 }
 0x12c   : > { %v2284_v42 = vpack.c.bf16 %v1741_v34, %v1741_v34  ;;  %v13878_v43 = vpop.f32.mrb[31].mxu0  ;;  %v2285_v47 = vpack.c.bf16 %v1793_v37, %v1793_v37  ;;  %v13886_v48 = vpop.f32.mrb[31].mxu1 }
 0x12e   : > { %13978 = vmatmul.mubr.msk.bf16.vlgmr.msra.gmra.mrb[56].mxu0 %vm2286_vm2, %v2274_v40  ;;  %v2567_v49 = vsel %vm2286_vm2, %v2284_v42, 0  ;;  %13984 = vmatmul.mubr.msk.bf16.vlgmr.msra.gmra.mrb[56].mxu1 %vm2286_vm2, %v2275_v45  ;;  %v2613_v50 = vsel %vm2286_vm2, %v2285_v47, 0 }
 0x12f   : > { %13988 = vmatpush3.bf16.xpose.msra.mxu0 %v2567_v49  ;;  %13994 = vmatpush3.bf16.xpose.msra.mxu1 %v2613_v50 }
 0x130   : > { %13989 = vmatprep.mubr.msk.bf16.mxu0 %vm15498_vm0, %v15497_v1  ;;  %13995 = vmatprep.mubr.msk.bf16.mxu1 %vm15498_vm0, %v15497_v1 }
 0x131   : > { %13999 = vmatprep.subr.bf16.mxu0 %v15497_v1  ;;  %14005 = vmatprep.subr.bf16.mxu1 %v15497_v1  ;;  %v1892_v54 = vpop.f32.mrb[32].mxu0 }
 0x132   : > { %v1893_v56 = vadd.f32 %v12535_v53, %v1892_v54  ;;  %v13893_v57 = vpop.f32.mrb[33].mxu0 }
 0x133   : > { %v1895_v58 = vpop.f32.mrb[34].mxu0  ;;  %v1944_v60 = vpop.f32.mrb[32].mxu1 }
 0x134   : > { %v2752_v62 = vpack.c.bf16 %v1893_v56, %v1893_v56  ;;  %v13894_v63 = vpop.f32.mrb[35].mxu0  ;;  %v1945_v0 = vadd.f32 %v12536_v55, %v1944_v60  ;;  %v13901_v2 = vpop.f32.mrb[33].mxu1 }
 0x135   : > { %v1947_v59 = vpop.f32.mrb[34].mxu1 }
 0x136   : > { %13990 = vmatmul.mubr.msk.bf16.vlgmr.msra.gmra.mrb[60].mxu0 %vm2286_vm2, %v2276_v14  ;;  %13996 = vmatmul.mubr.msk.bf16.vlgmr.msra.gmra.mrb[60].mxu1 %vm2286_vm2, %v2277_v52  ;;  %v2753_v3 = vpack.c.bf16 %v1945_v0, %v1945_v0  ;;  %v13902_v61 = vpop.f32.mrb[35].mxu1  ;;  %v2765_v5 = vsel %vm2763_vm3, %v2752_v62, 0 }
 0x137   : > { %14001 = vmatprep.mubr.msk.bf16.mxu0 %vm15498_vm0, %v15497_v1  ;;  %14007 = vmatprep.mubr.msk.bf16.mxu1 %vm15498_vm0, %v15497_v1 }
 0x138   : > { %14000 = vmatpush3.bf16.msra.mxu0 %v2765_v5  ;;  %v2811_v7 = vsel %vm2763_vm3, %v2753_v3, 0 }
 0x139   : > { %14011 = vmatprep.subr.bf16.mxu0 %v15497_v1  ;;  %v16047_v8 = vpop.f32.mrb[36].mxu0  ;;  %14006 = vmatpush3.bf16.msra.mxu1 %v2811_v7 }
 0x13a   : > { %v13909_v9 = vpop.f32.mrb[37].mxu0  ;;  %14017 = vmatprep.subr.bf16.mxu1 %v15497_v1 }
 0x13b   : > { %v1999_v10 = vpop.f32.mrb[38].mxu0  ;;  %v16050_v11 = vpop.f32.mrb[36].mxu1 }
 0x13c   : > { %v13910_v13 = vpop.f32.mrb[39].mxu0  ;;  %v13917_v15 = vpop.f32.mrb[37].mxu1 }
 0x13d   : > { %v2051_v16 = vpop.f32.mrb[38].mxu1 }
 0x13e   : > { %v13918_v17 = vpop.f32.mrb[39].mxu1 }
 0x141   : > { %v16052_v18 = vpop.f32.mrb[40].mxu0 }
 0x142   : > { %v13925_v19 = vpop.f32.mrb[41].mxu0 }
 0x143   : > { %v2103_v20 = vpop.f32.mrb[42].mxu0  ;;  %v16054_v21 = vpop.f32.mrb[40].mxu1 }
 0x144   : > { %v13926_v22 = vpop.f32.mrb[43].mxu0  ;;  %v13933_v23 = vpop.f32.mrb[41].mxu1 }
 0x145   : > { %v2155_v24 = vpop.f32.mrb[42].mxu1 }
 0x146   : > { %v13934_v25 = vpop.f32.mrb[43].mxu1 }
 0x149   : > { %v16056_v26 = vpop.f32.mrb[44].mxu0 }
 0x14a   : > { %v13941_v28 = vpop.f32.mrb[45].mxu0 }
 0x14b   : > { %v16058_v27 = vpop.f32.mrb[44].mxu1  ;;  %v2207_v29 = vpop.f32.mrb[46].mxu0 }
 0x14c   : > { %v13949_v4 = vpop.f32.mrb[45].mxu1  ;;  %v13942_v30 = vpop.f32.mrb[47].mxu0 }
 0x14d   : > { %v2259_v6 = vpop.f32.mrb[46].mxu1 }
 0x14e   : > { %v13950_v31 = vpop.f32.mrb[47].mxu1 }
 0x1f1   : > { %v2327_v32 = vpop.f32.mrb[48].mxu0  ;;  %v2373_v33 = vpop.f32.mrb[48].mxu1 }
 0x1f2   : > { %v13955_v34 = vpop.f32.mrb[49].mxu0  ;;  %v2656_v35 = vsel %vm2655_vm4, %v2327_v32, -inf  ;;  %v13961_v36 = vpop.f32.mrb[49].mxu1  ;;  %v2659_v41 = vsel %vm2655_vm4, %v2373_v33, -inf }
 0x1f3   : > { %2657 = vmax.xlane.f32.xlu0 %v2656_v35  ;;  %v2330_v37 = vpop.f32.mrb[50].mxu0  ;;  %v2376_v38 = vpop.f32.mrb[50].mxu1 }
 0x1f4   : > { %v13956_v39 = vpop.f32.mrb[51].mxu0  ;;  %v13962_v40 = vpop.f32.mrb[51].mxu1 }
 0x1f7   : > { %2660 = vmax.xlane.f32.xlu0 %v2659_v41 }
 0x1f9   : > { %v2419_v42 = vpop.f32.mrb[52].mxu0  ;;  %v2465_v43 = vpop.f32.mrb[52].mxu1 }
 0x1fa   : > { %v13967_v44 = vpop.f32.mrb[53].mxu0  ;;  %v2662_v45 = vsel %vm2655_vm4, %v2419_v42, -inf  ;;  %v13973_v46 = vpop.f32.mrb[53].mxu1  ;;  %v2665_v51 = vsel %vm2655_vm4, %v2465_v43, -inf }
 0x1fb   : > { %2663 = vmax.xlane.f32.xlu1 %v2662_v45  ;;  %v2422_v47 = vpop.f32.mrb[54].mxu0  ;;  %v2468_v48 = vpop.f32.mrb[54].mxu1 }
 0x1fc   : > { %v13968_v49 = vpop.f32.mrb[55].mxu0  ;;  %v13974_v50 = vpop.f32.mrb[55].mxu1 }
 0x1ff   : > { %2666 = vmax.xlane.f32.xlu1 %v2665_v51 }
 0x201   : > { %v2511_v12 = vpop.f32.mrb[56].mxu0  ;;  %v2557_v14 = vpop.f32.mrb[56].mxu1 }
 0x202   : > { %v13979_v52 = vpop.f32.mrb[57].mxu0  ;;  %v2668_v53 = vsel %vm2655_vm4, %v2511_v12, -inf  ;;  %v13985_v54 = vpop.f32.mrb[57].mxu1  ;;  %v2671_v55 = vsel %vm2655_vm4, %v2557_v14, -inf }
 0x203   : > { %2669 = vmax.xlane.f32.xlu0 %v2668_v53  ;;  %v2514_v56 = vpop.f32.mrb[58].mxu0  ;;  %v2560_v57 = vpop.f32.mrb[58].mxu1  ;;  %2672 = vmax.xlane.f32.xlu1 %v2671_v55  ;;  %v12537_v55 = vld [vmem:[%s18192_s27 + $0x2] ss:$0 sm:$0xff] }
 0x204   : > { %v13980_v58 = vpop.f32.mrb[59].mxu0  ;;  %v13986_v60 = vpop.f32.mrb[59].mxu1  ;;  %v1997_v56 = vadd.f32 %v12537_v55, %v16047_v8 }
 0x205   : > { %v12538_v58 = vld [vmem:[%s18192_s27 + $0x3] ss:$0 sm:$0xff] }
 0x209   : > { %v2603_v62 = vpop.f32.mrb[60].mxu0  ;;  %v2649_v63 = vpop.f32.mrb[60].mxu1 }
 0x20a   : > { %v13991_v0 = vpop.f32.mrb[61].mxu0  ;;  %v2674_v2 = vsel %vm2655_vm4, %v2603_v62, -inf  ;;  %v13997_v59 = vpop.f32.mrb[61].mxu1  ;;  %v2677_v3 = vsel %vm2655_vm4, %v2649_v63, -inf }
 0x20b   : > { %2675 = vmax.xlane.f32.xlu0 %v2674_v2  ;;  %v2606_v61 = vpop.f32.mrb[62].mxu0  ;;  %v2652_v5 = vpop.f32.mrb[62].mxu1  ;;  %2678 = vmax.xlane.f32.xlu1 %v2677_v3  ;;  %v12539_v59 = vld [vmem:[%s18192_s27 + $0x4] ss:$0 sm:$0xff] }
 0x20c   : > { %v13992_v7 = vpop.f32.mrb[63].mxu0  ;;  %v13998_v9 = vpop.f32.mrb[63].mxu1  ;;  %v2101_v5 = vadd.f32 %v12539_v59, %v16052_v18 }
 0x280   : > { %v2658_v10 = vpop.xlane.xlu0 %2657 }
 0x281   : > { %v2680_v13 = vsub.f32 %v2327_v32, %v2658_v10 }
 0x283   : > { %v2688_v15 = vmul.f32 1.442695, %v2680_v13 }
 0x284   : > { %v2661_v16 = vpop.xlane.xlu0 %2660 }
 0x285   : > { %15346 = vpow2.f32 %v2688_v15  ;;  %v2681_v17 = vsub.f32 %v2373_v33, %v2661_v16  ;;  %v2756_v16 = vpack.c.bf16 %v2101_v5, %v2101_v5 }
 0x287   : > { %v2690_v19 = vmul.f32 1.442695, %v2681_v17 }
 0x288   : > { %v2664_v20 = vpop.xlane.xlu1 %2663 }
 0x289   : > { %15348 = vpow2.f32 %v2690_v19  ;;  %v2682_v22 = vsub.f32 %v2419_v42, %v2664_v20 }
 0x28b   : > { %v2692_v23 = vmul.f32 1.442695, %v2682_v22  ;;  %v12541_v22 = vld [vmem:[%s18192_s27 + $0x6] ss:$0 sm:$0xff] }
 0x28c   : > { %v2667_v24 = vpop.xlane.xlu1 %2666 }
 0x28d   : > { %15350 = vpow2.f32 %v2692_v23  ;;  %v2683_v25 = vsub.f32 %v2465_v43, %v2667_v24 }
 0x28f   : > { %v15347_v28 = vpop.eup %15346  ;;  %v2694_v4 = vmul.f32 1.442695, %v2683_v25 }
 0x290   : > { %v2670_v29 = vpop.xlane.xlu0 %2669  ;;  %v2704_v6 = vsel %vm2655_vm4, %v15347_v28, 0.0  ;;  %v2673_v30 = vpop.xlane.xlu1 %2672 }
 0x291   : > { %15352 = vpow2.f32 %v2694_v4  ;;  %v2684_v31 = vsub.f32 %v2511_v12, %v2670_v29  ;;  %2705 = vadd.xlane.f32.xlu0 %v2704_v6  ;;  %v2685_v32 = vsub.f32 %v2557_v14, %v2673_v30  ;;  %v2949_v4 = vsel %vm2763_vm3, %v2756_v16, 0  ;;  %v12542_v6 = vld [vmem:[%s18192_s27 + $0x7] ss:$0 sm:$0xff] }
 0x293   : > { %v15349_v34 = vpop.eup %15348  ;;  %v2696_v33 = vmul.f32 1.442695, %v2684_v31  ;;  %v2698_v35 = vmul.f32 1.442695, %v2685_v32 }
 0x294   : > { %v2707_v36 = vsel %vm2655_vm4, %v15349_v34, 0.0 }
 0x295   : > { %15354 = vpow2.f32 %v2696_v33  ;;  %2708 = vadd.xlane.f32.xlu1 %v2707_v36  ;;  %v2257_v33 = vadd.f32 %v12542_v6, %v16058_v27 }
 0x296   : > { %15356 = vpow2.f32 %v2698_v35 }
 0x297   : > { %v15351_v37 = vpop.eup %15350 }
 0x298   : > { %v2676_v38 = vpop.xlane.xlu0 %2675  ;;  %v2710_v39 = vsel %vm2655_vm4, %v15351_v37, 0.0  ;;  %v2679_v40 = vpop.xlane.xlu1 %2678 }
 0x299   : > { %v2686_v41 = vsub.f32 %v2603_v62, %v2676_v38  ;;  %2711 = vadd.xlane.f32.xlu0 %v2710_v39  ;;  %v2687_v42 = vsub.f32 %v2649_v63, %v2679_v40  ;;  %v2754_v62 = vpack.c.bf16 %v1997_v56, %v1997_v56  ;;  %v2049_v63 = vadd.f32 %v12538_v58, %v16050_v11  ;;  %v12540_v11 = vld [vmem:[%s18192_s27 + $0x5] ss:$0 sm:$0xff]  ;;  %v859_v56 = vld [vmem:[%s18193_s7 + $0x6] sm:$0x3] }
 0x29a   : > { %v2153_v17 = vadd.f32 %v12540_v11, %v16054_v21  ;;  %v2205_v21 = vadd.f32 %v12541_v22, %v16056_v26  ;;  %v2759_v39 = vpack.c.bf16 %v2257_v33, %v2257_v33 }
 0x29b   : > { %v16071_v43 = vpop.eup %15352  ;;  %v2700_v44 = vmul.f32 1.442695, %v2686_v41  ;;  %v2702_v45 = vmul.f32 1.442695, %v2687_v42  ;;  %v2755_v8 = vpack.c.bf16 %v2049_v63, %v2049_v63  ;;  %v2857_v9 = vsel %vm2763_vm3, %v2754_v62, 0 }
 0x29c   : > { %v2713_v46 = vsel %vm2655_vm4, %v16071_v43, 0.0  ;;  %v2757_v25 = vpack.c.bf16 %v2153_v17, %v2153_v17  ;;  %v856_v42 = vld [vmem:[%s18193_s7] sm:$0x3]  ;;  %v3279_v63 = vsel %vm2763_vm3, %v859_v56, 0  ;;  %v862_v17 = vld [vmem:[%s18193_s7 + $0xc] sm:$0x3] }
 0x29d   : > { %15358 = vpow2.f32 %v2700_v44  ;;  %2714 = vadd.xlane.f32.xlu1 %v2713_v46  ;;  %v2903_v20 = vsel %vm2763_vm3, %v2755_v8, 0 }
 0x29e   : > { %15360 = vpow2.f32 %v2702_v45  ;;  %v2995_v36 = vsel %vm2763_vm3, %v2757_v25, 0  ;;  %v3087_v45 = vsel %vm2763_vm3, %v2759_v39, 0 }
 0x29f   : > { %v16075_v47 = vpop.eup %15354 }
 0x2a0   : > { %v16077_v48 = vpop.eup %15356  ;;  %v2716_v49 = vsel %vm2655_vm4, %v16075_v47, 0.0 }
 0x2a1   : > { %v2719_v50 = vsel %vm2655_vm4, %v16077_v48, 0.0  ;;  %2717 = vadd.xlane.f32.xlu0 %v2716_v49 }
 0x2a2   : > { %2720 = vadd.xlane.f32.xlu1 %v2719_v50  ;;  %v857_v50 = vld [vmem:[%s18193_s7 + $0x2] sm:$0x3] }
 0x2a7   : > { %v16083_v51 = vpop.eup %15358 }
 0x2a8   : > { %v16085_v12 = vpop.eup %15360  ;;  %v2722_v14 = vsel %vm2655_vm4, %v16083_v51, 0.0 }
 0x2a9   : > { %v2725_v52 = vsel %vm2655_vm4, %v16085_v12, 0.0  ;;  %2723 = vadd.xlane.f32.xlu0 %v2722_v14 }
 0x2aa   : > { %2726 = vadd.xlane.f32.xlu1 %v2725_v52 }
 0x31e   : > { %v2706_v53 = vpop.xlane.xlu0 %2705 }
 0x31f   : > { %15362 = vrcp.f32 %v2706_v53 }
 0x322   : > { %v2709_v54 = vpop.xlane.xlu1 %2708 }
 0x323   : > { %15364 = vrcp.f32 %v2709_v54 }
 0x326   : > { %v2712_v57 = vpop.xlane.xlu0 %2711 }
 0x327   : > { %15366 = vrcp.f32 %v2712_v57 }
 0x329   : > { %v15363_v60 = vpop.eup %15362 }
 0x32a   : > { %v2736_v0 = vmul.f32 %v15363_v60, %v15347_v28  ;;  %v2715_v2 = vpop.xlane.xlu1 %2714 }
 0x32b   : > { %15368 = vrcp.f32 %v2715_v2  ;;  %v860_v2 = vld [vmem:[%s18193_s7 + $0x8] sm:$0x3] }
 0x32c   : > { %v2744_v3 = vpack.c.bf16 %v2736_v0, %v2736_v0  ;;  %v3325_v5 = vsel %vm2763_vm3, %v860_v2, 0 }
 0x32d   : > { %v15365_v61 = vpop.eup %15364 }
 0x32e   : > { %v2737_v7 = vmul.f32 %v15365_v61, %v15349_v34  ;;  %14002 = vmatmul.mubr.msk.bf16.vlgmr.msra.gmra.mrb[64].mxu0 %vm2286_vm2, %v2744_v3  ;;  %v2718_v10 = vpop.xlane.xlu0 %2717  ;;  %v2758_v34 = vpack.c.bf16 %v2205_v21, %v2205_v21  ;;  %v863_v21 = vld [vmem:[%s18193_s7 + $0xe] sm:$0x3] }
 0x32f   : > { %v2721_v13 = vpop.xlane.xlu1 %2720  ;;  %14012 = vmatpush3.bf16.msra.mxu0 %v2857_v9  ;;  %15370 = vrcp.f32 %v2718_v10  ;;  %14013 = vmatprep.mubr.msk.bf16.mxu0 %vm15498_vm0, %v15497_v1  ;;  %v861_v9 = vld [vmem:[%s18193_s7 + $0xa] sm:$0x3] }
 0x330   : > { %15372 = vrcp.f32 %v2721_v13  ;;  %v2745_v15 = vpack.c.bf16 %v2737_v7, %v2737_v7  ;;  %14023 = vmatprep.subr.bf16.mxu0 %v15497_v1  ;;  %v3041_v27 = vsel %vm2763_vm3, %v2758_v34, 0 }
 0x331   : > { %v15367_v18 = vpop.eup %15366 }
 0x332   : > { %v2738_v19 = vmul.f32 %v15367_v18, %v15351_v37  ;;  %14008 = vmatmul.mubr.msk.bf16.vlgmr.msra.gmra.mrb[64].mxu1 %vm2286_vm2, %v2745_v15  ;;  %v3371_v18 = vsel %vm2763_vm3, %v861_v9, 0 }
 0x333   : > { %14018 = vmatpush3.bf16.msra.mxu1 %v2903_v20  ;;  %14019 = vmatprep.mubr.msk.bf16.mxu1 %vm15498_vm0, %v15497_v1 }
 0x334   : > { %v2746_v23 = vpack.c.bf16 %v2738_v19, %v2738_v19  ;;  %14029 = vmatprep.subr.bf16.mxu1 %v15497_v1 }
 0x335   : > { %v15369_v24 = vpop.eup %15368 }
 0x336   : > { %v2739_v28 = vmul.f32 %v15369_v24, %v16071_v43  ;;  %14014 = vmatmul.mubr.msk.bf16.vlgmr.msra.gmra.mrb[68].mxu0 %vm2286_vm2, %v2746_v23  ;;  %v2724_v29 = vpop.xlane.xlu0 %2723  ;;  %v3417_v24 = vsel %vm2763_vm3, %v862_v17, 0 }
 0x337   : > { %v2727_v30 = vpop.xlane.xlu1 %2726  ;;  %14024 = vmatpush3.bf16.msra.mxu0 %v2949_v4  ;;  %15374 = vrcp.f32 %v2724_v29  ;;  %14025 = vmatprep.mubr.msk.bf16.mxu0 %vm15498_vm0, %v15497_v1 }
 0x338   : > { %15376 = vrcp.f32 %v2727_v30  ;;  %v2747_v31 = vpack.c.bf16 %v2739_v28, %v2739_v28  ;;  %14035 = vmatprep.subr.bf16.mxu0 %v15497_v1  ;;  %v3463_v30 = vsel %vm2763_vm3, %v863_v21, 0 }
 0x339   : > { %v15371_v26 = vpop.eup %15370 }
 0x33a   : > { %v15373_v32 = vpop.eup %15372  ;;  %v2740_v35 = vmul.f32 %v15371_v26, %v16075_v47  ;;  %14020 = vmatmul.mubr.msk.bf16.vlgmr.msra.gmra.mrb[68].mxu1 %vm2286_vm2, %v2747_v31 }
 0x33b   : > { %14030 = vmatpush3.bf16.msra.mxu1 %v2995_v36  ;;  %14031 = vmatprep.mubr.msk.bf16.mxu1 %vm15498_vm0, %v15497_v1  ;;  %v2741_v37 = vmul.f32 %v15373_v32, %v16077_v48  ;;  %v3141_v48 = vsel %vm2763_vm3, %v856_v42, 0 }
 0x33c   : > { %v2748_v38 = vpack.c.bf16 %v2740_v35, %v2740_v35  ;;  %14041 = vmatprep.subr.bf16.mxu1 %v15497_v1 }
 0x33d   : > { %v2749_v40 = vpack.c.bf16 %v2741_v37, %v2741_v37 }
 0x33e   : > { %14026 = vmatmul.mubr.msk.bf16.vlgmr.msra.gmra.mrb[72].mxu0 %vm2286_vm2, %v2748_v38 }
 0x33f   : > { %14036 = vmatpush3.bf16.msra.mxu0 %v3041_v27  ;;  %14037 = vmatprep.mubr.msk.bf16.mxu0 %vm15498_vm0, %v15497_v1 }
 0x340   : > { %14047 = vmatprep.subr.bf16.mxu0 %v15497_v1 }
 0x341   : > { %v15375_v41 = vpop.eup %15374 }
 0x342   : > { %v15377_v43 = vpop.eup %15376  ;;  %v2742_v44 = vmul.f32 %v15375_v41, %v16083_v51  ;;  %14032 = vmatmul.mubr.msk.bf16.vlgmr.msra.gmra.mrb[72].mxu1 %vm2286_vm2, %v2749_v40  ;;  %v3187_v51 = vsel %vm2763_vm3, %v857_v50, 0 }
 0x343   : > { %14042 = vmatpush3.bf16.msra.mxu1 %v3087_v45  ;;  %14043 = vmatprep.mubr.msk.bf16.mxu1 %vm15498_vm0, %v15497_v1  ;;  %v2743_v46 = vmul.f32 %v15377_v43, %v16085_v12  ;;  %v858_v12 = vld [vmem:[%s18193_s7 + $0x4] sm:$0x3] }
 0x344   : > { %v2750_v47 = vpack.c.bf16 %v2742_v44, %v2742_v44  ;;  %14053 = vmatprep.subr.bf16.mxu1 %v15497_v1  ;;  %v3233_v54 = vsel %vm2763_vm3, %v858_v12, 0 }
 0x345   : > { %v2751_v49 = vpack.c.bf16 %v2743_v46, %v2743_v46 }
 0x346   : > { %14038 = vmatmul.mubr.msk.bf16.vlgmr.msra.gmra.mrb[76].mxu0 %vm2286_vm2, %v2750_v47 }
 0x347   : > { %14048 = vmatpush3.bf16.msra.mxu0 %v3141_v48  ;;  %14049 = vmatprep.mubr.msk.bf16.mxu0 %vm15498_vm0, %v15497_v1 }
 0x348   : > { %14059 = vmatprep.subr.bf16.mxu0 %v15497_v1 }
 0x34a   : > { %14044 = vmatmul.mubr.msk.bf16.vlgmr.msra.gmra.mrb[76].mxu1 %vm2286_vm2, %v2751_v49 }
 0x34b   : > { %14055 = vmatprep.mubr.msk.bf16.mxu1 %vm15498_vm0, %v15497_v1  ;;  %14054 = vmatpush3.bf16.msra.mxu1 %v3187_v51 }
 0x34c   : > { %14065 = vmatprep.subr.bf16.mxu1 %v15497_v1 }
 0x401   : > { %v2801_v14 = vpop.f32.mrb[64].mxu0 }
 0x402   : > { %v3129_v52 = vpack.c.bf16 %v2801_v14, %v2801_v14  ;;  %v14003_v53 = vpop.f32.mrb[65].mxu0 }
 0x403   : > { %v2804_v55 = vpop.f32.mrb[66].mxu0 }
 0x404   : > { %v14004_v57 = vpop.f32.mrb[67].mxu0  ;;  %14050 = vmatmul.mubr.msk.bf16.vlgmr.msra.gmra.mrb[80].mxu0 %vm2286_vm2, %v3129_v52 }
 0x405   : > { %v2847_v58 = vpop.f32.mrb[64].mxu1  ;;  %14060 = vmatpush3.bf16.msra.mxu0 %v3233_v54  ;;  %14061 = vmatprep.mubr.msk.bf16.mxu0 %vm15498_vm0, %v15497_v1 }
 0x406   : > { %v3130_v60 = vpack.c.bf16 %v2847_v58, %v2847_v58  ;;  %v14009_v62 = vpop.f32.mrb[65].mxu1  ;;  %14071 = vmatprep.subr.bf16.mxu0 %v15497_v1 }
 0x407   : > { %v2850_v0 = vpop.f32.mrb[66].mxu1 }
 0x408   : > { %v14010_v59 = vpop.f32.mrb[67].mxu1  ;;  %14056 = vmatmul.mubr.msk.bf16.vlgmr.msra.gmra.mrb[80].mxu1 %vm2286_vm2, %v3130_v60 }
 0x409   : > { %v2893_v3 = vpop.f32.mrb[68].mxu0  ;;  %14066 = vmatpush3.bf16.msra.mxu1 %v3279_v63  ;;  %14067 = vmatprep.mubr.msk.bf16.mxu1 %vm15498_vm0, %v15497_v1 }
 0x40a   : > { %v3131_v61 = vpack.c.bf16 %v2893_v3, %v2893_v3  ;;  %v14015_v8 = vpop.f32.mrb[69].mxu0  ;;  %14077 = vmatprep.subr.bf16.mxu1 %v15497_v1 }
 0x40b   : > { %v2896_v7 = vpop.f32.mrb[70].mxu0 }
 0x40c   : > { %v14016_v10 = vpop.f32.mrb[71].mxu0  ;;  %14062 = vmatmul.mubr.msk.bf16.vlgmr.msra.gmra.mrb[84].mxu0 %vm2286_vm2, %v3131_v61 }
 0x40d   : > { %v2939_v11 = vpop.f32.mrb[68].mxu1  ;;  %14072 = vmatpush3.bf16.msra.mxu0 %v3325_v5  ;;  %14073 = vmatprep.mubr.msk.bf16.mxu0 %vm15498_vm0, %v15497_v1 }
 0x40e   : > { %v3132_v13 = vpack.c.bf16 %v2939_v11, %v2939_v11  ;;  %v14021_v15 = vpop.f32.mrb[69].mxu1  ;;  %14083 = vmatprep.subr.bf16.mxu0 %v15497_v1 }
 0x40f   : > { %v2942_v16 = vpop.f32.mrb[70].mxu1 }
 0x410   : > { %v14022_v19 = vpop.f32.mrb[71].mxu1  ;;  %14068 = vmatmul.mubr.msk.bf16.vlgmr.msra.gmra.mrb[84].mxu1 %vm2286_vm2, %v3132_v13 }
 0x411   : > { %v2985_v20 = vpop.f32.mrb[72].mxu0  ;;  %14078 = vmatpush3.bf16.msra.mxu1 %v3371_v18  ;;  %14079 = vmatprep.mubr.msk.bf16.mxu1 %vm15498_vm0, %v15497_v1 }
 0x412   : > { %v3133_v22 = vpack.c.bf16 %v2985_v20, %v2985_v20  ;;  %v14027_v23 = vpop.f32.mrb[73].mxu0  ;;  %14089 = vmatprep.subr.bf16.mxu1 %v15497_v1 }
 0x413   : > { %v2988_v25 = vpop.f32.mrb[74].mxu0 }
 0x414   : > { %v14028_v28 = vpop.f32.mrb[75].mxu0  ;;  %14074 = vmatmul.mubr.msk.bf16.vlgmr.msra.gmra.mrb[88].mxu0 %vm2286_vm2, %v3133_v22  ;;  %v12591_v25 = vld [vmem:[%s18146_s9] ss:$0 sm:$0xff] }
 0x415   : > { %v3031_v4 = vpop.f32.mrb[72].mxu1  ;;  %14084 = vmatpush3.bf16.msra.mxu0 %v3417_v24  ;;  %14085 = vmatprep.mubr.msk.bf16.mxu0 %vm15498_vm0, %v15497_v1 }
 0x416   : > { %v3134_v29 = vpack.c.bf16 %v3031_v4, %v3031_v4  ;;  %v14033_v6 = vpop.f32.mrb[73].mxu1  ;;  %14095 = vmatprep.subr.bf16.mxu0 %v15497_v1 }
 0x417   : > { %v3034_v31 = vpop.f32.mrb[74].mxu1  ;;  %v15488_v6 = vld [vmem:[%s18187_s4] sm:$0xf] }
 0x418   : > { %v14034_v26 = vpop.f32.mrb[75].mxu1  ;;  %14080 = vmatmul.mubr.msk.bf16.vlgmr.msra.gmra.mrb[88].mxu1 %vm2286_vm2, %v3134_v29 }
 0x419   : > { %v3077_v32 = vpop.f32.mrb[76].mxu0  ;;  %14090 = vmatpush3.bf16.msra.mxu1 %v3463_v30  ;;  %14091 = vmatprep.mubr.msk.bf16.mxu1 %vm15498_vm0, %v15497_v1 }
 0x41a   : > { %v3135_v34 = vpack.c.bf16 %v3077_v32, %v3077_v32  ;;  %v14039_v33 = vpop.f32.mrb[77].mxu0  ;;  %14103 = vmatprep.subr.bf16.mxu1 %v15497_v1 }
 0x41b   : > { %v3080_v35 = vpop.f32.mrb[78].mxu0 }
 0x41c   : > { %v14040_v36 = vpop.f32.mrb[79].mxu0  ;;  %14086 = vmatmul.mubr.msk.bf16.vlgmr.msra.gmra.mrb[92].mxu0 %vm2286_vm2, %v3135_v34 }
 0x41d   : > { %v3123_v37 = vpop.f32.mrb[76].mxu1  ;;  %14099 = vmatprep.mubr.msk.bf16.mxu0 %vm15498_vm0, %v15497_v1  ;;  %v15194_v36 = vld [vmem:[%s18194_s10] sm:$0xff]  }
 0x41e   : > { %v3136_v38 = vpack.c.bf16 %v3123_v37, %v3123_v37  ;;  %v14045_v39 = vpop.f32.mrb[77].mxu1  ;;  %v15195_v37 = vld [vmem:[%s18194_s10 + $0x10] sm:$0xff]   ;;  %14096 = vmatpush3.bf16.msra.mxu0 %v15194_v36 }
 0x41f   : > { %v3126_v27 = vpop.f32.mrb[78].mxu1  ;;  %14097 = vmatprep.subr.bf16.mxu0 %v15497_v1  ;;  %v15197_v39 = vld [vmem:[%s18194_s10 + $0x18] sm:$0xff]  }
 0x420   : > { %v14046_v40 = vpop.f32.mrb[79].mxu1  ;;  %14092 = vmatmul.mubr.msk.bf16.vlgmr.msra.gmra.mrb[92].mxu1 %vm2286_vm2, %v3136_v38  ;;  %v15196_v38 = vld [vmem:[%s18194_s10 + $0x8] sm:$0xff]  }
 0x421   : > { %14107 = vmatprep.mubr.msk.bf16.mxu1 %vm15498_vm0, %v15497_v1  ;;  %14104 = vmatpush3.bf16.msra.mxu1 %v15195_v37 }
 0x422   : > { %14105 = vmatprep.subr.bf16.mxu1 %v15497_v1  ;;  %14098 = vmatpush3.bf16.msra.mxu0 %v15196_v38 }
 0x423   : > { %14111 = vmatprep.subr.bf16.mxu0 %v15497_v1 }
 0x425   : > { %14106 = vmatpush3.bf16.msra.mxu1 %v15197_v39 }
 0x426   : > { %14119 = vmatprep.subr.bf16.mxu1 %v15497_v1 }
 0x4d7   : > { %v3177_v41 = vpop.f32.mrb[80].mxu0 }
 0x4d8   : > { %v14051_v42 = vpop.f32.mrb[81].mxu0  ;;  %v3506_v46 = vsel %vm3505_vm5, %v3177_v41, 0.0 }
 0x4d9   : > { %v3180_v43 = vpop.f32.mrb[82].mxu0 }
 0x4da   : > { %v14052_v44 = vpop.f32.mrb[83].mxu0  ;;  %v12592_v43 = vld [vmem:[%s18159_s22] ss:$0 sm:$0xff] }
 0x4db   : > { %v3223_v45 = vpop.f32.mrb[80].mxu1 }
 0x4dc   : > { %v3507_v47 = vsel %vm3505_vm5, %v3223_v45, 0.0  ;;  %v14057_v48 = vpop.f32.mrb[81].mxu1  ;;  %v12593_v45 = vld [vmem:[%s18160_s23] ss:$0 sm:$0xff] }
 0x4dd   : > { %v3508_v49 = vadd.f32 %v3507_v47, %v3506_v46  ;;  %v3226_v50 = vpop.f32.mrb[82].mxu1  ;;  %v15198_v48 = vld [vmem:[%s18194_s10 + $0x20] sm:$0xff]  }
 0x4de   : > { %v14058_v51 = vpop.f32.mrb[83].mxu1 }
 0x4df   : > { %v3269_v12 = vpop.f32.mrb[84].mxu0  ;;  %v15200_v51 = vld [vmem:[%s18194_s10 + $0x28] sm:$0xff]  }
 0x4e0   : > { %v3509_v14 = vsel %vm3505_vm5, %v3269_v12, 0.0  ;;  %v14063_v52 = vpop.f32.mrb[85].mxu0  ;;  %v15201_v12 = vld [vmem:[%s18194_s10 + $0x38] sm:$0xff]  }
 0x4e1   : > { %v3510_v53 = vadd.f32 %v3509_v14, %v3508_v49  ;;  %v3272_v54 = vpop.f32.mrb[86].mxu0  ;;  %v15199_v49 = vld [vmem:[%s18194_s10 + $0x30] sm:$0xff]   ;;  %v15202_v14 = vld [vmem:[%s18194_s10 + $0x40] sm:$0xff]  }
 0x4e2   : > { %v14064_v55 = vpop.f32.mrb[87].mxu0  ;;  %v15203_v52 = vld [vmem:[%s18194_s10 + $0x50] sm:$0xff]   ;;  %v15205_v54 = vld [vmem:[%s18194_s10 + $0x58] sm:$0xff]  }
 0x4e3   : > { %v3315_v56 = vpop.f32.mrb[84].mxu1  ;;  %v15206_v55 = vld [vmem:[%s18194_s10 + $0x60] sm:$0xff]  }
 0x4e4   : > { %v3511_v57 = vsel %vm3505_vm5, %v3315_v56, 0.0  ;;  %v14069_v58 = vpop.f32.mrb[85].mxu1  ;;  %v15207_v56 = vld [vmem:[%s18194_s10 + $0x70] sm:$0xff]  }
 0x4e5   : > { %v3512_v60 = vadd.f32 %v3511_v57, %v3510_v53  ;;  %v3318_v62 = vpop.f32.mrb[86].mxu1  ;;  %v15204_v53 = vld [vmem:[%s18194_s10 + $0x48] sm:$0xff]   ;;  %v15209_v58 = vld [vmem:[%s18194_s10 + $0x78] sm:$0xff]  }
 0x4e6   : > { %v14070_v63 = vpop.f32.mrb[87].mxu1  ;;  %v15208_v57 = vld [vmem:[%s18194_s10 + $0x68] sm:$0xff]   ;;  %v15211_v62 = vld [vmem:[%s18148_s11 + $0x10] sm:$0xff]   ;;  %s728_s10 = scalar_lea.vmem %s18197_s5, %s12469_s2  ;;  %s18198_s5 = sld [smem:[#allocation12_spill]] }
 0x4e7   : > { %v3361_v0 = vpop.f32.mrb[88].mxu0  ;;  %v15212_v63 = vld [vmem:[%s18148_s11 + $0x8] sm:$0xff]  }
 0x4e8   : > { %v3513_v2 = vsel %vm3505_vm5, %v3361_v0, 0.0  ;;  %v14075_v59 = vpop.f32.mrb[89].mxu0  ;;  %v15213_v0 = vld [vmem:[%s18148_s11 + $0x18] sm:$0xff]  }
 0x4e9   : > { %v3514_v3 = vadd.f32 %v3513_v2, %v3512_v60  ;;  %v3364_v61 = vpop.f32.mrb[90].mxu0  ;;  %v15210_v60 = vld [vmem:[%s18148_s11] sm:$0xff]  }
 0x4ea   : > { %v14076_v8 = vpop.f32.mrb[91].mxu0  ;;  %v735_v2 = vld [vmem:[%s728_s10] sm:$0x1f]  ;;  %v15215_v61 = vld [vmem:[%s18148_s11 + $0x30] sm:$0xff]  }
 0x4eb   : > { %v3407_v5 = vpop.f32.mrb[88].mxu1  ;;  %v16358_v59 = vpack.c.bf16 %v735_v2, %v735_v2  ;;  %v15216_v8 = vld [vmem:[%s18148_s11 + $0x28] sm:$0xff]   ;;  %v12626_v2 = vld [vmem:[%s18151_s14] ss:$0 sm:$0xff] }
 0x4ec   : > { %v3515_v7 = vsel %vm3505_vm5, %v3407_v5, 0.0  ;;  %v14081_v9 = vpop.f32.mrb[89].mxu1  ;;  %v15217_v5 = vld [vmem:[%s18148_s11 + $0x38] sm:$0xff]  }
 0x4ed   : > { %v3516_v10 = vadd.f32 %v3515_v7, %v3514_v3  ;;  %v3410_v11 = vpop.f32.mrb[90].mxu1  ;;  %v15214_v3 = vld [vmem:[%s18148_s11 + $0x20] sm:$0xff]   ;;  %v15219_v9 = vld [vmem:[%s18148_s11 + $0x50] sm:$0xff]  }
 0x4ee   : > { %v14082_v13 = vpop.f32.mrb[91].mxu1  ;;  %v15218_v7 = vld [vmem:[%s18148_s11 + $0x40] sm:$0xff]   ;;  %v15221_v11 = vld [vmem:[%s18148_s11 + $0x58] sm:$0xff]  }
 0x4ef   : > { %v3453_v15 = vpop.f32.mrb[92].mxu0  ;;  %v15222_v13 = vld [vmem:[%s18148_s11 + $0x60] sm:$0xff]  }
 0x4f0   : > { %v3517_v18 = vsel %vm3505_vm5, %v3453_v15, 0.0  ;;  %v14087_v16 = vpop.f32.mrb[93].mxu0  ;;  %v15223_v15 = vld [vmem:[%s18148_s11 + $0x70] sm:$0xff]  }
 0x4f1   : > { %v3518_v17 = vadd.f32 %v3517_v18, %v3516_v10  ;;  %v3456_v19 = vpop.f32.mrb[94].mxu0  ;;  %v15220_v10 = vld [vmem:[%s18148_s11 + $0x48] sm:$0xff]   ;;  %v15225_v16 = vld [vmem:[%s18148_s11 + $0x78] sm:$0xff]  }
 0x4f2   : > { %v14088_v20 = vpop.f32.mrb[95].mxu0  ;;  %v15224_v18 = vld [vmem:[%s18148_s11 + $0x68] sm:$0xff]   ;;  %v15227_v19 = vld [vmem:[%s18149_s12 + $0x10] sm:$0xff]  }
 0x4f3   : > { %v3499_v22 = vpop.f32.mrb[92].mxu1  ;;  %v15228_v20 = vld [vmem:[%s18149_s12 + $0x8] sm:$0xff]  }
 0x4f4   : > { %v3519_v23 = vsel %vm3505_vm5, %v3499_v22, 0.0  ;;  %v14093_v24 = vpop.f32.mrb[93].mxu1  ;;  %v15229_v22 = vld [vmem:[%s18149_s12 + $0x18] sm:$0xff]  }
 0x4f5   : > { %v3520_v21 = vadd.f32 %v3519_v23, %v3518_v17  ;;  %v3502_v28 = vpop.f32.mrb[94].mxu1  ;;  %v15226_v17 = vld [vmem:[%s18149_s12] sm:$0xff]   ;;  %v15231_v24 = vld [vmem:[%s18149_s12 + $0x30] sm:$0xff]  }
 0x4f6   : > { %v14094_v4 = vpop.f32.mrb[95].mxu1  ;;  %v15230_v23 = vld [vmem:[%s18149_s12 + $0x20] sm:$0xff]  }
 0x4f7   : > { %v3527_v29 = vadd.f32 %v12591_v25, %v3520_v21  ;;  %v15232_v25 = vld [vmem:[%s18149_s12 + $0x28] sm:$0xff]   ;;  %v15233_v21 = vld [vmem:[%s18149_s12 + $0x38] sm:$0xff]   ;;  %v15234_v28 = vld [vmem:[%s18149_s12 + $0x40] sm:$0xff]  }
 0x4f8   : > { %v15235_v4 = vld [vmem:[%s18149_s12 + $0x50] sm:$0xff]  }
 0x4f9   : > { %v3528_v30 = vadd.f32 %v15488_v6, %v3527_v29  ;;  %v15236_v29 = vld [vmem:[%s18149_s12 + $0x48] sm:$0xff]   ;;  %v15237_v6 = vld [vmem:[%s18149_s12 + $0x58] sm:$0xff]  }
 0x4fb   : > { %v3531_v31 = vsel %vm3505_vm5, %v3528_v30, 0.0 }
 0x4fc   : > { %3532 = vadd.xlane.f32.xlu0 %v3531_v31  ;;  %v15239_v31 = vld [vmem:[%s18149_s12 + $0x70] sm:$0xff]  }
 0x589   : > { %v3533_v26 = vpop.xlane.xlu0 %3532 }
 0x58a   : > { %v3535_v32 = vmul.f32 0.03125, %v3533_v26  ;;  %v15240_v26 = vld [vmem:[%s18149_s12 + $0x68] sm:$0xff]  }
 0x58c   : > { %v3536_v34 = vsub.f32 %v3528_v30, %v3535_v32  ;;  %v15238_v30 = vld [vmem:[%s18149_s12 + $0x60] sm:$0xff]   ;;  %v15241_v32 = vld [vmem:[%s18149_s12 + $0x78] sm:$0xff]  }
 0x58e   : > { %v3537_v33 = vmul.f32 %v3536_v34, %v3536_v34 }
 0x590   : > { %v3538_v35 = vsel %vm3505_vm5, %v3537_v33, 0.0 }
 0x591   : > { %3539 = vadd.xlane.f32.xlu1 %v3538_v35 }
 0x61e   : > { %v3540_v27 = vpop.xlane.xlu1 %3539 }
 0x61f   : > { %v3541_v40 = vmul.f32 0.03125, %v3540_v27 }
 0x621   : > { %v3542_v41 = vadd.f32 1e-05, %v3541_v40 }
 0x623   : > { %15378 = vrsqrt.f32 %v3542_v41 }
 0x62d   : > { %v15379_v42 = vpop.eup %15378 }
 0x62e   : > { %v3544_v44 = vmul.f32 %v15379_v42, %v3536_v34 }
 0x630   : > { %v3551_v46 = vmul.f32 %v12592_v43, %v3544_v44 }
 0x632   : > { %v16258_v47 = vadd.f32 %v12593_v45, %v3551_v46 }
 0x634   : > { %v3688_v50 = vpack.c.bf16 %v16258_v47, %v16258_v47 }
 0x636   : > { %14100 = vmatmul.mubr.msk.bf16.vlgmr.msra.gmra.mrb[96].mxu0 %vm926_vm1, %v3688_v50  ;;  %14108 = vmatmul.mubr.msk.bf16.vlgmr.msra.gmra.mrb[96].mxu1 %vm926_vm1, %v3688_v50 }
 0x637   : > { %14112 = vmatpush3.bf16.msra.mxu0 %v15198_v48  ;;  %14120 = vmatpush3.bf16.msra.mxu1 %v15199_v49 }
 0x638   : > { %14113 = vmatprep.subr.bf16.mxu0 %v15497_v1  ;;  %14121 = vmatprep.subr.bf16.mxu1 %v15497_v1 }
 0x639   : > { %14115 = vmatprep.mubr.msk.bf16.mxu0 %vm15498_vm0, %v15497_v1  ;;  %14123 = vmatprep.mubr.msk.bf16.mxu1 %vm15498_vm0, %v15497_v1 }
 0x63b   : > { %14114 = vmatpush3.bf16.msra.mxu0 %v15200_v51  ;;  %14122 = vmatpush3.bf16.msra.mxu1 %v15201_v12 }
 0x63c   : > { %14127 = vmatprep.subr.bf16.mxu0 %v15497_v1  ;;  %14135 = vmatprep.subr.bf16.mxu1 %v15497_v1 }
 0x63e   : > { %14116 = vmatmul.mubr.msk.bf16.vlgmr.msra.gmra.mrb[100].mxu0 %vm926_vm1, %v3688_v50  ;;  %14124 = vmatmul.mubr.msk.bf16.vlgmr.msra.gmra.mrb[100].mxu1 %vm926_vm1, %v3688_v50 }
 0x63f   : > { %14128 = vmatpush3.bf16.msra.mxu0 %v15202_v14  ;;  %14136 = vmatpush3.bf16.msra.mxu1 %v15203_v52 }
 0x640   : > { %14129 = vmatprep.subr.bf16.mxu0 %v15497_v1  ;;  %14137 = vmatprep.subr.bf16.mxu1 %v15497_v1 }
 0x641   : > { %14131 = vmatprep.mubr.msk.bf16.mxu0 %vm15498_vm0, %v15497_v1  ;;  %14139 = vmatprep.mubr.msk.bf16.mxu1 %vm15498_vm0, %v15497_v1 }
 0x643   : > { %14130 = vmatpush3.bf16.msra.mxu0 %v15204_v53  ;;  %14138 = vmatpush3.bf16.msra.mxu1 %v15205_v54 }
 0x644   : > { %14143 = vmatprep.subr.bf16.mxu0 %v15497_v1  ;;  %14151 = vmatprep.subr.bf16.mxu1 %v15497_v1 }
 0x646   : > { %14132 = vmatmul.mubr.msk.bf16.vlgmr.msra.gmra.mrb[104].mxu0 %vm926_vm1, %v3688_v50  ;;  %14140 = vmatmul.mubr.msk.bf16.vlgmr.msra.gmra.mrb[104].mxu1 %vm926_vm1, %v3688_v50 }
 0x647   : > { %14144 = vmatpush3.bf16.msra.mxu0 %v15206_v55  ;;  %14152 = vmatpush3.bf16.msra.mxu1 %v15207_v56 }
 0x648   : > { %14145 = vmatprep.subr.bf16.mxu0 %v15497_v1  ;;  %14153 = vmatprep.subr.bf16.mxu1 %v15497_v1 }
 0x649   : > { %14147 = vmatprep.mubr.msk.bf16.mxu0 %vm15498_vm0, %v15497_v1  ;;  %14155 = vmatprep.mubr.msk.bf16.mxu1 %vm15498_vm0, %v15497_v1 }
 0x64b   : > { %14146 = vmatpush3.bf16.msra.mxu0 %v15208_v57  ;;  %14154 = vmatpush3.bf16.msra.mxu1 %v15209_v58 }
 0x64c   : > { %14159 = vmatprep.subr.bf16.mxu0 %v15497_v1  ;;  %14167 = vmatprep.subr.bf16.mxu1 %v15497_v1 }
 0x64e   : > { %14148 = vmatmul.mubr.msk.bf16.vlgmr.msra.gmra.mrb[108].mxu0 %vm926_vm1, %v3688_v50  ;;  %14156 = vmatmul.mubr.msk.bf16.vlgmr.msra.gmra.mrb[108].mxu1 %vm926_vm1, %v3688_v50 }
 0x64f   : > { %14160 = vmatpush3.bf16.msra.mxu0 %v15210_v60  ;;  %14168 = vmatpush3.bf16.msra.mxu1 %v15211_v62 }
 0x650   : > { %14161 = vmatprep.subr.bf16.mxu0 %v15497_v1  ;;  %14169 = vmatprep.subr.bf16.mxu1 %v15497_v1 }
 0x651   : > { %14163 = vmatprep.mubr.msk.bf16.mxu0 %vm15498_vm0, %v15497_v1  ;;  %14171 = vmatprep.mubr.msk.bf16.mxu1 %vm15498_vm0, %v15497_v1 }
 0x653   : > { %14162 = vmatpush3.bf16.msra.mxu0 %v15212_v63  ;;  %14170 = vmatpush3.bf16.msra.mxu1 %v15213_v0 }
 0x654   : > { %14175 = vmatprep.subr.bf16.mxu0 %v15497_v1  ;;  %14183 = vmatprep.subr.bf16.mxu1 %v15497_v1 }
 0x656   : > { %14164 = vmatmul.mubr.msk.bf16.vlgmr.msra.gmra.mrb[112].mxu0 %vm926_vm1, %v16358_v59  ;;  %14172 = vmatmul.mubr.msk.bf16.vlgmr.msra.gmra.mrb[112].mxu1 %vm926_vm1, %v16358_v59 }
 0x657   : > { %14176 = vmatpush3.bf16.msra.mxu0 %v15214_v3  ;;  %14184 = vmatpush3.bf16.msra.mxu1 %v15215_v61  ;;  %v12627_v3 = vld [vmem:[%s18151_s14 + $0x1] ss:$0 sm:$0xff]  ;;  %v12594_v61 = vld [vmem:[%s18150_s13] ss:$0 sm:$0xff] }
 0x658   : > { %14177 = vmatprep.subr.bf16.mxu0 %v15497_v1  ;;  %14185 = vmatprep.subr.bf16.mxu1 %v15497_v1 }
 0x659   : > { %14179 = vmatprep.mubr.msk.bf16.mxu0 %vm15498_vm0, %v15497_v1  ;;  %14187 = vmatprep.mubr.msk.bf16.mxu1 %vm15498_vm0, %v15497_v1 }
 0x65b   : > { %14178 = vmatpush3.bf16.msra.mxu0 %v15216_v8  ;;  %14186 = vmatpush3.bf16.msra.mxu1 %v15217_v5  ;;  %v12595_v8 = vld [vmem:[%s18150_s13 + $0x1] ss:$0 sm:$0xff] }
 0x65c   : > { %14191 = vmatprep.subr.bf16.mxu0 %v15497_v1  ;;  %14199 = vmatprep.subr.bf16.mxu1 %v15497_v1 }
 0x65e   : > { %14180 = vmatmul.mubr.msk.bf16.vlgmr.msra.gmra.mrb[116].mxu0 %vm926_vm1, %v16358_v59  ;;  %14188 = vmatmul.mubr.msk.bf16.vlgmr.msra.gmra.mrb[116].mxu1 %vm926_vm1, %v16358_v59 }
 0x65f   : > { %14192 = vmatpush3.bf16.msra.mxu0 %v15218_v7  ;;  %14200 = vmatpush3.bf16.msra.mxu1 %v15219_v9 }
 0x660   : > { %14193 = vmatprep.subr.bf16.mxu0 %v15497_v1  ;;  %14201 = vmatprep.subr.bf16.mxu1 %v15497_v1 }
 0x661   : > { %14195 = vmatprep.mubr.msk.bf16.mxu0 %vm15498_vm0, %v15497_v1  ;;  %14203 = vmatprep.mubr.msk.bf16.mxu1 %vm15498_vm0, %v15497_v1 }
 0x663   : > { %14194 = vmatpush3.bf16.msra.mxu0 %v15220_v10  ;;  %14202 = vmatpush3.bf16.msra.mxu1 %v15221_v11 }
 0x664   : > { %14207 = vmatprep.subr.bf16.mxu0 %v15497_v1  ;;  %14215 = vmatprep.subr.bf16.mxu1 %v15497_v1 }
 0x666   : > { %14196 = vmatmul.mubr.msk.bf16.vlgmr.msra.gmra.mrb[120].mxu0 %vm926_vm1, %v16358_v59  ;;  %14204 = vmatmul.mubr.msk.bf16.vlgmr.msra.gmra.mrb[120].mxu1 %vm926_vm1, %v16358_v59 }
 0x667   : > { %14208 = vmatpush3.bf16.msra.mxu0 %v15222_v13  ;;  %14216 = vmatpush3.bf16.msra.mxu1 %v15223_v15 }
 0x668   : > { %14209 = vmatprep.subr.bf16.mxu0 %v15497_v1  ;;  %14217 = vmatprep.subr.bf16.mxu1 %v15497_v1 }
 0x669   : > { %14211 = vmatprep.mubr.msk.bf16.mxu0 %vm15498_vm0, %v15497_v1  ;;  %14219 = vmatprep.mubr.msk.bf16.mxu1 %vm15498_vm0, %v15497_v1 }
 0x66b   : > { %14210 = vmatpush3.bf16.msra.mxu0 %v15224_v18  ;;  %14218 = vmatpush3.bf16.msra.mxu1 %v15225_v16 }
 0x66c   : > { %14223 = vmatprep.subr.bf16.mxu0 %v15497_v1  ;;  %14231 = vmatprep.subr.bf16.mxu1 %v15497_v1 }
 0x66e   : > { %14212 = vmatmul.mubr.msk.bf16.vlgmr.msra.gmra.mrb[124].mxu0 %vm926_vm1, %v16358_v59  ;;  %14220 = vmatmul.mubr.msk.bf16.vlgmr.msra.gmra.mrb[124].mxu1 %vm926_vm1, %v16358_v59 }
 0x66f   : > { %14224 = vmatpush3.bf16.msra.mxu0 %v15226_v17  ;;  %14227 = vmatprep.mubr.msk.bf16.mxu0 %vm15498_vm0, %v15497_v1 }
 0x670   : > { %14225 = vmatprep.subr.bf16.mxu0 %v15497_v1  ;;  %14235 = vmatprep.mubr.msk.bf16.mxu1 %vm15498_vm0, %v15497_v1 }
 0x671   : > { %14232 = vmatpush3.bf16.msra.mxu1 %v15227_v19 }
 0x672   : > { %14233 = vmatprep.subr.bf16.mxu1 %v15497_v1 }
 0x673   : > { %14226 = vmatpush3.bf16.msra.mxu0 %v15228_v20 }
 0x674   : > { %14239 = vmatprep.subr.bf16.mxu0 %v15497_v1 }
 0x675   : > { %14234 = vmatpush3.bf16.msra.mxu1 %v15229_v22 }
 0x676   : > { %14228 = vmatmul.mubr.msk.bf16.vlgmr.msra.gmra.mrb[128].mxu0 %vm926_vm1, %v16358_v59  ;;  %14247 = vmatprep.subr.bf16.mxu1 %v15497_v1 }
 0x677   : > { %14240 = vmatpush3.bf16.msra.mxu0 %v15230_v23  ;;  %14243 = vmatprep.mubr.msk.bf16.mxu0 %vm15498_vm0, %v15497_v1 }
 0x678   : > { %14236 = vmatmul.mubr.msk.bf16.vlgmr.msra.gmra.mrb[128].mxu1 %vm926_vm1, %v16358_v59  ;;  %14241 = vmatprep.subr.bf16.mxu0 %v15497_v1 }
 0x679   : > { %14248 = vmatpush3.bf16.msra.mxu1 %v15231_v24  ;;  %14251 = vmatprep.mubr.msk.bf16.mxu1 %vm15498_vm0, %v15497_v1 }
 0x67a   : > { %14249 = vmatprep.subr.bf16.mxu1 %v15497_v1 }
 0x67b   : > { %14242 = vmatpush3.bf16.msra.mxu0 %v15232_v25 }
 0x67c   : > { %14255 = vmatprep.subr.bf16.mxu0 %v15497_v1 }
 0x67d   : > { %14250 = vmatpush3.bf16.msra.mxu1 %v15233_v21 }
 0x67e   : > { %14244 = vmatmul.mubr.msk.bf16.vlgmr.msra.gmra.mrb[132].mxu0 %vm926_vm1, %v16358_v59  ;;  %14263 = vmatprep.subr.bf16.mxu1 %v15497_v1 }
 0x67f   : > { %14256 = vmatpush3.bf16.msra.mxu0 %v15234_v28  ;;  %14259 = vmatprep.mubr.msk.bf16.mxu0 %vm15498_vm0, %v15497_v1 }
 0x680   : > { %14252 = vmatmul.mubr.msk.bf16.vlgmr.msra.gmra.mrb[132].mxu1 %vm926_vm1, %v16358_v59  ;;  %14257 = vmatprep.subr.bf16.mxu0 %v15497_v1 }
 0x681   : > { %14264 = vmatpush3.bf16.msra.mxu1 %v15235_v4  ;;  %14267 = vmatprep.mubr.msk.bf16.mxu1 %vm15498_vm0, %v15497_v1  ;;  %v12628_v4 = vld [vmem:[%s18151_s14 + $0x2] ss:$0 sm:$0xff] }
 0x682   : > { %14265 = vmatprep.subr.bf16.mxu1 %v15497_v1 }
 0x683   : > { %14258 = vmatpush3.bf16.msra.mxu0 %v15236_v29  ;;  %v12629_v29 = vld [vmem:[%s18151_s14 + $0x3] ss:$0 sm:$0xff] }
 0x684   : > { %14271 = vmatprep.subr.bf16.mxu0 %v15497_v1 }
 0x685   : > { %14266 = vmatpush3.bf16.msra.mxu1 %v15237_v6  ;;  %v12596_v6 = vld [vmem:[%s18150_s13 + $0x2] ss:$0 sm:$0xff] }
 0x686   : > { %14260 = vmatmul.mubr.msk.bf16.vlgmr.msra.gmra.mrb[136].mxu0 %vm926_vm1, %v16358_v59  ;;  %14279 = vmatprep.subr.bf16.mxu1 %v15497_v1 }
 0x687   : > { %14275 = vmatprep.mubr.msk.bf16.mxu0 %vm15498_vm0, %v15497_v1  ;;  %14272 = vmatpush3.bf16.msra.mxu0 %v15238_v30  ;;  %v12597_v30 = vld [vmem:[%s18150_s13 + $0x3] ss:$0 sm:$0xff] }
 0x688   : > { %14268 = vmatmul.mubr.msk.bf16.vlgmr.msra.gmra.mrb[136].mxu1 %vm926_vm1, %v16358_v59  ;;  %14273 = vmatprep.subr.bf16.mxu0 %v15497_v1 }
 0x689   : > { %14280 = vmatpush3.bf16.msra.mxu1 %v15239_v31  ;;  %14283 = vmatprep.mubr.msk.bf16.mxu1 %vm15498_vm0, %v15497_v1 }
 0x68a   : > { %14281 = vmatprep.subr.bf16.mxu1 %v15497_v1 }
 0x68b   : > { %14274 = vmatpush3.bf16.msra.mxu0 %v15240_v26 }
 0x68c   : > { %14287 = vmatprep.subr.bf16.mxu0 %v15497_v1 }
 0x68d   : > { %14282 = vmatpush3.bf16.msra.mxu1 %v15241_v32 }
 0x68e   : > { %14293 = vmatprep.subr.bf16.mxu1 %v15497_v1  ;;  %14276 = vmatmul.mubr.msk.bf16.vlgmr.msra.gmra.mrb[140].mxu0 %vm926_vm1, %v16358_v59 }
 0x68f   : > { %14289 = vmatprep.mubr.msk.bf16.mxu0 %vm15498_vm0, %v15497_v1 }
 0x690   : > { %14284 = vmatmul.mubr.msk.bf16.vlgmr.msra.gmra.mrb[140].mxu1 %vm926_vm1, %v16358_v59 }
 0x691   : > { %14295 = vmatprep.mubr.msk.bf16.mxu1 %vm15498_vm0, %v15497_v1 }
 0x709   : > { %v3787_v34 = vpop.f32.mrb[96].mxu0  ;;  %v3839_v33 = vpop.f32.mrb[96].mxu1 }
 0x70a   : > { %v14101_v35 = vpop.f32.mrb[97].mxu0  ;;  %v14109_v36 = vpop.f32.mrb[97].mxu1  ;;  %v3788_v15 = vadd.f32 %v12594_v61, %v3787_v34  ;;  %v3840_v18 = vadd.f32 %v12595_v8, %v3839_v33 }
 0x70b   : > { %v3790_v37 = vpop.f32.mrb[98].mxu0  ;;  %v3842_v38 = vpop.f32.mrb[98].mxu1 }
 0x70c   : > { %v14102_v39 = vpop.f32.mrb[99].mxu0  ;;  %v14110_v27 = vpop.f32.mrb[99].mxu1  ;;  %v5088_v21 = vmul.f32 0.5, %v3788_v15  ;;  %v5089_v28 = vmul.f32 0.5, %v3840_v18 }
 0x70e   : > { %v5096_v36 = vpack.c.bf16 %v5088_v21, %v5088_v21  ;;  %v5097_v37 = vpack.c.bf16 %v5089_v28, %v5089_v28 }
 0x711   : > { %v16538_v40 = vpop.f32.mrb[100].mxu0  ;;  %v16540_v41 = vpop.f32.mrb[100].mxu1 }
 0x712   : > { %v14117_v42 = vpop.f32.mrb[101].mxu0  ;;  %v14125_v43 = vpop.f32.mrb[101].mxu1  ;;  %v3892_v27 = vadd.f32 %v12596_v6, %v16538_v40  ;;  %v12630_v40 = vld [vmem:[%s18151_s14 + $0x4] ss:$0 sm:$0xff] }
 0x713   : > { %v3894_v44 = vpop.f32.mrb[102].mxu0  ;;  %v3946_v45 = vpop.f32.mrb[102].mxu1  ;;  %v3944_v42 = vadd.f32 %v12597_v30, %v16540_v41  ;;  %v12631_v41 = vld [vmem:[%s18151_s14 + $0x5] ss:$0 sm:$0xff] }
 0x714   : > { %v14118_v46 = vpop.f32.mrb[103].mxu0  ;;  %v14126_v48 = vpop.f32.mrb[103].mxu1 }
 0x719   : > { %v16542_v49 = vpop.f32.mrb[104].mxu0  ;;  %v16544_v50 = vpop.f32.mrb[104].mxu1 }
 0x71a   : > { %v14133_v51 = vpop.f32.mrb[105].mxu0  ;;  %v14141_v12 = vpop.f32.mrb[105].mxu1 }
 0x71b   : > { %v3998_v14 = vpop.f32.mrb[106].mxu0  ;;  %v4050_v52 = vpop.f32.mrb[106].mxu1  ;;  %v5090_v12 = vmul.f32 0.5, %v3892_v27  ;;  %v15499_v27 = vmov 65535  }
 0x71c   : > { %v14134_v53 = vpop.f32.mrb[107].mxu0  ;;  %v14142_v54 = vpop.f32.mrb[107].mxu1  ;;  %v5091_v14 = vmul.f32 0.5, %v3944_v42  ;;  %v12598_v52 = vld [vmem:[%s18150_s13 + $0x4] ss:$0 sm:$0xff]  ;;  %v5590_v42 = vsel %vm2763_vm3, 4294967295, %v15499_v27 }
 0x71d   : > { %v12599_v53 = vld [vmem:[%s18150_s13 + $0x5] ss:$0 sm:$0xff]  ;;  %v5098_v8 = vpack.c.bf16 %v5090_v12, %v5090_v12 }
 0x721   : > { %v16546_v55 = vpop.f32.mrb[108].mxu0  ;;  %v16548_v56 = vpop.f32.mrb[108].mxu1 }
 0x722   : > { %v14149_v57 = vpop.f32.mrb[109].mxu0  ;;  %v14157_v58 = vpop.f32.mrb[109].mxu1 }
 0x723   : > { %v4102_v60 = vpop.f32.mrb[110].mxu0  ;;  %v4154_v62 = vpop.f32.mrb[110].mxu1 }
 0x724   : > { %v14150_v63 = vpop.f32.mrb[111].mxu0  ;;  %v14158_v0 = vpop.f32.mrb[111].mxu1 }
 0x725   : > { %v3996_v0 = vadd.f32 %v12598_v52, %v16542_v49 }
 0x727   : > { %v5092_v18 = vmul.f32 0.5, %v3996_v0 }
 0x729   : > { %v4254_v5 = vpop.f32.mrb[112].mxu0  ;;  %v4306_v7 = vpop.f32.mrb[112].mxu1  ;;  %v5100_v28 = vpack.c.bf16 %v5092_v18, %v5092_v18 }
 0x72a   : > { %v4255_v9 = vadd.f32 %v12626_v2, %v4254_v5  ;;  %v4307_v10 = vadd.f32 %v12627_v3, %v4306_v7  ;;  %v14165_v11 = vpop.f32.mrb[113].mxu0  ;;  %v14173_v13 = vpop.f32.mrb[113].mxu1  ;;  %v4048_v2 = vadd.f32 %v12599_v53, %v16544_v50  ;;  %v5099_v5 = vpack.c.bf16 %v5091_v14, %v5091_v14  ;;  %v12632_v50 = vld [vmem:[%s18151_s14 + $0x6] ss:$0 sm:$0xff] }
 0x72b   : > { %v4257_v16 = vpop.f32.mrb[114].mxu0  ;;  %v4309_v17 = vpop.f32.mrb[114].mxu1 }
 0x72c   : > { %v5104_v19 = vpack.c.bf16 %v4255_v9, %v4255_v9  ;;  %v5105_v20 = vpack.c.bf16 %v4307_v10, %v4307_v10  ;;  %v14166_v22 = vpop.f32.mrb[115].mxu0  ;;  %v14174_v23 = vpop.f32.mrb[115].mxu1  ;;  %v5093_v49 = vmul.f32 0.5, %v4048_v2  ;;  %v12633_v16 = vld [vmem:[%s18151_s14 + $0x7] ss:$0 sm:$0xff] }
 0x72d   : > { %v12600_v17 = vld [vmem:[%s18150_s13 + $0x6] ss:$0 sm:$0xff] }
 0x72e   : > { %v5116_v24 = vsel %vm2286_vm2, %v5104_v19, 0  ;;  %v5162_v25 = vsel %vm2286_vm2, %v5105_v20, 0  ;;  %v12601_v19 = vld [vmem:[%s18150_s13 + $0x7] ss:$0 sm:$0xff]  ;;  %v4100_v30 = vadd.f32 %v12600_v17, %v16546_v55 }
 0x72f   : > { %14288 = vmatpush3.bf16.xpose.msra.mxu0 %v5116_v24  ;;  %14294 = vmatpush3.bf16.xpose.msra.mxu1 %v5162_v25 }
 0x730   : > { %14299 = vmatprep.subr.bf16.mxu0 %v15497_v1  ;;  %14305 = vmatprep.subr.bf16.mxu1 %v15497_v1 }
 0x731   : > { %v4358_v31 = vpop.f32.mrb[116].mxu0  ;;  %v4410_v26 = vpop.f32.mrb[116].mxu1 }
 0x732   : > { %v4359_v32 = vadd.f32 %v12628_v4, %v4358_v31  ;;  %v4411_v34 = vadd.f32 %v12629_v29, %v4410_v26  ;;  %v14181_v33 = vpop.f32.mrb[117].mxu0  ;;  %v14189_v35 = vpop.f32.mrb[117].mxu1  ;;  %v5101_v4 = vpack.c.bf16 %v5093_v49, %v5093_v49  ;;  %v4152_v31 = vadd.f32 %v12601_v19, %v16548_v56 }
 0x733   : > { %v4361_v38 = vpop.f32.mrb[118].mxu0  ;;  %v4413_v39 = vpop.f32.mrb[118].mxu1 }
 0x734   : > { %v5106_v43 = vpack.c.bf16 %v4359_v32, %v4359_v32  ;;  %v5107_v44 = vpack.c.bf16 %v4411_v34, %v4411_v34  ;;  %v14182_v45 = vpop.f32.mrb[119].mxu0  ;;  %v14190_v46 = vpop.f32.mrb[119].mxu1  ;;  %v5095_v38 = vmul.f32 0.5, %v4152_v31  ;;  %v12658_v39 = vld [vmem:[%s18152_s15] ss:$0 sm:$0xff] }
 0x736   : > { %14290 = vmatmul.mubr.msk.bf16.vlgmr.msra.gmra.mrb[144].mxu0 %vm2286_vm2, %v5096_v36  ;;  %14296 = vmatmul.mubr.msk.bf16.vlgmr.msra.gmra.mrb[144].mxu1 %vm2286_vm2, %v5097_v37  ;;  %v5208_v48 = vsel %vm2286_vm2, %v5106_v43, 0  ;;  %v5254_v51 = vsel %vm2286_vm2, %v5107_v44, 0  ;;  %v5094_v37 = vmul.f32 0.5, %v4100_v30  ;;  %v5103_v56 = vpack.c.bf16 %v5095_v38, %v5095_v38  ;;  %v12659_v44 = vld [vmem:[%s18152_s15 + $0x1] ss:$0 sm:$0xff] }
 0x737   : > { %14300 = vmatpush3.bf16.xpose.msra.mxu0 %v5208_v48  ;;  %14306 = vmatpush3.bf16.xpose.msra.mxu1 %v5254_v51  ;;  %v16651_v48 = vsel %vm5589_vm6, %v5590_v42, 0 }
 0x738   : > { %14301 = vmatprep.mubr.msk.bf16.mxu0 %vm15498_vm0, %v15497_v1  ;;  %14307 = vmatprep.mubr.msk.bf16.mxu1 %vm15498_vm0, %v15497_v1  ;;  %v5102_v55 = vpack.c.bf16 %v5094_v37, %v5094_v37 }
 0x739   : > { %v4462_v54 = vpop.f32.mrb[120].mxu0  ;;  %v4514_v57 = vpop.f32.mrb[120].mxu1  ;;  %14311 = vmatprep.subr.bf16.mxu0 %v15497_v1  ;;  %14317 = vmatprep.subr.bf16.mxu1 %v15497_v1 }
 0x73a   : > { %v4463_v58 = vadd.f32 %v12630_v40, %v4462_v54  ;;  %v4515_v60 = vadd.f32 %v12631_v41, %v4514_v57  ;;  %v14197_v62 = vpop.f32.mrb[121].mxu0  ;;  %v14205_v63 = vpop.f32.mrb[121].mxu1 }
 0x73b   : > { %v4465_v3 = vpop.f32.mrb[122].mxu0  ;;  %v4517_v61 = vpop.f32.mrb[122].mxu1 }
 0x73c   : > { %v5108_v7 = vpack.c.bf16 %v4463_v58, %v4463_v58  ;;  %v5109_v9 = vpack.c.bf16 %v4515_v60, %v4515_v60  ;;  %v14198_v10 = vpop.f32.mrb[123].mxu0  ;;  %v14206_v11 = vpop.f32.mrb[123].mxu1 }
 0x73e   : > { %14302 = vmatmul.mubr.msk.bf16.vlgmr.msra.gmra.mrb[148].mxu0 %vm2286_vm2, %v5098_v8  ;;  %14308 = vmatmul.mubr.msk.bf16.vlgmr.msra.gmra.mrb[148].mxu1 %vm2286_vm2, %v5099_v5  ;;  %v5300_v13 = vsel %vm2286_vm2, %v5108_v7, 0  ;;  %v5346_v15 = vsel %vm2286_vm2, %v5109_v9, 0 }
 0x73f   : > { %14312 = vmatpush3.bf16.xpose.msra.mxu0 %v5300_v13  ;;  %14318 = vmatpush3.bf16.xpose.msra.mxu1 %v5346_v15 }
 0x740   : > { %14313 = vmatprep.mubr.msk.bf16.mxu0 %vm15498_vm0, %v15497_v1  ;;  %14319 = vmatprep.mubr.msk.bf16.mxu1 %vm15498_vm0, %v15497_v1 }
 0x741   : > { %v4566_v20 = vpop.f32.mrb[124].mxu0  ;;  %v4618_v22 = vpop.f32.mrb[124].mxu1  ;;  %14323 = vmatprep.subr.bf16.mxu0 %v15497_v1  ;;  %14329 = vmatprep.subr.bf16.mxu1 %v15497_v1 }
 0x742   : > { %v4567_v23 = vadd.f32 %v12632_v50, %v4566_v20  ;;  %v4619_v24 = vadd.f32 %v12633_v16, %v4618_v22  ;;  %v14213_v25 = vpop.f32.mrb[125].mxu0  ;;  %v14221_v21 = vpop.f32.mrb[125].mxu1 }
 0x743   : > { %v4569_v29 = vpop.f32.mrb[126].mxu0  ;;  %v4621_v6 = vpop.f32.mrb[126].mxu1 }
 0x744   : > { %v5110_v26 = vpack.c.bf16 %v4567_v23, %v4567_v23  ;;  %v5111_v32 = vpack.c.bf16 %v4619_v24, %v4619_v24  ;;  %v14214_v34 = vpop.f32.mrb[127].mxu0  ;;  %v14222_v33 = vpop.f32.mrb[127].mxu1 }
 0x746   : > { %14314 = vmatmul.mubr.msk.bf16.vlgmr.msra.gmra.mrb[152].mxu0 %vm2286_vm2, %v5100_v28  ;;  %14320 = vmatmul.mubr.msk.bf16.vlgmr.msra.gmra.mrb[152].mxu1 %vm2286_vm2, %v5101_v4  ;;  %v5392_v35 = vsel %vm2286_vm2, %v5110_v26, 0  ;;  %v5438_v36 = vsel %vm2286_vm2, %v5111_v32, 0 }
 0x747   : > { %14324 = vmatpush3.bf16.xpose.msra.mxu0 %v5392_v35  ;;  %14330 = vmatpush3.bf16.xpose.msra.mxu1 %v5438_v36 }
 0x748   : > { %14325 = vmatprep.mubr.msk.bf16.mxu0 %vm15498_vm0, %v15497_v1  ;;  %14331 = vmatprep.mubr.msk.bf16.mxu1 %vm15498_vm0, %v15497_v1 }
 0x749   : > { %14335 = vmatprep.subr.bf16.mxu0 %v15497_v1  ;;  %14341 = vmatprep.subr.bf16.mxu1 %v15497_v1  ;;  %v4718_v43 = vpop.f32.mrb[128].mxu0 }
 0x74a   : > { %v4719_v45 = vadd.f32 %v12658_v39, %v4718_v43  ;;  %v14229_v46 = vpop.f32.mrb[129].mxu0 }
 0x74b   : > { %v4721_v51 = vpop.f32.mrb[130].mxu0  ;;  %v4770_v40 = vpop.f32.mrb[128].mxu1 }
 0x74c   : > { %v5577_v41 = vpack.c.bf16 %v4719_v45, %v4719_v45  ;;  %v4771_v12 = vadd.f32 %v12659_v44, %v4770_v40  ;;  %v14230_v14 = vpop.f32.mrb[131].mxu0  ;;  %v14237_v52 = vpop.f32.mrb[129].mxu1 }
 0x74d   : > { %v4773_v53 = vpop.f32.mrb[130].mxu1 }
 0x74e   : > { %14326 = vmatmul.mubr.msk.bf16.vlgmr.msra.gmra.mrb[156].mxu0 %vm2286_vm2, %v5102_v55  ;;  %14332 = vmatmul.mubr.msk.bf16.vlgmr.msra.gmra.mrb[156].mxu1 %vm2286_vm2, %v5103_v56  ;;  %v5593_v54 = vand.u32 %v16651_v48, %v5577_v41  ;;  %v5578_v57 = vpack.c.bf16 %v4771_v12, %v4771_v12  ;;  %v14238_v58 = vpop.f32.mrb[131].mxu1 }
 0x74f   : > { %14337 = vmatprep.mubr.msk.bf16.mxu0 %vm15498_vm0, %v15497_v1  ;;  %14343 = vmatprep.mubr.msk.bf16.mxu1 %vm15498_vm0, %v15497_v1 }
 0x750   : > { %v5639_v60 = vand.u32 %v16651_v48, %v5578_v57  ;;  %14336 = vmatpush3.bf16.msra.mxu0 %v5593_v54 }
 0x751   : > { %v16655_v62 = vpop.f32.mrb[132].mxu0  ;;  %14347 = vmatprep.subr.bf16.mxu0 %v15497_v1 }
 0x752   : > { %v14245_v63 = vpop.f32.mrb[133].mxu0  ;;  %14342 = vmatpush3.bf16.msra.mxu1 %v5639_v60 }
 0x753   : > { %v4825_v0 = vpop.f32.mrb[134].mxu0  ;;  %v16658_v2 = vpop.f32.mrb[132].mxu1  ;;  %14353 = vmatprep.subr.bf16.mxu1 %v15497_v1 }
 0x754   : > { %v14246_v3 = vpop.f32.mrb[135].mxu0  ;;  %v14253_v61 = vpop.f32.mrb[133].mxu1 }
 0x755   : > { %v4877_v8 = vpop.f32.mrb[134].mxu1 }
 0x756   : > { %v14254_v5 = vpop.f32.mrb[135].mxu1 }
 0x759   : > { %v16661_v7 = vpop.f32.mrb[136].mxu0 }
 0x75a   : > { %v14261_v9 = vpop.f32.mrb[137].mxu0 }
 0x75b   : > { %v4929_v10 = vpop.f32.mrb[138].mxu0  ;;  %v16663_v11 = vpop.f32.mrb[136].mxu1 }
 0x75c   : > { %v14262_v13 = vpop.f32.mrb[139].mxu0  ;;  %v14269_v15 = vpop.f32.mrb[137].mxu1 }
 0x75d   : > { %v4981_v18 = vpop.f32.mrb[138].mxu1 }
 0x75e   : > { %v14270_v49 = vpop.f32.mrb[139].mxu1 }
 0x761   : > { %v16665_v50 = vpop.f32.mrb[140].mxu0 }
 0x762   : > { %v14277_v17 = vpop.f32.mrb[141].mxu0 }
 0x763   : > { %v16667_v16 = vpop.f32.mrb[140].mxu1  ;;  %v5033_v20 = vpop.f32.mrb[142].mxu0 }
 0x764   : > { %v14285_v19 = vpop.f32.mrb[141].mxu1  ;;  %v14278_v23 = vpop.f32.mrb[143].mxu0 }
 0x765   : > { %v5085_v22 = vpop.f32.mrb[142].mxu1 }
 0x766   : > { %v14286_v24 = vpop.f32.mrb[143].mxu1 }
 0x809   : > { %v5152_v25 = vpop.f32.mrb[144].mxu0  ;;  %v5198_v21 = vpop.f32.mrb[144].mxu1 }
 0x80a   : > { %v14291_v28 = vpop.f32.mrb[145].mxu0  ;;  %v14297_v4 = vpop.f32.mrb[145].mxu1  ;;  %v5484_v29 = vsel %vm5480_vm7, %v5198_v21, -inf  ;;  %v5481_v6 = vsel %vm5480_vm7, %v5152_v25, -inf }
 0x80b   : > { %5485 = vmax.xlane.f32.xlu1 %v5484_v29  ;;  %v5201_v30 = vpop.f32.mrb[146].mxu1  ;;  %5482 = vmax.xlane.f32.xlu0 %v5481_v6  ;;  %v5155_v31 = vpop.f32.mrb[146].mxu0 }
 0x80c   : > { %v14292_v26 = vpop.f32.mrb[147].mxu0  ;;  %v14298_v32 = vpop.f32.mrb[147].mxu1 }
 0x811   : > { %v5244_v34 = vpop.f32.mrb[148].mxu0  ;;  %v5290_v33 = vpop.f32.mrb[148].mxu1 }
 0x812   : > { %v14303_v35 = vpop.f32.mrb[149].mxu0  ;;  %v14309_v36 = vpop.f32.mrb[149].mxu1  ;;  %v5490_v37 = vsel %vm5480_vm7, %v5290_v33, -inf  ;;  %v5487_v38 = vsel %vm5480_vm7, %v5244_v34, -inf }
 0x813   : > { %5491 = vmax.xlane.f32.xlu1 %v5490_v37  ;;  %v5293_v55 = vpop.f32.mrb[150].mxu1  ;;  %5488 = vmax.xlane.f32.xlu0 %v5487_v38  ;;  %v5247_v56 = vpop.f32.mrb[150].mxu0 }
 0x814   : > { %v14304_v39 = vpop.f32.mrb[151].mxu0  ;;  %v14310_v27 = vpop.f32.mrb[151].mxu1 }
 0x819   : > { %v5336_v42 = vpop.f32.mrb[152].mxu0  ;;  %v5382_v43 = vpop.f32.mrb[152].mxu1 }
 0x81a   : > { %v14315_v44 = vpop.f32.mrb[153].mxu0  ;;  %v14321_v45 = vpop.f32.mrb[153].mxu1  ;;  %v5496_v46 = vsel %vm5480_vm7, %v5382_v43, -inf  ;;  %v5493_v51 = vsel %vm5480_vm7, %v5336_v42, -inf }
 0x81b   : > { %5497 = vmax.xlane.f32.xlu1 %v5496_v46  ;;  %v5385_v40 = vpop.f32.mrb[154].mxu1  ;;  %5494 = vmax.xlane.f32.xlu0 %v5493_v51  ;;  %v5339_v41 = vpop.f32.mrb[154].mxu0 }
 0x81c   : > { %v14316_v12 = vpop.f32.mrb[155].mxu0  ;;  %v14322_v14 = vpop.f32.mrb[155].mxu1 }
 0x81d   : > { %v12661_v12 = vld [vmem:[%s18152_s15 + $0x3] ss:$0 sm:$0xff]  ;;  %v12660_v14 = vld [vmem:[%s18152_s15 + $0x2] ss:$0 sm:$0xff] }
 0x821   : > { %v5428_v52 = vpop.f32.mrb[156].mxu0  ;;  %v5474_v53 = vpop.f32.mrb[156].mxu1 }
 0x822   : > { %v14327_v54 = vpop.f32.mrb[157].mxu0  ;;  %v14333_v57 = vpop.f32.mrb[157].mxu1  ;;  %v5502_v58 = vsel %vm5480_vm7, %v5474_v53, -inf  ;;  %v5499_v60 = vsel %vm5480_vm7, %v5428_v52, -inf }
 0x823   : > { %5503 = vmax.xlane.f32.xlu1 %v5502_v58  ;;  %v5477_v63 = vpop.f32.mrb[158].mxu1  ;;  %5500 = vmax.xlane.f32.xlu0 %v5499_v60  ;;  %v5431_v0 = vpop.f32.mrb[158].mxu0 }
 0x824   : > { %v14328_v3 = vpop.f32.mrb[159].mxu0  ;;  %v14334_v61 = vpop.f32.mrb[159].mxu1 }
 0x825   : > { %v12663_v3 = vld [vmem:[%s18152_s15 + $0x5] ss:$0 sm:$0xff] }
 0x898   : > { %v5486_v8 = vpop.xlane.xlu1 %5485  ;;  %v5483_v5 = vpop.xlane.xlu0 %5482 }
 0x899   : > { %v5506_v9 = vsub.f32 %v5198_v21, %v5486_v8  ;;  %v5505_v10 = vsub.f32 %v5152_v25, %v5483_v5  ;;  %v12662_v8 = vld [vmem:[%s18152_s15 + $0x4] ss:$0 sm:$0xff] }
 0x89b   : > { %v5515_v13 = vmul.f32 1.442695, %v5506_v9  ;;  %v5513_v15 = vmul.f32 1.442695, %v5505_v10  ;;  %v4979_v9 = vadd.f32 %v12663_v3, %v16663_v11 }
 0x89d   : > { %15380 = vpow2.f32 %v5515_v13  ;;  %v5582_v11 = vpack.c.bf16 %v4979_v9, %v4979_v9 }
 0x89e   : > { %15382 = vpow2.f32 %v5513_v15  ;;  %v4927_v15 = vadd.f32 %v12662_v8, %v16661_v7  ;;  %v3684_v8 = vld [vmem:[%s18153_s16 + $0xa] sm:$0x3] }
 0x8a0   : > { %v5492_v18 = vpop.xlane.xlu1 %5491  ;;  %v5489_v49 = vpop.xlane.xlu0 %5488 }
 0x8a1   : > { %v5508_v17 = vsub.f32 %v5290_v33, %v5492_v18  ;;  %v5507_v19 = vsub.f32 %v5244_v34, %v5489_v49 }
 0x8a3   : > { %v5519_v20 = vmul.f32 1.442695, %v5508_v17  ;;  %v5517_v22 = vmul.f32 1.442695, %v5507_v19  ;;  %v5581_v19 = vpack.c.bf16 %v4927_v15, %v4927_v15 }
 0x8a5   : > { %15384 = vpow2.f32 %v5519_v20  ;;  %v12665_v20 = vld [vmem:[%s18152_s15 + $0x7] ss:$0 sm:$0xff] }
 0x8a6   : > { %15386 = vpow2.f32 %v5517_v22 }
 0x8a7   : > { %v15381_v23 = vpop.eup %15380 }
 0x8a8   : > { %v15383_v24 = vpop.eup %15382  ;;  %v5498_v28 = vpop.xlane.xlu1 %5497  ;;  %v5532_v29 = vsel %vm5480_vm7, %v15381_v23, 0.0 }
 0x8a9   : > { %v5495_v4 = vpop.xlane.xlu0 %5494  ;;  %v5510_v21 = vsub.f32 %v5382_v43, %v5498_v28  ;;  %5533 = vadd.xlane.f32.xlu1 %v5532_v29  ;;  %v5529_v6 = vsel %vm5480_vm7, %v15383_v24, 0.0  ;;  %v5083_v29 = vadd.f32 %v12665_v20, %v16667_v16  ;;  %v3686_v20 = vld [vmem:[%s18153_s16 + $0xe] sm:$0x3] }
 0x8aa   : > { %v5509_v25 = vsub.f32 %v5336_v42, %v5495_v4  ;;  %5530 = vadd.xlane.f32.xlu0 %v5529_v6  ;;  %v5823_v4 = vand.u32 %v16651_v48, %v5582_v11 }
 0x8ab   : > { %v5523_v30 = vmul.f32 1.442695, %v5510_v21  ;;  %v5584_v16 = vpack.c.bf16 %v5083_v29, %v5083_v29  ;;  %v6291_v29 = vsel %vm2763_vm3, %v3686_v20, 0 }
 0x8ac   : > { %v5521_v31 = vmul.f32 1.442695, %v5509_v25  ;;  %v5777_v25 = vand.u32 %v16651_v48, %v5581_v19 }
 0x8ad   : > { %15388 = vpow2.f32 %v5523_v30 }
 0x8ae   : > { %15390 = vpow2.f32 %v5521_v31 }
 0x8af   : > { %v16679_v26 = vpop.eup %15384 }
 0x8b0   : > { %v16681_v32 = vpop.eup %15386  ;;  %v5504_v34 = vpop.xlane.xlu1 %5503  ;;  %v5538_v35 = vsel %vm5480_vm7, %v16679_v26, 0.0 }
 0x8b1   : > { %v5501_v33 = vpop.xlane.xlu0 %5500  ;;  %v5512_v36 = vsub.f32 %v5474_v53, %v5504_v34  ;;  %5539 = vadd.xlane.f32.xlu1 %v5538_v35  ;;  %v5535_v38 = vsel %vm5480_vm7, %v16681_v32, 0.0  ;;  %v4823_v53 = vadd.f32 %v12660_v14, %v16655_v62 }
 0x8b2   : > { %v5511_v37 = vsub.f32 %v5428_v52, %v5501_v33  ;;  %5536 = vadd.xlane.f32.xlu0 %v5535_v38  ;;  %v4875_v52 = vadd.f32 %v12661_v12, %v16658_v2 }
 0x8b3   : > { %v5527_v55 = vmul.f32 1.442695, %v5512_v36  ;;  %v5579_v0 = vpack.c.bf16 %v4823_v53, %v4823_v53  ;;  %v5915_v36 = vand.u32 %v16651_v48, %v5584_v16 }
 0x8b4   : > { %v5525_v56 = vmul.f32 1.442695, %v5511_v37  ;;  %v5580_v60 = vpack.c.bf16 %v4875_v52, %v4875_v52 }
 0x8b5   : > { %15392 = vpow2.f32 %v5527_v55  ;;  %v5685_v13 = vand.u32 %v16651_v48, %v5579_v0 }
 0x8b6   : > { %15394 = vpow2.f32 %v5525_v56  ;;  %v5731_v5 = vand.u32 %v16651_v48, %v5580_v60  ;;  %v3680_v56 = vld [vmem:[%s18153_s16 + $0x2] sm:$0x3] }
 0x8b7   : > { %v16687_v39 = vpop.eup %15388 }
 0x8b8   : > { %v16689_v27 = vpop.eup %15390  ;;  %v5544_v42 = vsel %vm5480_vm7, %v16687_v39, 0.0 }
 0x8b9   : > { %5545 = vadd.xlane.f32.xlu1 %v5544_v42  ;;  %v5541_v43 = vsel %vm5480_vm7, %v16689_v27, 0.0  ;;  %v3679_v42 = vld [vmem:[%s18153_s16] sm:$0x3] }
 0x8ba   : > { %5542 = vadd.xlane.f32.xlu0 %v5541_v43 }
 0x8bf   : > { %v16695_v44 = vpop.eup %15392 }
 0x8c0   : > { %v16697_v45 = vpop.eup %15394  ;;  %v5550_v46 = vsel %vm5480_vm7, %v16695_v44, 0.0 }
 0x8c1   : > { %5551 = vadd.xlane.f32.xlu1 %v5550_v46  ;;  %v5547_v51 = vsel %vm5480_vm7, %v16697_v45, 0.0 }
 0x8c2   : > { %5548 = vadd.xlane.f32.xlu0 %v5547_v51  ;;  %v6015_v51 = vsel %vm2763_vm3, %v3680_v56, 0 }
 0x936   : > { %v5534_v40 = vpop.xlane.xlu1 %5533 }
 0x937   : > { %15396 = vrcp.f32 %v5534_v40  ;;  %v5531_v41 = vpop.xlane.xlu0 %5530 }
 0x938   : > { %15398 = vrcp.f32 %v5531_v41  ;;  %v5969_v41 = vsel %vm2763_vm3, %v3679_v42, 0 }
 0x93e   : > { %v5540_v54 = vpop.xlane.xlu1 %5539 }
 0x93f   : > { %15400 = vrcp.f32 %v5540_v54  ;;  %v5537_v57 = vpop.xlane.xlu0 %5536 }
 0x940   : > { %15402 = vrcp.f32 %v5537_v57 }
 0x941   : > { %v15397_v58 = vpop.eup %15396 }
 0x942   : > { %v15399_v63 = vpop.eup %15398  ;;  %v5562_v61 = vmul.f32 %v15397_v58, %v15381_v23  ;;  %v12664_v23 = vld [vmem:[%s18152_s15 + $0x6] ss:$0 sm:$0xff] }
 0x943   : > { %v5561_v2 = vmul.f32 %v15399_v63, %v15383_v24  ;;  %v5031_v6 = vadd.f32 %v12664_v23, %v16665_v50 }
 0x944   : > { %v5570_v62 = vpack.c.bf16 %v5562_v61, %v5562_v61 }
 0x945   : > { %v5569_v10 = vpack.c.bf16 %v5561_v2, %v5561_v2  ;;  %v3683_v2 = vld [vmem:[%s18153_s16 + $0x8] sm:$0x3] }
 0x946   : > { %14344 = vmatmul.mubr.msk.bf16.vlgmr.msra.gmra.mrb[160].mxu1 %vm5585_vm8, %v5570_v62  ;;  %v5546_v18 = vpop.xlane.xlu1 %5545 }
 0x947   : > { %14354 = vmatpush3.bf16.msra.mxu1 %v5731_v5  ;;  %15404 = vrcp.f32 %v5546_v18  ;;  %14338 = vmatmul.mubr.msk.bf16.vlgmr.msra.gmra.mrb[160].mxu0 %vm5585_vm8, %v5569_v10  ;;  %v5543_v49 = vpop.xlane.xlu0 %5542 }
 0x948   : > { %14348 = vmatpush3.bf16.msra.mxu0 %v5685_v13  ;;  %15406 = vrcp.f32 %v5543_v49  ;;  %14349 = vmatprep.mubr.msk.bf16.mxu0 %vm15498_vm0, %v15497_v1  ;;  %v6199_v13 = vsel %vm2763_vm3, %v3684_v8, 0 }
 0x949   : > { %v15401_v17 = vpop.eup %15400  ;;  %14355 = vmatprep.mubr.msk.bf16.mxu1 %vm15498_vm0, %v15497_v1  ;;  %14359 = vmatprep.subr.bf16.mxu0 %v15497_v1 }
 0x94a   : > { %v15403_v7 = vpop.eup %15402  ;;  %v5564_v22 = vmul.f32 %v15401_v17, %v16679_v26  ;;  %14365 = vmatprep.subr.bf16.mxu1 %v15497_v1  ;;  %v6153_v17 = vsel %vm2763_vm3, %v3683_v2, 0 }
 0x94b   : > { %v5563_v24 = vmul.f32 %v15403_v7, %v16681_v32  ;;  %v5583_v32 = vpack.c.bf16 %v5031_v6, %v5031_v6 }
 0x94c   : > { %v5572_v28 = vpack.c.bf16 %v5564_v22, %v5564_v22  ;;  %v3685_v22 = vld [vmem:[%s18153_s16 + $0xc] sm:$0x3] }
 0x94d   : > { %v5571_v21 = vpack.c.bf16 %v5563_v24, %v5563_v24  ;;  %v5869_v38 = vand.u32 %v16651_v48, %v5583_v32 }
 0x94e   : > { %14356 = vmatmul.mubr.msk.bf16.vlgmr.msra.gmra.mrb[164].mxu1 %vm5585_vm8, %v5572_v28  ;;  %v5552_v30 = vpop.xlane.xlu1 %5551 }
 0x94f   : > { %14366 = vmatpush3.bf16.msra.mxu1 %v5823_v4  ;;  %15408 = vrcp.f32 %v5552_v30  ;;  %14350 = vmatmul.mubr.msk.bf16.vlgmr.msra.gmra.mrb[164].mxu0 %vm5585_vm8, %v5571_v21  ;;  %v5549_v31 = vpop.xlane.xlu0 %5548  ;;  %v6245_v30 = vsel %vm2763_vm3, %v3685_v22, 0 }
 0x950   : > { %14360 = vmatpush3.bf16.msra.mxu0 %v5777_v25  ;;  %15410 = vrcp.f32 %v5549_v31  ;;  %14361 = vmatprep.mubr.msk.bf16.mxu0 %vm15498_vm0, %v15497_v1 }
 0x951   : > { %v15405_v26 = vpop.eup %15404  ;;  %14367 = vmatprep.mubr.msk.bf16.mxu1 %vm15498_vm0, %v15497_v1  ;;  %14371 = vmatprep.subr.bf16.mxu0 %v15497_v1 }
 0x952   : > { %v15407_v50 = vpop.eup %15406  ;;  %v5566_v34 = vmul.f32 %v15405_v26, %v16687_v39  ;;  %14377 = vmatprep.subr.bf16.mxu1 %v15497_v1 }
 0x953   : > { %v5565_v33 = vmul.f32 %v15407_v50, %v16689_v27 }
 0x954   : > { %v5574_v35 = vpack.c.bf16 %v5566_v34, %v5566_v34 }
 0x955   : > { %v5573_v37 = vpack.c.bf16 %v5565_v33, %v5565_v33 }
 0x956   : > { %14368 = vmatmul.mubr.msk.bf16.vlgmr.msra.gmra.mrb[168].mxu1 %vm5585_vm8, %v5574_v35 }
 0x957   : > { %14362 = vmatmul.mubr.msk.bf16.vlgmr.msra.gmra.mrb[168].mxu0 %vm5585_vm8, %v5573_v37  ;;  %14378 = vmatpush3.bf16.msra.mxu1 %v5915_v36 }
 0x958   : > { %14372 = vmatpush3.bf16.msra.mxu0 %v5869_v38  ;;  %14373 = vmatprep.mubr.msk.bf16.mxu0 %vm15498_vm0, %v15497_v1 }
 0x959   : > { %v15409_v55 = vpop.eup %15408  ;;  %14379 = vmatprep.mubr.msk.bf16.mxu1 %vm15498_vm0, %v15497_v1  ;;  %14383 = vmatprep.subr.bf16.mxu0 %v15497_v1 }
 0x95a   : > { %v15411_v39 = vpop.eup %15410  ;;  %v5568_v27 = vmul.f32 %v15409_v55, %v16695_v44  ;;  %14389 = vmatprep.subr.bf16.mxu1 %v15497_v1  ;;  %v3682_v44 = vld [vmem:[%s18153_s16 + $0x6] sm:$0x3] }
 0x95b   : > { %v5567_v43 = vmul.f32 %v15411_v39, %v16697_v45  ;;  %v3681_v45 = vld [vmem:[%s18153_s16 + $0x4] sm:$0x3]  ;;  %v6107_v54 = vsel %vm2763_vm3, %v3682_v44, 0 }
 0x95c   : > { %v5576_v46 = vpack.c.bf16 %v5568_v27, %v5568_v27  ;;  %v6061_v63 = vsel %vm2763_vm3, %v3681_v45, 0 }
 0x95d   : > { %v5575_v40 = vpack.c.bf16 %v5567_v43, %v5567_v43 }
 0x95e   : > { %14380 = vmatmul.mubr.msk.bf16.vlgmr.msra.gmra.mrb[172].mxu1 %vm5585_vm8, %v5576_v46 }
 0x95f   : > { %14374 = vmatmul.mubr.msk.bf16.vlgmr.msra.gmra.mrb[172].mxu0 %vm5585_vm8, %v5575_v40  ;;  %14390 = vmatpush3.bf16.msra.mxu1 %v6015_v51 }
 0x960   : > { %14384 = vmatpush3.bf16.msra.mxu0 %v5969_v41  ;;  %14385 = vmatprep.mubr.msk.bf16.mxu0 %vm15498_vm0, %v15497_v1 }
 0x961   : > { %14391 = vmatprep.mubr.msk.bf16.mxu1 %vm15498_vm0, %v15497_v1  ;;  %14395 = vmatprep.subr.bf16.mxu0 %v15497_v1 }
 0x962   : > { %14401 = vmatprep.subr.bf16.mxu1 %v15497_v1 }
 0xa19   : > { %v5675_v12 = vpop.f32.mrb[160].mxu1 }
 0xa1a   : > { %v5629_v14 = vpop.f32.mrb[160].mxu0  ;;  %v5958_v52 = vpack.c.bf16 %v5675_v12, %v5675_v12  ;;  %v14345_v53 = vpop.f32.mrb[161].mxu1 }
 0xa1b   : > { %v5957_v57 = vpack.c.bf16 %v5629_v14, %v5629_v14  ;;  %v14339_v58 = vpop.f32.mrb[161].mxu0  ;;  %v5678_v60 = vpop.f32.mrb[162].mxu1 }
 0xa1c   : > { %v5632_v0 = vpop.f32.mrb[162].mxu0  ;;  %v14346_v3 = vpop.f32.mrb[163].mxu1  ;;  %14392 = vmatmul.mubr.msk.bf16.vlgmr.msra.gmra.mrb[176].mxu1 %vm2286_vm2, %v5958_v52 }
 0xa1d   : > { %v14340_v61 = vpop.f32.mrb[163].mxu0  ;;  %14386 = vmatmul.mubr.msk.bf16.vlgmr.msra.gmra.mrb[176].mxu0 %vm2286_vm2, %v5957_v57  ;;  %14402 = vmatpush3.bf16.msra.mxu1 %v6107_v54 }
 0xa1e   : > { %14396 = vmatpush3.bf16.msra.mxu0 %v6061_v63  ;;  %14397 = vmatprep.mubr.msk.bf16.mxu0 %vm15498_vm0, %v15497_v1 }
 0xa1f   : > { %14403 = vmatprep.mubr.msk.bf16.mxu1 %vm15498_vm0, %v15497_v1  ;;  %14407 = vmatprep.subr.bf16.mxu0 %v15497_v1 }
 0xa20   : > { %14413 = vmatprep.subr.bf16.mxu1 %v15497_v1 }
 0xa21   : > { %v5767_v62 = vpop.f32.mrb[164].mxu1 }
 0xa22   : > { %v5721_v5 = vpop.f32.mrb[164].mxu0  ;;  %v5960_v9 = vpack.c.bf16 %v5767_v62, %v5767_v62  ;;  %v14357_v10 = vpop.f32.mrb[165].mxu1 }
 0xa23   : > { %v5959_v15 = vpack.c.bf16 %v5721_v5, %v5721_v5  ;;  %v14351_v18 = vpop.f32.mrb[165].mxu0  ;;  %v5770_v49 = vpop.f32.mrb[166].mxu1 }
 0xa24   : > { %v5724_v11 = vpop.f32.mrb[166].mxu0  ;;  %v14358_v7 = vpop.f32.mrb[167].mxu1  ;;  %14404 = vmatmul.mubr.msk.bf16.vlgmr.msra.gmra.mrb[180].mxu1 %vm2286_vm2, %v5960_v9 }
 0xa25   : > { %v14352_v19 = vpop.f32.mrb[167].mxu0  ;;  %14398 = vmatmul.mubr.msk.bf16.vlgmr.msra.gmra.mrb[180].mxu0 %vm2286_vm2, %v5959_v15  ;;  %14414 = vmatpush3.bf16.msra.mxu1 %v6199_v13 }
 0xa26   : > { %14408 = vmatpush3.bf16.msra.mxu0 %v6153_v17  ;;  %14409 = vmatprep.mubr.msk.bf16.mxu0 %vm15498_vm0, %v15497_v1 }
 0xa27   : > { %14415 = vmatprep.mubr.msk.bf16.mxu1 %vm15498_vm0, %v15497_v1  ;;  %14419 = vmatprep.subr.bf16.mxu0 %v15497_v1 }
 0xa28   : > { %14425 = vmatprep.subr.bf16.mxu1 %v15497_v1 }
 0xa29   : > { %v5859_v23 = vpop.f32.mrb[168].mxu1 }
 0xa2a   : > { %v5813_v24 = vpop.f32.mrb[168].mxu0  ;;  %v5962_v28 = vpack.c.bf16 %v5859_v23, %v5859_v23  ;;  %v14369_v4 = vpop.f32.mrb[169].mxu1 }
 0xa2b   : > { %v5961_v21 = vpack.c.bf16 %v5813_v24, %v5813_v24  ;;  %v14363_v25 = vpop.f32.mrb[169].mxu0  ;;  %v5862_v6 = vpop.f32.mrb[170].mxu1 }
 0xa2c   : > { %v5816_v31 = vpop.f32.mrb[170].mxu0  ;;  %v14370_v26 = vpop.f32.mrb[171].mxu1  ;;  %14416 = vmatmul.mubr.msk.bf16.vlgmr.msra.gmra.mrb[184].mxu1 %vm2286_vm2, %v5962_v28  ;;  %v12714_v25 = vld [vmem:[%s18154_s17] ss:$0 sm:$0xff] }
 0xa2d   : > { %v14364_v16 = vpop.f32.mrb[171].mxu0  ;;  %14410 = vmatmul.mubr.msk.bf16.vlgmr.msra.gmra.mrb[184].mxu0 %vm2286_vm2, %v5961_v21  ;;  %14426 = vmatpush3.bf16.msra.mxu1 %v6291_v29 }
 0xa2e   : > { %14420 = vmatpush3.bf16.msra.mxu0 %v6245_v30  ;;  %14421 = vmatprep.mubr.msk.bf16.mxu0 %vm15498_vm0, %v15497_v1 }
 0xa2f   : > { %14427 = vmatprep.mubr.msk.bf16.mxu1 %vm15498_vm0, %v15497_v1  ;;  %14431 = vmatprep.subr.bf16.mxu0 %v15497_v1 }
 0xa30   : > { %14439 = vmatprep.subr.bf16.mxu1 %v15497_v1 }
 0xa31   : > { %v5951_v50 = vpop.f32.mrb[172].mxu1 }
 0xa32   : > { %v5905_v32 = vpop.f32.mrb[172].mxu0  ;;  %v5964_v34 = vpack.c.bf16 %v5951_v50, %v5951_v50  ;;  %v14381_v33 = vpop.f32.mrb[173].mxu1 }
 0xa33   : > { %v5963_v35 = vpack.c.bf16 %v5905_v32, %v5905_v32  ;;  %v14375_v36 = vpop.f32.mrb[173].mxu0  ;;  %v5954_v37 = vpop.f32.mrb[174].mxu1 }
 0xa34   : > { %v5908_v38 = vpop.f32.mrb[174].mxu0  ;;  %v14382_v55 = vpop.f32.mrb[175].mxu1  ;;  %14428 = vmatmul.mubr.msk.bf16.vlgmr.msra.gmra.mrb[188].mxu1 %vm2286_vm2, %v5964_v34  ;;  %v15242_v37 = vld [vmem:[%s18155_s18] sm:$0xff]  }
 0xa35   : > { %v14376_v56 = vpop.f32.mrb[175].mxu0  ;;  %14422 = vmatmul.mubr.msk.bf16.vlgmr.msra.gmra.mrb[188].mxu0 %vm2286_vm2, %v5963_v35  ;;  %14443 = vmatprep.mubr.msk.bf16.mxu1 %vm15498_vm0, %v15497_v1  ;;  %v15243_v38 = vld [vmem:[%s18155_s18 + $0x8] sm:$0xff]  }
 0xa36   : > { %14435 = vmatprep.mubr.msk.bf16.mxu0 %vm15498_vm0, %v15497_v1  ;;  %14432 = vmatpush3.bf16.msra.mxu0 %v15242_v37  ;;  %v15262_v37 = vld [vmem:[%s18188_s29 + $0x80] sm:$0xff]  }
 0xa37   : > { %14433 = vmatprep.subr.bf16.mxu0 %v15497_v1 }
 0xa3a   : > { %14434 = vmatpush3.bf16.msra.mxu0 %v15243_v38  ;;  %v15263_v38 = vld [vmem:[%s18188_s29 + $0x90] sm:$0xff]  }
 0xa3b   : > { %14447 = vmatprep.subr.bf16.mxu0 %v15497_v1 }
 0xaef   : > { %v6051_v39 = vpop.f32.mrb[176].mxu1 }
 0xaf0   : > { %v6005_v27 = vpop.f32.mrb[176].mxu0  ;;  %v6334_v42 = vsel %vm3505_vm5, %v6051_v39, 0.0  ;;  %v14393_v43 = vpop.f32.mrb[177].mxu1 }
 0xaf1   : > { %v6333_v46 = vsel %vm3505_vm5, %v6005_v27, 0.0  ;;  %v14387_v51 = vpop.f32.mrb[177].mxu0  ;;  %v6054_v40 = vpop.f32.mrb[178].mxu1  ;;  %v12717_v27 = vld [vmem:[%s18159_s22 + $0x1] ss:$0 sm:$0xff] }
 0xaf2   : > { %v6335_v41 = vadd.f32 %v6334_v42, %v6333_v46  ;;  %v6008_v44 = vpop.f32.mrb[178].mxu0  ;;  %v14394_v45 = vpop.f32.mrb[179].mxu1  ;;  %v12718_v43 = vld [vmem:[%s18160_s23 + $0x1] ss:$0 sm:$0xff] }
 0xaf3   : > { %v14388_v12 = vpop.f32.mrb[179].mxu0  ;;  %v15245_v44 = vld [vmem:[%s18157_s20 + $0x8] sm:$0xff]   ;;  %v12719_v45 = vld [vmem:[%s18156_s19] ss:$0 sm:$0xff] }
 0xaf7   : > { %v6143_v14 = vpop.f32.mrb[180].mxu1 }
 0xaf8   : > { %v6097_v52 = vpop.f32.mrb[180].mxu0  ;;  %v14405_v53 = vpop.f32.mrb[181].mxu1  ;;  %v6338_v3 = vsel %vm3505_vm5, %v6143_v14, 0.0 }
 0xaf9   : > { %v6336_v54 = vsel %vm3505_vm5, %v6097_v52, 0.0  ;;  %v14399_v57 = vpop.f32.mrb[181].mxu0  ;;  %v6146_v58 = vpop.f32.mrb[182].mxu1 }
 0xafa   : > { %v6337_v60 = vadd.f32 %v6336_v54, %v6335_v41  ;;  %v6100_v63 = vpop.f32.mrb[182].mxu0  ;;  %v14406_v0 = vpop.f32.mrb[183].mxu1  ;;  %v15244_v41 = vld [vmem:[%s18157_s20] sm:$0xff]  }
 0xafb   : > { %v14400_v61 = vpop.f32.mrb[183].mxu0  ;;  %14440 = vmatpush3.bf16.msra.mxu1 %v15244_v41  ;;  %v15274_v41 = vld [vmem:[%s18188_s29 + $0xe0] sm:$0xff]  }
 0xafc   : > { %v6339_v8 = vadd.f32 %v6338_v3, %v6337_v60  ;;  %14441 = vmatprep.subr.bf16.mxu1 %v15497_v1  ;;  %v12723_v60 = vld [vmem:[%s18158_s21] ss:$0 sm:$0xff] }
 0xaff   : > { %v6235_v2 = vpop.f32.mrb[184].mxu1  ;;  %14442 = vmatpush3.bf16.msra.mxu1 %v15245_v44  ;;  %v15275_v44 = vld [vmem:[%s18188_s29 + $0xf0] sm:$0xff]  }
 0xb00   : > { %v6189_v62 = vpop.f32.mrb[184].mxu0  ;;  %v14417_v5 = vpop.f32.mrb[185].mxu1  ;;  %v6342_v17 = vsel %vm3505_vm5, %v6235_v2, 0.0  ;;  %14455 = vmatprep.subr.bf16.mxu1 %v15497_v1 }
 0xb01   : > { %v6340_v9 = vsel %vm3505_vm5, %v6189_v62, 0.0  ;;  %v14411_v10 = vpop.f32.mrb[185].mxu0  ;;  %v6238_v13 = vpop.f32.mrb[186].mxu1 }
 0xb02   : > { %v6341_v15 = vadd.f32 %v6340_v9, %v6339_v8  ;;  %v6192_v18 = vpop.f32.mrb[186].mxu0  ;;  %v14418_v49 = vpop.f32.mrb[187].mxu1 }
 0xb03   : > { %v14412_v11 = vpop.f32.mrb[187].mxu0  ;;  %v15246_v18 = vld [vmem:[%s18186_s6 + $0x80] sm:$0xff]   ;;  %v15247_v49 = vld [vmem:[%s18186_s6 + $0x90] sm:$0xff]  }
 0xb04   : > { %v6343_v7 = vadd.f32 %v6342_v17, %v6341_v15  ;;  %v15248_v17 = vld [vmem:[%s18186_s6 + $0x88] sm:$0xff]   ;;  %v15249_v11 = vld [vmem:[%s18186_s6 + $0x98] sm:$0xff]  }
 0xb07   : > { %v6327_v19 = vpop.f32.mrb[188].mxu1 }
 0xb08   : > { %v6281_v20 = vpop.f32.mrb[188].mxu0  ;;  %v14429_v22 = vpop.f32.mrb[189].mxu1  ;;  %v6346_v6 = vsel %vm3505_vm5, %v6327_v19, 0.0 }
 0xb09   : > { %v6344_v23 = vsel %vm3505_vm5, %v6281_v20, 0.0  ;;  %v14423_v24 = vpop.f32.mrb[189].mxu0  ;;  %v6330_v28 = vpop.f32.mrb[190].mxu1 }
 0xb0a   : > { %v6345_v4 = vadd.f32 %v6344_v23, %v6343_v7  ;;  %v6284_v29 = vpop.f32.mrb[190].mxu0  ;;  %v14430_v21 = vpop.f32.mrb[191].mxu1  ;;  %v12729_v23 = vld [vmem:[%s18159_s22 + $0x2] ss:$0 sm:$0xff] }
 0xb0b   : > { %v14424_v30 = vpop.f32.mrb[191].mxu0  ;;  %v12730_v28 = vld [vmem:[%s18160_s23 + $0x2] ss:$0 sm:$0xff] }
 0xb0c   : > { %v6347_v31 = vadd.f32 %v6346_v6, %v6345_v4  ;;  %v15250_v21 = vld [vmem:[%s18186_s6 + $0xa0] sm:$0xff]   ;;  %v15252_v30 = vld [vmem:[%s18186_s6 + $0xa8] sm:$0xff]  }
 0xb0e   : > { %v6354_v26 = vadd.f32 %v12714_v25, %v6347_v31  ;;  %v15251_v25 = vld [vmem:[%s18186_s6 + $0xb0] sm:$0xff]   ;;  %v15253_v31 = vld [vmem:[%s18186_s6 + $0xb8] sm:$0xff]  }
 0xb10   : > { %v6355_v16 = vadd.f32 %v6354_v26, %v16258_v47  ;;  %v15254_v26 = vld [vmem:[%s18186_s6 + $0xc0] sm:$0xff]  }
 0xb12   : > { %v6360_v50 = vsel %vm3505_vm5, %v6355_v16, 0.0 }
 0xb13   : > { %6361 = vadd.xlane.f32.xlu0 %v6360_v50  ;;  %v15256_v50 = vld [vmem:[%s18186_s6 + $0xc8] sm:$0xff]  }
 0xba0   : > { %v6362_v32 = vpop.xlane.xlu0 %6361 }
 0xba1   : > { %v6363_v34 = vmul.f32 0.03125, %v6362_v32  ;;  %v15257_v32 = vld [vmem:[%s18186_s6 + $0xd8] sm:$0xff]  }
 0xba3   : > { %v6364_v33 = vsub.f32 %v6355_v16, %v6363_v34  ;;  %v15255_v16 = vld [vmem:[%s18186_s6 + $0xd0] sm:$0xff]   ;;  %v15258_v34 = vld [vmem:[%s18186_s6 + $0xe0] sm:$0xff]  }
 0xba5   : > { %v6365_v35 = vmul.f32 %v6364_v33, %v6364_v33 }
 0xba7   : > { %v6366_v36 = vsel %vm3505_vm5, %v6365_v35, 0.0  ;;  %v15260_v35 = vld [vmem:[%s18186_s6 + $0xe8] sm:$0xff]  }
 0xba8   : > { %6367 = vadd.xlane.f32.xlu1 %v6366_v36  ;;  %v15261_v36 = vld [vmem:[%s18186_s6 + $0xf8] sm:$0xff]  }
 0xc35   : > { %v6368_v47 = vpop.xlane.xlu1 %6367 }
 0xc36   : > { %v6369_v55 = vmul.f32 0.03125, %v6368_v47  ;;  %v15264_v47 = vld [vmem:[%s18188_s29 + $0x88] sm:$0xff]  }
 0xc38   : > { %v6370_v56 = vadd.f32 1e-05, %v6369_v55  ;;  %v15265_v55 = vld [vmem:[%s18188_s29 + $0x98] sm:$0xff]  }
 0xc3a   : > { %15412 = vrsqrt.f32 %v6370_v56  ;;  %v15266_v56 = vld [vmem:[%s18188_s29 + $0xa0] sm:$0xff]  }
 0xc44   : > { %v15413_v39 = vpop.eup %15412 }
 0xc45   : > { %v6372_v42 = vmul.f32 %v15413_v39, %v6364_v33  ;;  %v15259_v33 = vld [vmem:[%s18186_s6 + $0xf0] sm:$0xff]  }
 0xc46   : > { %v15267_v39 = vld [vmem:[%s18188_s29 + $0xb0] sm:$0xff]  }
 0xc47   : > { %v6379_v46 = vmul.f32 %v12717_v27, %v6372_v42  ;;  %v15268_v27 = vld [vmem:[%s18188_s29 + $0xa8] sm:$0xff]   ;;  %v15269_v42 = vld [vmem:[%s18188_s29 + $0xb8] sm:$0xff]  }
 0xc49   : > { %v6386_v51 = vadd.f32 %v12718_v43, %v6379_v46  ;;  %v15270_v43 = vld [vmem:[%s18188_s29 + $0xc0] sm:$0xff]   ;;  %v15271_v46 = vld [vmem:[%s18188_s29 + $0xd0] sm:$0xff]  }
 0xc4b   : > { %v6397_v40 = vpack.c.bf16 %v6386_v51, %v6386_v51 }
 0xc4d   : > { %14436 = vmatmul.mubr.msk.bf16.vlgmr.msra.gmra.mrb[192].mxu0 %vm926_vm1, %v6397_v40  ;;  %v15273_v40 = vld [vmem:[%s18188_s29 + $0xd8] sm:$0xff]  }
 0xc4e   : > { %14451 = vmatprep.mubr.msk.bf16.mxu0 %vm15498_vm0, %v15497_v1  ;;  %14448 = vmatpush3.bf16.msra.mxu0 %v15246_v18 }
 0xc4f   : > { %14449 = vmatprep.subr.bf16.mxu0 %v15497_v1 }
 0xc52   : > { %14450 = vmatpush3.bf16.msra.mxu0 %v15248_v17 }
 0xc53   : > { %14463 = vmatprep.subr.bf16.mxu0 %v15497_v1 }
 0xd20   : > { %v6453_v12 = vpop.f32.mrb[192].mxu0 }
 0xd21   : > { %v6454_v14 = vadd.f32 %v12719_v45, %v6453_v12  ;;  %v14437_v52 = vpop.f32.mrb[193].mxu0  ;;  %v15276_v45 = vld [vmem:[%s18188_s29 + $0xe8] sm:$0xff]   ;;  %v15277_v12 = vld [vmem:[%s18188_s29 + $0xf8] sm:$0xff]  }
 0xd22   : > { %v6456_v53 = vpop.f32.mrb[194].mxu0  ;;  %v15279_v52 = vld [vmem:[%s18189_s30 + $0x90] sm:$0xff]  }
 0xd23   : > { %v6459_v54 = vmax.f32 %v6454_v14, 0.0  ;;  %v14438_v57 = vpop.f32.mrb[195].mxu0  ;;  %v15278_v14 = vld [vmem:[%s18189_s30 + $0x80] sm:$0xff]   ;;  %v15280_v53 = vld [vmem:[%s18189_s30 + $0x88] sm:$0xff]  }
 0xd24   : > { %v15282_v57 = vld [vmem:[%s18189_s30 + $0xa0] sm:$0xff]  }
 0xd25   : > { %v6460_v58 = vpack.c.bf16 %v6459_v54, %v6459_v54  ;;  %v15281_v54 = vld [vmem:[%s18189_s30 + $0x98] sm:$0xff]  }
 0xd27   : > { %14444 = vmatmul.mubr.msk.bf16.vlgmr.msra.gmra.mrb[192].mxu1 %vm926_vm1, %v6460_v58  ;;  %v15283_v58 = vld [vmem:[%s18189_s30 + $0xb0] sm:$0xff]  }
 0xd28   : > { %14459 = vmatprep.mubr.msk.bf16.mxu1 %vm15498_vm0, %v15497_v1  ;;  %14456 = vmatpush3.bf16.msra.mxu1 %v15247_v49 }
 0xd29   : > { %14457 = vmatprep.subr.bf16.mxu1 %v15497_v1 }
 0xd2c   : > { %14458 = vmatpush3.bf16.msra.mxu1 %v15249_v11 }
 0xd2d   : > { %14471 = vmatprep.subr.bf16.mxu1 %v15497_v1 }
 0xdfa   : > { %v6516_v63 = vpop.f32.mrb[192].mxu1 }
 0xdfb   : > { %v6517_v0 = vadd.f32 %v12723_v60, %v6516_v63  ;;  %v14445_v3 = vpop.f32.mrb[193].mxu1  ;;  %v15284_v60 = vld [vmem:[%s18189_s30 + $0xa8] sm:$0xff]   ;;  %v15285_v63 = vld [vmem:[%s18189_s30 + $0xb8] sm:$0xff]  }
 0xdfc   : > { %v6519_v61 = vpop.f32.mrb[194].mxu1  ;;  %v15287_v3 = vld [vmem:[%s18189_s30 + $0xd0] sm:$0xff]  }
 0xdfd   : > { %v14446_v8 = vpop.f32.mrb[195].mxu1  ;;  %v6522_v2 = vadd.f32 %v6517_v0, %v6386_v51  ;;  %v15272_v51 = vld [vmem:[%s18188_s29 + $0xc8] sm:$0xff]   ;;  %v15286_v0 = vld [vmem:[%s18189_s30 + $0xc0] sm:$0xff]  }
 0xdfe   : > { %v15288_v61 = vld [vmem:[%s18189_s30 + $0xc8] sm:$0xff]   ;;  %v15289_v8 = vld [vmem:[%s18189_s30 + $0xd8] sm:$0xff]  }
 0xdff   : > { %v6527_v62 = vsel %vm3505_vm5, %v6522_v2, 0.0 }
 0xe00   : > { %6528 = vadd.xlane.f32.xlu0 %v6527_v62  ;;  %v15291_v62 = vld [vmem:[%s18189_s30 + $0xf0] sm:$0xff]  }
 0xe8d   : > { %v6529_v5 = vpop.xlane.xlu0 %6528 }
 0xe8e   : > { %v6530_v9 = vmul.f32 0.03125, %v6529_v5  ;;  %v15292_v5 = vld [vmem:[%s18189_s30 + $0xe8] sm:$0xff]  }
 0xe90   : > { %v6531_v10 = vsub.f32 %v6522_v2, %v6530_v9  ;;  %v15290_v2 = vld [vmem:[%s18189_s30 + $0xe0] sm:$0xff]   ;;  %v15293_v9 = vld [vmem:[%s18189_s30 + $0xf8] sm:$0xff]  }
 0xe92   : > { %v6532_v13 = vmul.f32 %v6531_v10, %v6531_v10 }
 0xe94   : > { %v6533_v15 = vsel %vm3505_vm5, %v6532_v13, 0.0 }
 0xe95   : > { %6534 = vadd.xlane.f32.xlu1 %v6533_v15 }
 0xf22   : > { %v6535_v7 = vpop.xlane.xlu1 %6534 }
 0xf23   : > { %v6536_v19 = vmul.f32 0.03125, %v6535_v7 }
 0xf25   : > { %v6537_v20 = vadd.f32 1e-05, %v6536_v19 }
 0xf27   : > { %15414 = vrsqrt.f32 %v6537_v20 }
 0xf31   : > { %v15415_v22 = vpop.eup %15414 }
 0xf32   : > { %v6539_v24 = vmul.f32 %v15415_v22, %v6531_v10 }
 0xf34   : > { %v6546_v4 = vmul.f32 %v12729_v23, %v6539_v24 }
 0xf36   : > { %v16905_v29 = vadd.f32 %v12730_v28, %v6546_v4 }
 0xf38   : > { %v16915_v6 = vpack.c.bf16 %v16905_v29, %v16905_v29 }
 0xf3a   : > { %14452 = vmatmul.mubr.msk.bf16.vlgmr.msra.gmra.mrb[196].mxu0 %vm926_vm1, %v16915_v6  ;;  %14460 = vmatmul.mubr.msk.bf16.vlgmr.msra.gmra.mrb[196].mxu1 %vm926_vm1, %v16915_v6 }
 0xf3b   : > { %14464 = vmatpush3.bf16.msra.mxu0 %v15250_v21  ;;  %14472 = vmatpush3.bf16.msra.mxu1 %v15251_v25 }
 0xf3c   : > { %14465 = vmatprep.subr.bf16.mxu0 %v15497_v1  ;;  %14473 = vmatprep.subr.bf16.mxu1 %v15497_v1 }
 0xf3d   : > { %14467 = vmatprep.mubr.msk.bf16.mxu0 %vm15498_vm0, %v15497_v1  ;;  %14475 = vmatprep.mubr.msk.bf16.mxu1 %vm15498_vm0, %v15497_v1 }
 0xf3f   : > { %14466 = vmatpush3.bf16.msra.mxu0 %v15252_v30  ;;  %14474 = vmatpush3.bf16.msra.mxu1 %v15253_v31 }
 0xf40   : > { %14479 = vmatprep.subr.bf16.mxu0 %v15497_v1  ;;  %14487 = vmatprep.subr.bf16.mxu1 %v15497_v1 }
 0xf42   : > { %14468 = vmatmul.mubr.msk.bf16.vlgmr.msra.gmra.mrb[200].mxu0 %vm926_vm1, %v16915_v6  ;;  %14476 = vmatmul.mubr.msk.bf16.vlgmr.msra.gmra.mrb[200].mxu1 %vm926_vm1, %v16915_v6 }
 0xf43   : > { %14480 = vmatpush3.bf16.msra.mxu0 %v15254_v26  ;;  %14488 = vmatpush3.bf16.msra.mxu1 %v15255_v16 }
 0xf44   : > { %14481 = vmatprep.subr.bf16.mxu0 %v15497_v1  ;;  %14489 = vmatprep.subr.bf16.mxu1 %v15497_v1 }
 0xf45   : > { %14483 = vmatprep.mubr.msk.bf16.mxu0 %vm15498_vm0, %v15497_v1  ;;  %14491 = vmatprep.mubr.msk.bf16.mxu1 %vm15498_vm0, %v15497_v1 }
 0xf47   : > { %14482 = vmatpush3.bf16.msra.mxu0 %v15256_v50  ;;  %14490 = vmatpush3.bf16.msra.mxu1 %v15257_v32 }
 0xf48   : > { %14495 = vmatprep.subr.bf16.mxu0 %v15497_v1  ;;  %14503 = vmatprep.subr.bf16.mxu1 %v15497_v1 }
 0xf4a   : > { %14484 = vmatmul.mubr.msk.bf16.vlgmr.msra.gmra.mrb[204].mxu0 %vm926_vm1, %v16915_v6  ;;  %14492 = vmatmul.mubr.msk.bf16.vlgmr.msra.gmra.mrb[204].mxu1 %vm926_vm1, %v16915_v6 }
 0xf4b   : > { %14496 = vmatpush3.bf16.msra.mxu0 %v15258_v34  ;;  %14504 = vmatpush3.bf16.msra.mxu1 %v15259_v33 }
 0xf4c   : > { %14497 = vmatprep.subr.bf16.mxu0 %v15497_v1  ;;  %14505 = vmatprep.subr.bf16.mxu1 %v15497_v1 }
 0xf4d   : > { %14499 = vmatprep.mubr.msk.bf16.mxu0 %vm15498_vm0, %v15497_v1  ;;  %14507 = vmatprep.mubr.msk.bf16.mxu1 %vm15498_vm0, %v15497_v1 }
 0xf4f   : > { %14498 = vmatpush3.bf16.msra.mxu0 %v15260_v35  ;;  %14506 = vmatpush3.bf16.msra.mxu1 %v15261_v36 }
 0xf50   : > { %14511 = vmatprep.subr.bf16.mxu0 %v15497_v1  ;;  %14519 = vmatprep.subr.bf16.mxu1 %v15497_v1 }
 0xf52   : > { %14500 = vmatmul.mubr.msk.bf16.vlgmr.msra.gmra.mrb[208].mxu0 %vm926_vm1, %v16915_v6  ;;  %14508 = vmatmul.mubr.msk.bf16.vlgmr.msra.gmra.mrb[208].mxu1 %vm926_vm1, %v16915_v6 }
 0xf53   : > { %14512 = vmatpush3.bf16.msra.mxu0 %v15262_v37  ;;  %14520 = vmatpush3.bf16.msra.mxu1 %v15263_v38 }
 0xf54   : > { %14513 = vmatprep.subr.bf16.mxu0 %v15497_v1  ;;  %14521 = vmatprep.subr.bf16.mxu1 %v15497_v1 }
 0xf55   : > { %14515 = vmatprep.mubr.msk.bf16.mxu0 %vm15498_vm0, %v15497_v1  ;;  %14523 = vmatprep.mubr.msk.bf16.mxu1 %vm15498_vm0, %v15497_v1 }
 0xf57   : > { %14514 = vmatpush3.bf16.msra.mxu0 %v15264_v47  ;;  %14522 = vmatpush3.bf16.msra.mxu1 %v15265_v55 }
 0xf58   : > { %14527 = vmatprep.subr.bf16.mxu0 %v15497_v1  ;;  %14535 = vmatprep.subr.bf16.mxu1 %v15497_v1 }
 0xf5a   : > { %14516 = vmatmul.mubr.msk.bf16.vlgmr.msra.gmra.mrb[212].mxu0 %vm926_vm1, %v16915_v6  ;;  %14524 = vmatmul.mubr.msk.bf16.vlgmr.msra.gmra.mrb[212].mxu1 %vm926_vm1, %v16915_v6 }
 0xf5b   : > { %14528 = vmatpush3.bf16.msra.mxu0 %v15266_v56  ;;  %14536 = vmatpush3.bf16.msra.mxu1 %v15267_v39  ;;  %v12892_v56 = vld [vmem:[%s18190_s28 + $0x8] ss:$0 sm:$0xff]  ;;  %v12893_v39 = vld [vmem:[%s18190_s28 + $0x9] ss:$0 sm:$0xff] }
 0xf5c   : > { %14529 = vmatprep.subr.bf16.mxu0 %v15497_v1  ;;  %14537 = vmatprep.subr.bf16.mxu1 %v15497_v1 }
 0xf5d   : > { %14531 = vmatprep.mubr.msk.bf16.mxu0 %vm15498_vm0, %v15497_v1  ;;  %14539 = vmatprep.mubr.msk.bf16.mxu1 %vm15498_vm0, %v15497_v1 }
 0xf5f   : > { %14530 = vmatpush3.bf16.msra.mxu0 %v15268_v27  ;;  %14538 = vmatpush3.bf16.msra.mxu1 %v15269_v42  ;;  %v12860_v27 = vld [vmem:[%s18191_s25 + $0x8] ss:$0 sm:$0xff]  ;;  %v12861_v42 = vld [vmem:[%s18191_s25 + $0x9] ss:$0 sm:$0xff] }
 0xf60   : > { %14543 = vmatprep.subr.bf16.mxu0 %v15497_v1  ;;  %14551 = vmatprep.subr.bf16.mxu1 %v15497_v1 }
 0xf62   : > { %14532 = vmatmul.mubr.msk.bf16.vlgmr.msra.gmra.mrb[216].mxu0 %vm926_vm1, %v16915_v6  ;;  %14540 = vmatmul.mubr.msk.bf16.vlgmr.msra.gmra.mrb[216].mxu1 %vm926_vm1, %v16915_v6 }
 0xf63   : > { %14544 = vmatpush3.bf16.msra.mxu0 %v15270_v43  ;;  %14552 = vmatpush3.bf16.msra.mxu1 %v15271_v46 }
 0xf64   : > { %14545 = vmatprep.subr.bf16.mxu0 %v15497_v1  ;;  %14553 = vmatprep.subr.bf16.mxu1 %v15497_v1 }
 0xf65   : > { %14547 = vmatprep.mubr.msk.bf16.mxu0 %vm15498_vm0, %v15497_v1  ;;  %14555 = vmatprep.mubr.msk.bf16.mxu1 %vm15498_vm0, %v15497_v1 }
 0xf67   : > { %14546 = vmatpush3.bf16.msra.mxu0 %v15272_v51  ;;  %14554 = vmatpush3.bf16.msra.mxu1 %v15273_v40 }
 0xf68   : > { %14559 = vmatprep.subr.bf16.mxu0 %v15497_v1  ;;  %14567 = vmatprep.subr.bf16.mxu1 %v15497_v1 }
 0xf6a   : > { %14548 = vmatmul.mubr.msk.bf16.vlgmr.msra.gmra.mrb[220].mxu0 %vm926_vm1, %v16915_v6  ;;  %14556 = vmatmul.mubr.msk.bf16.vlgmr.msra.gmra.mrb[220].mxu1 %vm926_vm1, %v16915_v6 }
 0xf6b   : > { %14560 = vmatpush3.bf16.msra.mxu0 %v15274_v41  ;;  %14568 = vmatpush3.bf16.msra.mxu1 %v15275_v44 }
 0xf6c   : > { %14561 = vmatprep.subr.bf16.mxu0 %v15497_v1  ;;  %14569 = vmatprep.subr.bf16.mxu1 %v15497_v1 }
 0xf6d   : > { %14563 = vmatprep.mubr.msk.bf16.mxu0 %vm15498_vm0, %v15497_v1  ;;  %14571 = vmatprep.mubr.msk.bf16.mxu1 %vm15498_vm0, %v15497_v1 }
 0xf6f   : > { %14562 = vmatpush3.bf16.msra.mxu0 %v15276_v45  ;;  %14570 = vmatpush3.bf16.msra.mxu1 %v15277_v12 }
 0xf70   : > { %14575 = vmatprep.subr.bf16.mxu0 %v15497_v1  ;;  %14583 = vmatprep.subr.bf16.mxu1 %v15497_v1 }
 0xf72   : > { %14564 = vmatmul.mubr.msk.bf16.vlgmr.msra.gmra.mrb[224].mxu0 %vm926_vm1, %v16915_v6  ;;  %14572 = vmatmul.mubr.msk.bf16.vlgmr.msra.gmra.mrb[224].mxu1 %vm926_vm1, %v16915_v6 }
 0xf73   : > { %14576 = vmatpush3.bf16.msra.mxu0 %v15278_v14  ;;  %14584 = vmatpush3.bf16.msra.mxu1 %v15279_v52 }
 0xf74   : > { %14577 = vmatprep.subr.bf16.mxu0 %v15497_v1  ;;  %14585 = vmatprep.subr.bf16.mxu1 %v15497_v1 }
 0xf75   : > { %14579 = vmatprep.mubr.msk.bf16.mxu0 %vm15498_vm0, %v15497_v1  ;;  %14587 = vmatprep.mubr.msk.bf16.mxu1 %vm15498_vm0, %v15497_v1 }
 0xf77   : > { %14578 = vmatpush3.bf16.msra.mxu0 %v15280_v53  ;;  %14586 = vmatpush3.bf16.msra.mxu1 %v15281_v54 }
 0xf78   : > { %14591 = vmatprep.subr.bf16.mxu0 %v15497_v1  ;;  %14599 = vmatprep.subr.bf16.mxu1 %v15497_v1 }
 0xf7a   : > { %14580 = vmatmul.mubr.msk.bf16.vlgmr.msra.gmra.mrb[228].mxu0 %vm926_vm1, %v16915_v6  ;;  %14588 = vmatmul.mubr.msk.bf16.vlgmr.msra.gmra.mrb[228].mxu1 %vm926_vm1, %v16915_v6 }
 0xf7b   : > { %14592 = vmatpush3.bf16.msra.mxu0 %v15282_v57  ;;  %14600 = vmatpush3.bf16.msra.mxu1 %v15283_v58 }
 0xf7c   : > { %14593 = vmatprep.subr.bf16.mxu0 %v15497_v1  ;;  %14601 = vmatprep.subr.bf16.mxu1 %v15497_v1 }
 0xf7d   : > { %14595 = vmatprep.mubr.msk.bf16.mxu0 %vm15498_vm0, %v15497_v1  ;;  %14603 = vmatprep.mubr.msk.bf16.mxu1 %vm15498_vm0, %v15497_v1 }
 0xf7f   : > { %14594 = vmatpush3.bf16.msra.mxu0 %v15284_v60  ;;  %14602 = vmatpush3.bf16.msra.mxu1 %v15285_v63 }
 0xf80   : > { %14607 = vmatprep.subr.bf16.mxu0 %v15497_v1  ;;  %14615 = vmatprep.subr.bf16.mxu1 %v15497_v1 }
 0xf82   : > { %14596 = vmatmul.mubr.msk.bf16.vlgmr.msra.gmra.mrb[232].mxu0 %vm926_vm1, %v16915_v6  ;;  %14604 = vmatmul.mubr.msk.bf16.vlgmr.msra.gmra.mrb[232].mxu1 %vm926_vm1, %v16915_v6 }
 0xf83   : > { %14608 = vmatpush3.bf16.msra.mxu0 %v15286_v0  ;;  %14616 = vmatpush3.bf16.msra.mxu1 %v15287_v3 }
 0xf84   : > { %14609 = vmatprep.subr.bf16.mxu0 %v15497_v1  ;;  %14617 = vmatprep.subr.bf16.mxu1 %v15497_v1 }
 0xf85   : > { %14611 = vmatprep.mubr.msk.bf16.mxu0 %vm15498_vm0, %v15497_v1  ;;  %14619 = vmatprep.mubr.msk.bf16.mxu1 %vm15498_vm0, %v15497_v1 }
 0xf87   : > { %14610 = vmatpush3.bf16.msra.mxu0 %v15288_v61  ;;  %14618 = vmatpush3.bf16.msra.mxu1 %v15289_v8  ;;  %v12894_v61 = vld [vmem:[%s18190_s28 + $0xa] ss:$0 sm:$0xff]  ;;  %v12895_v8 = vld [vmem:[%s18190_s28 + $0xb] ss:$0 sm:$0xff] }
 0xf88   : > { %14623 = vmatprep.subr.bf16.mxu0 %v15497_v1  ;;  %14631 = vmatprep.subr.bf16.mxu1 %v15497_v1 }
 0xf8a   : > { %14612 = vmatmul.mubr.msk.bf16.vlgmr.msra.gmra.mrb[236].mxu0 %vm926_vm1, %v16915_v6  ;;  %14620 = vmatmul.mubr.msk.bf16.vlgmr.msra.gmra.mrb[236].mxu1 %vm926_vm1, %v16915_v6 }
 0xf8b   : > { %14624 = vmatpush3.bf16.msra.mxu0 %v15290_v2  ;;  %14632 = vmatpush3.bf16.msra.mxu1 %v15291_v62  ;;  %v12862_v2 = vld [vmem:[%s18191_s25 + $0xa] ss:$0 sm:$0xff]  ;;  %v12863_v62 = vld [vmem:[%s18191_s25 + $0xb] ss:$0 sm:$0xff] }
 0xf8c   : > { %14625 = vmatprep.subr.bf16.mxu0 %v15497_v1  ;;  %14633 = vmatprep.subr.bf16.mxu1 %v15497_v1 }
 0xf8d   : > { %14627 = vmatprep.mubr.msk.bf16.mxu0 %vm15498_vm0, %v15497_v1  ;;  %14635 = vmatprep.mubr.msk.bf16.mxu1 %vm15498_vm0, %v15497_v1 }
 0xf8f   : > { %14626 = vmatpush3.bf16.msra.mxu0 %v15292_v5  ;;  %14634 = vmatpush3.bf16.msra.mxu1 %v15293_v9 }
 0xf90   : > { %14639 = vmatprep.subr.bf16.mxu0 %v15497_v1  ;;  %14645 = vmatprep.subr.bf16.mxu1 %v15497_v1 }
 0xf92   : > { %14628 = vmatmul.mubr.msk.bf16.vlgmr.msra.gmra.mrb[240].mxu0 %vm926_vm1, %v16915_v6  ;;  %14636 = vmatmul.mubr.msk.bf16.vlgmr.msra.gmra.mrb[240].mxu1 %vm926_vm1, %v16915_v6 }
 0xf93   : > { %14641 = vmatprep.mubr.msk.bf16.mxu0 %vm15498_vm0, %v15497_v1  ;;  %14647 = vmatprep.mubr.msk.bf16.mxu1 %vm15498_vm0, %v15497_v1 }
0x100d   : > { %v6789_v10 = vpop.f32.mrb[196].mxu0  ;;  %v6841_v13 = vpop.f32.mrb[196].mxu1 }
0x100e   : > { %v14453_v15 = vpop.f32.mrb[197].mxu0  ;;  %v14461_v18 = vpop.f32.mrb[197].mxu1  ;;  %v6790_v45 = vadd.f32 %v12860_v27, %v6789_v10  ;;  %v6842_v12 = vadd.f32 %v12861_v42, %v6841_v13 }
0x100f   : > { %v6792_v49 = vpop.f32.mrb[198].mxu0  ;;  %v6844_v17 = vpop.f32.mrb[198].mxu1 }
0x1010   : > { %v14454_v11 = vpop.f32.mrb[199].mxu0  ;;  %v14462_v7 = vpop.f32.mrb[199].mxu1  ;;  %v8087_v0 = vmul.f32 0.5, %v6790_v45  ;;  %v8088_v3 = vmul.f32 0.5, %v6842_v12 }
0x1012   : > { %v8095_v49 = vpack.c.bf16 %v8087_v0, %v8087_v0  ;;  %v8096_v17 = vpack.c.bf16 %v8088_v3, %v8088_v3 }
0x1015   : > { %v17183_v19 = vpop.f32.mrb[200].mxu0  ;;  %v17185_v20 = vpop.f32.mrb[200].mxu1 }
0x1016   : > { %v14469_v22 = vpop.f32.mrb[201].mxu0  ;;  %v14477_v23 = vpop.f32.mrb[201].mxu1 }
0x1017   : > { %v6896_v24 = vpop.f32.mrb[202].mxu0  ;;  %v6948_v28 = vpop.f32.mrb[202].mxu1  ;;  %v6894_v22 = vadd.f32 %v12862_v2, %v17183_v19  ;;  %v6946_v23 = vadd.f32 %v12863_v62, %v17185_v20  ;;  %v12896_v19 = vld [vmem:[%s18190_s28 + $0xc] ss:$0 sm:$0xff]  ;;  %v12897_v20 = vld [vmem:[%s18190_s28 + $0xd] ss:$0 sm:$0xff] }
0x1018   : > { %v14470_v4 = vpop.f32.mrb[203].mxu0  ;;  %v14478_v21 = vpop.f32.mrb[203].mxu1 }
0x101d   : > { %v17187_v25 = vpop.f32.mrb[204].mxu0  ;;  %v17189_v6 = vpop.f32.mrb[204].mxu1 }
0x101e   : > { %v14485_v30 = vpop.f32.mrb[205].mxu0  ;;  %v14493_v31 = vpop.f32.mrb[205].mxu1 }
0x101f   : > { %v7000_v26 = vpop.f32.mrb[206].mxu0  ;;  %v7052_v16 = vpop.f32.mrb[206].mxu1 }
0x1020   : > { %v14486_v50 = vpop.f32.mrb[207].mxu0  ;;  %v14494_v32 = vpop.f32.mrb[207].mxu1  ;;  %v8089_v26 = vmul.f32 0.5, %v6894_v22  ;;  %v8090_v16 = vmul.f32 0.5, %v6946_v23 }
0x1021   : > { %v12864_v50 = vld [vmem:[%s18191_s25 + $0xc] ss:$0 sm:$0xff]  ;;  %v12865_v32 = vld [vmem:[%s18191_s25 + $0xd] ss:$0 sm:$0xff] }
0x1025   : > { %v17191_v34 = vpop.f32.mrb[208].mxu0  ;;  %v17193_v33 = vpop.f32.mrb[208].mxu1 }
0x1026   : > { %v14501_v35 = vpop.f32.mrb[209].mxu0  ;;  %v14509_v36 = vpop.f32.mrb[209].mxu1 }
0x1027   : > { %v7104_v37 = vpop.f32.mrb[210].mxu0  ;;  %v7156_v38 = vpop.f32.mrb[210].mxu1 }
0x1028   : > { %v14502_v47 = vpop.f32.mrb[211].mxu0  ;;  %v14510_v55 = vpop.f32.mrb[211].mxu1 }
0x102d   : > { %v7253_v43 = vpop.f32.mrb[212].mxu0  ;;  %v7305_v46 = vpop.f32.mrb[212].mxu1 }
0x102e   : > { %v7254_v51 = vadd.f32 %v12892_v56, %v7253_v43  ;;  %v7306_v40 = vadd.f32 %v12893_v39, %v7305_v46  ;;  %v14517_v41 = vpop.f32.mrb[213].mxu0  ;;  %v14525_v44 = vpop.f32.mrb[213].mxu1  ;;  %v6998_v56 = vadd.f32 %v12864_v50, %v17187_v25  ;;  %v7050_v39 = vadd.f32 %v12865_v32, %v17189_v6  ;;  %v12898_v6 = vld [vmem:[%s18190_s28 + $0xe] ss:$0 sm:$0xff] }
0x102f   : > { %v7256_v14 = vpop.f32.mrb[214].mxu0  ;;  %v7308_v52 = vpop.f32.mrb[214].mxu1  ;;  %v8097_v43 = vpack.c.bf16 %v8089_v26, %v8089_v26  ;;  %v8098_v46 = vpack.c.bf16 %v8090_v16, %v8090_v16 }
0x1030   : > { %v8103_v53 = vpack.c.bf16 %v7254_v51, %v7254_v51  ;;  %v8104_v54 = vpack.c.bf16 %v7306_v40, %v7306_v40  ;;  %v14518_v57 = vpop.f32.mrb[215].mxu0  ;;  %v14526_v58 = vpop.f32.mrb[215].mxu1  ;;  %v8091_v14 = vmul.f32 0.5, %v6998_v56  ;;  %v8092_v25 = vmul.f32 0.5, %v7050_v39  ;;  %v12899_v52 = vld [vmem:[%s18190_s28 + $0xf] ss:$0 sm:$0xff] }
0x1032   : > { %v8115_v60 = vsel %vm2286_vm2, %v8103_v53, 0  ;;  %v8161_v63 = vsel %vm2286_vm2, %v8104_v54, 0  ;;  %v12866_v53 = vld [vmem:[%s18191_s25 + $0xe] ss:$0 sm:$0xff]  ;;  %v12867_v54 = vld [vmem:[%s18191_s25 + $0xf] ss:$0 sm:$0xff] }
0x1033   : > { %14640 = vmatpush3.bf16.xpose.msra.mxu0 %v8115_v60  ;;  %14646 = vmatpush3.bf16.xpose.msra.mxu1 %v8161_v63 }
0x1034   : > { %14651 = vmatprep.subr.bf16.mxu0 %v15497_v1  ;;  %14657 = vmatprep.subr.bf16.mxu1 %v15497_v1 }
0x1035   : > { %v7357_v5 = vpop.f32.mrb[216].mxu0  ;;  %v7409_v9 = vpop.f32.mrb[216].mxu1 }
0x1036   : > { %v7358_v10 = vadd.f32 %v12894_v61, %v7357_v5  ;;  %v7410_v13 = vadd.f32 %v12895_v8, %v7409_v9  ;;  %v14533_v15 = vpop.f32.mrb[217].mxu0  ;;  %v14541_v18 = vpop.f32.mrb[217].mxu1  ;;  %v8099_v61 = vpack.c.bf16 %v8091_v14, %v8091_v14  ;;  %v8100_v8 = vpack.c.bf16 %v8092_v25, %v8092_v25 }
0x1037   : > { %v7360_v11 = vpop.f32.mrb[218].mxu0  ;;  %v7412_v7 = vpop.f32.mrb[218].mxu1  ;;  %v7102_v5 = vadd.f32 %v12866_v53, %v17191_v34  ;;  %v7154_v9 = vadd.f32 %v12867_v54, %v17193_v33  ;;  %v12924_v34 = vld [vmem:[%s18192_s27 + $0x8] ss:$0 sm:$0xff]  ;;  %v12925_v33 = vld [vmem:[%s18192_s27 + $0x9] ss:$0 sm:$0xff] }
0x1038   : > { %v8105_v24 = vpack.c.bf16 %v7358_v10, %v7358_v10  ;;  %v8106_v28 = vpack.c.bf16 %v7410_v13, %v7410_v13  ;;  %v14534_v4 = vpop.f32.mrb[219].mxu0  ;;  %v14542_v21 = vpop.f32.mrb[219].mxu1 }
0x1039   : > { %v8093_v11 = vmul.f32 0.5, %v7102_v5  ;;  %v8094_v7 = vmul.f32 0.5, %v7154_v9 }
0x103a   : > { %v8207_v30 = vsel %vm2286_vm2, %v8105_v24, 0  ;;  %v8253_v31 = vsel %vm2286_vm2, %v8106_v28, 0  ;;  %14642 = vmatmul.mubr.msk.bf16.vlgmr.msra.gmra.mrb[244].mxu0 %vm2286_vm2, %v8095_v49  ;;  %14648 = vmatmul.mubr.msk.bf16.vlgmr.msra.gmra.mrb[244].mxu1 %vm2286_vm2, %v8096_v17 }
0x103b   : > { %14652 = vmatpush3.bf16.xpose.msra.mxu0 %v8207_v30  ;;  %14658 = vmatpush3.bf16.xpose.msra.mxu1 %v8253_v31 }
0x103c   : > { %14653 = vmatprep.mubr.msk.bf16.mxu0 %vm15498_vm0, %v15497_v1  ;;  %14659 = vmatprep.mubr.msk.bf16.mxu1 %vm15498_vm0, %v15497_v1 }
0x103d   : > { %v7461_v35 = vpop.f32.mrb[220].mxu0  ;;  %v7513_v36 = vpop.f32.mrb[220].mxu1  ;;  %14663 = vmatprep.subr.bf16.mxu0 %v15497_v1  ;;  %14669 = vmatprep.subr.bf16.mxu1 %v15497_v1 }
0x103e   : > { %v7462_v37 = vadd.f32 %v12896_v19, %v7461_v35  ;;  %v7514_v38 = vadd.f32 %v12897_v20, %v7513_v36  ;;  %v14549_v47 = vpop.f32.mrb[221].mxu0  ;;  %v14557_v55 = vpop.f32.mrb[221].mxu1  ;;  %v8101_v19 = vpack.c.bf16 %v8093_v11, %v8093_v11  ;;  %v8102_v20 = vpack.c.bf16 %v8094_v7, %v8094_v7 }
0x103f   : > { %v7464_v27 = vpop.f32.mrb[222].mxu0  ;;  %v7516_v42 = vpop.f32.mrb[222].mxu1 }
0x1040   : > { %v8107_v51 = vpack.c.bf16 %v7462_v37, %v7462_v37  ;;  %v8108_v40 = vpack.c.bf16 %v7514_v38, %v7514_v38  ;;  %v14550_v41 = vpop.f32.mrb[223].mxu0  ;;  %v14558_v44 = vpop.f32.mrb[223].mxu1 }
0x1042   : > { %v8299_v45 = vsel %vm2286_vm2, %v8107_v51, 0  ;;  %v8345_v12 = vsel %vm2286_vm2, %v8108_v40, 0  ;;  %14654 = vmatmul.mubr.msk.bf16.vlgmr.msra.gmra.mrb[248].mxu0 %vm2286_vm2, %v8097_v43  ;;  %14660 = vmatmul.mubr.msk.bf16.vlgmr.msra.gmra.mrb[248].mxu1 %vm2286_vm2, %v8098_v46 }
0x1043   : > { %14664 = vmatpush3.bf16.xpose.msra.mxu0 %v8299_v45  ;;  %14670 = vmatpush3.bf16.xpose.msra.mxu1 %v8345_v12 }
0x1044   : > { %14665 = vmatprep.mubr.msk.bf16.mxu0 %vm15498_vm0, %v15497_v1  ;;  %14671 = vmatprep.mubr.msk.bf16.mxu1 %vm15498_vm0, %v15497_v1 }
0x1045   : > { %v7565_v57 = vpop.f32.mrb[224].mxu0  ;;  %v7617_v58 = vpop.f32.mrb[224].mxu1  ;;  %14675 = vmatprep.subr.bf16.mxu0 %v15497_v1  ;;  %14681 = vmatprep.subr.bf16.mxu1 %v15497_v1 }
0x1046   : > { %v7566_v60 = vadd.f32 %v12898_v6, %v7565_v57  ;;  %v7618_v63 = vadd.f32 %v12899_v52, %v7617_v58  ;;  %v14565_v0 = vpop.f32.mrb[225].mxu0  ;;  %v14573_v3 = vpop.f32.mrb[225].mxu1 }
0x1047   : > { %v7568_v2 = vpop.f32.mrb[226].mxu0  ;;  %v7620_v62 = vpop.f32.mrb[226].mxu1 }
0x1048   : > { %v8109_v10 = vpack.c.bf16 %v7566_v60, %v7566_v60  ;;  %v8110_v13 = vpack.c.bf16 %v7618_v63, %v7618_v63  ;;  %v14566_v15 = vpop.f32.mrb[227].mxu0  ;;  %v14574_v18 = vpop.f32.mrb[227].mxu1 }
0x104a   : > { %v8391_v49 = vsel %vm2286_vm2, %v8109_v10, 0  ;;  %v8437_v17 = vsel %vm2286_vm2, %v8110_v13, 0  ;;  %14666 = vmatmul.mubr.msk.bf16.vlgmr.msra.gmra.mrb[252].mxu0 %vm2286_vm2, %v8099_v61  ;;  %14672 = vmatmul.mubr.msk.bf16.vlgmr.msra.gmra.mrb[252].mxu1 %vm2286_vm2, %v8100_v8 }
0x104b   : > { %14676 = vmatpush3.bf16.xpose.msra.mxu0 %v8391_v49  ;;  %14682 = vmatpush3.bf16.xpose.msra.mxu1 %v8437_v17 }
0x104c   : > { %14677 = vmatprep.mubr.msk.bf16.mxu0 %vm15498_vm0, %v15497_v1  ;;  %14683 = vmatprep.mubr.msk.bf16.mxu1 %vm15498_vm0, %v15497_v1 }
0x104d   : > { %v7717_v22 = vpop.f32.mrb[228].mxu0  ;;  %v7769_v23 = vpop.f32.mrb[228].mxu1  ;;  %14687 = vmatprep.subr.bf16.mxu0 %v15497_v1  ;;  %14693 = vmatprep.subr.bf16.mxu1 %v15497_v1 }
0x104e   : > { %v7718_v24 = vadd.f32 %v12924_v34, %v7717_v22  ;;  %v7770_v28 = vadd.f32 %v12925_v33, %v7769_v23  ;;  %v14581_v4 = vpop.f32.mrb[229].mxu0  ;;  %v14589_v21 = vpop.f32.mrb[229].mxu1 }
0x104f   : > { %v7720_v30 = vpop.f32.mrb[230].mxu0  ;;  %v7772_v31 = vpop.f32.mrb[230].mxu1 }
0x1050   : > { %v8575_v26 = vpack.c.bf16 %v7718_v24, %v7718_v24  ;;  %v8576_v16 = vpack.c.bf16 %v7770_v28, %v7770_v28  ;;  %v14582_v50 = vpop.f32.mrb[231].mxu0  ;;  %v14590_v32 = vpop.f32.mrb[231].mxu1 }
0x1052   : > { %v8587_v35 = vsel %vm2763_vm3, %v8575_v26, 0  ;;  %v8633_v36 = vsel %vm2763_vm3, %v8576_v16, 0  ;;  %14678 = vmatmul.mubr.msk.bf16.vlgmr.msra.gmra.mrb[0].mxu0 %vm2286_vm2, %v8101_v19  ;;  %14684 = vmatmul.mubr.msk.bf16.vlgmr.msra.gmra.mrb[0].mxu1 %vm2286_vm2, %v8102_v20 }
0x1053   : > { %14688 = vmatpush3.bf16.msra.mxu0 %v8587_v35  ;;  %14694 = vmatpush3.bf16.msra.mxu1 %v8633_v36 }
0x1054   : > { %14689 = vmatprep.mubr.msk.bf16.mxu0 %vm15498_vm0, %v15497_v1  ;;  %14695 = vmatprep.mubr.msk.bf16.mxu1 %vm15498_vm0, %v15497_v1 }
0x1055   : > { %v17297_v37 = vpop.f32.mrb[232].mxu0  ;;  %v17299_v38 = vpop.f32.mrb[232].mxu1  ;;  %14699 = vmatprep.subr.bf16.mxu0 %v15497_v1  ;;  %14705 = vmatprep.subr.bf16.mxu1 %v15497_v1 }
0x1056   : > { %v14597_v47 = vpop.f32.mrb[233].mxu0  ;;  %v14605_v55 = vpop.f32.mrb[233].mxu1 }
0x1057   : > { %v7824_v56 = vpop.f32.mrb[234].mxu0  ;;  %v7876_v39 = vpop.f32.mrb[234].mxu1 }
0x1058   : > { %v14598_v27 = vpop.f32.mrb[235].mxu0  ;;  %v14606_v42 = vpop.f32.mrb[235].mxu1 }
0x105d   : > { %v17303_v43 = vpop.f32.mrb[236].mxu0  ;;  %v17305_v46 = vpop.f32.mrb[236].mxu1 }
0x105e   : > { %v14613_v51 = vpop.f32.mrb[237].mxu0  ;;  %v14621_v40 = vpop.f32.mrb[237].mxu1 }
0x105f   : > { %v7928_v41 = vpop.f32.mrb[238].mxu0  ;;  %v7980_v44 = vpop.f32.mrb[238].mxu1 }
0x1060   : > { %v14614_v45 = vpop.f32.mrb[239].mxu0  ;;  %v14622_v12 = vpop.f32.mrb[239].mxu1 }
0x1065   : > { %v17307_v14 = vpop.f32.mrb[240].mxu0  ;;  %v17309_v25 = vpop.f32.mrb[240].mxu1 }
0x1066   : > { %v14629_v6 = vpop.f32.mrb[241].mxu0  ;;  %v14637_v52 = vpop.f32.mrb[241].mxu1 }
0x1067   : > { %v8032_v53 = vpop.f32.mrb[242].mxu0  ;;  %v8084_v54 = vpop.f32.mrb[242].mxu1 }
0x1068   : > { %v14630_v57 = vpop.f32.mrb[243].mxu0  ;;  %v14638_v58 = vpop.f32.mrb[243].mxu1 }
0x110d   : > { %v8151_v60 = vpop.f32.mrb[244].mxu0  ;;  %v8197_v63 = vpop.f32.mrb[244].mxu1 }
0x110e   : > { %v14643_v0 = vpop.f32.mrb[245].mxu0  ;;  %v14649_v3 = vpop.f32.mrb[245].mxu1  ;;  %v8482_v61 = vsel %vm2655_vm4, %v8197_v63, -inf  ;;  %v8479_v8 = vsel %vm2655_vm4, %v8151_v60, -inf }
0x110f   : > { %8483 = vmax.xlane.f32.xlu1 %v8482_v61  ;;  %v8200_v2 = vpop.f32.mrb[246].mxu1  ;;  %8480 = vmax.xlane.f32.xlu0 %v8479_v8  ;;  %v8154_v62 = vpop.f32.mrb[246].mxu0 }
0x1110   : > { %v14644_v5 = vpop.f32.mrb[247].mxu0  ;;  %v14650_v9 = vpop.f32.mrb[247].mxu1 }
0x1115   : > { %v8243_v10 = vpop.f32.mrb[248].mxu0  ;;  %v8289_v13 = vpop.f32.mrb[248].mxu1 }
0x1116   : > { %v14655_v15 = vpop.f32.mrb[249].mxu0  ;;  %v14661_v18 = vpop.f32.mrb[249].mxu1  ;;  %v8488_v49 = vsel %vm2655_vm4, %v8289_v13, -inf  ;;  %v8485_v17 = vsel %vm2655_vm4, %v8243_v10, -inf }
0x1117   : > { %8489 = vmax.xlane.f32.xlu1 %v8488_v49  ;;  %v8292_v34 = vpop.f32.mrb[250].mxu1  ;;  %8486 = vmax.xlane.f32.xlu0 %v8485_v17  ;;  %v8246_v33 = vpop.f32.mrb[250].mxu0 }
0x1118   : > { %v14656_v11 = vpop.f32.mrb[251].mxu0  ;;  %v14662_v7 = vpop.f32.mrb[251].mxu1 }
0x111d   : > { %v8335_v22 = vpop.f32.mrb[252].mxu0  ;;  %v8381_v23 = vpop.f32.mrb[252].mxu1 }
0x111e   : > { %v14667_v24 = vpop.f32.mrb[253].mxu0  ;;  %v14673_v28 = vpop.f32.mrb[253].mxu1  ;;  %v8494_v4 = vsel %vm2655_vm4, %v8381_v23, -inf  ;;  %v8491_v21 = vsel %vm2655_vm4, %v8335_v22, -inf }
0x111f   : > { %8495 = vmax.xlane.f32.xlu1 %v8494_v4  ;;  %v8384_v30 = vpop.f32.mrb[254].mxu1  ;;  %8492 = vmax.xlane.f32.xlu0 %v8491_v21  ;;  %v8338_v31 = vpop.f32.mrb[254].mxu0 }
0x1120   : > { %v14668_v19 = vpop.f32.mrb[255].mxu0  ;;  %v14674_v20 = vpop.f32.mrb[255].mxu1 }
0x1121   : > { %v12927_v19 = vld [vmem:[%s18192_s27 + $0xb] ss:$0 sm:$0xff]  ;;  %v12926_v20 = vld [vmem:[%s18192_s27 + $0xa] ss:$0 sm:$0xff] }
0x1125   : > { %v8427_v26 = vpop.f32.mrb[0].mxu0  ;;  %v8473_v16 = vpop.f32.mrb[0].mxu1 }
0x1126   : > { %v14679_v50 = vpop.f32.mrb[1].mxu0  ;;  %v14685_v32 = vpop.f32.mrb[1].mxu1  ;;  %v8500_v35 = vsel %vm2655_vm4, %v8473_v16, -inf  ;;  %v8497_v36 = vsel %vm2655_vm4, %v8427_v26, -inf }
0x1127   : > { %8501 = vmax.xlane.f32.xlu1 %v8500_v35  ;;  %v8476_v47 = vpop.f32.mrb[2].mxu1  ;;  %8498 = vmax.xlane.f32.xlu0 %v8497_v36  ;;  %v8430_v55 = vpop.f32.mrb[2].mxu0  ;;  %v7822_v50 = vadd.f32 %v12926_v20, %v17297_v37 }
0x1128   : > { %v14680_v56 = vpop.f32.mrb[3].mxu0  ;;  %v14686_v39 = vpop.f32.mrb[3].mxu1 }
0x1129   : > { %v8577_v56 = vpack.c.bf16 %v7822_v50, %v7822_v50  ;;  %v12929_v39 = vld [vmem:[%s18192_s27 + $0xd] ss:$0 sm:$0xff] }
0x119c   : > { %v8484_v27 = vpop.xlane.xlu1 %8483  ;;  %v8481_v42 = vpop.xlane.xlu0 %8480 }
0x119d   : > { %v8504_v51 = vsub.f32 %v8197_v63, %v8484_v27  ;;  %v8503_v40 = vsub.f32 %v8151_v60, %v8481_v42 }
0x119f   : > { %v8513_v41 = vmul.f32 1.442695, %v8504_v51  ;;  %v8511_v44 = vmul.f32 1.442695, %v8503_v40  ;;  %v7978_v40 = vadd.f32 %v12929_v39, %v17305_v46 }
0x11a1   : > { %15416 = vpow2.f32 %v8513_v41 }
0x11a2   : > { %15418 = vpow2.f32 %v8511_v44  ;;  %v8679_v44 = vsel %vm2763_vm3, %v8577_v56, 0 }
0x11a4   : > { %v8490_v45 = vpop.xlane.xlu1 %8489  ;;  %v8487_v12 = vpop.xlane.xlu0 %8486 }
0x11a5   : > { %v8506_v6 = vsub.f32 %v8289_v13, %v8490_v45  ;;  %v8505_v52 = vsub.f32 %v8243_v10, %v8487_v12 }
0x11a7   : > { %v8517_v53 = vmul.f32 1.442695, %v8506_v6  ;;  %v8515_v54 = vmul.f32 1.442695, %v8505_v52  ;;  %v8580_v52 = vpack.c.bf16 %v7978_v40, %v7978_v40 }
0x11a9   : > { %15420 = vpow2.f32 %v8517_v53 }
0x11aa   : > { %15422 = vpow2.f32 %v8515_v54  ;;  %v12931_v54 = vld [vmem:[%s18192_s27 + $0xf] ss:$0 sm:$0xff] }
0x11ab   : > { %v15417_v57 = vpop.eup %15416 }
0x11ac   : > { %v15419_v58 = vpop.eup %15418  ;;  %v8496_v0 = vpop.xlane.xlu1 %8495  ;;  %v8530_v61 = vsel %vm2655_vm4, %v15417_v57, 0.0 }
0x11ad   : > { %v8493_v3 = vpop.xlane.xlu0 %8492  ;;  %v8508_v63 = vsub.f32 %v8381_v23, %v8496_v0  ;;  %8531 = vadd.xlane.f32.xlu1 %v8530_v61  ;;  %v8527_v8 = vsel %vm2655_vm4, %v15419_v58, 0.0  ;;  %v8817_v61 = vsel %vm2763_vm3, %v8580_v52, 0 }
0x11ae   : > { %v8507_v60 = vsub.f32 %v8335_v22, %v8493_v3  ;;  %8528 = vadd.xlane.f32.xlu0 %v8527_v8 }
0x11af   : > { %v8521_v2 = vmul.f32 1.442695, %v8508_v63  ;;  %v8082_v63 = vadd.f32 %v12931_v54, %v17309_v25  ;;  %v12857_v54 = vld [vmem:[%s18193_s7 + $0x1c] sm:$0x3] }
0x11b0   : > { %v8519_v62 = vmul.f32 1.442695, %v8507_v60 }
0x11b1   : > { %15424 = vpow2.f32 %v8521_v2 }
0x11b2   : > { %15426 = vpow2.f32 %v8519_v62 }
0x11b3   : > { %v17321_v5 = vpop.eup %15420 }
0x11b4   : > { %v17323_v9 = vpop.eup %15422  ;;  %v8502_v10 = vpop.xlane.xlu1 %8501  ;;  %v8536_v15 = vsel %vm2655_vm4, %v17321_v5, 0.0 }
0x11b5   : > { %v8499_v13 = vpop.xlane.xlu0 %8498  ;;  %v8510_v18 = vsub.f32 %v8473_v16, %v8502_v10  ;;  %8537 = vadd.xlane.f32.xlu1 %v8536_v15  ;;  %v8533_v17 = vsel %vm2655_vm4, %v17323_v9, 0.0 }
0x11b6   : > { %v8509_v49 = vsub.f32 %v8427_v26, %v8499_v13  ;;  %8534 = vadd.xlane.f32.xlu0 %v8533_v17  ;;  %v7874_v26 = vadd.f32 %v12927_v19, %v17299_v38  ;;  %v12928_v38 = vld [vmem:[%s18192_s27 + $0xc] ss:$0 sm:$0xff] }
0x11b7   : > { %v8525_v34 = vmul.f32 1.442695, %v8510_v18  ;;  %v7926_v45 = vadd.f32 %v12928_v38, %v17303_v43  ;;  %v12855_v38 = vld [vmem:[%s18193_s7 + $0x18] sm:$0x3] }
0x11b8   : > { %v8523_v33 = vmul.f32 1.442695, %v8509_v49  ;;  %v8578_v47 = vpack.c.bf16 %v7874_v26, %v7874_v26 }
0x11b9   : > { %15428 = vpow2.f32 %v8525_v34  ;;  %v8579_v53 = vpack.c.bf16 %v7926_v45, %v7926_v45 }
0x11ba   : > { %15430 = vpow2.f32 %v8523_v33  ;;  %v8725_v37 = vsel %vm2763_vm3, %v8578_v47, 0  ;;  %v12852_v33 = vld [vmem:[%s18193_s7 + $0x12] sm:$0x3] }
0x11bb   : > { %v17329_v11 = vpop.eup %15424  ;;  %v8771_v8 = vsel %vm2763_vm3, %v8579_v53, 0  ;;  %v12858_v53 = vld [vmem:[%s18193_s7 + $0x1e] sm:$0x3] }
0x11bc   : > { %v17331_v7 = vpop.eup %15426  ;;  %v8542_v22 = vsel %vm2655_vm4, %v17329_v11, 0.0 }
0x11bd   : > { %8543 = vadd.xlane.f32.xlu1 %v8542_v22  ;;  %v8539_v23 = vsel %vm2655_vm4, %v17331_v7, 0.0  ;;  %v12851_v22 = vld [vmem:[%s18193_s7 + $0x10] sm:$0x3] }
0x11be   : > { %8540 = vadd.xlane.f32.xlu0 %v8539_v23 }
0x11c3   : > { %v17337_v24 = vpop.eup %15428 }
0x11c4   : > { %v17339_v28 = vpop.eup %15430  ;;  %v8548_v4 = vsel %vm2655_vm4, %v17337_v24, 0.0 }
0x11c5   : > { %8549 = vadd.xlane.f32.xlu1 %v8548_v4  ;;  %v8545_v21 = vsel %vm2655_vm4, %v17339_v28, 0.0 }
0x11c6   : > { %8546 = vadd.xlane.f32.xlu0 %v8545_v21  ;;  %v9009_v21 = vsel %vm2763_vm3, %v12852_v33, 0 }
0x123a   : > { %v8532_v30 = vpop.xlane.xlu1 %8531 }
0x123b   : > { %15432 = vrcp.f32 %v8532_v30  ;;  %v8529_v31 = vpop.xlane.xlu0 %8528 }
0x123c   : > { %15434 = vrcp.f32 %v8529_v31  ;;  %v8963_v31 = vsel %vm2763_vm3, %v12851_v22, 0 }
0x1242   : > { %v8538_v16 = vpop.xlane.xlu1 %8537 }
0x1243   : > { %15436 = vrcp.f32 %v8538_v16  ;;  %v8535_v32 = vpop.xlane.xlu0 %8534 }
0x1244   : > { %15438 = vrcp.f32 %v8535_v32 }
0x1245   : > { %v15433_v35 = vpop.eup %15432 }
0x1246   : > { %v15435_v36 = vpop.eup %15434  ;;  %v8560_v55 = vmul.f32 %v15433_v35, %v15417_v57 }
0x1247   : > { %v8559_v27 = vmul.f32 %v15435_v36, %v15419_v58  ;;  %v12930_v58 = vld [vmem:[%s18192_s27 + $0xe] ss:$0 sm:$0xff] }
0x1248   : > { %v8568_v42 = vpack.c.bf16 %v8560_v55, %v8560_v55  ;;  %v8030_v2 = vadd.f32 %v12930_v58, %v17307_v14 }
0x1249   : > { %v8567_v51 = vpack.c.bf16 %v8559_v27, %v8559_v27  ;;  %v12856_v27 = vld [vmem:[%s18193_s7 + $0x1a] sm:$0x3] }
0x124a   : > { %14696 = vmatmul.mubr.msk.bf16.vlgmr.msra.gmra.mrb[4].mxu1 %vm2286_vm2, %v8568_v42  ;;  %v8544_v41 = vpop.xlane.xlu1 %8543  ;;  %v8581_v10 = vpack.c.bf16 %v8030_v2, %v8030_v2  ;;  %v9239_v2 = vsel %vm2763_vm3, %v12857_v54, 0 }
0x124b   : > { %14706 = vmatpush3.bf16.msra.mxu1 %v8725_v37  ;;  %15440 = vrcp.f32 %v8544_v41  ;;  %14690 = vmatmul.mubr.msk.bf16.vlgmr.msra.gmra.mrb[4].mxu0 %vm2286_vm2, %v8567_v51  ;;  %v8541_v12 = vpop.xlane.xlu0 %8540  ;;  %v9193_v41 = vsel %vm2763_vm3, %v12856_v27, 0 }
0x124c   : > { %14700 = vmatpush3.bf16.msra.mxu0 %v8679_v44  ;;  %15442 = vrcp.f32 %v8541_v12  ;;  %14701 = vmatprep.mubr.msk.bf16.mxu0 %vm15498_vm0, %v15497_v1  ;;  %v8863_v17 = vsel %vm2763_vm3, %v8581_v10, 0 }
0x124d   : > { %v15437_v6 = vpop.eup %15436  ;;  %14707 = vmatprep.mubr.msk.bf16.mxu1 %vm15498_vm0, %v15497_v1  ;;  %14711 = vmatprep.subr.bf16.mxu0 %v15497_v1 }
0x124e   : > { %v15439_v46 = vpop.eup %15438  ;;  %v8562_v43 = vmul.f32 %v15437_v6, %v17321_v5  ;;  %14717 = vmatprep.subr.bf16.mxu1 %v15497_v1  ;;  %v9147_v6 = vsel %vm2763_vm3, %v12855_v38, 0 }
0x124f   : > { %v8561_v57 = vmul.f32 %v15439_v46, %v17323_v9  ;;  %v8582_v9 = vpack.c.bf16 %v8082_v63, %v8082_v63 }
0x1250   : > { %v8570_v0 = vpack.c.bf16 %v8562_v43, %v8562_v43 }
0x1251   : > { %v8569_v3 = vpack.c.bf16 %v8561_v57, %v8561_v57  ;;  %v8909_v49 = vsel %vm2763_vm3, %v8582_v9, 0 }
0x1252   : > { %14708 = vmatmul.mubr.msk.bf16.vlgmr.msra.gmra.mrb[8].mxu1 %vm2286_vm2, %v8570_v0  ;;  %v8550_v60 = vpop.xlane.xlu1 %8549 }
0x1253   : > { %14718 = vmatpush3.bf16.msra.mxu1 %v8817_v61  ;;  %15444 = vrcp.f32 %v8550_v60  ;;  %14702 = vmatmul.mubr.msk.bf16.vlgmr.msra.gmra.mrb[8].mxu0 %vm2286_vm2, %v8569_v3  ;;  %v8547_v62 = vpop.xlane.xlu0 %8546  ;;  %v9285_v61 = vsel %vm2763_vm3, %v12858_v53, 0 }
0x1254   : > { %14712 = vmatpush3.bf16.msra.mxu0 %v8771_v8  ;;  %15446 = vrcp.f32 %v8547_v62  ;;  %14713 = vmatprep.mubr.msk.bf16.mxu0 %vm15498_vm0, %v15497_v1 }
0x1255   : > { %v15441_v5 = vpop.eup %15440  ;;  %14719 = vmatprep.mubr.msk.bf16.mxu1 %vm15498_vm0, %v15497_v1  ;;  %14723 = vmatprep.subr.bf16.mxu0 %v15497_v1 }
0x1256   : > { %v15443_v25 = vpop.eup %15442  ;;  %v8564_v14 = vmul.f32 %v15441_v5, %v17329_v11  ;;  %14729 = vmatprep.subr.bf16.mxu1 %v15497_v1 }
0x1257   : > { %v8563_v13 = vmul.f32 %v15443_v25, %v17331_v7 }
0x1258   : > { %v8572_v15 = vpack.c.bf16 %v8564_v14, %v8564_v14 }
0x1259   : > { %v8571_v18 = vpack.c.bf16 %v8563_v13, %v8563_v13 }
0x125a   : > { %14720 = vmatmul.mubr.msk.bf16.vlgmr.msra.gmra.mrb[12].mxu1 %vm2286_vm2, %v8572_v15 }
0x125b   : > { %14714 = vmatmul.mubr.msk.bf16.vlgmr.msra.gmra.mrb[12].mxu0 %vm2286_vm2, %v8571_v18  ;;  %14730 = vmatpush3.bf16.msra.mxu1 %v8909_v49 }
0x125c   : > { %14724 = vmatpush3.bf16.msra.mxu0 %v8863_v17  ;;  %14725 = vmatprep.mubr.msk.bf16.mxu0 %vm15498_vm0, %v15497_v1 }
0x125d   : > { %v15445_v34 = vpop.eup %15444  ;;  %14731 = vmatprep.mubr.msk.bf16.mxu1 %vm15498_vm0, %v15497_v1  ;;  %14735 = vmatprep.subr.bf16.mxu0 %v15497_v1 }
0x125e   : > { %v15447_v11 = vpop.eup %15446  ;;  %v8566_v7 = vmul.f32 %v15445_v34, %v17337_v24  ;;  %14741 = vmatprep.subr.bf16.mxu1 %v15497_v1  ;;  %v12854_v24 = vld [vmem:[%s18193_s7 + $0x16] sm:$0x3] }
0x125f   : > { %v8565_v23 = vmul.f32 %v15447_v11, %v17339_v28  ;;  %v12853_v28 = vld [vmem:[%s18193_s7 + $0x14] sm:$0x3]  ;;  %v9101_v50 = vsel %vm2763_vm3, %v12854_v24, 0 }
0x1260   : > { %v8574_v4 = vpack.c.bf16 %v8566_v7, %v8566_v7  ;;  %v9055_v47 = vsel %vm2763_vm3, %v12853_v28, 0 }
0x1261   : > { %v8573_v30 = vpack.c.bf16 %v8565_v23, %v8565_v23 }
0x1262   : > { %14732 = vmatmul.mubr.msk.bf16.vlgmr.msra.gmra.mrb[16].mxu1 %vm2286_vm2, %v8574_v4 }
0x1263   : > { %14726 = vmatmul.mubr.msk.bf16.vlgmr.msra.gmra.mrb[16].mxu0 %vm2286_vm2, %v8573_v30  ;;  %14742 = vmatpush3.bf16.msra.mxu1 %v9009_v21 }
0x1264   : > { %14736 = vmatpush3.bf16.msra.mxu0 %v8963_v31  ;;  %14737 = vmatprep.mubr.msk.bf16.mxu0 %vm15498_vm0, %v15497_v1 }
0x1265   : > { %14743 = vmatprep.mubr.msk.bf16.mxu1 %vm15498_vm0, %v15497_v1  ;;  %14747 = vmatprep.subr.bf16.mxu0 %v15497_v1 }
0x1266   : > { %14753 = vmatprep.subr.bf16.mxu1 %v15497_v1 }
0x131d   : > { %v8669_v19 = vpop.f32.mrb[4].mxu1 }
0x131e   : > { %v8623_v20 = vpop.f32.mrb[4].mxu0  ;;  %v8952_v26 = vpack.c.bf16 %v8669_v19, %v8669_v19  ;;  %v14697_v16 = vpop.f32.mrb[5].mxu1 }
0x131f   : > { %v8951_v32 = vpack.c.bf16 %v8623_v20, %v8623_v20  ;;  %v14691_v35 = vpop.f32.mrb[5].mxu0  ;;  %v8672_v36 = vpop.f32.mrb[6].mxu1 }
0x1320   : > { %v8626_v55 = vpop.f32.mrb[6].mxu0  ;;  %v14698_v56 = vpop.f32.mrb[7].mxu1  ;;  %14744 = vmatmul.mubr.msk.bf16.vlgmr.msra.gmra.mrb[20].mxu1 %vm2286_vm2, %v8952_v26 }
0x1321   : > { %v14692_v39 = vpop.f32.mrb[7].mxu0  ;;  %14738 = vmatmul.mubr.msk.bf16.vlgmr.msra.gmra.mrb[20].mxu0 %vm2286_vm2, %v8951_v32  ;;  %14754 = vmatpush3.bf16.msra.mxu1 %v9101_v50 }
0x1322   : > { %14748 = vmatpush3.bf16.msra.mxu0 %v9055_v47  ;;  %14749 = vmatprep.mubr.msk.bf16.mxu0 %vm15498_vm0, %v15497_v1 }
0x1323   : > { %14755 = vmatprep.mubr.msk.bf16.mxu1 %vm15498_vm0, %v15497_v1  ;;  %14759 = vmatprep.subr.bf16.mxu0 %v15497_v1 }
0x1324   : > { %14765 = vmatprep.subr.bf16.mxu1 %v15497_v1 }
0x1325   : > { %v8761_v42 = vpop.f32.mrb[8].mxu1 }
0x1326   : > { %v8715_v51 = vpop.f32.mrb[8].mxu0  ;;  %v8954_v37 = vpack.c.bf16 %v8761_v42, %v8761_v42  ;;  %v14709_v40 = vpop.f32.mrb[9].mxu1 }
0x1327   : > { %v8953_v44 = vpack.c.bf16 %v8715_v51, %v8715_v51  ;;  %v14703_v45 = vpop.f32.mrb[9].mxu0  ;;  %v8764_v12 = vpop.f32.mrb[10].mxu1 }
0x1328   : > { %v8718_v46 = vpop.f32.mrb[10].mxu0  ;;  %v14710_v52 = vpop.f32.mrb[11].mxu1  ;;  %14756 = vmatmul.mubr.msk.bf16.vlgmr.msra.gmra.mrb[24].mxu1 %vm2286_vm2, %v8954_v37 }
0x1329   : > { %v14704_v43 = vpop.f32.mrb[11].mxu0  ;;  %14750 = vmatmul.mubr.msk.bf16.vlgmr.msra.gmra.mrb[24].mxu0 %vm2286_vm2, %v8953_v44  ;;  %14766 = vmatpush3.bf16.msra.mxu1 %v9193_v41 }
0x132a   : > { %14760 = vmatpush3.bf16.msra.mxu0 %v9147_v6  ;;  %14761 = vmatprep.mubr.msk.bf16.mxu0 %vm15498_vm0, %v15497_v1 }
0x132b   : > { %14767 = vmatprep.mubr.msk.bf16.mxu1 %vm15498_vm0, %v15497_v1  ;;  %14771 = vmatprep.subr.bf16.mxu0 %v15497_v1 }
0x132c   : > { %14777 = vmatprep.subr.bf16.mxu1 %v15497_v1 }
0x132d   : > { %v8853_v57 = vpop.f32.mrb[12].mxu1 }
0x132e   : > { %v8807_v58 = vpop.f32.mrb[12].mxu0  ;;  %v8956_v0 = vpack.c.bf16 %v8853_v57, %v8853_v57  ;;  %v14721_v3 = vpop.f32.mrb[13].mxu1 }
0x132f   : > { %v8955_v63 = vpack.c.bf16 %v8807_v58, %v8807_v58  ;;  %v14715_v60 = vpop.f32.mrb[13].mxu0  ;;  %v8856_v8 = vpop.f32.mrb[14].mxu1 }
0x1330   : > { %v8810_v62 = vpop.f32.mrb[14].mxu0  ;;  %v14722_v5 = vpop.f32.mrb[15].mxu1  ;;  %14768 = vmatmul.mubr.msk.bf16.vlgmr.msra.gmra.mrb[28].mxu1 %vm2286_vm2, %v8956_v0  ;;  %v12980_v60 = vld [vmem:[%s18146_s9 + $0x1] ss:$0 sm:$0xff] }
0x1331   : > { %v14716_v25 = vpop.f32.mrb[15].mxu0  ;;  %14762 = vmatmul.mubr.msk.bf16.vlgmr.msra.gmra.mrb[28].mxu0 %vm2286_vm2, %v8955_v63  ;;  %14778 = vmatpush3.bf16.msra.mxu1 %v9285_v61 }
0x1332   : > { %14772 = vmatpush3.bf16.msra.mxu0 %v9239_v2  ;;  %14773 = vmatprep.mubr.msk.bf16.mxu0 %vm15498_vm0, %v15497_v1 }
0x1333   : > { %14779 = vmatprep.mubr.msk.bf16.mxu1 %vm15498_vm0, %v15497_v1  ;;  %14783 = vmatprep.subr.bf16.mxu0 %v15497_v1 }
0x1334   : > { %14791 = vmatprep.subr.bf16.mxu1 %v15497_v1 }
0x1335   : > { %v8945_v9 = vpop.f32.mrb[16].mxu1 }
0x1336   : > { %v8899_v14 = vpop.f32.mrb[16].mxu0  ;;  %v8958_v10 = vpack.c.bf16 %v8945_v9, %v8945_v9  ;;  %v14733_v13 = vpop.f32.mrb[17].mxu1 }
0x1337   : > { %v8957_v15 = vpack.c.bf16 %v8899_v14, %v8899_v14  ;;  %v14727_v18 = vpop.f32.mrb[17].mxu0  ;;  %v8948_v49 = vpop.f32.mrb[18].mxu1 }
0x1338   : > { %v8902_v17 = vpop.f32.mrb[18].mxu0  ;;  %v14734_v34 = vpop.f32.mrb[19].mxu1  ;;  %14780 = vmatmul.mubr.msk.bf16.vlgmr.msra.gmra.mrb[32].mxu1 %vm2286_vm2, %v8958_v10  ;;  %v15294_v49 = vld [vmem:[%s18198_s5 + $0x80] sm:$0xff]  }
0x1339   : > { %v14728_v33 = vpop.f32.mrb[19].mxu0  ;;  %14774 = vmatmul.mubr.msk.bf16.vlgmr.msra.gmra.mrb[32].mxu0 %vm2286_vm2, %v8957_v15  ;;  %14795 = vmatprep.mubr.msk.bf16.mxu1 %vm15498_vm0, %v15497_v1  ;;  %v15295_v17 = vld [vmem:[%s18198_s5 + $0x90] sm:$0xff]   ;;  %v15297_v34 = vld [vmem:[%s18198_s5 + $0x98] sm:$0xff]  }
0x133a   : > { %14787 = vmatprep.mubr.msk.bf16.mxu0 %vm15498_vm0, %v15497_v1  ;;  %14784 = vmatpush3.bf16.msra.mxu0 %v15294_v49 }
0x133b   : > { %14792 = vmatpush3.bf16.msra.mxu1 %v15295_v17  ;;  %14785 = vmatprep.subr.bf16.mxu0 %v15497_v1 }
0x133c   : > { %14793 = vmatprep.subr.bf16.mxu1 %v15497_v1 }
0x133f   : > { %14794 = vmatpush3.bf16.msra.mxu1 %v15297_v34 }
0x1340   : > { %14807 = vmatprep.subr.bf16.mxu1 %v15497_v1 }
0x13f3   : > { %v9045_v11 = vpop.f32.mrb[20].mxu1 }
0x13f4   : > { %v8999_v7 = vpop.f32.mrb[20].mxu0  ;;  %v9328_v22 = vsel %vm3505_vm5, %v9045_v11, 0.0  ;;  %v14745_v23 = vpop.f32.mrb[21].mxu1 }
0x13f5   : > { %v9327_v4 = vsel %vm3505_vm5, %v8999_v7, 0.0  ;;  %v14739_v21 = vpop.f32.mrb[21].mxu0  ;;  %v9048_v30 = vpop.f32.mrb[22].mxu1  ;;  %v12983_v23 = vld [vmem:[%s18159_s22 + $0x3] ss:$0 sm:$0xff] }
0x13f6   : > { %v9329_v31 = vadd.f32 %v9328_v22, %v9327_v4  ;;  %v9002_v24 = vpop.f32.mrb[22].mxu0  ;;  %v14746_v28 = vpop.f32.mrb[23].mxu1  ;;  %v12984_v21 = vld [vmem:[%s18160_s23 + $0x3] ss:$0 sm:$0xff] }
0x13f7   : > { %v14740_v19 = vpop.f32.mrb[23].mxu0  ;;  %v15298_v24 = vld [vmem:[%s18198_s5 + $0xa0] sm:$0xff]   ;;  %v15299_v28 = vld [vmem:[%s18198_s5 + $0xb0] sm:$0xff]  }
0x13fb   : > { %v9137_v20 = vpop.f32.mrb[24].mxu1 }
0x13fc   : > { %v9091_v26 = vpop.f32.mrb[24].mxu0  ;;  %v14757_v16 = vpop.f32.mrb[25].mxu1  ;;  %v9332_v56 = vsel %vm3505_vm5, %v9137_v20, 0.0  ;;  %v15300_v20 = vld [vmem:[%s18198_s5 + $0xa8] sm:$0xff]  }
0x13fd   : > { %v9330_v50 = vsel %vm3505_vm5, %v9091_v26, 0.0  ;;  %v14751_v32 = vpop.f32.mrb[25].mxu0  ;;  %v9140_v35 = vpop.f32.mrb[26].mxu1  ;;  %v15301_v26 = vld [vmem:[%s18198_s5 + $0xb8] sm:$0xff]   ;;  %v15302_v16 = vld [vmem:[%s18198_s5 + $0xc0] sm:$0xff]  }
0x13fe   : > { %v9331_v36 = vadd.f32 %v9330_v50, %v9329_v31  ;;  %v9094_v47 = vpop.f32.mrb[26].mxu0  ;;  %v14758_v55 = vpop.f32.mrb[27].mxu1  ;;  %v15303_v50 = vld [vmem:[%s18198_s5 + $0xd0] sm:$0xff]   ;;  %v15304_v32 = vld [vmem:[%s18198_s5 + $0xc8] sm:$0xff]   ;;  %v15305_v35 = vld [vmem:[%s18198_s5 + $0xd8] sm:$0xff]  }
0x13ff   : > { %v14752_v39 = vpop.f32.mrb[27].mxu0  ;;  %v15307_v47 = vld [vmem:[%s18198_s5 + $0xf0] sm:$0xff]   ;;  %v15308_v55 = vld [vmem:[%s18198_s5 + $0xe8] sm:$0xff]  }
0x1400   : > { %v9333_v27 = vadd.f32 %v9332_v56, %v9331_v36  ;;  %v15306_v36 = vld [vmem:[%s18198_s5 + $0xe0] sm:$0xff]   ;;  %v15309_v56 = vld [vmem:[%s18198_s5 + $0xf8] sm:$0xff]  }
0x1401   : > { %v15310_v39 = vld [vmem:[%s18148_s11 + $0x80] sm:$0xff]  }
0x1403   : > { %v9229_v38 = vpop.f32.mrb[28].mxu1 }
0x1404   : > { %v9183_v42 = vpop.f32.mrb[28].mxu0  ;;  %v14769_v51 = vpop.f32.mrb[29].mxu1  ;;  %v9336_v6 = vsel %vm3505_vm5, %v9229_v38, 0.0  ;;  %v15312_v38 = vld [vmem:[%s18148_s11 + $0x88] sm:$0xff]  }
0x1405   : > { %v9334_v37 = vsel %vm3505_vm5, %v9183_v42, 0.0  ;;  %v14763_v40 = vpop.f32.mrb[29].mxu0  ;;  %v9232_v41 = vpop.f32.mrb[30].mxu1  ;;  %v15313_v42 = vld [vmem:[%s18148_s11 + $0x98] sm:$0xff]   ;;  %v15314_v51 = vld [vmem:[%s18148_s11 + $0xa0] sm:$0xff]  }
0x1406   : > { %v9335_v44 = vadd.f32 %v9334_v37, %v9333_v27  ;;  %v9186_v45 = vpop.f32.mrb[30].mxu0  ;;  %v14770_v12 = vpop.f32.mrb[31].mxu1  ;;  %v15311_v27 = vld [vmem:[%s18148_s11 + $0x90] sm:$0xff]   ;;  %v15316_v40 = vld [vmem:[%s18148_s11 + $0xa8] sm:$0xff]   ;;  %v15317_v41 = vld [vmem:[%s18148_s11 + $0xb8] sm:$0xff]  }
0x1407   : > { %v14764_v46 = vpop.f32.mrb[31].mxu0  ;;  %v15315_v37 = vld [vmem:[%s18148_s11 + $0xb0] sm:$0xff]   ;;  %v15320_v12 = vld [vmem:[%s18148_s11 + $0xc8] sm:$0xff]  }
0x1408   : > { %v9337_v52 = vadd.f32 %v9336_v6, %v9335_v44  ;;  %v15318_v44 = vld [vmem:[%s18148_s11 + $0xc0] sm:$0xff]   ;;  %v15319_v45 = vld [vmem:[%s18148_s11 + $0xd0] sm:$0xff]   ;;  %v15321_v6 = vld [vmem:[%s18148_s11 + $0xd8] sm:$0xff]  }
0x1409   : > { %v15322_v46 = vld [vmem:[%s18148_s11 + $0xe0] sm:$0xff]  }
0x140b   : > { %v9321_v43 = vpop.f32.mrb[32].mxu1 }
0x140c   : > { %v9275_v53 = vpop.f32.mrb[32].mxu0  ;;  %v14781_v54 = vpop.f32.mrb[33].mxu1  ;;  %v9340_v8 = vsel %vm3505_vm5, %v9321_v43, 0.0  ;;  %v15324_v43 = vld [vmem:[%s18148_s11 + $0xe8] sm:$0xff]  }
0x140d   : > { %v9338_v57 = vsel %vm3505_vm5, %v9275_v53, 0.0  ;;  %v14775_v58 = vpop.f32.mrb[33].mxu0  ;;  %v9324_v0 = vpop.f32.mrb[34].mxu1  ;;  %v15325_v53 = vld [vmem:[%s18148_s11 + $0xf8] sm:$0xff]   ;;  %v15326_v54 = vld [vmem:[%s18149_s12 + $0x80] sm:$0xff]  }
0x140e   : > { %v9339_v3 = vadd.f32 %v9338_v57, %v9337_v52  ;;  %v9278_v61 = vpop.f32.mrb[34].mxu0  ;;  %v14782_v63 = vpop.f32.mrb[35].mxu1  ;;  %v15323_v52 = vld [vmem:[%s18148_s11 + $0xf0] sm:$0xff]   ;;  %v15328_v58 = vld [vmem:[%s18149_s12 + $0x88] sm:$0xff]   ;;  %v15329_v0 = vld [vmem:[%s18149_s12 + $0x98] sm:$0xff]  }
0x140f   : > { %v14776_v2 = vpop.f32.mrb[35].mxu0  ;;  %v15327_v57 = vld [vmem:[%s18149_s12 + $0x90] sm:$0xff]   ;;  %v15332_v63 = vld [vmem:[%s18149_s12 + $0xa8] sm:$0xff]  }
0x1410   : > { %v9341_v62 = vadd.f32 %v9340_v8, %v9339_v3  ;;  %v15330_v3 = vld [vmem:[%s18149_s12 + $0xa0] sm:$0xff]   ;;  %v15331_v61 = vld [vmem:[%s18149_s12 + $0xb0] sm:$0xff]  }
0x1411   : > { %v15334_v8 = vld [vmem:[%s18149_s12 + $0xc0] sm:$0xff]   ;;  %v15335_v2 = vld [vmem:[%s18149_s12 + $0xd0] sm:$0xff]  }
0x1412   : > { %v9348_v5 = vadd.f32 %v12980_v60, %v9341_v62  ;;  %v15333_v60 = vld [vmem:[%s18149_s12 + $0xb8] sm:$0xff]   ;;  %v15336_v62 = vld [vmem:[%s18149_s12 + $0xc8] sm:$0xff]  }
0x1414   : > { %v9349_v25 = vadd.f32 %v9348_v5, %v16905_v29  ;;  %v15296_v29 = vld [vmem:[%s18198_s5 + $0x88] sm:$0xff]   ;;  %v15337_v5 = vld [vmem:[%s18149_s12 + $0xd8] sm:$0xff]   ;;  %s18199_s5 = sld [smem:[#allocation13_spill]] }
0x1415   : > { %14786 = vmatpush3.bf16.msra.mxu0 %v15296_v29 }
0x1416   : > { %v9354_v9 = vsel %vm3505_vm5, %v9349_v25, 0.0  ;;  %14799 = vmatprep.subr.bf16.mxu0 %v15497_v1 }
0x1417   : > { %9355 = vadd.xlane.f32.xlu0 %v9354_v9  ;;  %v15339_v9 = vld [vmem:[%s18149_s12 + $0xf0] sm:$0xff]  }
0x141a   : > { %s732_s26 = scalar_lea.vmem %s18199_s5, %s12470_s24 }
0x14a4   : > { %v9356_v14 = vpop.xlane.xlu0 %9355 }
0x14a5   : > { %v9357_v10 = vmul.f32 0.03125, %v9356_v14  ;;  %v15340_v14 = vld [vmem:[%s18149_s12 + $0xe8] sm:$0xff]  }
0x14a7   : > { %v9358_v13 = vsub.f32 %v9349_v25, %v9357_v10  ;;  %v15338_v25 = vld [vmem:[%s18149_s12 + $0xe0] sm:$0xff]   ;;  %v15341_v10 = vld [vmem:[%s18149_s12 + $0xf8] sm:$0xff]  }
0x14a9   : > { %v9359_v15 = vmul.f32 %v9358_v13, %v9358_v13 }
0x14ab   : > { %v9360_v18 = vsel %vm3505_vm5, %v9359_v15, 0.0 }
0x14ac   : > { %9361 = vadd.xlane.f32.xlu1 %v9360_v18 }
0x1539   : > { %v9362_v33 = vpop.xlane.xlu1 %9361 }
0x153a   : > { %v9363_v11 = vmul.f32 0.03125, %v9362_v33 }
0x153c   : > { %v9364_v7 = vadd.f32 1e-05, %v9363_v11 }
0x153e   : > { %15448 = vrsqrt.f32 %v9364_v7 }
0x1548   : > { %v15449_v22 = vpop.eup %15448 }
0x1549   : > { %v9366_v4 = vmul.f32 %v15449_v22, %v9358_v13 }
0x154b   : > { %v9373_v30 = vmul.f32 %v12983_v23, %v9366_v4 }
0x154d   : > { %v17511_v31 = vadd.f32 %v12984_v21, %v9373_v30 }
0x154f   : > { %v9518_v19 = vpack.c.bf16 %v17511_v31, %v17511_v31 }
0x1551   : > { %14788 = vmatmul.mubr.msk.bf16.vlgmr.msra.gmra.mrb[36].mxu0 %vm926_vm1, %v9518_v19  ;;  %14796 = vmatmul.mubr.msk.bf16.vlgmr.msra.gmra.mrb[36].mxu1 %vm926_vm1, %v9518_v19 }
0x1552   : > { %14800 = vmatpush3.bf16.msra.mxu0 %v15298_v24  ;;  %14808 = vmatpush3.bf16.msra.mxu1 %v15299_v28 }
0x1553   : > { %14801 = vmatprep.subr.bf16.mxu0 %v15497_v1  ;;  %14809 = vmatprep.subr.bf16.mxu1 %v15497_v1 }
0x1554   : > { %14803 = vmatprep.mubr.msk.bf16.mxu0 %vm15498_vm0, %v15497_v1  ;;  %14811 = vmatprep.mubr.msk.bf16.mxu1 %vm15498_vm0, %v15497_v1 }
0x1556   : > { %14802 = vmatpush3.bf16.msra.mxu0 %v15300_v20  ;;  %14810 = vmatpush3.bf16.msra.mxu1 %v15301_v26 }
0x1557   : > { %14815 = vmatprep.subr.bf16.mxu0 %v15497_v1  ;;  %14823 = vmatprep.subr.bf16.mxu1 %v15497_v1 }
0x1559   : > { %14804 = vmatmul.mubr.msk.bf16.vlgmr.msra.gmra.mrb[40].mxu0 %vm926_vm1, %v9518_v19  ;;  %14812 = vmatmul.mubr.msk.bf16.vlgmr.msra.gmra.mrb[40].mxu1 %vm926_vm1, %v9518_v19 }
0x155a   : > { %14816 = vmatpush3.bf16.msra.mxu0 %v15302_v16  ;;  %14824 = vmatpush3.bf16.msra.mxu1 %v15303_v50 }
0x155b   : > { %14817 = vmatprep.subr.bf16.mxu0 %v15497_v1  ;;  %14825 = vmatprep.subr.bf16.mxu1 %v15497_v1 }
0x155c   : > { %14819 = vmatprep.mubr.msk.bf16.mxu0 %vm15498_vm0, %v15497_v1  ;;  %14827 = vmatprep.mubr.msk.bf16.mxu1 %vm15498_vm0, %v15497_v1 }
0x155e   : > { %14818 = vmatpush3.bf16.msra.mxu0 %v15304_v32  ;;  %14826 = vmatpush3.bf16.msra.mxu1 %v15305_v35 }
0x155f   : > { %14831 = vmatprep.subr.bf16.mxu0 %v15497_v1  ;;  %14839 = vmatprep.subr.bf16.mxu1 %v15497_v1 }
0x1561   : > { %14820 = vmatmul.mubr.msk.bf16.vlgmr.msra.gmra.mrb[44].mxu0 %vm926_vm1, %v9518_v19  ;;  %14828 = vmatmul.mubr.msk.bf16.vlgmr.msra.gmra.mrb[44].mxu1 %vm926_vm1, %v9518_v19 }
0x1562   : > { %14832 = vmatpush3.bf16.msra.mxu0 %v15306_v36  ;;  %14840 = vmatpush3.bf16.msra.mxu1 %v15307_v47 }
0x1563   : > { %14833 = vmatprep.subr.bf16.mxu0 %v15497_v1  ;;  %14841 = vmatprep.subr.bf16.mxu1 %v15497_v1 }
0x1564   : > { %14835 = vmatprep.mubr.msk.bf16.mxu0 %vm15498_vm0, %v15497_v1  ;;  %14843 = vmatprep.mubr.msk.bf16.mxu1 %vm15498_vm0, %v15497_v1 }
0x1566   : > { %14834 = vmatpush3.bf16.msra.mxu0 %v15308_v55  ;;  %14842 = vmatpush3.bf16.msra.mxu1 %v15309_v56 }
0x1567   : > { %14847 = vmatprep.subr.bf16.mxu0 %v15497_v1  ;;  %14855 = vmatprep.subr.bf16.mxu1 %v15497_v1 }
0x1569   : > { %14836 = vmatmul.mubr.msk.bf16.vlgmr.msra.gmra.mrb[48].mxu0 %vm926_vm1, %v9518_v19  ;;  %14844 = vmatmul.mubr.msk.bf16.vlgmr.msra.gmra.mrb[48].mxu1 %vm926_vm1, %v9518_v19 }
0x156a   : > { %14848 = vmatpush3.bf16.msra.mxu0 %v15310_v39  ;;  %14856 = vmatpush3.bf16.msra.mxu1 %v15311_v27 }
0x156b   : > { %14849 = vmatprep.subr.bf16.mxu0 %v15497_v1  ;;  %14857 = vmatprep.subr.bf16.mxu1 %v15497_v1 }
0x156c   : > { %14851 = vmatprep.mubr.msk.bf16.mxu0 %vm15498_vm0, %v15497_v1  ;;  %14859 = vmatprep.mubr.msk.bf16.mxu1 %vm15498_vm0, %v15497_v1 }
0x156e   : > { %14850 = vmatpush3.bf16.msra.mxu0 %v15312_v38  ;;  %14858 = vmatpush3.bf16.msra.mxu1 %v15313_v42  ;;  %v13146_v42 = vld [vmem:[%s18151_s14 + $0x8] ss:$0 sm:$0xff] }
0x156f   : > { %14863 = vmatprep.subr.bf16.mxu0 %v15497_v1  ;;  %14871 = vmatprep.subr.bf16.mxu1 %v15497_v1 }
0x1571   : > { %14852 = vmatmul.mubr.msk.bf16.vlgmr.msra.gmra.mrb[52].mxu0 %vm926_vm1, %v16358_v59  ;;  %14860 = vmatmul.mubr.msk.bf16.vlgmr.msra.gmra.mrb[52].mxu1 %vm926_vm1, %v16358_v59 }
0x1572   : > { %14864 = vmatpush3.bf16.msra.mxu0 %v15314_v51  ;;  %14872 = vmatpush3.bf16.msra.mxu1 %v15315_v37  ;;  %v13147_v51 = vld [vmem:[%s18151_s14 + $0x9] ss:$0 sm:$0xff]  ;;  %v13114_v37 = vld [vmem:[%s18150_s13 + $0x8] ss:$0 sm:$0xff] }
0x1573   : > { %14865 = vmatprep.subr.bf16.mxu0 %v15497_v1  ;;  %14873 = vmatprep.subr.bf16.mxu1 %v15497_v1 }
0x1574   : > { %14867 = vmatprep.mubr.msk.bf16.mxu0 %vm15498_vm0, %v15497_v1  ;;  %14875 = vmatprep.mubr.msk.bf16.mxu1 %vm15498_vm0, %v15497_v1 }
0x1576   : > { %14866 = vmatpush3.bf16.msra.mxu0 %v15316_v40  ;;  %14874 = vmatpush3.bf16.msra.mxu1 %v15317_v41  ;;  %v13115_v40 = vld [vmem:[%s18150_s13 + $0x9] ss:$0 sm:$0xff] }
0x1577   : > { %14879 = vmatprep.subr.bf16.mxu0 %v15497_v1  ;;  %14887 = vmatprep.subr.bf16.mxu1 %v15497_v1 }
0x1579   : > { %14868 = vmatmul.mubr.msk.bf16.vlgmr.msra.gmra.mrb[56].mxu0 %vm926_vm1, %v16358_v59  ;;  %14876 = vmatmul.mubr.msk.bf16.vlgmr.msra.gmra.mrb[56].mxu1 %vm926_vm1, %v16358_v59 }
0x157a   : > { %14880 = vmatpush3.bf16.msra.mxu0 %v15318_v44  ;;  %14888 = vmatpush3.bf16.msra.mxu1 %v15319_v45 }
0x157b   : > { %14881 = vmatprep.subr.bf16.mxu0 %v15497_v1  ;;  %14889 = vmatprep.subr.bf16.mxu1 %v15497_v1 }
0x157c   : > { %14883 = vmatprep.mubr.msk.bf16.mxu0 %vm15498_vm0, %v15497_v1  ;;  %14891 = vmatprep.mubr.msk.bf16.mxu1 %vm15498_vm0, %v15497_v1 }
0x157e   : > { %14882 = vmatpush3.bf16.msra.mxu0 %v15320_v12  ;;  %14890 = vmatpush3.bf16.msra.mxu1 %v15321_v6 }
0x157f   : > { %14895 = vmatprep.subr.bf16.mxu0 %v15497_v1  ;;  %14903 = vmatprep.subr.bf16.mxu1 %v15497_v1 }
0x1581   : > { %14884 = vmatmul.mubr.msk.bf16.vlgmr.msra.gmra.mrb[60].mxu0 %vm926_vm1, %v16358_v59  ;;  %14892 = vmatmul.mubr.msk.bf16.vlgmr.msra.gmra.mrb[60].mxu1 %vm926_vm1, %v16358_v59 }
0x1582   : > { %14896 = vmatpush3.bf16.msra.mxu0 %v15322_v46  ;;  %14904 = vmatpush3.bf16.msra.mxu1 %v15323_v52 }
0x1583   : > { %14897 = vmatprep.subr.bf16.mxu0 %v15497_v1  ;;  %14905 = vmatprep.subr.bf16.mxu1 %v15497_v1 }
0x1584   : > { %14899 = vmatprep.mubr.msk.bf16.mxu0 %vm15498_vm0, %v15497_v1  ;;  %14907 = vmatprep.mubr.msk.bf16.mxu1 %vm15498_vm0, %v15497_v1 }
0x1586   : > { %14898 = vmatpush3.bf16.msra.mxu0 %v15324_v43  ;;  %14906 = vmatpush3.bf16.msra.mxu1 %v15325_v53 }
0x1587   : > { %14911 = vmatprep.subr.bf16.mxu0 %v15497_v1  ;;  %14919 = vmatprep.subr.bf16.mxu1 %v15497_v1 }
0x1589   : > { %14900 = vmatmul.mubr.msk.bf16.vlgmr.msra.gmra.mrb[64].mxu0 %vm926_vm1, %v16358_v59  ;;  %14908 = vmatmul.mubr.msk.bf16.vlgmr.msra.gmra.mrb[64].mxu1 %vm926_vm1, %v16358_v59 }
0x158a   : > { %14912 = vmatpush3.bf16.msra.mxu0 %v15326_v54  ;;  %14915 = vmatprep.mubr.msk.bf16.mxu0 %vm15498_vm0, %v15497_v1 }
0x158b   : > { %14913 = vmatprep.subr.bf16.mxu0 %v15497_v1  ;;  %14923 = vmatprep.mubr.msk.bf16.mxu1 %vm15498_vm0, %v15497_v1 }
0x158c   : > { %14920 = vmatpush3.bf16.msra.mxu1 %v15327_v57 }
0x158d   : > { %14921 = vmatprep.subr.bf16.mxu1 %v15497_v1 }
0x158e   : > { %14914 = vmatpush3.bf16.msra.mxu0 %v15328_v58 }
0x158f   : > { %14927 = vmatprep.subr.bf16.mxu0 %v15497_v1 }
0x1590   : > { %14922 = vmatpush3.bf16.msra.mxu1 %v15329_v0 }
0x1591   : > { %14916 = vmatmul.mubr.msk.bf16.vlgmr.msra.gmra.mrb[68].mxu0 %vm926_vm1, %v16358_v59  ;;  %14935 = vmatprep.subr.bf16.mxu1 %v15497_v1 }
0x1592   : > { %14928 = vmatpush3.bf16.msra.mxu0 %v15330_v3  ;;  %14931 = vmatprep.mubr.msk.bf16.mxu0 %vm15498_vm0, %v15497_v1 }
0x1593   : > { %14924 = vmatmul.mubr.msk.bf16.vlgmr.msra.gmra.mrb[68].mxu1 %vm926_vm1, %v16358_v59  ;;  %14929 = vmatprep.subr.bf16.mxu0 %v15497_v1 }
0x1594   : > { %14936 = vmatpush3.bf16.msra.mxu1 %v15331_v61  ;;  %14939 = vmatprep.mubr.msk.bf16.mxu1 %vm15498_vm0, %v15497_v1 }
0x1595   : > { %14937 = vmatprep.subr.bf16.mxu1 %v15497_v1 }
0x1596   : > { %14930 = vmatpush3.bf16.msra.mxu0 %v15332_v63 }
0x1597   : > { %14943 = vmatprep.subr.bf16.mxu0 %v15497_v1 }
0x1598   : > { %14938 = vmatpush3.bf16.msra.mxu1 %v15333_v60 }
0x1599   : > { %14932 = vmatmul.mubr.msk.bf16.vlgmr.msra.gmra.mrb[72].mxu0 %vm926_vm1, %v16358_v59  ;;  %14951 = vmatprep.subr.bf16.mxu1 %v15497_v1 }
0x159a   : > { %14944 = vmatpush3.bf16.msra.mxu0 %v15334_v8  ;;  %14947 = vmatprep.mubr.msk.bf16.mxu0 %vm15498_vm0, %v15497_v1 }
0x159b   : > { %14940 = vmatmul.mubr.msk.bf16.vlgmr.msra.gmra.mrb[72].mxu1 %vm926_vm1, %v16358_v59  ;;  %14945 = vmatprep.subr.bf16.mxu0 %v15497_v1 }
0x159c   : > { %14952 = vmatpush3.bf16.msra.mxu1 %v15335_v2  ;;  %14955 = vmatprep.mubr.msk.bf16.mxu1 %vm15498_vm0, %v15497_v1  ;;  %v13148_v2 = vld [vmem:[%s18151_s14 + $0xa] ss:$0 sm:$0xff] }
0x159d   : > { %14953 = vmatprep.subr.bf16.mxu1 %v15497_v1 }
0x159e   : > { %14946 = vmatpush3.bf16.msra.mxu0 %v15336_v62  ;;  %v13149_v62 = vld [vmem:[%s18151_s14 + $0xb] ss:$0 sm:$0xff] }
0x159f   : > { %14959 = vmatprep.subr.bf16.mxu0 %v15497_v1 }
0x15a0   : > { %14954 = vmatpush3.bf16.msra.mxu1 %v15337_v5  ;;  %v13116_v5 = vld [vmem:[%s18150_s13 + $0xa] ss:$0 sm:$0xff] }
0x15a1   : > { %14948 = vmatmul.mubr.msk.bf16.vlgmr.msra.gmra.mrb[76].mxu0 %vm926_vm1, %v16358_v59  ;;  %14967 = vmatprep.subr.bf16.mxu1 %v15497_v1 }
0x15a2   : > { %14963 = vmatprep.mubr.msk.bf16.mxu0 %vm15498_vm0, %v15497_v1  ;;  %14960 = vmatpush3.bf16.msra.mxu0 %v15338_v25  ;;  %v13117_v25 = vld [vmem:[%s18150_s13 + $0xb] ss:$0 sm:$0xff] }
0x15a3   : > { %14956 = vmatmul.mubr.msk.bf16.vlgmr.msra.gmra.mrb[76].mxu1 %vm926_vm1, %v16358_v59  ;;  %14961 = vmatprep.subr.bf16.mxu0 %v15497_v1 }
0x15a4   : > { %14968 = vmatpush3.bf16.msra.mxu1 %v15339_v9  ;;  %14971 = vmatprep.mubr.msk.bf16.mxu1 %vm15498_vm0, %v15497_v1 }
0x15a5   : > { %14969 = vmatprep.subr.bf16.mxu1 %v15497_v1 }
0x15a6   : > { %14962 = vmatpush3.bf16.msra.mxu0 %v15340_v14 }
0x15a7   : > { %14975 = vmatprep.subr.bf16.mxu0 %v15497_v1 }
0x15a8   : > { %14970 = vmatpush3.bf16.msra.mxu1 %v15341_v10 }
0x15a9   : > { %14981 = vmatprep.subr.bf16.mxu1 %v15497_v1  ;;  %14964 = vmatmul.mubr.msk.bf16.vlgmr.msra.gmra.mrb[80].mxu0 %vm926_vm1, %v16358_v59 }
0x15aa   : > { %14977 = vmatprep.mubr.msk.bf16.mxu0 %vm15498_vm0, %v15497_v1 }
0x15ab   : > { %14972 = vmatmul.mubr.msk.bf16.vlgmr.msra.gmra.mrb[80].mxu1 %vm926_vm1, %v16358_v59 }
0x15ac   : > { %14983 = vmatprep.mubr.msk.bf16.mxu1 %vm15498_vm0, %v15497_v1 }
0x1624   : > { %v9616_v13 = vpop.f32.mrb[36].mxu0  ;;  %v9668_v15 = vpop.f32.mrb[36].mxu1 }
0x1625   : > { %v14789_v18 = vpop.f32.mrb[37].mxu0  ;;  %v14797_v49 = vpop.f32.mrb[37].mxu1  ;;  %v9617_v52 = vadd.f32 %v13114_v37, %v9616_v13  ;;  %v9669_v43 = vadd.f32 %v13115_v40, %v9668_v15 }
0x1626   : > { %v9619_v17 = vpop.f32.mrb[38].mxu0  ;;  %v9671_v29 = vpop.f32.mrb[38].mxu1 }
0x1627   : > { %v14790_v34 = vpop.f32.mrb[39].mxu0  ;;  %v14798_v33 = vpop.f32.mrb[39].mxu1  ;;  %v10914_v60 = vmul.f32 0.5, %v9617_v52  ;;  %v10915_v8 = vmul.f32 0.5, %v9669_v43 }
0x1629   : > { %v10922_v49 = vpack.c.bf16 %v10914_v60, %v10914_v60  ;;  %v10923_v17 = vpack.c.bf16 %v10915_v8, %v10915_v8 }
0x162c   : > { %v17779_v11 = vpop.f32.mrb[40].mxu0  ;;  %v17781_v7 = vpop.f32.mrb[40].mxu1 }
0x162d   : > { %v14805_v22 = vpop.f32.mrb[41].mxu0  ;;  %v14813_v59 = vpop.f32.mrb[41].mxu1  ;;  %v9721_v33 = vadd.f32 %v13116_v5, %v17779_v11  ;;  %v13150_v11 = vld [vmem:[%s18151_s14 + $0xc] ss:$0 sm:$0xff] }
0x162e   : > { %v9723_v23 = vpop.f32.mrb[42].mxu0  ;;  %v9775_v4 = vpop.f32.mrb[42].mxu1  ;;  %v9773_v22 = vadd.f32 %v13117_v25, %v17781_v7  ;;  %v13151_v7 = vld [vmem:[%s18151_s14 + $0xd] ss:$0 sm:$0xff] }
0x162f   : > { %v14806_v21 = vpop.f32.mrb[43].mxu0  ;;  %v14814_v30 = vpop.f32.mrb[43].mxu1 }
0x1634   : > { %v17783_v24 = vpop.f32.mrb[44].mxu0  ;;  %v17785_v28 = vpop.f32.mrb[44].mxu1 }
0x1635   : > { %v14821_v19 = vpop.f32.mrb[45].mxu0  ;;  %v14829_v20 = vpop.f32.mrb[45].mxu1 }
0x1636   : > { %v9827_v26 = vpop.f32.mrb[46].mxu0  ;;  %v9879_v16 = vpop.f32.mrb[46].mxu1  ;;  %v10916_v20 = vmul.f32 0.5, %v9721_v33 }
0x1637   : > { %v14822_v50 = vpop.f32.mrb[47].mxu0  ;;  %v14830_v32 = vpop.f32.mrb[47].mxu1  ;;  %v10917_v26 = vmul.f32 0.5, %v9773_v22  ;;  %v13118_v16 = vld [vmem:[%s18150_s13 + $0xc] ss:$0 sm:$0xff] }
0x1638   : > { %v13119_v50 = vld [vmem:[%s18150_s13 + $0xd] ss:$0 sm:$0xff]  ;;  %v10924_v40 = vpack.c.bf16 %v10916_v20, %v10916_v20  ;;  %v13179_v22 = vld [vmem:[%s18152_s15 + $0x9] ss:$0 sm:$0xff] }
0x163c   : > { %v17787_v35 = vpop.f32.mrb[48].mxu0  ;;  %v17789_v36 = vpop.f32.mrb[48].mxu1 }
0x163d   : > { %v14837_v47 = vpop.f32.mrb[49].mxu0  ;;  %v14845_v55 = vpop.f32.mrb[49].mxu1 }
0x163e   : > { %v9931_v56 = vpop.f32.mrb[50].mxu0  ;;  %v9983_v39 = vpop.f32.mrb[50].mxu1 }
0x163f   : > { %v14838_v27 = vpop.f32.mrb[51].mxu0  ;;  %v14846_v38 = vpop.f32.mrb[51].mxu1 }
0x1640   : > { %v9825_v38 = vadd.f32 %v13118_v16, %v17783_v24 }
0x1642   : > { %v10918_v43 = vmul.f32 0.5, %v9825_v38 }
0x1644   : > { %v10080_v41 = vpop.f32.mrb[52].mxu0  ;;  %v10132_v44 = vpop.f32.mrb[52].mxu1  ;;  %v10926_v8 = vpack.c.bf16 %v10918_v43, %v10918_v43 }
0x1645   : > { %v10081_v45 = vadd.f32 %v13146_v42, %v10080_v41  ;;  %v10133_v12 = vadd.f32 %v13147_v51, %v10132_v44  ;;  %v14853_v6 = vpop.f32.mrb[53].mxu0  ;;  %v14861_v46 = vpop.f32.mrb[53].mxu1  ;;  %v9877_v42 = vadd.f32 %v13119_v50, %v17785_v28  ;;  %v10925_v41 = vpack.c.bf16 %v10917_v26, %v10917_v26  ;;  %v13152_v28 = vld [vmem:[%s18151_s14 + $0xe] ss:$0 sm:$0xff] }
0x1646   : > { %v10083_v53 = vpop.f32.mrb[54].mxu0  ;;  %v10135_v54 = vpop.f32.mrb[54].mxu1 }
0x1647   : > { %v10930_v57 = vpack.c.bf16 %v10081_v45, %v10081_v45  ;;  %v10931_v58 = vpack.c.bf16 %v10133_v12, %v10133_v12  ;;  %v14854_v0 = vpop.f32.mrb[55].mxu0  ;;  %v14862_v3 = vpop.f32.mrb[55].mxu1  ;;  %v10919_v24 = vmul.f32 0.5, %v9877_v42  ;;  %v13153_v53 = vld [vmem:[%s18151_s14 + $0xf] ss:$0 sm:$0xff] }
0x1648   : > { %v13120_v54 = vld [vmem:[%s18150_s13 + $0xe] ss:$0 sm:$0xff] }
0x1649   : > { %v10942_v61 = vsel %vm2286_vm2, %v10930_v57, 0  ;;  %v10988_v63 = vsel %vm2286_vm2, %v10931_v58, 0  ;;  %v13121_v57 = vld [vmem:[%s18150_s13 + $0xf] ss:$0 sm:$0xff]  ;;  %v9929_v25 = vadd.f32 %v13120_v54, %v17787_v35 }
0x164a   : > { %14976 = vmatpush3.bf16.xpose.msra.mxu0 %v10942_v61  ;;  %14982 = vmatpush3.bf16.xpose.msra.mxu1 %v10988_v63 }
0x164b   : > { %14987 = vmatprep.subr.bf16.mxu0 %v15497_v1  ;;  %14993 = vmatprep.subr.bf16.mxu1 %v15497_v1 }
0x164c   : > { %v10184_v9 = vpop.f32.mrb[56].mxu0  ;;  %v10236_v14 = vpop.f32.mrb[56].mxu1 }
0x164d   : > { %v10185_v10 = vadd.f32 %v13148_v2, %v10184_v9  ;;  %v10237_v13 = vadd.f32 %v13149_v62, %v10236_v14  ;;  %v14869_v15 = vpop.f32.mrb[57].mxu0  ;;  %v14877_v18 = vpop.f32.mrb[57].mxu1  ;;  %v10927_v2 = vpack.c.bf16 %v10919_v24, %v10919_v24  ;;  %v9981_v9 = vadd.f32 %v13121_v57, %v17789_v36 }
0x164e   : > { %v10187_v29 = vpop.f32.mrb[58].mxu0  ;;  %v10239_v34 = vpop.f32.mrb[58].mxu1 }
0x164f   : > { %v10932_v59 = vpack.c.bf16 %v10185_v10, %v10185_v10  ;;  %v10933_v23 = vpack.c.bf16 %v10237_v13, %v10237_v13  ;;  %v14870_v4 = vpop.f32.mrb[59].mxu0  ;;  %v14878_v21 = vpop.f32.mrb[59].mxu1  ;;  %v10921_v29 = vmul.f32 0.5, %v9981_v9  ;;  %v13178_v34 = vld [vmem:[%s18152_s15 + $0x8] ss:$0 sm:$0xff] }
0x1651   : > { %v11034_v30 = vsel %vm2286_vm2, %v10932_v59, 0  ;;  %v11080_v19 = vsel %vm2286_vm2, %v10933_v23, 0  ;;  %14978 = vmatmul.mubr.msk.bf16.vlgmr.msra.gmra.mrb[84].mxu0 %vm2286_vm2, %v10922_v49  ;;  %14984 = vmatmul.mubr.msk.bf16.vlgmr.msra.gmra.mrb[84].mxu1 %vm2286_vm2, %v10923_v17  ;;  %v10920_v17 = vmul.f32 0.5, %v9929_v25  ;;  %v10929_v36 = vpack.c.bf16 %v10921_v29, %v10921_v29 }
0x1652   : > { %14988 = vmatpush3.bf16.xpose.msra.mxu0 %v11034_v30  ;;  %14994 = vmatpush3.bf16.xpose.msra.mxu1 %v11080_v19 }
0x1653   : > { %14989 = vmatprep.mubr.msk.bf16.mxu0 %vm15498_vm0, %v15497_v1  ;;  %14995 = vmatprep.mubr.msk.bf16.mxu1 %vm15498_vm0, %v15497_v1  ;;  %v10928_v35 = vpack.c.bf16 %v10920_v17, %v10920_v17 }
0x1654   : > { %v10288_v32 = vpop.f32.mrb[60].mxu0  ;;  %v10340_v47 = vpop.f32.mrb[60].mxu1  ;;  %14999 = vmatprep.subr.bf16.mxu0 %v15497_v1  ;;  %15005 = vmatprep.subr.bf16.mxu1 %v15497_v1 }
0x1655   : > { %v10289_v55 = vadd.f32 %v13150_v11, %v10288_v32  ;;  %v10341_v56 = vadd.f32 %v13151_v7, %v10340_v47  ;;  %v14885_v39 = vpop.f32.mrb[61].mxu0  ;;  %v14893_v27 = vpop.f32.mrb[61].mxu1 }
0x1656   : > { %v10291_v51 = vpop.f32.mrb[62].mxu0  ;;  %v10343_v37 = vpop.f32.mrb[62].mxu1 }
0x1657   : > { %v10934_v44 = vpack.c.bf16 %v10289_v55, %v10289_v55  ;;  %v10935_v45 = vpack.c.bf16 %v10341_v56, %v10341_v56  ;;  %v14886_v12 = vpop.f32.mrb[63].mxu0  ;;  %v14894_v6 = vpop.f32.mrb[63].mxu1 }
0x1659   : > { %v11126_v46 = vsel %vm2286_vm2, %v10934_v44, 0  ;;  %v11172_v52 = vsel %vm2286_vm2, %v10935_v45, 0  ;;  %14990 = vmatmul.mubr.msk.bf16.vlgmr.msra.gmra.mrb[88].mxu0 %vm2286_vm2, %v10924_v40  ;;  %14996 = vmatmul.mubr.msk.bf16.vlgmr.msra.gmra.mrb[88].mxu1 %vm2286_vm2, %v10925_v41 }
0x165a   : > { %15000 = vmatpush3.bf16.xpose.msra.mxu0 %v11126_v46  ;;  %15006 = vmatpush3.bf16.xpose.msra.mxu1 %v11172_v52 }
0x165b   : > { %15001 = vmatprep.mubr.msk.bf16.mxu0 %vm15498_vm0, %v15497_v1  ;;  %15007 = vmatprep.mubr.msk.bf16.mxu1 %vm15498_vm0, %v15497_v1 }
0x165c   : > { %v10392_v58 = vpop.f32.mrb[64].mxu0  ;;  %v10444_v0 = vpop.f32.mrb[64].mxu1  ;;  %15011 = vmatprep.subr.bf16.mxu0 %v15497_v1  ;;  %15017 = vmatprep.subr.bf16.mxu1 %v15497_v1 }
0x165d   : > { %v10393_v3 = vadd.f32 %v13152_v28, %v10392_v58  ;;  %v10445_v61 = vadd.f32 %v13153_v53, %v10444_v0  ;;  %v14901_v63 = vpop.f32.mrb[65].mxu0  ;;  %v14909_v60 = vpop.f32.mrb[65].mxu1 }
0x165e   : > { %v10395_v62 = vpop.f32.mrb[66].mxu0  ;;  %v10447_v5 = vpop.f32.mrb[66].mxu1 }
0x165f   : > { %v10936_v14 = vpack.c.bf16 %v10393_v3, %v10393_v3  ;;  %v10937_v10 = vpack.c.bf16 %v10445_v61, %v10445_v61  ;;  %v14902_v13 = vpop.f32.mrb[67].mxu0  ;;  %v14910_v15 = vpop.f32.mrb[67].mxu1 }
0x1661   : > { %v11218_v18 = vsel %vm2286_vm2, %v10936_v14, 0  ;;  %v11264_v49 = vsel %vm2286_vm2, %v10937_v10, 0  ;;  %15002 = vmatmul.mubr.msk.bf16.vlgmr.msra.gmra.mrb[92].mxu0 %vm2286_vm2, %v10926_v8  ;;  %15008 = vmatmul.mubr.msk.bf16.vlgmr.msra.gmra.mrb[92].mxu1 %vm2286_vm2, %v10927_v2 }
0x1662   : > { %15012 = vmatpush3.bf16.xpose.msra.mxu0 %v11218_v18  ;;  %15018 = vmatpush3.bf16.xpose.msra.mxu1 %v11264_v49 }
0x1663   : > { %15013 = vmatprep.mubr.msk.bf16.mxu0 %vm15498_vm0, %v15497_v1  ;;  %15019 = vmatprep.mubr.msk.bf16.mxu1 %vm15498_vm0, %v15497_v1 }
0x1664   : > { %15023 = vmatprep.subr.bf16.mxu0 %v15497_v1  ;;  %15029 = vmatprep.subr.bf16.mxu1 %v15497_v1  ;;  %v10544_v33 = vpop.f32.mrb[68].mxu0 }
0x1665   : > { %v10545_v59 = vadd.f32 %v13178_v34, %v10544_v33  ;;  %v14917_v23 = vpop.f32.mrb[69].mxu0 }
0x1666   : > { %v10547_v4 = vpop.f32.mrb[70].mxu0  ;;  %v10596_v21 = vpop.f32.mrb[68].mxu1 }
0x1667   : > { %v11402_v30 = vpack.c.bf16 %v10545_v59, %v10545_v59  ;;  %v10597_v19 = vadd.f32 %v13179_v22, %v10596_v21  ;;  %v14918_v11 = vpop.f32.mrb[71].mxu0  ;;  %v14925_v7 = vpop.f32.mrb[69].mxu1 }
0x1668   : > { %v10599_v20 = vpop.f32.mrb[70].mxu1 }
0x1669   : > { %15014 = vmatmul.mubr.msk.bf16.vlgmr.msra.gmra.mrb[96].mxu0 %vm2286_vm2, %v10928_v35  ;;  %15020 = vmatmul.mubr.msk.bf16.vlgmr.msra.gmra.mrb[96].mxu1 %vm2286_vm2, %v10929_v36  ;;  %v11414_v26 = vand.u32 %v11402_v30, %v16651_v48  ;;  %v11403_v16 = vpack.c.bf16 %v10597_v19, %v10597_v19  ;;  %v14926_v50 = vpop.f32.mrb[71].mxu1 }
0x166a   : > { %15025 = vmatprep.mubr.msk.bf16.mxu0 %vm15498_vm0, %v15497_v1  ;;  %15031 = vmatprep.mubr.msk.bf16.mxu1 %vm15498_vm0, %v15497_v1 }
0x166b   : > { %v11460_v32 = vand.u32 %v11403_v16, %v16651_v48  ;;  %15024 = vmatpush3.bf16.msra.mxu0 %v11414_v26 }
0x166c   : > { %v17893_v47 = vpop.f32.mrb[72].mxu0  ;;  %15035 = vmatprep.subr.bf16.mxu0 %v15497_v1 }
0x166d   : > { %v14933_v55 = vpop.f32.mrb[73].mxu0  ;;  %15030 = vmatpush3.bf16.msra.mxu1 %v11460_v32 }
0x166e   : > { %v10651_v56 = vpop.f32.mrb[74].mxu0  ;;  %v17896_v39 = vpop.f32.mrb[72].mxu1  ;;  %15041 = vmatprep.subr.bf16.mxu1 %v15497_v1 }
0x166f   : > { %v14934_v27 = vpop.f32.mrb[75].mxu0  ;;  %v14941_v38 = vpop.f32.mrb[73].mxu1 }
0x1670   : > { %v10703_v42 = vpop.f32.mrb[74].mxu1 }
0x1671   : > { %v14942_v51 = vpop.f32.mrb[75].mxu1 }
0x1674   : > { %v17899_v37 = vpop.f32.mrb[76].mxu0 }
0x1675   : > { %v14949_v40 = vpop.f32.mrb[77].mxu0 }
0x1676   : > { %v10755_v41 = vpop.f32.mrb[78].mxu0  ;;  %v17901_v44 = vpop.f32.mrb[76].mxu1 }
0x1677   : > { %v14950_v45 = vpop.f32.mrb[79].mxu0  ;;  %v14957_v12 = vpop.f32.mrb[77].mxu1 }
0x1678   : > { %v10807_v6 = vpop.f32.mrb[78].mxu1 }
0x1679   : > { %v14958_v46 = vpop.f32.mrb[79].mxu1 }
0x167c   : > { %v17903_v52 = vpop.f32.mrb[80].mxu0 }
0x167d   : > { %v14965_v24 = vpop.f32.mrb[81].mxu0 }
0x167e   : > { %v17905_v43 = vpop.f32.mrb[80].mxu1  ;;  %v10859_v53 = vpop.f32.mrb[82].mxu0 }
0x167f   : > { %v14973_v28 = vpop.f32.mrb[81].mxu1  ;;  %v14966_v57 = vpop.f32.mrb[83].mxu0 }
0x1680   : > { %v10911_v54 = vpop.f32.mrb[82].mxu1 }
0x1681   : > { %v14974_v58 = vpop.f32.mrb[83].mxu1 }
0x1724   : > { %v10978_v0 = vpop.f32.mrb[84].mxu0  ;;  %v11024_v3 = vpop.f32.mrb[84].mxu1 }
0x1725   : > { %v14979_v61 = vpop.f32.mrb[85].mxu0  ;;  %v14985_v63 = vpop.f32.mrb[85].mxu1  ;;  %v11309_v60 = vsel %vm5480_vm7, %v11024_v3, -inf  ;;  %v11306_v8 = vsel %vm5480_vm7, %v10978_v0, -inf }
0x1726   : > { %11310 = vmax.xlane.f32.xlu1 %v11309_v60  ;;  %v11027_v2 = vpop.f32.mrb[86].mxu1  ;;  %11307 = vmax.xlane.f32.xlu0 %v11306_v8  ;;  %v10981_v62 = vpop.f32.mrb[86].mxu0 }
0x1727   : > { %v14980_v5 = vpop.f32.mrb[87].mxu0  ;;  %v14986_v25 = vpop.f32.mrb[87].mxu1 }
0x172c   : > { %v11070_v9 = vpop.f32.mrb[88].mxu0  ;;  %v11116_v14 = vpop.f32.mrb[88].mxu1 }
0x172d   : > { %v14991_v10 = vpop.f32.mrb[89].mxu0  ;;  %v14997_v13 = vpop.f32.mrb[89].mxu1  ;;  %v11315_v15 = vsel %vm5480_vm7, %v11116_v14, -inf  ;;  %v11312_v18 = vsel %vm5480_vm7, %v11070_v9, -inf }
0x172e   : > { %11316 = vmax.xlane.f32.xlu1 %v11315_v15  ;;  %v11119_v49 = vpop.f32.mrb[90].mxu1  ;;  %11313 = vmax.xlane.f32.xlu0 %v11312_v18  ;;  %v11073_v17 = vpop.f32.mrb[90].mxu0 }
0x172f   : > { %v14992_v29 = vpop.f32.mrb[91].mxu0  ;;  %v14998_v35 = vpop.f32.mrb[91].mxu1 }
0x1734   : > { %v11162_v36 = vpop.f32.mrb[92].mxu0  ;;  %v11208_v34 = vpop.f32.mrb[92].mxu1 }
0x1735   : > { %v15003_v33 = vpop.f32.mrb[93].mxu0  ;;  %v15009_v22 = vpop.f32.mrb[93].mxu1  ;;  %v11321_v59 = vsel %vm5480_vm7, %v11208_v34, -inf  ;;  %v11318_v23 = vsel %vm5480_vm7, %v11162_v36, -inf }
0x1736   : > { %11322 = vmax.xlane.f32.xlu1 %v11321_v59  ;;  %v11211_v4 = vpop.f32.mrb[94].mxu1  ;;  %11319 = vmax.xlane.f32.xlu0 %v11318_v23  ;;  %v11165_v21 = vpop.f32.mrb[94].mxu0 }
0x1737   : > { %v15004_v30 = vpop.f32.mrb[95].mxu0  ;;  %v15010_v19 = vpop.f32.mrb[95].mxu1  ;;  %v13181_v21 = vld [vmem:[%s18152_s15 + $0xb] ss:$0 sm:$0xff] }
0x1738   : > { %v13180_v30 = vld [vmem:[%s18152_s15 + $0xa] ss:$0 sm:$0xff]  ;;  %v10701_v19 = vadd.f32 %v13181_v21, %v17896_v39 }
0x173c   : > { %v11254_v11 = vpop.f32.mrb[96].mxu0  ;;  %v11300_v7 = vpop.f32.mrb[96].mxu1 }
0x173d   : > { %v15015_v20 = vpop.f32.mrb[97].mxu0  ;;  %v15021_v26 = vpop.f32.mrb[97].mxu1  ;;  %v11327_v16 = vsel %vm5480_vm7, %v11300_v7, -inf  ;;  %v11324_v50 = vsel %vm5480_vm7, %v11254_v11, -inf }
0x173e   : > { %11328 = vmax.xlane.f32.xlu1 %v11327_v16  ;;  %v11303_v32 = vpop.f32.mrb[98].mxu1  ;;  %11325 = vmax.xlane.f32.xlu0 %v11324_v50  ;;  %v11257_v55 = vpop.f32.mrb[98].mxu0  ;;  %v11405_v16 = vpack.c.bf16 %v10701_v19, %v10701_v19 }
0x173f   : > { %v15016_v56 = vpop.f32.mrb[99].mxu0  ;;  %v15022_v27 = vpop.f32.mrb[99].mxu1  ;;  %v13183_v55 = vld [vmem:[%s18152_s15 + $0xd] ss:$0 sm:$0xff] }
0x1740   : > { %v13182_v27 = vld [vmem:[%s18152_s15 + $0xc] ss:$0 sm:$0xff] }
0x17b3   : > { %v11311_v38 = vpop.xlane.xlu1 %11310  ;;  %v11308_v42 = vpop.xlane.xlu0 %11307 }
0x17b4   : > { %v11331_v51 = vsub.f32 %v11024_v3, %v11311_v38  ;;  %v11330_v40 = vsub.f32 %v10978_v0, %v11308_v42  ;;  %v10805_v42 = vadd.f32 %v13183_v55, %v17901_v44  ;;  %v13110_v55 = vld [vmem:[%s18153_s16 + $0x1a] sm:$0x3] }
0x17b6   : > { %v11340_v41 = vmul.f32 1.442695, %v11331_v51  ;;  %v11338_v45 = vmul.f32 1.442695, %v11330_v40  ;;  %v11407_v44 = vpack.c.bf16 %v10805_v42, %v10805_v42  ;;  %v12020_v42 = vsel %vm2763_vm3, %v13110_v55, 0 }
0x17b8   : > { %15450 = vpow2.f32 %v11340_v41  ;;  %v10753_v41 = vadd.f32 %v13182_v27, %v17899_v37 }
0x17b9   : > { %15452 = vpow2.f32 %v11338_v45 }
0x17bb   : > { %v11317_v12 = vpop.xlane.xlu1 %11316  ;;  %v11314_v6 = vpop.xlane.xlu0 %11313 }
0x17bc   : > { %v11333_v46 = vsub.f32 %v11116_v14, %v11317_v12  ;;  %v11332_v24 = vsub.f32 %v11070_v9, %v11314_v6 }
0x17be   : > { %v11344_v28 = vmul.f32 1.442695, %v11333_v46  ;;  %v11342_v53 = vmul.f32 1.442695, %v11332_v24  ;;  %v11406_v46 = vpack.c.bf16 %v10753_v41, %v10753_v41  ;;  %v13185_v24 = vld [vmem:[%s18152_s15 + $0xf] ss:$0 sm:$0xff] }
0x17c0   : > { %15454 = vpow2.f32 %v11344_v28 }
0x17c1   : > { %15456 = vpow2.f32 %v11342_v53  ;;  %v13184_v53 = vld [vmem:[%s18152_s15 + $0xe] ss:$0 sm:$0xff] }
0x17c2   : > { %v15451_v54 = vpop.eup %15450 }
0x17c3   : > { %v15453_v57 = vpop.eup %15452  ;;  %v11323_v58 = vpop.xlane.xlu1 %11322  ;;  %v11357_v63 = vsel %vm5480_vm7, %v15451_v54, 0.0 }
0x17c4   : > { %v11320_v61 = vpop.xlane.xlu0 %11319  ;;  %v11335_v3 = vsub.f32 %v11208_v34, %v11323_v58  ;;  %11358 = vadd.xlane.f32.xlu1 %v11357_v63  ;;  %v11354_v60 = vsel %vm5480_vm7, %v15453_v57, 0.0  ;;  %v11644_v58 = vand.u32 %v11407_v44, %v16651_v48 }
0x17c5   : > { %v11334_v0 = vsub.f32 %v11162_v36, %v11320_v61  ;;  %11355 = vadd.xlane.f32.xlu0 %v11354_v60  ;;  %v10909_v61 = vadd.f32 %v13185_v24, %v17905_v43 }
0x17c6   : > { %v11348_v8 = vmul.f32 1.442695, %v11335_v3  ;;  %v11598_v3 = vand.u32 %v11406_v46, %v16651_v48  ;;  %v13111_v46 = vld [vmem:[%s18153_s16 + $0x1c] sm:$0x3] }
0x17c7   : > { %v11346_v2 = vmul.f32 1.442695, %v11334_v0  ;;  %v10857_v0 = vadd.f32 %v13184_v53, %v17903_v52  ;;  %v11409_v43 = vpack.c.bf16 %v10909_v61, %v10909_v61 }
0x17c8   : > { %15458 = vpow2.f32 %v11348_v8 }
0x17c9   : > { %15460 = vpow2.f32 %v11346_v2 }
0x17ca   : > { %v17917_v62 = vpop.eup %15454 }
0x17cb   : > { %v17919_v5 = vpop.eup %15456  ;;  %v11329_v25 = vpop.xlane.xlu1 %11328  ;;  %v11363_v14 = vsel %vm5480_vm7, %v17917_v62, 0.0 }
0x17cc   : > { %v11326_v9 = vpop.xlane.xlu0 %11325  ;;  %v11337_v10 = vsub.f32 %v11300_v7, %v11329_v25  ;;  %11364 = vadd.xlane.f32.xlu1 %v11363_v14  ;;  %v11360_v15 = vsel %vm5480_vm7, %v17919_v5, 0.0  ;;  %v11736_v14 = vand.u32 %v11409_v43, %v16651_v48 }
0x17cd   : > { %v11336_v13 = vsub.f32 %v11254_v11, %v11326_v9  ;;  %11361 = vadd.xlane.f32.xlu0 %v11360_v15  ;;  %v10649_v11 = vadd.f32 %v13180_v30, %v17893_v47  ;;  %v11552_v47 = vand.u32 %v11405_v16, %v16651_v48 }
0x17ce   : > { %v11352_v18 = vmul.f32 1.442695, %v11337_v10 }
0x17cf   : > { %v11350_v49 = vmul.f32 1.442695, %v11336_v13  ;;  %v11404_v32 = vpack.c.bf16 %v10649_v11, %v10649_v11 }
0x17d0   : > { %15462 = vpow2.f32 %v11352_v18  ;;  %v13106_v18 = vld [vmem:[%s18153_s16 + $0x12] sm:$0x3] }
0x17d1   : > { %15464 = vpow2.f32 %v11350_v49  ;;  %v11506_v40 = vand.u32 %v11404_v32, %v16651_v48 }
0x17d2   : > { %v17925_v17 = vpop.eup %15458 }
0x17d3   : > { %v17927_v29 = vpop.eup %15460  ;;  %v11369_v35 = vsel %vm5480_vm7, %v17925_v17, 0.0 }
0x17d4   : > { %11370 = vadd.xlane.f32.xlu1 %v11369_v35  ;;  %v11366_v36 = vsel %vm5480_vm7, %v17927_v29, 0.0 }
0x17d5   : > { %11367 = vadd.xlane.f32.xlu0 %v11366_v36  ;;  %v11836_v36 = vsel %vm2763_vm3, %v13106_v18, 0 }
0x17da   : > { %v17933_v34 = vpop.eup %15462 }
0x17db   : > { %v17935_v33 = vpop.eup %15464  ;;  %v11375_v22 = vsel %vm5480_vm7, %v17933_v34, 0.0 }
0x17dc   : > { %11376 = vadd.xlane.f32.xlu1 %v11375_v22  ;;  %v11372_v59 = vsel %vm5480_vm7, %v17935_v33, 0.0 }
0x17dd   : > { %11373 = vadd.xlane.f32.xlu0 %v11372_v59 }
0x1851   : > { %v11359_v23 = vpop.xlane.xlu1 %11358 }
0x1852   : > { %15466 = vrcp.f32 %v11359_v23  ;;  %v11356_v4 = vpop.xlane.xlu0 %11355 }
0x1853   : > { %15468 = vrcp.f32 %v11356_v4 }
0x1859   : > { %v11365_v7 = vpop.xlane.xlu1 %11364 }
0x185a   : > { %15470 = vrcp.f32 %v11365_v7  ;;  %v11362_v20 = vpop.xlane.xlu0 %11361 }
0x185b   : > { %15472 = vrcp.f32 %v11362_v20 }
0x185c   : > { %v15467_v26 = vpop.eup %15466 }
0x185d   : > { %v15469_v50 = vpop.eup %15468  ;;  %v11387_v56 = vmul.f32 %v15467_v26, %v15451_v54 }
0x185e   : > { %v11386_v39 = vmul.f32 %v15469_v50, %v15453_v57 }
0x185f   : > { %v11395_v38 = vpack.c.bf16 %v11387_v56, %v11387_v56  ;;  %v13109_v56 = vld [vmem:[%s18153_s16 + $0x18] sm:$0x3] }
0x1860   : > { %v11394_v51 = vpack.c.bf16 %v11386_v39, %v11386_v39 }
0x1861   : > { %15032 = vmatmul.mubr.msk.bf16.vlgmr.msra.gmra.mrb[100].mxu1 %vm5585_vm8, %v11395_v38  ;;  %v11371_v45 = vpop.xlane.xlu1 %11370 }
0x1862   : > { %15042 = vmatpush3.bf16.msra.mxu1 %v11552_v47  ;;  %15474 = vrcp.f32 %v11371_v45  ;;  %15026 = vmatmul.mubr.msk.bf16.vlgmr.msra.gmra.mrb[100].mxu0 %vm5585_vm8, %v11394_v51  ;;  %v11368_v12 = vpop.xlane.xlu0 %11367  ;;  %v11974_v45 = vsel %vm2763_vm3, %v13109_v56, 0 }
0x1863   : > { %15036 = vmatpush3.bf16.msra.mxu0 %v11506_v40  ;;  %15476 = vrcp.f32 %v11368_v12  ;;  %15037 = vmatprep.mubr.msk.bf16.mxu0 %vm15498_vm0, %v15497_v1 }
0x1864   : > { %v15471_v6 = vpop.eup %15470  ;;  %15043 = vmatprep.mubr.msk.bf16.mxu1 %vm15498_vm0, %v15497_v1  ;;  %15047 = vmatprep.subr.bf16.mxu0 %v15497_v1 }
0x1865   : > { %v15473_v37 = vpop.eup %15472  ;;  %v11389_v28 = vmul.f32 %v15471_v6, %v17917_v62  ;;  %15053 = vmatprep.subr.bf16.mxu1 %v15497_v1  ;;  %v11408_v62 = vpack.c.bf16 %v10857_v0, %v10857_v0 }
0x1866   : > { %v11388_v54 = vmul.f32 %v15473_v37, %v17919_v5  ;;  %v13112_v37 = vld [vmem:[%s18153_s16 + $0x1e] sm:$0x3] }
0x1867   : > { %v11397_v57 = vpack.c.bf16 %v11389_v28, %v11389_v28  ;;  %v11690_v13 = vand.u32 %v11408_v62, %v16651_v48 }
0x1868   : > { %v11396_v63 = vpack.c.bf16 %v11388_v54, %v11388_v54 }
0x1869   : > { %15044 = vmatmul.mubr.msk.bf16.vlgmr.msra.gmra.mrb[104].mxu1 %vm5585_vm8, %v11397_v57  ;;  %v11377_v60 = vpop.xlane.xlu1 %11376  ;;  %v12112_v57 = vsel %vm2763_vm3, %v13112_v37, 0 }
0x186a   : > { %15054 = vmatpush3.bf16.msra.mxu1 %v11644_v58  ;;  %15478 = vrcp.f32 %v11377_v60  ;;  %15038 = vmatmul.mubr.msk.bf16.vlgmr.msra.gmra.mrb[104].mxu0 %vm5585_vm8, %v11396_v63  ;;  %v11374_v8 = vpop.xlane.xlu0 %11373 }
0x186b   : > { %15048 = vmatpush3.bf16.msra.mxu0 %v11598_v3  ;;  %15480 = vrcp.f32 %v11374_v8  ;;  %15049 = vmatprep.mubr.msk.bf16.mxu0 %vm15498_vm0, %v15497_v1  ;;  %v12066_v3 = vsel %vm2763_vm3, %v13111_v46, 0 }
0x186c   : > { %v15475_v2 = vpop.eup %15474  ;;  %15055 = vmatprep.mubr.msk.bf16.mxu1 %vm15498_vm0, %v15497_v1  ;;  %15059 = vmatprep.subr.bf16.mxu0 %v15497_v1 }
0x186d   : > { %v15477_v52 = vpop.eup %15476  ;;  %v11391_v5 = vmul.f32 %v15475_v2, %v17925_v17  ;;  %15065 = vmatprep.subr.bf16.mxu1 %v15497_v1  ;;  %v13105_v17 = vld [vmem:[%s18153_s16 + $0x10] sm:$0x3] }
0x186e   : > { %v11390_v25 = vmul.f32 %v15477_v52, %v17927_v29  ;;  %v11790_v59 = vsel %vm2763_vm3, %v13105_v17, 0 }
0x186f   : > { %v11399_v9 = vpack.c.bf16 %v11391_v5, %v11391_v5 }
0x1870   : > { %v11398_v10 = vpack.c.bf16 %v11390_v25, %v11390_v25 }
0x1871   : > { %15056 = vmatmul.mubr.msk.bf16.vlgmr.msra.gmra.mrb[108].mxu1 %vm5585_vm8, %v11399_v9 }
0x1872   : > { %15050 = vmatmul.mubr.msk.bf16.vlgmr.msra.gmra.mrb[108].mxu0 %vm5585_vm8, %v11398_v10  ;;  %15066 = vmatpush3.bf16.msra.mxu1 %v11736_v14 }
0x1873   : > { %15060 = vmatpush3.bf16.msra.mxu0 %v11690_v13  ;;  %15061 = vmatprep.mubr.msk.bf16.mxu0 %vm15498_vm0, %v15497_v1 }
0x1874   : > { %v15479_v15 = vpop.eup %15478  ;;  %15067 = vmatprep.mubr.msk.bf16.mxu1 %vm15498_vm0, %v15497_v1  ;;  %15071 = vmatprep.subr.bf16.mxu0 %v15497_v1 }
0x1875   : > { %v15481_v48 = vpop.eup %15480  ;;  %v11393_v49 = vmul.f32 %v15479_v15, %v17933_v34  ;;  %15077 = vmatprep.subr.bf16.mxu1 %v15497_v1  ;;  %v13108_v34 = vld [vmem:[%s18153_s16 + $0x16] sm:$0x3] }
0x1876   : > { %v11392_v29 = vmul.f32 %v15481_v48, %v17935_v33  ;;  %v13107_v33 = vld [vmem:[%s18153_s16 + $0x14] sm:$0x3]  ;;  %v11928_v19 = vsel %vm2763_vm3, %v13108_v34, 0 }
0x1877   : > { %v11401_v35 = vpack.c.bf16 %v11393_v49, %v11393_v49  ;;  %v11882_v26 = vsel %vm2763_vm3, %v13107_v33, 0 }
0x1878   : > { %v11400_v22 = vpack.c.bf16 %v11392_v29, %v11392_v29 }
0x1879   : > { %15068 = vmatmul.mubr.msk.bf16.vlgmr.msra.gmra.mrb[112].mxu1 %vm5585_vm8, %v11401_v35 }
0x187a   : > { %15062 = vmatmul.mubr.msk.bf16.vlgmr.msra.gmra.mrb[112].mxu0 %vm5585_vm8, %v11400_v22  ;;  %15078 = vmatpush3.bf16.msra.mxu1 %v11836_v36 }
0x187b   : > { %15072 = vmatpush3.bf16.msra.mxu0 %v11790_v59  ;;  %15073 = vmatprep.mubr.msk.bf16.mxu0 %vm15498_vm0, %v15497_v1 }
0x187c   : > { %15079 = vmatprep.mubr.msk.bf16.mxu1 %vm15498_vm0, %v15497_v1  ;;  %15083 = vmatprep.subr.bf16.mxu0 %v15497_v1 }
0x187d   : > { %15089 = vmatprep.subr.bf16.mxu1 %v15497_v1 }
0x1934   : > { %v11496_v23 = vpop.f32.mrb[100].mxu1 }
0x1935   : > { %v11450_v4 = vpop.f32.mrb[100].mxu0  ;;  %v11779_v21 = vpack.c.bf16 %v11496_v23, %v11496_v23  ;;  %v15033_v30 = vpop.f32.mrb[101].mxu1 }
0x1936   : > { %v11778_v11 = vpack.c.bf16 %v11450_v4, %v11450_v4  ;;  %v15027_v7 = vpop.f32.mrb[101].mxu0  ;;  %v11499_v20 = vpop.f32.mrb[102].mxu1 }
0x1937   : > { %v11453_v16 = vpop.f32.mrb[102].mxu0  ;;  %v15034_v50 = vpop.f32.mrb[103].mxu1  ;;  %15080 = vmatmul.mubr.msk.bf16.vlgmr.msra.gmra.mrb[116].mxu1 %vm2286_vm2, %v11779_v21 }
0x1938   : > { %v15028_v32 = vpop.f32.mrb[103].mxu0  ;;  %15074 = vmatmul.mubr.msk.bf16.vlgmr.msra.gmra.mrb[116].mxu0 %vm2286_vm2, %v11778_v11  ;;  %15090 = vmatpush3.bf16.msra.mxu1 %v11928_v19 }
0x1939   : > { %15084 = vmatpush3.bf16.msra.mxu0 %v11882_v26  ;;  %15085 = vmatprep.mubr.msk.bf16.mxu0 %vm15498_vm0, %v15497_v1 }
0x193a   : > { %15091 = vmatprep.mubr.msk.bf16.mxu1 %vm15498_vm0, %v15497_v1  ;;  %15095 = vmatprep.subr.bf16.mxu0 %v15497_v1 }
0x193b   : > { %15101 = vmatprep.subr.bf16.mxu1 %v15497_v1 }
0x193c   : > { %v11588_v27 = vpop.f32.mrb[104].mxu1 }
0x193d   : > { %v11542_v39 = vpop.f32.mrb[104].mxu0  ;;  %v11781_v38 = vpack.c.bf16 %v11588_v27, %v11588_v27  ;;  %v15045_v47 = vpop.f32.mrb[105].mxu1 }
0x193e   : > { %v11780_v51 = vpack.c.bf16 %v11542_v39, %v11542_v39  ;;  %v15039_v40 = vpop.f32.mrb[105].mxu0  ;;  %v11591_v41 = vpop.f32.mrb[106].mxu1 }
0x193f   : > { %v11545_v12 = vpop.f32.mrb[106].mxu0  ;;  %v15046_v6 = vpop.f32.mrb[107].mxu1  ;;  %15092 = vmatmul.mubr.msk.bf16.vlgmr.msra.gmra.mrb[120].mxu1 %vm2286_vm2, %v11781_v38 }
0x1940   : > { %v15040_v44 = vpop.f32.mrb[107].mxu0  ;;  %15086 = vmatmul.mubr.msk.bf16.vlgmr.msra.gmra.mrb[120].mxu0 %vm2286_vm2, %v11780_v51  ;;  %15102 = vmatpush3.bf16.msra.mxu1 %v12020_v42 }
0x1941   : > { %15096 = vmatpush3.bf16.msra.mxu0 %v11974_v45  ;;  %15097 = vmatprep.mubr.msk.bf16.mxu0 %vm15498_vm0, %v15497_v1 }
0x1942   : > { %15103 = vmatprep.mubr.msk.bf16.mxu1 %vm15498_vm0, %v15497_v1  ;;  %15107 = vmatprep.subr.bf16.mxu0 %v15497_v1 }
0x1943   : > { %15113 = vmatprep.subr.bf16.mxu1 %v15497_v1 }
0x1944   : > { %v11680_v24 = vpop.f32.mrb[108].mxu1 }
0x1945   : > { %v11634_v28 = vpop.f32.mrb[108].mxu0  ;;  %v11783_v53 = vpack.c.bf16 %v11680_v24, %v11680_v24  ;;  %v15057_v54 = vpop.f32.mrb[109].mxu1 }
0x1946   : > { %v11782_v58 = vpack.c.bf16 %v11634_v28, %v11634_v28  ;;  %v15051_v61 = vpop.f32.mrb[109].mxu0  ;;  %v11683_v63 = vpop.f32.mrb[110].mxu1 }
0x1947   : > { %v11637_v0 = vpop.f32.mrb[110].mxu0  ;;  %v15058_v60 = vpop.f32.mrb[111].mxu1  ;;  %15104 = vmatmul.mubr.msk.bf16.vlgmr.msra.gmra.mrb[124].mxu1 %vm2286_vm2, %v11783_v53 }
0x1948   : > { %v15052_v8 = vpop.f32.mrb[111].mxu0  ;;  %15098 = vmatmul.mubr.msk.bf16.vlgmr.msra.gmra.mrb[124].mxu0 %vm2286_vm2, %v11782_v58  ;;  %15114 = vmatpush3.bf16.msra.mxu1 %v12112_v57  ;;  %v13234_v57 = vld [vmem:[%s18154_s17 + $0x1] ss:$0 sm:$0xff] }
0x1949   : > { %15108 = vmatpush3.bf16.msra.mxu0 %v12066_v3  ;;  %15109 = vmatprep.mubr.msk.bf16.mxu0 %vm15498_vm0, %v15497_v1 }
0x194a   : > { %15115 = vmatprep.mubr.msk.bf16.mxu1 %vm15498_vm0, %v15497_v1  ;;  %15119 = vmatprep.subr.bf16.mxu0 %v15497_v1 }
0x194b   : > { %15127 = vmatprep.subr.bf16.mxu1 %v15497_v1 }
0x194c   : > { %v11772_v2 = vpop.f32.mrb[112].mxu1 }
0x194d   : > { %v11726_v43 = vpop.f32.mrb[112].mxu0  ;;  %v11785_v52 = vpack.c.bf16 %v11772_v2, %v11772_v2  ;;  %v15069_v62 = vpop.f32.mrb[113].mxu1 }
0x194e   : > { %v11784_v5 = vpack.c.bf16 %v11726_v43, %v11726_v43  ;;  %v15063_v25 = vpop.f32.mrb[113].mxu0  ;;  %v11775_v9 = vpop.f32.mrb[114].mxu1 }
0x194f   : > { %v11729_v14 = vpop.f32.mrb[114].mxu0  ;;  %v15070_v10 = vpop.f32.mrb[115].mxu1  ;;  %15116 = vmatmul.mubr.msk.bf16.vlgmr.msra.gmra.mrb[128].mxu1 %vm2286_vm2, %v11785_v52 }
0x1950   : > { %v15064_v13 = vpop.f32.mrb[115].mxu0  ;;  %15110 = vmatmul.mubr.msk.bf16.vlgmr.msra.gmra.mrb[128].mxu0 %vm2286_vm2, %v11784_v5  ;;  %15131 = vmatprep.mubr.msk.bf16.mxu1 %vm15498_vm0, %v15497_v1  ;;  %v15342_v5 = vld [vmem:[%s18155_s18 + $0x10] sm:$0xff]  }
0x1951   : > { %15123 = vmatprep.mubr.msk.bf16.mxu0 %vm15498_vm0, %v15497_v1  ;;  %15120 = vmatpush3.bf16.msra.mxu0 %v15342_v5  ;;  %v13237_v13 = vld [vmem:[%s18159_s22 + $0x4] ss:$0 sm:$0xff] }
0x1952   : > { %15121 = vmatprep.subr.bf16.mxu0 %v15497_v1 }
0x1a0a   : > { %v11872_v15 = vpop.f32.mrb[116].mxu1 }
0x1a0b   : > { %v11826_v18 = vpop.f32.mrb[116].mxu0  ;;  %v12155_v48 = vsel %vm3505_vm5, %v11872_v15, 0.0  ;;  %v15081_v49 = vpop.f32.mrb[117].mxu1 }
0x1a0c   : > { %v12154_v17 = vsel %vm3505_vm5, %v11826_v18, 0.0  ;;  %v15075_v29 = vpop.f32.mrb[117].mxu0  ;;  %v11875_v35 = vpop.f32.mrb[118].mxu1  ;;  %v13238_v18 = vld [vmem:[%s18160_s23 + $0x4] ss:$0 sm:$0xff] }
0x1a0d   : > { %v12156_v36 = vadd.f32 %v12155_v48, %v12154_v17  ;;  %v11829_v22 = vpop.f32.mrb[118].mxu0  ;;  %v15082_v59 = vpop.f32.mrb[119].mxu1  ;;  %v15344_v29 = vld [vmem:[%s18157_s20 + $0x10] sm:$0xff]   ;;  %v15345_v35 = vld [vmem:[%s18157_s20 + $0x18] sm:$0xff]  }
0x1a0e   : > { %v15076_v34 = vpop.f32.mrb[119].mxu0  ;;  %15128 = vmatpush3.bf16.msra.mxu1 %v15344_v29 }
0x1a0f   : > { %15129 = vmatprep.subr.bf16.mxu1 %v15497_v1  ;;  %v13253_v1 = vld [vmem:[%s18158_s21 + $0x1] ss:$0 sm:$0xff] }
0x1a12   : > { %v11964_v33 = vpop.f32.mrb[120].mxu1  ;;  %15130 = vmatpush3.bf16.msra.mxu1 %v15345_v35 }
0x1a13   : > { %v11918_v23 = vpop.f32.mrb[120].mxu0  ;;  %v15093_v4 = vpop.f32.mrb[121].mxu1  ;;  %v12159_v26 = vsel %vm3505_vm5, %v11964_v33, 0.0 }
0x1a14   : > { %v12157_v21 = vsel %vm3505_vm5, %v11918_v23, 0.0  ;;  %v15087_v30 = vpop.f32.mrb[121].mxu0  ;;  %v11967_v19 = vpop.f32.mrb[122].mxu1 }
0x1a15   : > { %v12158_v11 = vadd.f32 %v12157_v21, %v12156_v36  ;;  %v11921_v7 = vpop.f32.mrb[122].mxu0  ;;  %v15094_v20 = vpop.f32.mrb[123].mxu1  ;;  %v13249_v36 = vld [vmem:[%s18156_s19 + $0x1] ss:$0 sm:$0xff] }
0x1a16   : > { %v15088_v16 = vpop.f32.mrb[123].mxu0 }
0x1a17   : > { %v12160_v50 = vadd.f32 %v12159_v26, %v12158_v11 }
0x1a1a   : > { %v12056_v32 = vpop.f32.mrb[124].mxu1 }
0x1a1b   : > { %v12010_v55 = vpop.f32.mrb[124].mxu0  ;;  %v15105_v56 = vpop.f32.mrb[125].mxu1  ;;  %v12163_v40 = vsel %vm3505_vm5, %v12056_v32, 0.0 }
0x1a1c   : > { %v12161_v27 = vsel %vm3505_vm5, %v12010_v55, 0.0  ;;  %v15099_v39 = vpop.f32.mrb[125].mxu0  ;;  %v12059_v38 = vpop.f32.mrb[126].mxu1 }
0x1a1d   : > { %v12162_v47 = vadd.f32 %v12161_v27, %v12160_v50  ;;  %v12013_v42 = vpop.f32.mrb[126].mxu0  ;;  %v15106_v51 = vpop.f32.mrb[127].mxu1 }
0x1a1e   : > { %v15100_v41 = vpop.f32.mrb[127].mxu0  ;;  %v13259_v51 = vld [vmem:[%s18159_s22 + $0x5] ss:$0 sm:$0xff] }
0x1a1f   : > { %v12164_v45 = vadd.f32 %v12163_v40, %v12162_v47  ;;  %v13260_v41 = vld [vmem:[%s18160_s23 + $0x5] ss:$0 sm:$0xff] }
0x1a22   : > { %v12148_v12 = vpop.f32.mrb[128].mxu1 }
0x1a23   : > { %v12102_v6 = vpop.f32.mrb[128].mxu0  ;;  %v15117_v44 = vpop.f32.mrb[129].mxu1  ;;  %v12167_v58 = vsel %vm3505_vm5, %v12148_v12, 0.0 }
0x1a24   : > { %v12165_v37 = vsel %vm3505_vm5, %v12102_v6, 0.0  ;;  %v15111_v46 = vpop.f32.mrb[129].mxu0  ;;  %v12151_v24 = vpop.f32.mrb[130].mxu1 }
0x1a25   : > { %v12166_v28 = vadd.f32 %v12165_v37, %v12164_v45  ;;  %v12105_v53 = vpop.f32.mrb[130].mxu0  ;;  %v15118_v54 = vpop.f32.mrb[131].mxu1 }
0x1a26   : > { %v15112_v61 = vpop.f32.mrb[131].mxu0 }
0x1a27   : > { %v12168_v63 = vadd.f32 %v12167_v58, %v12166_v28  ;;  %v13263_v61 = vld [vmem:[%s18159_s22 + $0x6] ss:$0 sm:$0xff] }
0x1a29   : > { %v12175_v3 = vadd.f32 %v13234_v57, %v12168_v63 }
0x1a2b   : > { %v12176_v0 = vadd.f32 %v12175_v3, %v17511_v31  ;;  %v15343_v31 = vld [vmem:[%s18155_s18 + $0x18] sm:$0xff]   ;;  %v13264_v3 = vld [vmem:[%s18160_s23 + $0x6] ss:$0 sm:$0xff] }
0x1a2c   : > { %15122 = vmatpush3.bf16.msra.mxu0 %v15343_v31 }
0x1a2d   : > { %v12181_v60 = vsel %vm3505_vm5, %v12176_v0, 0.0 }
0x1a2e   : > { %12182 = vadd.xlane.f32.xlu0 %v12181_v60 }
0x1abb   : > { %v12183_v8 = vpop.xlane.xlu0 %12182 }
0x1abc   : > { %v12184_v2 = vmul.f32 0.03125, %v12183_v8 }
0x1abe   : > { %v12185_v43 = vsub.f32 %v12176_v0, %v12184_v2 }
0x1ac0   : > { %v12186_v52 = vmul.f32 %v12185_v43, %v12185_v43 }
0x1ac2   : > { %v12187_v62 = vsel %vm3505_vm5, %v12186_v52, 0.0 }
0x1ac3   : > { %12188 = vadd.xlane.f32.xlu1 %v12187_v62 }
0x1b50   : > { %v12189_v25 = vpop.xlane.xlu1 %12188 }
0x1b51   : > { %v12190_v9 = vmul.f32 0.03125, %v12189_v25 }
0x1b53   : > { %v12191_v14 = vadd.f32 1e-05, %v12190_v9 }
0x1b55   : > { %15482 = vrsqrt.f32 %v12191_v14 }
0x1b5f   : > { %v15483_v10 = vpop.eup %15482 }
0x1b60   : > { %v12193_v15 = vmul.f32 %v15483_v10, %v12185_v43 }
0x1b62   : > { %v12200_v48 = vmul.f32 %v13237_v13, %v12193_v15 }
0x1b64   : > { %v12207_v49 = vadd.f32 %v13238_v18, %v12200_v48 }
0x1b66   : > { %v12222_v17 = vpack.c.bf16 %v12207_v49, %v12207_v49 }
0x1b68   : > { %15124 = vmatmul.mubr.msk.bf16.vlgmr.msra.gmra.mrb[132].mxu0 %vm926_vm1, %v12222_v17 }
0x1c3b   : > { %v12278_v22 = vpop.f32.mrb[132].mxu0 }
0x1c3c   : > { %v12279_v59 = vadd.f32 %v13249_v36, %v12278_v22  ;;  %v15125_v34 = vpop.f32.mrb[133].mxu0 }
0x1c3d   : > { %v12281_v33 = vpop.f32.mrb[134].mxu0 }
0x1c3e   : > { %v12284_v23 = vmax.f32 %v12279_v59, 0.0  ;;  %v15126_v4 = vpop.f32.mrb[135].mxu0 }
0x1c40   : > { %v12285_v21 = vpack.c.bf16 %v12284_v23, %v12284_v23 }
0x1c42   : > { %15132 = vmatmul.mubr.msk.bf16.vlgmr.msra.gmra.mrb[132].mxu1 %vm926_vm1, %v12285_v21 }
0x1d15   : > { %v12341_v30 = vpop.f32.mrb[132].mxu1 }
0x1d16   : > { %v12342_v19 = vadd.f32 %v13253_v1, %v12341_v30  ;;  %v15133_v11 = vpop.f32.mrb[133].mxu1 }
0x1d17   : > { %v12344_v7 = vpop.f32.mrb[134].mxu1 }
0x1d18   : > { %v15134_v20 = vpop.f32.mrb[135].mxu1  ;;  %v12347_v26 = vadd.f32 %v12342_v19, %v12207_v49 }
0x1d1a   : > { %v12352_v16 = vsel %vm3505_vm5, %v12347_v26, 0.0 }
0x1d1b   : > { %12353 = vadd.xlane.f32.xlu0 %v12352_v16 }
0x1da8   : > { %v12354_v50 = vpop.xlane.xlu0 %12353 }
0x1da9   : > { %v12355_v32 = vmul.f32 0.03125, %v12354_v50 }
0x1dab   : > { %v12356_v55 = vsub.f32 %v12347_v26, %v12355_v32 }
0x1dad   : > { %v12357_v56 = vmul.f32 %v12356_v55, %v12356_v55 }
0x1daf   : > { %v12358_v27 = vsel %vm3505_vm5, %v12357_v56, 0.0 }
0x1db0   : > { %12359 = vadd.xlane.f32.xlu1 %v12358_v27 }
0x1e3d   : > { %v12360_v39 = vpop.xlane.xlu1 %12359 }
0x1e3e   : > { %v12361_v38 = vmul.f32 0.03125, %v12360_v39 }
0x1e40   : > { %v12362_v47 = vadd.f32 1e-05, %v12361_v38 }
0x1e42   : > { %15484 = vrsqrt.f32 %v12362_v47 }
0x1e4c   : > { %v15485_v42 = vpop.eup %15484 }
0x1e4d   : > { %v12364_v40 = vmul.f32 %v15485_v42, %v12356_v55 }
0x1e4f   : > { %v12371_v45 = vmul.f32 %v13259_v51, %v12364_v40 }
0x1e51   : > { %v12378_v12 = vadd.f32 %v13260_v41, %v12371_v45 }
0x1e53   : > { %v12383_v6 = vsel %vm3505_vm5, %v12378_v12, 0.0 }
0x1e54   : > { %12384 = vadd.xlane.f32.xlu0 %v12383_v6 }
0x1ee1   : > { %v12385_v44 = vpop.xlane.xlu0 %12384 }
0x1ee2   : > { %v12386_v37 = vmul.f32 0.03125, %v12385_v44 }
0x1ee4   : > { %v12387_v46 = vsub.f32 %v12378_v12, %v12386_v37 }
0x1ee6   : > { %v12388_v24 = vmul.f32 %v12387_v46, %v12387_v46 }
0x1ee8   : > { %v12389_v28 = vsel %vm3505_vm5, %v12388_v24, 0.0 }
0x1ee9   : > { %12390 = vadd.xlane.f32.xlu1 %v12389_v28 }
0x1f76   : > { %v12391_v53 = vpop.xlane.xlu1 %12390 }
0x1f77   : > { %v12392_v54 = vmul.f32 0.03125, %v12391_v53 }
0x1f79   : > { %v12393_v57 = vadd.f32 1e-05, %v12392_v54 }
0x1f7b   : > { %15486 = vrsqrt.f32 %v12393_v57 }
0x1f85   : > { %v15487_v58 = vpop.eup %15486 }
0x1f86   : > { %v12395_v63 = vmul.f32 %v15487_v58, %v12387_v46 }
0x1f88   : > { %v12402_v0 = vmul.f32 %v13263_v61, %v12395_v63 }
0x1f8a   : > { %v12409_v60 = vadd.f32 %v13264_v3, %v12402_v0 }
0x1f8c   : > { %12410 = vst.msk [vmem:[%s732_s26] sm:$0xf] %vm3505_vm5, %v12409_v60 }
0x1f8d PF: > { %s18200_s6 = sld [smem:[#allocation2_spill]] }
0x1f93   : > { %s34_s5 = sadd.s32 1, %s18200_s6  }
0x1f94   : > { %p31_p4 = scmp.ge.s32.totalorder %s34_s5, 4  }
0x1f96   :  { %33 = sbr.rel (!%p31_p4) target bundleno = 12 (0xc), region = 178 }

</bundles_post_ra>
